<compile_context>
chip_gen: v7x
topology: tpu7x:2x2x1
jax: 0.10.0
libtpu: 0.0.40
codegen_flags: <defaults>
</compile_context>

<pallas_src>
import functools

import jax
import jax.numpy as jnp
import numpy as np
from jax.experimental import pallas as pl
from jax.experimental.pallas import tpu as pltpu

_BN_EPS = 1e-5


def _round_up(x, m):
    return (x + m - 1) // m * m


# ------------------------------------------------------------------
# Generic fused matmul kernel (used for the 7-wide stem conv):
#   out = act(A @ W + shift), per-column shift, bf16 MXU, f32 epilogue.
# ------------------------------------------------------------------
def _matmul_bias_act_kernel(a_ref, w_ref, s_ref, o_ref, *, relu):
    acc = jnp.dot(a_ref[...], w_ref[...], preferred_element_type=jnp.float32)
    out = acc + s_ref[...]
    if relu:
        out = jnp.maximum(out, 0.0)
    o_ref[...] = out.astype(o_ref.dtype)


def fused_matmul_bias_act(a, w, shift, relu=True, out_dtype=jnp.float32):
    M, K = a.shape
    K2, N = w.shape
    assert K == K2
    a = a.astype(jnp.bfloat16)
    w = w.astype(jnp.bfloat16)
    shift = shift.reshape(1, N).astype(jnp.float32)

    # cdiv-style tiling with zero padding: bounded VMEM blocks and lane-dense
    # (multiple-of-128) output stores.  Padded rows/cols are sliced off below.
    tm = 128 if M >= 128 else _round_up(max(M, 8), 8)
    tn = 128
    Mp = _round_up(M, tm)
    Np = _round_up(N, tn)
    if Mp != M:
        a = jnp.pad(a, ((0, Mp - M), (0, 0)))
    if Np != N:
        w = jnp.pad(w, ((0, 0), (0, Np - N)))
        shift = jnp.pad(shift, ((0, 0), (0, Np - N)))

    out = pl.pallas_call(
        functools.partial(_matmul_bias_act_kernel, relu=relu),
        out_shape=jax.ShapeDtypeStruct((Mp, Np), out_dtype),
        grid=(Mp // tm, Np // tn),
        in_specs=[
            pl.BlockSpec((tm, K), lambda i, j: (i, 0)),
            pl.BlockSpec((K, tn), lambda i, j: (0, j)),
            pl.BlockSpec((1, tn), lambda i, j: (0, j)),
        ],
        out_specs=pl.BlockSpec((tm, tn), lambda i, j: (i, j)),
        compiler_params=pltpu.CompilerParams(
            dimension_semantics=("parallel", "parallel"),
            vmem_limit_bytes=32 * 1024 * 1024),
    )(a, w, shift)
    return out[:M, :N]


# ------------------------------------------------------------------
# Stem: Conv1d(k=7, stride=2, pad=3) + BN + ReLU via im2col + fused matmul.
# ------------------------------------------------------------------
def conv_stem_bn_relu(x_nlc, weight, bias, bn):
    N, L, C_in = x_nlc.shape
    C_out, _, K = weight.shape
    stride, padding = 2, 3
    L_out = (L + 2 * padding - K) // stride + 1

    x_pad = jnp.pad(x_nlc, ((0, 0), (padding, padding), (0, 0)))
    cols = [x_pad[:, k:k + stride * (L_out - 1) + 1:stride, :] for k in range(K)]
    patches = jnp.stack(cols, axis=2)                  # (N, L_out, K, C_in)
    a = patches.reshape(N * L_out, K * C_in)

    # Fold BN scale into the weight matrix; only the shift enters the kernel.
    inv = bn["gamma"] * jax.lax.rsqrt(bn["var"] + _BN_EPS)
    w_mat = (jnp.transpose(weight, (2, 1, 0)).reshape(K * C_in, C_out)
             * inv[None, :])
    shift = bn["beta"] + (bias - bn["mean"]) * inv

    out = fused_matmul_bias_act(a, w_mat, shift, relu=True)
    return out.reshape(N, L_out, C_out)


def maxpool1d_k3_s2_p1(x_nlc):
    """MaxPool1d(kernel_size=3, stride=2, padding=1), channels-last (XLA glue)."""
    N, L, C = x_nlc.shape
    neg = jnp.array(-jnp.inf, dtype=x_nlc.dtype)
    x_pad = jnp.pad(x_nlc, ((0, 0), (1, 1), (0, 0)), constant_values=neg)
    L_out = (L + 2 - 3) // 2 + 1
    cols = [x_pad[:, k:k + 2 * (L_out - 1) + 1:2, :] for k in range(3)]
    return jnp.maximum(jnp.maximum(cols[0], cols[1]), cols[2])


# ------------------------------------------------------------------
# Fused residual blocks (one pallas_call per block).
# ------------------------------------------------------------------
def _fold_bn_conv(w, b, bn):
    """PyTorch conv weight (C_out, C_in, K) -> bf16 (K, C_in, C_out) with the
    BN scale folded in, plus the f32 per-channel shift (1, C_out)."""
    inv = bn["gamma"] * jax.lax.rsqrt(bn["var"] + _BN_EPS)
    w_kio = jnp.transpose(w, (2, 1, 0)) * inv[None, None, :]
    shift = (bn["beta"] + (b - bn["mean"]) * inv).reshape(1, -1)
    return w_kio.astype(jnp.bfloat16), shift.astype(jnp.float32)


def _identity_block_kernel(x_ref, w1_ref, s1_ref, w2_ref, s2_ref, o_ref,
                           hpad_ref, *, L):
    """Fused ResidualBlock (stride=1, C_in == C_out, identity shortcut).
    x_ref: (L+2, C) f32 (zero-padded along L); w*: (3, C, C) bf16;
    s*: (1, C) f32; o_ref: (L, C) f32; hpad_ref: (L+2, C) f32 VMEM scratch."""
    C = o_ref.shape[-1]

    # conv1 + BN + ReLU : in-kernel im2col = 3 shifted bf16 matmuls, f32 acc.
    acc = jnp.zeros((L, C), jnp.float32)
    for k in range(3):
        acc = acc + jnp.dot(x_ref[k:k + L, :].astype(jnp.bfloat16), w1_ref[k],
                            preferred_element_type=jnp.float32)
    h = jnp.maximum(acc + s1_ref[...], 0.0)

    # conv2 + BN + residual + ReLU, with h kept resident in VMEM.
    hpad_ref[...] = jnp.zeros_like(hpad_ref)
    hpad_ref[1:L + 1, :] = h
    acc2 = jnp.zeros((L, C), jnp.float32)
    for k in range(3):
        acc2 = acc2 + jnp.dot(hpad_ref[k:k + L, :].astype(jnp.bfloat16),
                              w2_ref[k], preferred_element_type=jnp.float32)
    out = acc2 + s2_ref[...] + x_ref[1:L + 1, :]
    o_ref[...] = jnp.maximum(out, 0.0).astype(o_ref.dtype)


def identity_residual_block(x_nlc, w1, s1, w2, s2):
    N, L, C = x_nlc.shape
    x_pad = jnp.pad(x_nlc, ((0, 0), (1, 1), (0, 0)))
    return pl.pallas_call(
        functools.partial(_identity_block_kernel, L=L),
        out_shape=jax.ShapeDtypeStruct((N, L, C), jnp.float32),
        grid=(N,),
        in_specs=[
            pl.BlockSpec((None, L + 2, C), lambda n: (n, 0, 0)),
            pl.BlockSpec((3, C, C), lambda n: (0, 0, 0)),
            pl.BlockSpec((1, C), lambda n: (0, 0)),
            pl.BlockSpec((3, C, C), lambda n: (0, 0, 0)),
            pl.BlockSpec((1, C), lambda n: (0, 0)),
        ],
        out_specs=pl.BlockSpec((None, L, C), lambda n: (n, 0, 0)),
        scratch_shapes=[pltpu.VMEM((L + 2, C), jnp.float32)],
        compiler_params=pltpu.CompilerParams(
            dimension_semantics=("parallel",),
            vmem_limit_bytes=32 * 1024 * 1024),
    )(x_pad, w1, s1, w2, s2)


def _downsample_block_kernel(xe_ref, xo_ref, w1_ref, s1_ref, w2_ref, s2_ref,
                             wsc_ref, ssc_ref, o_ref, hpad_ref, *, L_out):
    """Fused ResidualBlock (stride=2 with 1x1-conv + BN shortcut).
    xe_ref: (L_out+1, C_in) even rows of the padded input; xo_ref: (L_out, C_in)
    odd rows; w1: (3, C_in, C_out); w2: (3, C_out, C_out); wsc: (C_in, C_out)."""
    Lo = L_out
    C_out = o_ref.shape[-1]
    xo = xo_ref[...].astype(jnp.bfloat16)

    # conv1 (k=3, stride=2, pad=1) + BN + ReLU
    acc = jnp.dot(xe_ref[0:Lo, :].astype(jnp.bfloat16), w1_ref[0],
                  preferred_element_type=jnp.float32)
    acc = acc + jnp.dot(xo, w1_ref[1], preferred_element_type=jnp.float32)
    acc = acc + jnp.dot(xe_ref[1:Lo + 1, :].astype(jnp.bfloat16), w1_ref[2],
                        preferred_element_type=jnp.float32)
    h = jnp.maximum(acc + s1_ref[...], 0.0)

    # shortcut: 1x1 stride-2 conv + BN  (x[2j] == odd rows of the padded input)
    res = jnp.dot(xo, wsc_ref[...], preferred_element_type=jnp.float32)
    res = res + ssc_ref[...]

    # conv2 (k=3, stride=1, pad=1) + BN + residual + ReLU
    hpad_ref[...] = jnp.zeros_like(hpad_ref)
    hpad_ref[1:Lo + 1, :] = h
    acc2 = jnp.zeros((Lo, C_out), jnp.float32)
    for k in range(3):
        acc2 = acc2 + jnp.dot(hpad_ref[k:k + Lo, :].astype(jnp.bfloat16),
                              w2_ref[k], preferred_element_type=jnp.float32)
    out = acc2 + s2_ref[...] + res
    o_ref[...] = jnp.maximum(out, 0.0).astype(o_ref.dtype)


def downsample_residual_block(x_nlc, w1, s1, w2, s2, wsc, ssc):
    N, L, C_in = x_nlc.shape
    C_out = w1.shape[-1]
    L_out = (L - 1) // 2 + 1
    x_pad = jnp.pad(x_nlc, ((0, 0), (1, 1), (0, 0)))
    xe = x_pad[:, 0::2, :][:, :L_out + 1]   # padded rows 0, 2, 4, ...
    xo = x_pad[:, 1::2, :][:, :L_out]       # padded rows 1, 3, 5, ...
    return pl.pallas_call(
        functools.partial(_downsample_block_kernel, L_out=L_out),
        out_shape=jax.ShapeDtypeStruct((N, L_out, C_out), jnp.float32),
        grid=(N,),
        in_specs=[
            pl.BlockSpec((None, L_out + 1, C_in), lambda n: (n, 0, 0)),
            pl.BlockSpec((None, L_out, C_in), lambda n: (n, 0, 0)),
            pl.BlockSpec((3, C_in, C_out), lambda n: (0, 0, 0)),
            pl.BlockSpec((1, C_out), lambda n: (0, 0)),
            pl.BlockSpec((3, C_out, C_out), lambda n: (0, 0, 0)),
            pl.BlockSpec((1, C_out), lambda n: (0, 0)),
            pl.BlockSpec((C_in, C_out), lambda n: (0, 0)),
            pl.BlockSpec((1, C_out), lambda n: (0, 0)),
        ],
        out_specs=pl.BlockSpec((None, L_out, C_out), lambda n: (n, 0, 0)),
        scratch_shapes=[pltpu.VMEM((L_out + 2, C_out), jnp.float32)],
        compiler_params=pltpu.CompilerParams(
            dimension_semantics=("parallel",),
            vmem_limit_bytes=32 * 1024 * 1024),
    )(xe, xo, w1, s1, w2, s2, wsc, ssc)


def residual_block(x, p):
    w1, s1 = _fold_bn_conv(p["w1"], p["b1"], p["bn1"])
    w2, s2 = _fold_bn_conv(p["w2"], p["b2"], p["bn2"])
    if "sc_w" in p:
        assert p["stride"] == 2
        wsc, ssc = _fold_bn_conv(p["sc_w"], p["sc_b"], p["sc_bn"])
        return downsample_residual_block(x, w1, s1, w2, s2, wsc[0], ssc)
    assert p["stride"] == 1
    return identity_residual_block(x, w1, s1, w2, s2)


# ------------------------------------------------------------------
# Full network
# ------------------------------------------------------------------
def ecg_resnet34_forward(params, x_ncl):
    x = jnp.transpose(x_ncl, (0, 2, 1)).astype(jnp.float32)   # NCL -> NLC
    x = conv_stem_bn_relu(x, params["conv1_w"], params["conv1_b"],
                          params["bn1"])
    x = maxpool1d_k3_s2_p1(x)
    for layer in ("layer1", "layer2", "layer3", "layer4"):
        for bp in params[layer]:
            x = residual_block(x, bp)
    x = jnp.mean(x, axis=1)                  # AdaptiveAvgPool1d(1) + flatten
    # Final 2x512x5 Linear: too small for a Pallas call -> plain XLA dot.
    return x @ params["fc_w"].T + params["fc_b"]


# ------------------------------------------------------------------
# Deterministic parameter initialization (matches module __init__ shapes)
# ------------------------------------------------------------------
def _init_bn(c):
    return dict(gamma=jnp.ones((c,), jnp.float32),
                beta=jnp.zeros((c,), jnp.float32),
                mean=jnp.zeros((c,), jnp.float32),
                var=jnp.ones((c,), jnp.float32))


def _init_conv(key, c_out, c_in, k):
    k1, k2 = jax.random.split(key)
    bound = 1.0 / np.sqrt(c_in * k)
    w = jax.random.uniform(k1, (c_out, c_in, k), jnp.float32, -bound, bound)
    b = jax.random.uniform(k2, (c_out,), jnp.float32, -bound, bound)
    return w, b


def _make_layer(key, in_c, out_c, blocks, stride=1):
    keys = jax.random.split(key, blocks)
    layer = []
    for bidx in range(blocks):
        s = stride if bidx == 0 else 1
        ic = in_c if bidx == 0 else out_c
        bk = jax.random.split(keys[bidx], 3)
        p = {"stride": s}
        p["w1"], p["b1"] = _init_conv(bk[0], out_c, ic, 3)
        p["bn1"] = _init_bn(out_c)
        p["w2"], p["b2"] = _init_conv(bk[1], out_c, out_c, 3)
        p["bn2"] = _init_bn(out_c)
        if s != 1 or ic != out_c:
            p["sc_w"], p["sc_b"] = _init_conv(bk[2], out_c, ic, 1)
            p["sc_bn"] = _init_bn(out_c)
        layer.append(p)
    return layer


def init_params(key, input_channels=2):
    keys = jax.random.split(key, 6)
    params = {}
    params["conv1_w"], params["conv1_b"] = _init_conv(keys[0], 64,
                                                      input_channels, 7)
    params["bn1"] = _init_bn(64)
    params["layer1"] = _make_layer(keys[1], 64, 64, 3)
    params["layer2"] = _make_layer(keys[2], 64, 128, 4, stride=2)
    params["layer3"] = _make_layer(keys[3], 128, 256, 6, stride=2)
    params["layer4"] = _make_layer(keys[4], 256, 512, 3, stride=2)
    fk1, fk2 = jax.random.split(keys[5])
    bound = 1.0 / np.sqrt(512)
    params["fc_w"] = jax.random.uniform(fk1, (5, 512), jnp.float32,
                                        -bound, bound)
    params["fc_b"] = jax.random.uniform(fk2, (5,), jnp.float32, -bound, bound)
    return params


# ------------------------------------------------------------------
if __name__ == "__main__":
    root = jax.random.PRNGKey(0)
    pkey, xkey = jax.random.split(root)

    params = init_params(pkey, input_channels=2)

    # Small but consistent input: batch=2, channels=2 (module default), L=128.
    x = jax.random.normal(xkey, (2, 2, 128), dtype=jnp.float32)

    fwd = jax.jit(lambda inp: ecg_resnet34_forward(params, inp))
    out = jax.block_until_ready(fwd(x))

    assert out.shape == (2, 5), out.shape
    assert bool(jnp.all(jnp.isfinite(out)))
    print("KERNEL_OK")
</pallas_src>

<mosaic_0001>
module attributes {stable_mosaic.version = 11 : i64} {
  func.func @_matmul_bias_act_kernel(%arg0: i32, %arg1: i32, %arg2: memref<128x14xbf16, #tpu.memory_space<vmem>>, %arg3: memref<14x128xbf16, #tpu.memory_space<vmem>>, %arg4: memref<1x128xf32, #tpu.memory_space<vmem>>, %arg5: memref<128x128xf32, #tpu.memory_space<vmem>>) attributes {dimension_semantics = [#tpu.dimension_semantics<parallel>, #tpu.dimension_semantics<parallel>], iteration_bounds = array<i64: 1, 1>, scalar_prefetch = 0 : i64, scratch_operands = 0 : i64, tpu.core_type = #tpu.core_type<tc>, window_params = [{transform_indices = @transform_0, window_bounds = array<i64: 128, 14>}, {transform_indices = @transform_1, window_bounds = array<i64: 14, 128>}, {transform_indices = @transform_2, window_bounds = array<i64: 1, 128>}, {transform_indices = @transform_3, window_bounds = array<i64: 128, 128>}]} {
    %c0 = arith.constant 0 : index
    %c0_0 = arith.constant 0 : index
    %0 = vector.load %arg2[%c0, %c0_0] : memref<128x14xbf16, #tpu.memory_space<vmem>>, vector<128x14xbf16>
    %c0_1 = arith.constant 0 : index
    %c0_2 = arith.constant 0 : index
    %1 = vector.load %arg3[%c0_1, %c0_2] : memref<14x128xbf16, #tpu.memory_space<vmem>>, vector<14x128xbf16>
    %cst = arith.constant dense<0.000000e+00> : vector<128x128xf32>
    %2 = tpu.matmul %0, %1, %cst {dimension_numbers = #tpu.dot_dimension_numbers<[1], [0], [0], [1], [0, 0, 1, 1], [], []>} : vector<128x14xbf16>, vector<14x128xbf16>, vector<128x128xf32> -> vector<128x128xf32>
    %c0_3 = arith.constant 0 : index
    %c0_4 = arith.constant 0 : index
    %3 = vector.load %arg4[%c0_3, %c0_4] : memref<1x128xf32, #tpu.memory_space<vmem>>, vector<1x128xf32>
    %4 = vector.broadcast %3 : vector<1x128xf32> to vector<128x128xf32>
    %5 = arith.addf %2, %4 : vector<128x128xf32>
    %cst_5 = arith.constant 0.000000e+00 : f32
    %6 = vector.broadcast %cst_5 : f32 to vector<128x128xf32>
    %7 = arith.maximumf %5, %6 : vector<128x128xf32>
    %c0_6 = arith.constant 0 : index
    %c0_7 = arith.constant 0 : index
    %8 = vector.load %arg5[%c0_6, %c0_7] : memref<128x128xf32, #tpu.memory_space<vmem>>, vector<128x128xf32>
    tpu.vector_store %arg5[%c0_6, %c0_7], %7 {strides = array<i32>} : memref<128x128xf32, #tpu.memory_space<vmem>>, vector<128x128xf32>,
    return
  }
  func.func @transform_0(%arg0: i32, %arg1: i32) -> (i32, i32) {
    %c0_i32 = arith.constant 0 : i32
    %c0_i32_0 = arith.constant 0 : i32
    return %arg0, %c0_i32 : i32, i32
  }
  func.func @transform_1(%arg0: i32, %arg1: i32) -> (i32, i32) {
    %c0_i32 = arith.constant 0 : i32
    %c0_i32_0 = arith.constant 0 : i32
    return %c0_i32, %arg1 : i32, i32
  }
  func.func @transform_2(%arg0: i32, %arg1: i32) -> (i32, i32) {
    %c0_i32 = arith.constant 0 : i32
    %c0_i32_0 = arith.constant 0 : i32
    return %c0_i32, %arg1 : i32, i32
  }
  func.func @transform_3(%arg0: i32, %arg1: i32) -> (i32, i32) {
    %c0_i32 = arith.constant 0 : i32
    return %arg0, %arg1 : i32, i32
  }
}

module attributes {stable_mosaic.version = 11 : i64} {
  func.func @_identity_block_kernel(%arg0: i32, %arg1: memref<1x34x64xf32, #tpu.memory_space<vmem>>, %arg2: memref<3x64x64xbf16, #tpu.memory_space<vmem>>, %arg3: memref<1x64xf32, #tpu.memory_space<vmem>>, %arg4: memref<3x64x64xbf16, #tpu.memory_space<vmem>>, %arg5: memref<1x64xf32, #tpu.memory_space<vmem>>, %arg6: memref<1x32x64xf32, #tpu.memory_space<vmem>>, %arg7: memref<34x64xf32, #tpu.memory_space<vmem>>) attributes {dimension_semantics = [#tpu.dimension_semantics<parallel>], iteration_bounds = array<i64: 2>, scalar_prefetch = 0 : i64, scratch_operands = 1 : i64, tpu.core_type = #tpu.core_type<tc>, window_params = [{transform_indices = @transform_0, window_bounds = array<i64: 1, 34, 64>}, {pipeline_mode = #tpu.pipeline_mode<synchronous>, transform_indices = @transform_1, window_bounds = array<i64: 3, 64, 64>}, {pipeline_mode = #tpu.pipeline_mode<synchronous>, transform_indices = @transform_2, window_bounds = array<i64: 1, 64>}, {pipeline_mode = #tpu.pipeline_mode<synchronous>, transform_indices = @transform_3, window_bounds = array<i64: 3, 64, 64>}, {pipeline_mode = #tpu.pipeline_mode<synchronous>, transform_indices = @transform_4, window_bounds = array<i64: 1, 64>}, {transform_indices = @transform_5, window_bounds = array<i64: 1, 32, 64>}]} {
    %cst = arith.constant 0.000000e+00 : f32
    %0 = vector.broadcast %cst : f32 to vector<32x64xf32>
    %c0 = arith.constant 0 : index
    %c0_0 = arith.constant 0 : index
    %c0_1 = arith.constant 0 : index
    %1 = vector.load %arg1[%c0, %c0_0, %c0_1] : memref<1x34x64xf32, #tpu.memory_space<vmem>>, vector<1x32x64xf32>
    %2 = vector.shape_cast %1 : vector<1x32x64xf32> to vector<32x64xf32>
    %3 = arith.truncf %2 : vector<32x64xf32> to vector<32x64xbf16>
    %c0_2 = arith.constant 0 : index
    %c0_3 = arith.constant 0 : index
    %c0_4 = arith.constant 0 : index
    %4 = vector.load %arg2[%c0_2, %c0_3, %c0_4] : memref<3x64x64xbf16, #tpu.memory_space<vmem>>, vector<1x64x64xbf16>
    %5 = vector.shape_cast %4 : vector<1x64x64xbf16> to vector<64x64xbf16>
    %cst_5 = arith.constant dense<0.000000e+00> : vector<32x64xf32>
    %6 = tpu.matmul %3, %5, %cst_5 {dimension_numbers = #tpu.dot_dimension_numbers<[1], [0], [0], [1], [0, 0, 1, 1], [], []>} : vector<32x64xbf16>, vector<64x64xbf16>, vector<32x64xf32> -> vector<32x64xf32>
    %7 = arith.addf %0, %6 : vector<32x64xf32>
    %c0_6 = arith.constant 0 : index
    %c1 = arith.constant 1 : index
    %c0_7 = arith.constant 0 : index
    %8 = vector.load %arg1[%c0_6, %c1, %c0_7] : memref<1x34x64xf32, #tpu.memory_space<vmem>>, vector<1x32x64xf32>
    %9 = vector.shape_cast %8 : vector<1x32x64xf32> to vector<32x64xf32>
    %10 = arith.truncf %9 : vector<32x64xf32> to vector<32x64xbf16>
    %c1_8 = arith.constant 1 : index
    %c0_9 = arith.constant 0 : index
    %c0_10 = arith.constant 0 : index
    %11 = vector.load %arg2[%c1_8, %c0_9, %c0_10] : memref<3x64x64xbf16, #tpu.memory_space<vmem>>, vector<1x64x64xbf16>
    %12 = vector.shape_cast %11 : vector<1x64x64xbf16> to vector<64x64xbf16>
    %cst_11 = arith.constant dense<0.000000e+00> : vector<32x64xf32>
    %13 = tpu.matmul %10, %12, %cst_11 {dimension_numbers = #tpu.dot_dimension_numbers<[1], [0], [0], [1], [0, 0, 1, 1], [], []>} : vector<32x64xbf16>, vector<64x64xbf16>, vector<32x64xf32> -> vector<32x64xf32>
    %14 = arith.addf %7, %13 : vector<32x64xf32>
    %c0_12 = arith.constant 0 : index
    %c2 = arith.constant 2 : index
    %c0_13 = arith.constant 0 : index
    %15 = vector.load %arg1[%c0_12, %c2, %c0_13] : memref<1x34x64xf32, #tpu.memory_space<vmem>>, vector<1x32x64xf32>
    %16 = vector.shape_cast %15 : vector<1x32x64xf32> to vector<32x64xf32>
    %17 = arith.truncf %16 : vector<32x64xf32> to vector<32x64xbf16>
    %c2_14 = arith.constant 2 : index
    %c0_15 = arith.constant 0 : index
    %c0_16 = arith.constant 0 : index
    %18 = vector.load %arg2[%c2_14, %c0_15, %c0_16] : memref<3x64x64xbf16, #tpu.memory_space<vmem>>, vector<1x64x64xbf16>
    %19 = vector.shape_cast %18 : vector<1x64x64xbf16> to vector<64x64xbf16>
    %cst_17 = arith.constant dense<0.000000e+00> : vector<32x64xf32>
    %20 = tpu.matmul %17, %19, %cst_17 {dimension_numbers = #tpu.dot_dimension_numbers<[1], [0], [0], [1], [0, 0, 1, 1], [], []>} : vector<32x64xbf16>, vector<64x64xbf16>, vector<32x64xf32> -> vector<32x64xf32>
    %21 = arith.addf %14, %20 : vector<32x64xf32>
    %c0_18 = arith.constant 0 : index
    %c0_19 = arith.constant 0 : index
    %22 = vector.load %arg3[%c0_18, %c0_19] : memref<1x64xf32, #tpu.memory_space<vmem>>, vector<1x64xf32>
    %23 = vector.broadcast %22 : vector<1x64xf32> to vector<32x64xf32>
    %24 = arith.addf %21, %23 : vector<32x64xf32>
    %cst_20 = arith.constant 0.000000e+00 : f32
    %25 = vector.broadcast %cst_20 : f32 to vector<32x64xf32>
    %26 = arith.maximumf %24, %25 : vector<32x64xf32>
    %cst_21 = arith.constant 0.000000e+00 : f32
    %27 = vector.broadcast %cst_21 : f32 to vector<34x64xf32>
    %c0_22 = arith.constant 0 : index
    %c0_23 = arith.constant 0 : index
    %28 = vector.load %arg7[%c0_22, %c0_23] : memref<34x64xf32, #tpu.memory_space<vmem>>, vector<34x64xf32>
    tpu.vector_store %arg7[%c0_22, %c0_23], %27 {strides = array<i32>} : memref<34x64xf32, #tpu.memory_space<vmem>>, vector<34x64xf32>,
    %c1_24 = arith.constant 1 : index
    %c0_25 = arith.constant 0 : index
    %29 = vector.load %arg7[%c1_24, %c0_25] : memref<34x64xf32, #tpu.memory_space<vmem>>, vector<32x64xf32>
    tpu.vector_store %arg7[%c1_24, %c0_25], %26 {strides = array<i32>} : memref<34x64xf32, #tpu.memory_space<vmem>>, vector<32x64xf32>,
    %cst_26 = arith.constant 0.000000e+00 : f32
    %30 = vector.broadcast %cst_26 : f32 to vector<32x64xf32>
    %c0_27 = arith.constant 0 : index
    %c0_28 = arith.constant 0 : index
    %31 = vector.load %arg7[%c0_27, %c0_28] : memref<34x64xf32, #tpu.memory_space<vmem>>, vector<32x64xf32>
    %32 = arith.truncf %31 : vector<32x64xf32> to vector<32x64xbf16>
    %c0_29 = arith.constant 0 : index
    %c0_30 = arith.constant 0 : index
    %c0_31 = arith.constant 0 : index
    %33 = vector.load %arg4[%c0_29, %c0_30, %c0_31] : memref<3x64x64xbf16, #tpu.memory_space<vmem>>, vector<1x64x64xbf16>
    %34 = vector.shape_cast %33 : vector<1x64x64xbf16> to vector<64x64xbf16>
    %cst_32 = arith.constant dense<0.000000e+00> : vector<32x64xf32>
    %35 = tpu.matmul %32, %34, %cst_32 {dimension_numbers = #tpu.dot_dimension_numbers<[1], [0], [0], [1], [0, 0, 1, 1], [], []>} : vector<32x64xbf16>, vector<64x64xbf16>, vector<32x64xf32> -> vector<32x64xf32>
    %36 = arith.addf %30, %35 : vector<32x64xf32>
    %c1_33 = arith.constant 1 : index
    %c0_34 = arith.constant 0 : index
    %37 = vector.load %arg7[%c1_33, %c0_34] : memref<34x64xf32, #tpu.memory_space<vmem>>, vector<32x64xf32>
    %38 = arith.truncf %37 : vector<32x64xf32> to vector<32x64xbf16>
    %c1_35 = arith.constant 1 : index
    %c0_36 = arith.constant 0 : index
    %c0_37 = arith.constant 0 : index
    %39 = vector.load %arg4[%c1_35, %c0_36, %c0_37] : memref<3x64x64xbf16, #tpu.memory_space<vmem>>, vector<1x64x64xbf16>
    %40 = vector.shape_cast %39 : vector<1x64x64xbf16> to vector<64x64xbf16>
    %cst_38 = arith.constant dense<0.000000e+00> : vector<32x64xf32>
    %41 = tpu.matmul %38, %40, %cst_38 {dimension_numbers = #tpu.dot_dimension_numbers<[1], [0], [0], [1], [0, 0, 1, 1], [], []>} : vector<32x64xbf16>, vector<64x64xbf16>, vector<32x64xf32> -> vector<32x64xf32>
    %42 = arith.addf %36, %41 : vector<32x64xf32>
    %c2_39 = arith.constant 2 : index
    %c0_40 = arith.constant 0 : index
    %43 = vector.load %arg7[%c2_39, %c0_40] : memref<34x64xf32, #tpu.memory_space<vmem>>, vector<32x64xf32>
    %44 = arith.truncf %43 : vector<32x64xf32> to vector<32x64xbf16>
    %c2_41 = arith.constant 2 : index
    %c0_42 = arith.constant 0 : index
    %c0_43 = arith.constant 0 : index
    %45 = vector.load %arg4[%c2_41, %c0_42, %c0_43] : memref<3x64x64xbf16, #tpu.memory_space<vmem>>, vector<1x64x64xbf16>
    %46 = vector.shape_cast %45 : vector<1x64x64xbf16> to vector<64x64xbf16>
    %cst_44 = arith.constant dense<0.000000e+00> : vector<32x64xf32>
    %47 = tpu.matmul %44, %46, %cst_44 {dimension_numbers = #tpu.dot_dimension_numbers<[1], [0], [0], [1], [0, 0, 1, 1], [], []>} : vector<32x64xbf16>, vector<64x64xbf16>, vector<32x64xf32> -> vector<32x64xf32>
    %48 = arith.addf %42, %47 : vector<32x64xf32>
    %c0_45 = arith.constant 0 : index
    %c0_46 = arith.constant 0 : index
    %49 = vector.load %arg5[%c0_45, %c0_46] : memref<1x64xf32, #tpu.memory_space<vmem>>, vector<1x64xf32>
    %50 = vector.broadcast %49 : vector<1x64xf32> to vector<32x64xf32>
    %51 = arith.addf %48, %50 : vector<32x64xf32>
    %c0_47 = arith.constant 0 : index
    %c1_48 = arith.constant 1 : index
    %c0_49 = arith.constant 0 : index
    %52 = vector.load %arg1[%c0_47, %c1_48, %c0_49] : memref<1x34x64xf32, #tpu.memory_space<vmem>>, vector<1x32x64xf32>
    %53 = vector.shape_cast %52 : vector<1x32x64xf32> to vector<32x64xf32>
    %54 = arith.addf %51, %53 : vector<32x64xf32>
    %cst_50 = arith.constant 0.000000e+00 : f32
    %55 = vector.broadcast %cst_50 : f32 to vector<32x64xf32>
    %56 = arith.maximumf %54, %55 : vector<32x64xf32>
    %c0_51 = arith.constant 0 : index
    %c0_52 = arith.constant 0 : index
    %c0_53 = arith.constant 0 : index
    %57 = vector.load %arg6[%c0_51, %c0_52, %c0_53] : memref<1x32x64xf32, #tpu.memory_space<vmem>>, vector<1x32x64xf32>
    %58 = vector.shape_cast %57 : vector<1x32x64xf32> to vector<32x64xf32>
    %59 = vector.shape_cast %56 : vector<32x64xf32> to vector<1x32x64xf32>
    tpu.vector_store %arg6[%c0_51, %c0_52, %c0_53], %59 {strides = array<i32>} : memref<1x32x64xf32, #tpu.memory_space<vmem>>, vector<1x32x64xf32>,
    return
  }
  func.func @transform_0(%arg0: i32) -> (i32, i32, i32) {
    %c0_i32 = arith.constant 0 : i32
    %c0_i32_0 = arith.constant 0 : i32
    %c0_i32_1 = arith.constant 0 : i32
    return %arg0, %c0_i32, %c0_i32_0 : i32, i32, i32
  }
  func.func @transform_1(%arg0: i32) -> (i32, i32, i32) {
    %c0_i32 = arith.constant 0 : i32
    %c0_i32_0 = arith.constant 0 : i32
    %c0_i32_1 = arith.constant 0 : i32
    %c0_i32_2 = arith.constant 0 : i32
    return %c0_i32, %c0_i32_0, %c0_i32_1 : i32, i32, i32
  }
  func.func @transform_2(%arg0: i32) -> (i32, i32) {
    %c0_i32 = arith.constant 0 : i32
    %c0_i32_0 = arith.constant 0 : i32
    %c0_i32_1 = arith.constant 0 : i32
    return %c0_i32, %c0_i32_0 : i32, i32
  }
  func.func @transform_3(%arg0: i32) -> (i32, i32, i32) {
    %c0_i32 = arith.constant 0 : i32
    %c0_i32_0 = arith.constant 0 : i32
    %c0_i32_1 = arith.constant 0 : i32
    %c0_i32_2 = arith.constant 0 : i32
    return %c0_i32, %c0_i32_0, %c0_i32_1 : i32, i32, i32
  }
  func.func @transform_4(%arg0: i32) -> (i32, i32) {
    %c0_i32 = arith.constant 0 : i32
    %c0_i32_0 = arith.constant 0 : i32
    %c0_i32_1 = arith.constant 0 : i32
    return %c0_i32, %c0_i32_0 : i32, i32
  }
  func.func @transform_5(%arg0: i32) -> (i32, i32, i32) {
    %c0_i32 = arith.constant 0 : i32
    %c0_i32_0 = arith.constant 0 : i32
    %c0_i32_1 = arith.constant 0 : i32
    return %arg0, %c0_i32, %c0_i32_0 : i32, i32, i32
  }
}

module attributes {stable_mosaic.version = 11 : i64} {
  func.func @_identity_block_kernel(%arg0: i32, %arg1: memref<1x18x128xf32, #tpu.memory_space<vmem>>, %arg2: memref<3x128x128xbf16, #tpu.memory_space<vmem>>, %arg3: memref<1x128xf32, #tpu.memory_space<vmem>>, %arg4: memref<3x128x128xbf16, #tpu.memory_space<vmem>>, %arg5: memref<1x128xf32, #tpu.memory_space<vmem>>, %arg6: memref<1x16x128xf32, #tpu.memory_space<vmem>>, %arg7: memref<18x128xf32, #tpu.memory_space<vmem>>) attributes {dimension_semantics = [#tpu.dimension_semantics<parallel>], iteration_bounds = array<i64: 2>, scalar_prefetch = 0 : i64, scratch_operands = 1 : i64, tpu.core_type = #tpu.core_type<tc>, window_params = [{transform_indices = @transform_0, window_bounds = array<i64: 1, 18, 128>}, {pipeline_mode = #tpu.pipeline_mode<synchronous>, transform_indices = @transform_1, window_bounds = array<i64: 3, 128, 128>}, {pipeline_mode = #tpu.pipeline_mode<synchronous>, transform_indices = @transform_2, window_bounds = array<i64: 1, 128>}, {pipeline_mode = #tpu.pipeline_mode<synchronous>, transform_indices = @transform_3, window_bounds = array<i64: 3, 128, 128>}, {pipeline_mode = #tpu.pipeline_mode<synchronous>, transform_indices = @transform_4, window_bounds = array<i64: 1, 128>}, {transform_indices = @transform_5, window_bounds = array<i64: 1, 16, 128>}]} {
    %cst = arith.constant 0.000000e+00 : f32
    %0 = vector.broadcast %cst : f32 to vector<16x128xf32>
    %c0 = arith.constant 0 : index
    %c0_0 = arith.constant 0 : index
    %c0_1 = arith.constant 0 : index
    %1 = vector.load %arg1[%c0, %c0_0, %c0_1] : memref<1x18x128xf32, #tpu.memory_space<vmem>>, vector<1x16x128xf32>
    %2 = vector.shape_cast %1 : vector<1x16x128xf32> to vector<16x128xf32>
    %3 = arith.truncf %2 : vector<16x128xf32> to vector<16x128xbf16>
    %c0_2 = arith.constant 0 : index
    %c0_3 = arith.constant 0 : index
    %c0_4 = arith.constant 0 : index
    %4 = vector.load %arg2[%c0_2, %c0_3, %c0_4] : memref<3x128x128xbf16, #tpu.memory_space<vmem>>, vector<1x128x128xbf16>
    %5 = vector.shape_cast %4 : vector<1x128x128xbf16> to vector<128x128xbf16>
    %cst_5 = arith.constant dense<0.000000e+00> : vector<16x128xf32>
    %6 = tpu.matmul %3, %5, %cst_5 {dimension_numbers = #tpu.dot_dimension_numbers<[1], [0], [0], [1], [0, 0, 1, 1], [], []>} : vector<16x128xbf16>, vector<128x128xbf16>, vector<16x128xf32> -> vector<16x128xf32>
    %7 = arith.addf %0, %6 : vector<16x128xf32>
    %c0_6 = arith.constant 0 : index
    %c1 = arith.constant 1 : index
    %c0_7 = arith.constant 0 : index
    %8 = vector.load %arg1[%c0_6, %c1, %c0_7] : memref<1x18x128xf32, #tpu.memory_space<vmem>>, vector<1x16x128xf32>
    %9 = vector.shape_cast %8 : vector<1x16x128xf32> to vector<16x128xf32>
    %10 = arith.truncf %9 : vector<16x128xf32> to vector<16x128xbf16>
    %c1_8 = arith.constant 1 : index
    %c0_9 = arith.constant 0 : index
    %c0_10 = arith.constant 0 : index
    %11 = vector.load %arg2[%c1_8, %c0_9, %c0_10] : memref<3x128x128xbf16, #tpu.memory_space<vmem>>, vector<1x128x128xbf16>
    %12 = vector.shape_cast %11 : vector<1x128x128xbf16> to vector<128x128xbf16>
    %cst_11 = arith.constant dense<0.000000e+00> : vector<16x128xf32>
    %13 = tpu.matmul %10, %12, %cst_11 {dimension_numbers = #tpu.dot_dimension_numbers<[1], [0], [0], [1], [0, 0, 1, 1], [], []>} : vector<16x128xbf16>, vector<128x128xbf16>, vector<16x128xf32> -> vector<16x128xf32>
    %14 = arith.addf %7, %13 : vector<16x128xf32>
    %c0_12 = arith.constant 0 : index
    %c2 = arith.constant 2 : index
    %c0_13 = arith.constant 0 : index
    %15 = vector.load %arg1[%c0_12, %c2, %c0_13] : memref<1x18x128xf32, #tpu.memory_space<vmem>>, vector<1x16x128xf32>
    %16 = vector.shape_cast %15 : vector<1x16x128xf32> to vector<16x128xf32>
    %17 = arith.truncf %16 : vector<16x128xf32> to vector<16x128xbf16>
    %c2_14 = arith.constant 2 : index
    %c0_15 = arith.constant 0 : index
    %c0_16 = arith.constant 0 : index
    %18 = vector.load %arg2[%c2_14, %c0_15, %c0_16] : memref<3x128x128xbf16, #tpu.memory_space<vmem>>, vector<1x128x128xbf16>
    %19 = vector.shape_cast %18 : vector<1x128x128xbf16> to vector<128x128xbf16>
    %cst_17 = arith.constant dense<0.000000e+00> : vector<16x128xf32>
    %20 = tpu.matmul %17, %19, %cst_17 {dimension_numbers = #tpu.dot_dimension_numbers<[1], [0], [0], [1], [0, 0, 1, 1], [], []>} : vector<16x128xbf16>, vector<128x128xbf16>, vector<16x128xf32> -> vector<16x128xf32>
    %21 = arith.addf %14, %20 : vector<16x128xf32>
    %c0_18 = arith.constant 0 : index
    %c0_19 = arith.constant 0 : index
    %22 = vector.load %arg3[%c0_18, %c0_19] : memref<1x128xf32, #tpu.memory_space<vmem>>, vector<1x128xf32>
    %23 = vector.broadcast %22 : vector<1x128xf32> to vector<16x128xf32>
    %24 = arith.addf %21, %23 : vector<16x128xf32>
    %cst_20 = arith.constant 0.000000e+00 : f32
    %25 = vector.broadcast %cst_20 : f32 to vector<16x128xf32>
    %26 = arith.maximumf %24, %25 : vector<16x128xf32>
    %cst_21 = arith.constant 0.000000e+00 : f32
    %27 = vector.broadcast %cst_21 : f32 to vector<18x128xf32>
    %c0_22 = arith.constant 0 : index
    %c0_23 = arith.constant 0 : index
    %28 = vector.load %arg7[%c0_22, %c0_23] : memref<18x128xf32, #tpu.memory_space<vmem>>, vector<18x128xf32>
    tpu.vector_store %arg7[%c0_22, %c0_23], %27 {strides = array<i32>} : memref<18x128xf32, #tpu.memory_space<vmem>>, vector<18x128xf32>,
    %c1_24 = arith.constant 1 : index
    %c0_25 = arith.constant 0 : index
    %29 = vector.load %arg7[%c1_24, %c0_25] : memref<18x128xf32, #tpu.memory_space<vmem>>, vector<16x128xf32>
    tpu.vector_store %arg7[%c1_24, %c0_25], %26 {strides = array<i32>} : memref<18x128xf32, #tpu.memory_space<vmem>>, vector<16x128xf32>,
    %cst_26 = arith.constant 0.000000e+00 : f32
    %30 = vector.broadcast %cst_26 : f32 to vector<16x128xf32>
    %c0_27 = arith.constant 0 : index
    %c0_28 = arith.constant 0 : index
    %31 = vector.load %arg7[%c0_27, %c0_28] : memref<18x128xf32, #tpu.memory_space<vmem>>, vector<16x128xf32>
    %32 = arith.truncf %31 : vector<16x128xf32> to vector<16x128xbf16>
    %c0_29 = arith.constant 0 : index
    %c0_30 = arith.constant 0 : index
    %c0_31 = arith.constant 0 : index
    %33 = vector.load %arg4[%c0_29, %c0_30, %c0_31] : memref<3x128x128xbf16, #tpu.memory_space<vmem>>, vector<1x128x128xbf16>
    %34 = vector.shape_cast %33 : vector<1x128x128xbf16> to vector<128x128xbf16>
    %cst_32 = arith.constant dense<0.000000e+00> : vector<16x128xf32>
    %35 = tpu.matmul %32, %34, %cst_32 {dimension_numbers = #tpu.dot_dimension_numbers<[1], [0], [0], [1], [0, 0, 1, 1], [], []>} : vector<16x128xbf16>, vector<128x128xbf16>, vector<16x128xf32> -> vector<16x128xf32>
    %36 = arith.addf %30, %35 : vector<16x128xf32>
    %c1_33 = arith.constant 1 : index
    %c0_34 = arith.constant 0 : index
    %37 = vector.load %arg7[%c1_33, %c0_34] : memref<18x128xf32, #tpu.memory_space<vmem>>, vector<16x128xf32>
    %38 = arith.truncf %37 : vector<16x128xf32> to vector<16x128xbf16>
    %c1_35 = arith.constant 1 : index
    %c0_36 = arith.constant 0 : index
    %c0_37 = arith.constant 0 : index
    %39 = vector.load %arg4[%c1_35, %c0_36, %c0_37] : memref<3x128x128xbf16, #tpu.memory_space<vmem>>, vector<1x128x128xbf16>
    %40 = vector.shape_cast %39 : vector<1x128x128xbf16> to vector<128x128xbf16>
    %cst_38 = arith.constant dense<0.000000e+00> : vector<16x128xf32>
    %41 = tpu.matmul %38, %40, %cst_38 {dimension_numbers = #tpu.dot_dimension_numbers<[1], [0], [0], [1], [0, 0, 1, 1], [], []>} : vector<16x128xbf16>, vector<128x128xbf16>, vector<16x128xf32> -> vector<16x128xf32>
    %42 = arith.addf %36, %41 : vector<16x128xf32>
    %c2_39 = arith.constant 2 : index
    %c0_40 = arith.constant 0 : index
    %43 = vector.load %arg7[%c2_39, %c0_40] : memref<18x128xf32, #tpu.memory_space<vmem>>, vector<16x128xf32>
    %44 = arith.truncf %43 : vector<16x128xf32> to vector<16x128xbf16>
    %c2_41 = arith.constant 2 : index
    %c0_42 = arith.constant 0 : index
    %c0_43 = arith.constant 0 : index
    %45 = vector.load %arg4[%c2_41, %c0_42, %c0_43] : memref<3x128x128xbf16, #tpu.memory_space<vmem>>, vector<1x128x128xbf16>
    %46 = vector.shape_cast %45 : vector<1x128x128xbf16> to vector<128x128xbf16>
    %cst_44 = arith.constant dense<0.000000e+00> : vector<16x128xf32>
    %47 = tpu.matmul %44, %46, %cst_44 {dimension_numbers = #tpu.dot_dimension_numbers<[1], [0], [0], [1], [0, 0, 1, 1], [], []>} : vector<16x128xbf16>, vector<128x128xbf16>, vector<16x128xf32> -> vector<16x128xf32>
    %48 = arith.addf %42, %47 : vector<16x128xf32>
    %c0_45 = arith.constant 0 : index
    %c0_46 = arith.constant 0 : index
    %49 = vector.load %arg5[%c0_45, %c0_46] : memref<1x128xf32, #tpu.memory_space<vmem>>, vector<1x128xf32>
    %50 = vector.broadcast %49 : vector<1x128xf32> to vector<16x128xf32>
    %51 = arith.addf %48, %50 : vector<16x128xf32>
    %c0_47 = arith.constant 0 : index
    %c1_48 = arith.constant 1 : index
    %c0_49 = arith.constant 0 : index
    %52 = vector.load %arg1[%c0_47, %c1_48, %c0_49] : memref<1x18x128xf32, #tpu.memory_space<vmem>>, vector<1x16x128xf32>
    %53 = vector.shape_cast %52 : vector<1x16x128xf32> to vector<16x128xf32>
    %54 = arith.addf %51, %53 : vector<16x128xf32>
    %cst_50 = arith.constant 0.000000e+00 : f32
    %55 = vector.broadcast %cst_50 : f32 to vector<16x128xf32>
    %56 = arith.maximumf %54, %55 : vector<16x128xf32>
    %c0_51 = arith.constant 0 : index
    %c0_52 = arith.constant 0 : index
    %c0_53 = arith.constant 0 : index
    %57 = vector.load %arg6[%c0_51, %c0_52, %c0_53] : memref<1x16x128xf32, #tpu.memory_space<vmem>>, vector<1x16x128xf32>
    %58 = vector.shape_cast %57 : vector<1x16x128xf32> to vector<16x128xf32>
    %59 = vector.shape_cast %56 : vector<16x128xf32> to vector<1x16x128xf32>
    tpu.vector_store %arg6[%c0_51, %c0_52, %c0_53], %59 {strides = array<i32>} : memref<1x16x128xf32, #tpu.memory_space<vmem>>, vector<1x16x128xf32>,
    return
  }
  func.func @transform_0(%arg0: i32) -> (i32, i32, i32) {
    %c0_i32 = arith.constant 0 : i32
    %c0_i32_0 = arith.constant 0 : i32
    %c0_i32_1 = arith.constant 0 : i32
    return %arg0, %c0_i32, %c0_i32_0 : i32, i32, i32
  }
  func.func @transform_1(%arg0: i32) -> (i32, i32, i32) {
    %c0_i32 = arith.constant 0 : i32
    %c0_i32_0 = arith.constant 0 : i32
    %c0_i32_1 = arith.constant 0 : i32
    %c0_i32_2 = arith.constant 0 : i32
    return %c0_i32, %c0_i32_0, %c0_i32_1 : i32, i32, i32
  }
  func.func @transform_2(%arg0: i32) -> (i32, i32) {
    %c0_i32 = arith.constant 0 : i32
    %c0_i32_0 = arith.constant 0 : i32
    %c0_i32_1 = arith.constant 0 : i32
    return %c0_i32, %c0_i32_0 : i32, i32
  }
  func.func @transform_3(%arg0: i32) -> (i32, i32, i32) {
    %c0_i32 = arith.constant 0 : i32
    %c0_i32_0 = arith.constant 0 : i32
    %c0_i32_1 = arith.constant 0 : i32
    %c0_i32_2 = arith.constant 0 : i32
    return %c0_i32, %c0_i32_0, %c0_i32_1 : i32, i32, i32
  }
  func.func @transform_4(%arg0: i32) -> (i32, i32) {
    %c0_i32 = arith.constant 0 : i32
    %c0_i32_0 = arith.constant 0 : i32
    %c0_i32_1 = arith.constant 0 : i32
    return %c0_i32, %c0_i32_0 : i32, i32
  }
  func.func @transform_5(%arg0: i32) -> (i32, i32, i32) {
    %c0_i32 = arith.constant 0 : i32
    %c0_i32_0 = arith.constant 0 : i32
    %c0_i32_1 = arith.constant 0 : i32
    return %arg0, %c0_i32, %c0_i32_0 : i32, i32, i32
  }
}

module attributes {stable_mosaic.version = 11 : i64} {
  func.func @_downsample_block_kernel(%arg0: i32, %arg1: memref<1x17x64xf32, #tpu.memory_space<vmem>>, %arg2: memref<1x16x64xf32, #tpu.memory_space<vmem>>, %arg3: memref<3x64x128xbf16, #tpu.memory_space<vmem>>, %arg4: memref<1x128xf32, #tpu.memory_space<vmem>>, %arg5: memref<3x128x128xbf16, #tpu.memory_space<vmem>>, %arg6: memref<1x128xf32, #tpu.memory_space<vmem>>, %arg7: memref<64x128xbf16, #tpu.memory_space<vmem>>, %arg8: memref<1x128xf32, #tpu.memory_space<vmem>>, %arg9: memref<1x16x128xf32, #tpu.memory_space<vmem>>, %arg10: memref<18x128xf32, #tpu.memory_space<vmem>>) attributes {dimension_semantics = [#tpu.dimension_semantics<parallel>], iteration_bounds = array<i64: 2>, scalar_prefetch = 0 : i64, scratch_operands = 1 : i64, tpu.core_type = #tpu.core_type<tc>, window_params = [{transform_indices = @transform_0, window_bounds = array<i64: 1, 17, 64>}, {transform_indices = @transform_1, window_bounds = array<i64: 1, 16, 64>}, {pipeline_mode = #tpu.pipeline_mode<synchronous>, transform_indices = @transform_2, window_bounds = array<i64: 3, 64, 128>}, {pipeline_mode = #tpu.pipeline_mode<synchronous>, transform_indices = @transform_3, window_bounds = array<i64: 1, 128>}, {pipeline_mode = #tpu.pipeline_mode<synchronous>, transform_indices = @transform_4, window_bounds = array<i64: 3, 128, 128>}, {pipeline_mode = #tpu.pipeline_mode<synchronous>, transform_indices = @transform_5, window_bounds = array<i64: 1, 128>}, {pipeline_mode = #tpu.pipeline_mode<synchronous>, transform_indices = @transform_6, window_bounds = array<i64: 64, 128>}, {pipeline_mode = #tpu.pipeline_mode<synchronous>, transform_indices = @transform_7, window_bounds = array<i64: 1, 128>}, {transform_indices = @transform_8, window_bounds = array<i64: 1, 16, 128>}]} {
    %c0 = arith.constant 0 : index
    %c0_0 = arith.constant 0 : index
    %c0_1 = arith.constant 0 : index
    %0 = vector.load %arg2[%c0, %c0_0, %c0_1] : memref<1x16x64xf32, #tpu.memory_space<vmem>>, vector<1x16x64xf32>
    %1 = vector.shape_cast %0 : vector<1x16x64xf32> to vector<16x64xf32>
    %2 = arith.truncf %1 : vector<16x64xf32> to vector<16x64xbf16>
    %c0_2 = arith.constant 0 : index
    %c0_3 = arith.constant 0 : index
    %c0_4 = arith.constant 0 : index
    %3 = vector.load %arg1[%c0_2, %c0_3, %c0_4] : memref<1x17x64xf32, #tpu.memory_space<vmem>>, vector<1x16x64xf32>
    %4 = vector.shape_cast %3 : vector<1x16x64xf32> to vector<16x64xf32>
    %5 = arith.truncf %4 : vector<16x64xf32> to vector<16x64xbf16>
    %c0_5 = arith.constant 0 : index
    %c0_6 = arith.constant 0 : index
    %c0_7 = arith.constant 0 : index
    %6 = vector.load %arg3[%c0_5, %c0_6, %c0_7] : memref<3x64x128xbf16, #tpu.memory_space<vmem>>, vector<1x64x128xbf16>
    %7 = vector.shape_cast %6 : vector<1x64x128xbf16> to vector<64x128xbf16>
    %cst = arith.constant dense<0.000000e+00> : vector<16x128xf32>
    %8 = tpu.matmul %5, %7, %cst {dimension_numbers = #tpu.dot_dimension_numbers<[1], [0], [0], [1], [0, 0, 1, 1], [], []>} : vector<16x64xbf16>, vector<64x128xbf16>, vector<16x128xf32> -> vector<16x128xf32>
    %c1 = arith.constant 1 : index
    %c0_8 = arith.constant 0 : index
    %c0_9 = arith.constant 0 : index
    %9 = vector.load %arg3[%c1, %c0_8, %c0_9] : memref<3x64x128xbf16, #tpu.memory_space<vmem>>, vector<1x64x128xbf16>
    %10 = vector.shape_cast %9 : vector<1x64x128xbf16> to vector<64x128xbf16>
    %cst_10 = arith.constant dense<0.000000e+00> : vector<16x128xf32>
    %11 = tpu.matmul %2, %10, %cst_10 {dimension_numbers = #tpu.dot_dimension_numbers<[1], [0], [0], [1], [0, 0, 1, 1], [], []>} : vector<16x64xbf16>, vector<64x128xbf16>, vector<16x128xf32> -> vector<16x128xf32>
    %12 = arith.addf %8, %11 : vector<16x128xf32>
    %c0_11 = arith.constant 0 : index
    %c1_12 = arith.constant 1 : index
    %c0_13 = arith.constant 0 : index
    %13 = vector.load %arg1[%c0_11, %c1_12, %c0_13] : memref<1x17x64xf32, #tpu.memory_space<vmem>>, vector<1x16x64xf32>
    %14 = vector.shape_cast %13 : vector<1x16x64xf32> to vector<16x64xf32>
    %15 = arith.truncf %14 : vector<16x64xf32> to vector<16x64xbf16>
    %c2 = arith.constant 2 : index
    %c0_14 = arith.constant 0 : index
    %c0_15 = arith.constant 0 : index
    %16 = vector.load %arg3[%c2, %c0_14, %c0_15] : memref<3x64x128xbf16, #tpu.memory_space<vmem>>, vector<1x64x128xbf16>
    %17 = vector.shape_cast %16 : vector<1x64x128xbf16> to vector<64x128xbf16>
    %cst_16 = arith.constant dense<0.000000e+00> : vector<16x128xf32>
    %18 = tpu.matmul %15, %17, %cst_16 {dimension_numbers = #tpu.dot_dimension_numbers<[1], [0], [0], [1], [0, 0, 1, 1], [], []>} : vector<16x64xbf16>, vector<64x128xbf16>, vector<16x128xf32> -> vector<16x128xf32>
    %19 = arith.addf %12, %18 : vector<16x128xf32>
    %c0_17 = arith.constant 0 : index
    %c0_18 = arith.constant 0 : index
    %20 = vector.load %arg4[%c0_17, %c0_18] : memref<1x128xf32, #tpu.memory_space<vmem>>, vector<1x128xf32>
    %21 = vector.broadcast %20 : vector<1x128xf32> to vector<16x128xf32>
    %22 = arith.addf %19, %21 : vector<16x128xf32>
    %cst_19 = arith.constant 0.000000e+00 : f32
    %23 = vector.broadcast %cst_19 : f32 to vector<16x128xf32>
    %24 = arith.maximumf %22, %23 : vector<16x128xf32>
    %c0_20 = arith.constant 0 : index
    %c0_21 = arith.constant 0 : index
    %25 = vector.load %arg7[%c0_20, %c0_21] : memref<64x128xbf16, #tpu.memory_space<vmem>>, vector<64x128xbf16>
    %cst_22 = arith.constant dense<0.000000e+00> : vector<16x128xf32>
    %26 = tpu.matmul %2, %25, %cst_22 {dimension_numbers = #tpu.dot_dimension_numbers<[1], [0], [0], [1], [0, 0, 1, 1], [], []>} : vector<16x64xbf16>, vector<64x128xbf16>, vector<16x128xf32> -> vector<16x128xf32>
    %c0_23 = arith.constant 0 : index
    %c0_24 = arith.constant 0 : index
    %27 = vector.load %arg8[%c0_23, %c0_24] : memref<1x128xf32, #tpu.memory_space<vmem>>, vector<1x128xf32>
    %28 = vector.broadcast %27 : vector<1x128xf32> to vector<16x128xf32>
    %29 = arith.addf %26, %28 : vector<16x128xf32>
    %cst_25 = arith.constant 0.000000e+00 : f32
    %30 = vector.broadcast %cst_25 : f32 to vector<18x128xf32>
    %c0_26 = arith.constant 0 : index
    %c0_27 = arith.constant 0 : index
    %31 = vector.load %arg10[%c0_26, %c0_27] : memref<18x128xf32, #tpu.memory_space<vmem>>, vector<18x128xf32>
    tpu.vector_store %arg10[%c0_26, %c0_27], %30 {strides = array<i32>} : memref<18x128xf32, #tpu.memory_space<vmem>>, vector<18x128xf32>,
    %c1_28 = arith.constant 1 : index
    %c0_29 = arith.constant 0 : index
    %32 = vector.load %arg10[%c1_28, %c0_29] : memref<18x128xf32, #tpu.memory_space<vmem>>, vector<16x128xf32>
    tpu.vector_store %arg10[%c1_28, %c0_29], %24 {strides = array<i32>} : memref<18x128xf32, #tpu.memory_space<vmem>>, vector<16x128xf32>,
    %cst_30 = arith.constant 0.000000e+00 : f32
    %33 = vector.broadcast %cst_30 : f32 to vector<16x128xf32>
    %c0_31 = arith.constant 0 : index
    %c0_32 = arith.constant 0 : index
    %34 = vector.load %arg10[%c0_31, %c0_32] : memref<18x128xf32, #tpu.memory_space<vmem>>, vector<16x128xf32>
    %35 = arith.truncf %34 : vector<16x128xf32> to vector<16x128xbf16>
    %c0_33 = arith.constant 0 : index
    %c0_34 = arith.constant 0 : index
    %c0_35 = arith.constant 0 : index
    %36 = vector.load %arg5[%c0_33, %c0_34, %c0_35] : memref<3x128x128xbf16, #tpu.memory_space<vmem>>, vector<1x128x128xbf16>
    %37 = vector.shape_cast %36 : vector<1x128x128xbf16> to vector<128x128xbf16>
    %cst_36 = arith.constant dense<0.000000e+00> : vector<16x128xf32>
    %38 = tpu.matmul %35, %37, %cst_36 {dimension_numbers = #tpu.dot_dimension_numbers<[1], [0], [0], [1], [0, 0, 1, 1], [], []>} : vector<16x128xbf16>, vector<128x128xbf16>, vector<16x128xf32> -> vector<16x128xf32>
    %39 = arith.addf %33, %38 : vector<16x128xf32>
    %c1_37 = arith.constant 1 : index
    %c0_38 = arith.constant 0 : index
    %40 = vector.load %arg10[%c1_37, %c0_38] : memref<18x128xf32, #tpu.memory_space<vmem>>, vector<16x128xf32>
    %41 = arith.truncf %40 : vector<16x128xf32> to vector<16x128xbf16>
    %c1_39 = arith.constant 1 : index
    %c0_40 = arith.constant 0 : index
    %c0_41 = arith.constant 0 : index
    %42 = vector.load %arg5[%c1_39, %c0_40, %c0_41] : memref<3x128x128xbf16, #tpu.memory_space<vmem>>, vector<1x128x128xbf16>
    %43 = vector.shape_cast %42 : vector<1x128x128xbf16> to vector<128x128xbf16>
    %cst_42 = arith.constant dense<0.000000e+00> : vector<16x128xf32>
    %44 = tpu.matmul %41, %43, %cst_42 {dimension_numbers = #tpu.dot_dimension_numbers<[1], [0], [0], [1], [0, 0, 1, 1], [], []>} : vector<16x128xbf16>, vector<128x128xbf16>, vector<16x128xf32> -> vector<16x128xf32>
    %45 = arith.addf %39, %44 : vector<16x128xf32>
    %c2_43 = arith.constant 2 : index
    %c0_44 = arith.constant 0 : index
    %46 = vector.load %arg10[%c2_43, %c0_44] : memref<18x128xf32, #tpu.memory_space<vmem>>, vector<16x128xf32>
    %47 = arith.truncf %46 : vector<16x128xf32> to vector<16x128xbf16>
    %c2_45 = arith.constant 2 : index
    %c0_46 = arith.constant 0 : index
    %c0_47 = arith.constant 0 : index
    %48 = vector.load %arg5[%c2_45, %c0_46, %c0_47] : memref<3x128x128xbf16, #tpu.memory_space<vmem>>, vector<1x128x128xbf16>
    %49 = vector.shape_cast %48 : vector<1x128x128xbf16> to vector<128x128xbf16>
    %cst_48 = arith.constant dense<0.000000e+00> : vector<16x128xf32>
    %50 = tpu.matmul %47, %49, %cst_48 {dimension_numbers = #tpu.dot_dimension_numbers<[1], [0], [0], [1], [0, 0, 1, 1], [], []>} : vector<16x128xbf16>, vector<128x128xbf16>, vector<16x128xf32> -> vector<16x128xf32>
    %51 = arith.addf %45, %50 : vector<16x128xf32>
    %c0_49 = arith.constant 0 : index
    %c0_50 = arith.constant 0 : index
    %52 = vector.load %arg6[%c0_49, %c0_50] : memref<1x128xf32, #tpu.memory_space<vmem>>, vector<1x128xf32>
    %53 = vector.broadcast %52 : vector<1x128xf32> to vector<16x128xf32>
    %54 = arith.addf %51, %53 : vector<16x128xf32>
    %55 = arith.addf %54, %29 : vector<16x128xf32>
    %cst_51 = arith.constant 0.000000e+00 : f32
    %56 = vector.broadcast %cst_51 : f32 to vector<16x128xf32>
    %57 = arith.maximumf %55, %56 : vector<16x128xf32>
    %c0_52 = arith.constant 0 : index
    %c0_53 = arith.constant 0 : index
    %c0_54 = arith.constant 0 : index
    %58 = vector.load %arg9[%c0_52, %c0_53, %c0_54] : memref<1x16x128xf32, #tpu.memory_space<vmem>>, vector<1x16x128xf32>
    %59 = vector.shape_cast %58 : vector<1x16x128xf32> to vector<16x128xf32>
    %60 = vector.shape_cast %57 : vector<16x128xf32> to vector<1x16x128xf32>
    tpu.vector_store %arg9[%c0_52, %c0_53, %c0_54], %60 {strides = array<i32>} : memref<1x16x128xf32, #tpu.memory_space<vmem>>, vector<1x16x128xf32>,
    return
  }
  func.func @transform_0(%arg0: i32) -> (i32, i32, i32) {
    %c0_i32 = arith.constant 0 : i32
    %c0_i32_0 = arith.constant 0 : i32
    %c0_i32_1 = arith.constant 0 : i32
    return %arg0, %c0_i32, %c0_i32_0 : i32, i32, i32
  }
  func.func @transform_1(%arg0: i32) -> (i32, i32, i32) {
    %c0_i32 = arith.constant 0 : i32
    %c0_i32_0 = arith.constant 0 : i32
    %c0_i32_1 = arith.constant 0 : i32
    return %arg0, %c0_i32, %c0_i32_0 : i32, i32, i32
  }
  func.func @transform_2(%arg0: i32) -> (i32, i32, i32) {
    %c0_i32 = arith.constant 0 : i32
    %c0_i32_0 = arith.constant 0 : i32
    %c0_i32_1 = arith.constant 0 : i32
    %c0_i32_2 = arith.constant 0 : i32
    return %c0_i32, %c0_i32_0, %c0_i32_1 : i32, i32, i32
  }
  func.func @transform_3(%arg0: i32) -> (i32, i32) {
    %c0_i32 = arith.constant 0 : i32
    %c0_i32_0 = arith.constant 0 : i32
    %c0_i32_1 = arith.constant 0 : i32
    return %c0_i32, %c0_i32_0 : i32, i32
  }
  func.func @transform_4(%arg0: i32) -> (i32, i32, i32) {
    %c0_i32 = arith.constant 0 : i32
    %c0_i32_0 = arith.constant 0 : i32
    %c0_i32_1 = arith.constant 0 : i32
    %c0_i32_2 = arith.constant 0 : i32
    return %c0_i32, %c0_i32_0, %c0_i32_1 : i32, i32, i32
  }
  func.func @transform_5(%arg0: i32) -> (i32, i32) {
    %c0_i32 = arith.constant 0 : i32
    %c0_i32_0 = arith.constant 0 : i32
    %c0_i32_1 = arith.constant 0 : i32
    return %c0_i32, %c0_i32_0 : i32, i32
  }
  func.func @transform_6(%arg0: i32) -> (i32, i32) {
    %c0_i32 = arith.constant 0 : i32
    %c0_i32_0 = arith.constant 0 : i32
    %c0_i32_1 = arith.constant 0 : i32
    return %c0_i32, %c0_i32_0 : i32, i32
  }
  func.func @transform_7(%arg0: i32) -> (i32, i32) {
    %c0_i32 = arith.constant 0 : i32
    %c0_i32_0 = arith.constant 0 : i32
    %c0_i32_1 = arith.constant 0 : i32
    return %c0_i32, %c0_i32_0 : i32, i32
  }
  func.func @transform_8(%arg0: i32) -> (i32, i32, i32) {
    %c0_i32 = arith.constant 0 : i32
    %c0_i32_0 = arith.constant 0 : i32
    %c0_i32_1 = arith.constant 0 : i32
    return %arg0, %c0_i32, %c0_i32_0 : i32, i32, i32
  }
}

module attributes {stable_mosaic.version = 11 : i64} {
  func.func @_downsample_block_kernel(%arg0: i32, %arg1: memref<1x9x128xf32, #tpu.memory_space<vmem>>, %arg2: memref<1x8x128xf32, #tpu.memory_space<vmem>>, %arg3: memref<3x128x256xbf16, #tpu.memory_space<vmem>>, %arg4: memref<1x256xf32, #tpu.memory_space<vmem>>, %arg5: memref<3x256x256xbf16, #tpu.memory_space<vmem>>, %arg6: memref<1x256xf32, #tpu.memory_space<vmem>>, %arg7: memref<128x256xbf16, #tpu.memory_space<vmem>>, %arg8: memref<1x256xf32, #tpu.memory_space<vmem>>, %arg9: memref<1x8x256xf32, #tpu.memory_space<vmem>>, %arg10: memref<10x256xf32, #tpu.memory_space<vmem>>) attributes {dimension_semantics = [#tpu.dimension_semantics<parallel>], iteration_bounds = array<i64: 2>, scalar_prefetch = 0 : i64, scratch_operands = 1 : i64, tpu.core_type = #tpu.core_type<tc>, window_params = [{transform_indices = @transform_0, window_bounds = array<i64: 1, 9, 128>}, {transform_indices = @transform_1, window_bounds = array<i64: 1, 8, 128>}, {pipeline_mode = #tpu.pipeline_mode<synchronous>, transform_indices = @transform_2, window_bounds = array<i64: 3, 128, 256>}, {pipeline_mode = #tpu.pipeline_mode<synchronous>, transform_indices = @transform_3, window_bounds = array<i64: 1, 256>}, {pipeline_mode = #tpu.pipeline_mode<synchronous>, transform_indices = @transform_4, window_bounds = array<i64: 3, 256, 256>}, {pipeline_mode = #tpu.pipeline_mode<synchronous>, transform_indices = @transform_5, window_bounds = array<i64: 1, 256>}, {pipeline_mode = #tpu.pipeline_mode<synchronous>, transform_indices = @transform_6, window_bounds = array<i64: 128, 256>}, {pipeline_mode = #tpu.pipeline_mode<synchronous>, transform_indices = @transform_7, window_bounds = array<i64: 1, 256>}, {transform_indices = @transform_8, window_bounds = array<i64: 1, 8, 256>}]} {
    %c0 = arith.constant 0 : index
    %c0_0 = arith.constant 0 : index
    %c0_1 = arith.constant 0 : index
    %0 = vector.load %arg2[%c0, %c0_0, %c0_1] : memref<1x8x128xf32, #tpu.memory_space<vmem>>, vector<1x8x128xf32>
    %1 = vector.shape_cast %0 : vector<1x8x128xf32> to vector<8x128xf32>
    %2 = arith.truncf %1 : vector<8x128xf32> to vector<8x128xbf16>
    %c0_2 = arith.constant 0 : index
    %c0_3 = arith.constant 0 : index
    %c0_4 = arith.constant 0 : index
    %3 = vector.load %arg1[%c0_2, %c0_3, %c0_4] : memref<1x9x128xf32, #tpu.memory_space<vmem>>, vector<1x8x128xf32>
    %4 = vector.shape_cast %3 : vector<1x8x128xf32> to vector<8x128xf32>
    %5 = arith.truncf %4 : vector<8x128xf32> to vector<8x128xbf16>
    %c0_5 = arith.constant 0 : index
    %c0_6 = arith.constant 0 : index
    %c0_7 = arith.constant 0 : index
    %6 = vector.load %arg3[%c0_5, %c0_6, %c0_7] : memref<3x128x256xbf16, #tpu.memory_space<vmem>>, vector<1x128x256xbf16>
    %7 = vector.shape_cast %6 : vector<1x128x256xbf16> to vector<128x256xbf16>
    %cst = arith.constant dense<0.000000e+00> : vector<8x256xf32>
    %8 = tpu.matmul %5, %7, %cst {dimension_numbers = #tpu.dot_dimension_numbers<[1], [0], [0], [1], [0, 0, 1, 1], [], []>} : vector<8x128xbf16>, vector<128x256xbf16>, vector<8x256xf32> -> vector<8x256xf32>
    %c1 = arith.constant 1 : index
    %c0_8 = arith.constant 0 : index
    %c0_9 = arith.constant 0 : index
    %9 = vector.load %arg3[%c1, %c0_8, %c0_9] : memref<3x128x256xbf16, #tpu.memory_space<vmem>>, vector<1x128x256xbf16>
    %10 = vector.shape_cast %9 : vector<1x128x256xbf16> to vector<128x256xbf16>
    %cst_10 = arith.constant dense<0.000000e+00> : vector<8x256xf32>
    %11 = tpu.matmul %2, %10, %cst_10 {dimension_numbers = #tpu.dot_dimension_numbers<[1], [0], [0], [1], [0, 0, 1, 1], [], []>} : vector<8x128xbf16>, vector<128x256xbf16>, vector<8x256xf32> -> vector<8x256xf32>
    %12 = arith.addf %8, %11 : vector<8x256xf32>
    %c0_11 = arith.constant 0 : index
    %c1_12 = arith.constant 1 : index
    %c0_13 = arith.constant 0 : index
    %13 = vector.load %arg1[%c0_11, %c1_12, %c0_13] : memref<1x9x128xf32, #tpu.memory_space<vmem>>, vector<1x8x128xf32>
    %14 = vector.shape_cast %13 : vector<1x8x128xf32> to vector<8x128xf32>
    %15 = arith.truncf %14 : vector<8x128xf32> to vector<8x128xbf16>
    %c2 = arith.constant 2 : index
    %c0_14 = arith.constant 0 : index
    %c0_15 = arith.constant 0 : index
    %16 = vector.load %arg3[%c2, %c0_14, %c0_15] : memref<3x128x256xbf16, #tpu.memory_space<vmem>>, vector<1x128x256xbf16>
    %17 = vector.shape_cast %16 : vector<1x128x256xbf16> to vector<128x256xbf16>
    %cst_16 = arith.constant dense<0.000000e+00> : vector<8x256xf32>
    %18 = tpu.matmul %15, %17, %cst_16 {dimension_numbers = #tpu.dot_dimension_numbers<[1], [0], [0], [1], [0, 0, 1, 1], [], []>} : vector<8x128xbf16>, vector<128x256xbf16>, vector<8x256xf32> -> vector<8x256xf32>
    %19 = arith.addf %12, %18 : vector<8x256xf32>
    %c0_17 = arith.constant 0 : index
    %c0_18 = arith.constant 0 : index
    %20 = vector.load %arg4[%c0_17, %c0_18] : memref<1x256xf32, #tpu.memory_space<vmem>>, vector<1x256xf32>
    %21 = vector.broadcast %20 : vector<1x256xf32> to vector<8x256xf32>
    %22 = arith.addf %19, %21 : vector<8x256xf32>
    %cst_19 = arith.constant 0.000000e+00 : f32
    %23 = vector.broadcast %cst_19 : f32 to vector<8x256xf32>
    %24 = arith.maximumf %22, %23 : vector<8x256xf32>
    %c0_20 = arith.constant 0 : index
    %c0_21 = arith.constant 0 : index
    %25 = vector.load %arg7[%c0_20, %c0_21] : memref<128x256xbf16, #tpu.memory_space<vmem>>, vector<128x256xbf16>
    %cst_22 = arith.constant dense<0.000000e+00> : vector<8x256xf32>
    %26 = tpu.matmul %2, %25, %cst_22 {dimension_numbers = #tpu.dot_dimension_numbers<[1], [0], [0], [1], [0, 0, 1, 1], [], []>} : vector<8x128xbf16>, vector<128x256xbf16>, vector<8x256xf32> -> vector<8x256xf32>
    %c0_23 = arith.constant 0 : index
    %c0_24 = arith.constant 0 : index
    %27 = vector.load %arg8[%c0_23, %c0_24] : memref<1x256xf32, #tpu.memory_space<vmem>>, vector<1x256xf32>
    %28 = vector.broadcast %27 : vector<1x256xf32> to vector<8x256xf32>
    %29 = arith.addf %26, %28 : vector<8x256xf32>
    %cst_25 = arith.constant 0.000000e+00 : f32
    %30 = vector.broadcast %cst_25 : f32 to vector<10x256xf32>
    %c0_26 = arith.constant 0 : index
    %c0_27 = arith.constant 0 : index
    %31 = vector.load %arg10[%c0_26, %c0_27] : memref<10x256xf32, #tpu.memory_space<vmem>>, vector<10x256xf32>
    tpu.vector_store %arg10[%c0_26, %c0_27], %30 {strides = array<i32>} : memref<10x256xf32, #tpu.memory_space<vmem>>, vector<10x256xf32>,
    %c1_28 = arith.constant 1 : index
    %c0_29 = arith.constant 0 : index
    %32 = vector.load %arg10[%c1_28, %c0_29] : memref<10x256xf32, #tpu.memory_space<vmem>>, vector<8x256xf32>
    tpu.vector_store %arg10[%c1_28, %c0_29], %24 {strides = array<i32>} : memref<10x256xf32, #tpu.memory_space<vmem>>, vector<8x256xf32>,
    %cst_30 = arith.constant 0.000000e+00 : f32
    %33 = vector.broadcast %cst_30 : f32 to vector<8x256xf32>
    %c0_31 = arith.constant 0 : index
    %c0_32 = arith.constant 0 : index
    %34 = vector.load %arg10[%c0_31, %c0_32] : memref<10x256xf32, #tpu.memory_space<vmem>>, vector<8x256xf32>
    %35 = arith.truncf %34 : vector<8x256xf32> to vector<8x256xbf16>
    %c0_33 = arith.constant 0 : index
    %c0_34 = arith.constant 0 : index
    %c0_35 = arith.constant 0 : index
    %36 = vector.load %arg5[%c0_33, %c0_34, %c0_35] : memref<3x256x256xbf16, #tpu.memory_space<vmem>>, vector<1x256x256xbf16>
    %37 = vector.shape_cast %36 : vector<1x256x256xbf16> to vector<256x256xbf16>
    %cst_36 = arith.constant dense<0.000000e+00> : vector<8x256xf32>
    %38 = tpu.matmul %35, %37, %cst_36 {dimension_numbers = #tpu.dot_dimension_numbers<[1], [0], [0], [1], [0, 0, 1, 1], [], []>} : vector<8x256xbf16>, vector<256x256xbf16>, vector<8x256xf32> -> vector<8x256xf32>
    %39 = arith.addf %33, %38 : vector<8x256xf32>
    %c1_37 = arith.constant 1 : index
    %c0_38 = arith.constant 0 : index
    %40 = vector.load %arg10[%c1_37, %c0_38] : memref<10x256xf32, #tpu.memory_space<vmem>>, vector<8x256xf32>
    %41 = arith.truncf %40 : vector<8x256xf32> to vector<8x256xbf16>
    %c1_39 = arith.constant 1 : index
    %c0_40 = arith.constant 0 : index
    %c0_41 = arith.constant 0 : index
    %42 = vector.load %arg5[%c1_39, %c0_40, %c0_41] : memref<3x256x256xbf16, #tpu.memory_space<vmem>>, vector<1x256x256xbf16>
    %43 = vector.shape_cast %42 : vector<1x256x256xbf16> to vector<256x256xbf16>
    %cst_42 = arith.constant dense<0.000000e+00> : vector<8x256xf32>
    %44 = tpu.matmul %41, %43, %cst_42 {dimension_numbers = #tpu.dot_dimension_numbers<[1], [0], [0], [1], [0, 0, 1, 1], [], []>} : vector<8x256xbf16>, vector<256x256xbf16>, vector<8x256xf32> -> vector<8x256xf32>
    %45 = arith.addf %39, %44 : vector<8x256xf32>
    %c2_43 = arith.constant 2 : index
    %c0_44 = arith.constant 0 : index
    %46 = vector.load %arg10[%c2_43, %c0_44] : memref<10x256xf32, #tpu.memory_space<vmem>>, vector<8x256xf32>
    %47 = arith.truncf %46 : vector<8x256xf32> to vector<8x256xbf16>
    %c2_45 = arith.constant 2 : index
    %c0_46 = arith.constant 0 : index
    %c0_47 = arith.constant 0 : index
    %48 = vector.load %arg5[%c2_45, %c0_46, %c0_47] : memref<3x256x256xbf16, #tpu.memory_space<vmem>>, vector<1x256x256xbf16>
    %49 = vector.shape_cast %48 : vector<1x256x256xbf16> to vector<256x256xbf16>
    %cst_48 = arith.constant dense<0.000000e+00> : vector<8x256xf32>
    %50 = tpu.matmul %47, %49, %cst_48 {dimension_numbers = #tpu.dot_dimension_numbers<[1], [0], [0], [1], [0, 0, 1, 1], [], []>} : vector<8x256xbf16>, vector<256x256xbf16>, vector<8x256xf32> -> vector<8x256xf32>
    %51 = arith.addf %45, %50 : vector<8x256xf32>
    %c0_49 = arith.constant 0 : index
    %c0_50 = arith.constant 0 : index
    %52 = vector.load %arg6[%c0_49, %c0_50] : memref<1x256xf32, #tpu.memory_space<vmem>>, vector<1x256xf32>
    %53 = vector.broadcast %52 : vector<1x256xf32> to vector<8x256xf32>
    %54 = arith.addf %51, %53 : vector<8x256xf32>
    %55 = arith.addf %54, %29 : vector<8x256xf32>
    %cst_51 = arith.constant 0.000000e+00 : f32
    %56 = vector.broadcast %cst_51 : f32 to vector<8x256xf32>
    %57 = arith.maximumf %55, %56 : vector<8x256xf32>
    %c0_52 = arith.constant 0 : index
    %c0_53 = arith.constant 0 : index
    %c0_54 = arith.constant 0 : index
    %58 = vector.load %arg9[%c0_52, %c0_53, %c0_54] : memref<1x8x256xf32, #tpu.memory_space<vmem>>, vector<1x8x256xf32>
    %59 = vector.shape_cast %58 : vector<1x8x256xf32> to vector<8x256xf32>
    %60 = vector.shape_cast %57 : vector<8x256xf32> to vector<1x8x256xf32>
    tpu.vector_store %arg9[%c0_52, %c0_53, %c0_54], %60 {strides = array<i32>} : memref<1x8x256xf32, #tpu.memory_space<vmem>>, vector<1x8x256xf32>,
    return
  }
  func.func @transform_0(%arg0: i32) -> (i32, i32, i32) {
    %c0_i32 = arith.constant 0 : i32
    %c0_i32_0 = arith.constant 0 : i32
    %c0_i32_1 = arith.constant 0 : i32
    return %arg0, %c0_i32, %c0_i32_0 : i32, i32, i32
  }
  func.func @transform_1(%arg0: i32) -> (i32, i32, i32) {
    %c0_i32 = arith.constant 0 : i32
    %c0_i32_0 = arith.constant 0 : i32
    %c0_i32_1 = arith.constant 0 : i32
    return %arg0, %c0_i32, %c0_i32_0 : i32, i32, i32
  }
  func.func @transform_2(%arg0: i32) -> (i32, i32, i32) {
    %c0_i32 = arith.constant 0 : i32
    %c0_i32_0 = arith.constant 0 : i32
    %c0_i32_1 = arith.constant 0 : i32
    %c0_i32_2 = arith.constant 0 : i32
    return %c0_i32, %c0_i32_0, %c0_i32_1 : i32, i32, i32
  }
  func.func @transform_3(%arg0: i32) -> (i32, i32) {
    %c0_i32 = arith.constant 0 : i32
    %c0_i32_0 = arith.constant 0 : i32
    %c0_i32_1 = arith.constant 0 : i32
    return %c0_i32, %c0_i32_0 : i32, i32
  }
  func.func @transform_4(%arg0: i32) -> (i32, i32, i32) {
    %c0_i32 = arith.constant 0 : i32
    %c0_i32_0 = arith.constant 0 : i32
    %c0_i32_1 = arith.constant 0 : i32
    %c0_i32_2 = arith.constant 0 : i32
    return %c0_i32, %c0_i32_0, %c0_i32_1 : i32, i32, i32
  }
  func.func @transform_5(%arg0: i32) -> (i32, i32) {
    %c0_i32 = arith.constant 0 : i32
    %c0_i32_0 = arith.constant 0 : i32
    %c0_i32_1 = arith.constant 0 : i32
    return %c0_i32, %c0_i32_0 : i32, i32
  }
  func.func @transform_6(%arg0: i32) -> (i32, i32) {
    %c0_i32 = arith.constant 0 : i32
    %c0_i32_0 = arith.constant 0 : i32
    %c0_i32_1 = arith.constant 0 : i32
    return %c0_i32, %c0_i32_0 : i32, i32
  }
  func.func @transform_7(%arg0: i32) -> (i32, i32) {
    %c0_i32 = arith.constant 0 : i32
    %c0_i32_0 = arith.constant 0 : i32
    %c0_i32_1 = arith.constant 0 : i32
    return %c0_i32, %c0_i32_0 : i32, i32
  }
  func.func @transform_8(%arg0: i32) -> (i32, i32, i32) {
    %c0_i32 = arith.constant 0 : i32
    %c0_i32_0 = arith.constant 0 : i32
    %c0_i32_1 = arith.constant 0 : i32
    return %arg0, %c0_i32, %c0_i32_0 : i32, i32, i32
  }
}

module attributes {stable_mosaic.version = 11 : i64} {
  func.func @_identity_block_kernel(%arg0: i32, %arg1: memref<1x10x256xf32, #tpu.memory_space<vmem>>, %arg2: memref<3x256x256xbf16, #tpu.memory_space<vmem>>, %arg3: memref<1x256xf32, #tpu.memory_space<vmem>>, %arg4: memref<3x256x256xbf16, #tpu.memory_space<vmem>>, %arg5: memref<1x256xf32, #tpu.memory_space<vmem>>, %arg6: memref<1x8x256xf32, #tpu.memory_space<vmem>>, %arg7: memref<10x256xf32, #tpu.memory_space<vmem>>) attributes {dimension_semantics = [#tpu.dimension_semantics<parallel>], iteration_bounds = array<i64: 2>, scalar_prefetch = 0 : i64, scratch_operands = 1 : i64, tpu.core_type = #tpu.core_type<tc>, window_params = [{transform_indices = @transform_0, window_bounds = array<i64: 1, 10, 256>}, {pipeline_mode = #tpu.pipeline_mode<synchronous>, transform_indices = @transform_1, window_bounds = array<i64: 3, 256, 256>}, {pipeline_mode = #tpu.pipeline_mode<synchronous>, transform_indices = @transform_2, window_bounds = array<i64: 1, 256>}, {pipeline_mode = #tpu.pipeline_mode<synchronous>, transform_indices = @transform_3, window_bounds = array<i64: 3, 256, 256>}, {pipeline_mode = #tpu.pipeline_mode<synchronous>, transform_indices = @transform_4, window_bounds = array<i64: 1, 256>}, {transform_indices = @transform_5, window_bounds = array<i64: 1, 8, 256>}]} {
    %cst = arith.constant 0.000000e+00 : f32
    %0 = vector.broadcast %cst : f32 to vector<8x256xf32>
    %c0 = arith.constant 0 : index
    %c0_0 = arith.constant 0 : index
    %c0_1 = arith.constant 0 : index
    %1 = vector.load %arg1[%c0, %c0_0, %c0_1] : memref<1x10x256xf32, #tpu.memory_space<vmem>>, vector<1x8x256xf32>
    %2 = vector.shape_cast %1 : vector<1x8x256xf32> to vector<8x256xf32>
    %3 = arith.truncf %2 : vector<8x256xf32> to vector<8x256xbf16>
    %c0_2 = arith.constant 0 : index
    %c0_3 = arith.constant 0 : index
    %c0_4 = arith.constant 0 : index
    %4 = vector.load %arg2[%c0_2, %c0_3, %c0_4] : memref<3x256x256xbf16, #tpu.memory_space<vmem>>, vector<1x256x256xbf16>
    %5 = vector.shape_cast %4 : vector<1x256x256xbf16> to vector<256x256xbf16>
    %cst_5 = arith.constant dense<0.000000e+00> : vector<8x256xf32>
    %6 = tpu.matmul %3, %5, %cst_5 {dimension_numbers = #tpu.dot_dimension_numbers<[1], [0], [0], [1], [0, 0, 1, 1], [], []>} : vector<8x256xbf16>, vector<256x256xbf16>, vector<8x256xf32> -> vector<8x256xf32>
    %7 = arith.addf %0, %6 : vector<8x256xf32>
    %c0_6 = arith.constant 0 : index
    %c1 = arith.constant 1 : index
    %c0_7 = arith.constant 0 : index
    %8 = vector.load %arg1[%c0_6, %c1, %c0_7] : memref<1x10x256xf32, #tpu.memory_space<vmem>>, vector<1x8x256xf32>
    %9 = vector.shape_cast %8 : vector<1x8x256xf32> to vector<8x256xf32>
    %10 = arith.truncf %9 : vector<8x256xf32> to vector<8x256xbf16>
    %c1_8 = arith.constant 1 : index
    %c0_9 = arith.constant 0 : index
    %c0_10 = arith.constant 0 : index
    %11 = vector.load %arg2[%c1_8, %c0_9, %c0_10] : memref<3x256x256xbf16, #tpu.memory_space<vmem>>, vector<1x256x256xbf16>
    %12 = vector.shape_cast %11 : vector<1x256x256xbf16> to vector<256x256xbf16>
    %cst_11 = arith.constant dense<0.000000e+00> : vector<8x256xf32>
    %13 = tpu.matmul %10, %12, %cst_11 {dimension_numbers = #tpu.dot_dimension_numbers<[1], [0], [0], [1], [0, 0, 1, 1], [], []>} : vector<8x256xbf16>, vector<256x256xbf16>, vector<8x256xf32> -> vector<8x256xf32>
    %14 = arith.addf %7, %13 : vector<8x256xf32>
    %c0_12 = arith.constant 0 : index
    %c2 = arith.constant 2 : index
    %c0_13 = arith.constant 0 : index
    %15 = vector.load %arg1[%c0_12, %c2, %c0_13] : memref<1x10x256xf32, #tpu.memory_space<vmem>>, vector<1x8x256xf32>
    %16 = vector.shape_cast %15 : vector<1x8x256xf32> to vector<8x256xf32>
    %17 = arith.truncf %16 : vector<8x256xf32> to vector<8x256xbf16>
    %c2_14 = arith.constant 2 : index
    %c0_15 = arith.constant 0 : index
    %c0_16 = arith.constant 0 : index
    %18 = vector.load %arg2[%c2_14, %c0_15, %c0_16] : memref<3x256x256xbf16, #tpu.memory_space<vmem>>, vector<1x256x256xbf16>
    %19 = vector.shape_cast %18 : vector<1x256x256xbf16> to vector<256x256xbf16>
    %cst_17 = arith.constant dense<0.000000e+00> : vector<8x256xf32>
    %20 = tpu.matmul %17, %19, %cst_17 {dimension_numbers = #tpu.dot_dimension_numbers<[1], [0], [0], [1], [0, 0, 1, 1], [], []>} : vector<8x256xbf16>, vector<256x256xbf16>, vector<8x256xf32> -> vector<8x256xf32>
    %21 = arith.addf %14, %20 : vector<8x256xf32>
    %c0_18 = arith.constant 0 : index
    %c0_19 = arith.constant 0 : index
    %22 = vector.load %arg3[%c0_18, %c0_19] : memref<1x256xf32, #tpu.memory_space<vmem>>, vector<1x256xf32>
    %23 = vector.broadcast %22 : vector<1x256xf32> to vector<8x256xf32>
    %24 = arith.addf %21, %23 : vector<8x256xf32>
    %cst_20 = arith.constant 0.000000e+00 : f32
    %25 = vector.broadcast %cst_20 : f32 to vector<8x256xf32>
    %26 = arith.maximumf %24, %25 : vector<8x256xf32>
    %cst_21 = arith.constant 0.000000e+00 : f32
    %27 = vector.broadcast %cst_21 : f32 to vector<10x256xf32>
    %c0_22 = arith.constant 0 : index
    %c0_23 = arith.constant 0 : index
    %28 = vector.load %arg7[%c0_22, %c0_23] : memref<10x256xf32, #tpu.memory_space<vmem>>, vector<10x256xf32>
    tpu.vector_store %arg7[%c0_22, %c0_23], %27 {strides = array<i32>} : memref<10x256xf32, #tpu.memory_space<vmem>>, vector<10x256xf32>,
    %c1_24 = arith.constant 1 : index
    %c0_25 = arith.constant 0 : index
    %29 = vector.load %arg7[%c1_24, %c0_25] : memref<10x256xf32, #tpu.memory_space<vmem>>, vector<8x256xf32>
    tpu.vector_store %arg7[%c1_24, %c0_25], %26 {strides = array<i32>} : memref<10x256xf32, #tpu.memory_space<vmem>>, vector<8x256xf32>,
    %cst_26 = arith.constant 0.000000e+00 : f32
    %30 = vector.broadcast %cst_26 : f32 to vector<8x256xf32>
    %c0_27 = arith.constant 0 : index
    %c0_28 = arith.constant 0 : index
    %31 = vector.load %arg7[%c0_27, %c0_28] : memref<10x256xf32, #tpu.memory_space<vmem>>, vector<8x256xf32>
    %32 = arith.truncf %31 : vector<8x256xf32> to vector<8x256xbf16>
    %c0_29 = arith.constant 0 : index
    %c0_30 = arith.constant 0 : index
    %c0_31 = arith.constant 0 : index
    %33 = vector.load %arg4[%c0_29, %c0_30, %c0_31] : memref<3x256x256xbf16, #tpu.memory_space<vmem>>, vector<1x256x256xbf16>
    %34 = vector.shape_cast %33 : vector<1x256x256xbf16> to vector<256x256xbf16>
    %cst_32 = arith.constant dense<0.000000e+00> : vector<8x256xf32>
    %35 = tpu.matmul %32, %34, %cst_32 {dimension_numbers = #tpu.dot_dimension_numbers<[1], [0], [0], [1], [0, 0, 1, 1], [], []>} : vector<8x256xbf16>, vector<256x256xbf16>, vector<8x256xf32> -> vector<8x256xf32>
    %36 = arith.addf %30, %35 : vector<8x256xf32>
    %c1_33 = arith.constant 1 : index
    %c0_34 = arith.constant 0 : index
    %37 = vector.load %arg7[%c1_33, %c0_34] : memref<10x256xf32, #tpu.memory_space<vmem>>, vector<8x256xf32>
    %38 = arith.truncf %37 : vector<8x256xf32> to vector<8x256xbf16>
    %c1_35 = arith.constant 1 : index
    %c0_36 = arith.constant 0 : index
    %c0_37 = arith.constant 0 : index
    %39 = vector.load %arg4[%c1_35, %c0_36, %c0_37] : memref<3x256x256xbf16, #tpu.memory_space<vmem>>, vector<1x256x256xbf16>
    %40 = vector.shape_cast %39 : vector<1x256x256xbf16> to vector<256x256xbf16>
    %cst_38 = arith.constant dense<0.000000e+00> : vector<8x256xf32>
    %41 = tpu.matmul %38, %40, %cst_38 {dimension_numbers = #tpu.dot_dimension_numbers<[1], [0], [0], [1], [0, 0, 1, 1], [], []>} : vector<8x256xbf16>, vector<256x256xbf16>, vector<8x256xf32> -> vector<8x256xf32>
    %42 = arith.addf %36, %41 : vector<8x256xf32>
    %c2_39 = arith.constant 2 : index
    %c0_40 = arith.constant 0 : index
    %43 = vector.load %arg7[%c2_39, %c0_40] : memref<10x256xf32, #tpu.memory_space<vmem>>, vector<8x256xf32>
    %44 = arith.truncf %43 : vector<8x256xf32> to vector<8x256xbf16>
    %c2_41 = arith.constant 2 : index
    %c0_42 = arith.constant 0 : index
    %c0_43 = arith.constant 0 : index
    %45 = vector.load %arg4[%c2_41, %c0_42, %c0_43] : memref<3x256x256xbf16, #tpu.memory_space<vmem>>, vector<1x256x256xbf16>
    %46 = vector.shape_cast %45 : vector<1x256x256xbf16> to vector<256x256xbf16>
    %cst_44 = arith.constant dense<0.000000e+00> : vector<8x256xf32>
    %47 = tpu.matmul %44, %46, %cst_44 {dimension_numbers = #tpu.dot_dimension_numbers<[1], [0], [0], [1], [0, 0, 1, 1], [], []>} : vector<8x256xbf16>, vector<256x256xbf16>, vector<8x256xf32> -> vector<8x256xf32>
    %48 = arith.addf %42, %47 : vector<8x256xf32>
    %c0_45 = arith.constant 0 : index
    %c0_46 = arith.constant 0 : index
    %49 = vector.load %arg5[%c0_45, %c0_46] : memref<1x256xf32, #tpu.memory_space<vmem>>, vector<1x256xf32>
    %50 = vector.broadcast %49 : vector<1x256xf32> to vector<8x256xf32>
    %51 = arith.addf %48, %50 : vector<8x256xf32>
    %c0_47 = arith.constant 0 : index
    %c1_48 = arith.constant 1 : index
    %c0_49 = arith.constant 0 : index
    %52 = vector.load %arg1[%c0_47, %c1_48, %c0_49] : memref<1x10x256xf32, #tpu.memory_space<vmem>>, vector<1x8x256xf32>
    %53 = vector.shape_cast %52 : vector<1x8x256xf32> to vector<8x256xf32>
    %54 = arith.addf %51, %53 : vector<8x256xf32>
    %cst_50 = arith.constant 0.000000e+00 : f32
    %55 = vector.broadcast %cst_50 : f32 to vector<8x256xf32>
    %56 = arith.maximumf %54, %55 : vector<8x256xf32>
    %c0_51 = arith.constant 0 : index
    %c0_52 = arith.constant 0 : index
    %c0_53 = arith.constant 0 : index
    %57 = vector.load %arg6[%c0_51, %c0_52, %c0_53] : memref<1x8x256xf32, #tpu.memory_space<vmem>>, vector<1x8x256xf32>
    %58 = vector.shape_cast %57 : vector<1x8x256xf32> to vector<8x256xf32>
    %59 = vector.shape_cast %56 : vector<8x256xf32> to vector<1x8x256xf32>
    tpu.vector_store %arg6[%c0_51, %c0_52, %c0_53], %59 {strides = array<i32>} : memref<1x8x256xf32, #tpu.memory_space<vmem>>, vector<1x8x256xf32>,
    return
  }
  func.func @transform_0(%arg0: i32) -> (i32, i32, i32) {
    %c0_i32 = arith.constant 0 : i32
    %c0_i32_0 = arith.constant 0 : i32
    %c0_i32_1 = arith.constant 0 : i32
    return %arg0, %c0_i32, %c0_i32_0 : i32, i32, i32
  }
  func.func @transform_1(%arg0: i32) -> (i32, i32, i32) {
    %c0_i32 = arith.constant 0 : i32
    %c0_i32_0 = arith.constant 0 : i32
    %c0_i32_1 = arith.constant 0 : i32
    %c0_i32_2 = arith.constant 0 : i32
    return %c0_i32, %c0_i32_0, %c0_i32_1 : i32, i32, i32
  }
  func.func @transform_2(%arg0: i32) -> (i32, i32) {
    %c0_i32 = arith.constant 0 : i32
    %c0_i32_0 = arith.constant 0 : i32
    %c0_i32_1 = arith.constant 0 : i32
    return %c0_i32, %c0_i32_0 : i32, i32
  }
  func.func @transform_3(%arg0: i32) -> (i32, i32, i32) {
    %c0_i32 = arith.constant 0 : i32
    %c0_i32_0 = arith.constant 0 : i32
    %c0_i32_1 = arith.constant 0 : i32
    %c0_i32_2 = arith.constant 0 : i32
    return %c0_i32, %c0_i32_0, %c0_i32_1 : i32, i32, i32
  }
  func.func @transform_4(%arg0: i32) -> (i32, i32) {
    %c0_i32 = arith.constant 0 : i32
    %c0_i32_0 = arith.constant 0 : i32
    %c0_i32_1 = arith.constant 0 : i32
    return %c0_i32, %c0_i32_0 : i32, i32
  }
  func.func @transform_5(%arg0: i32) -> (i32, i32, i32) {
    %c0_i32 = arith.constant 0 : i32
    %c0_i32_0 = arith.constant 0 : i32
    %c0_i32_1 = arith.constant 0 : i32
    return %arg0, %c0_i32, %c0_i32_0 : i32, i32, i32
  }
}

module attributes {stable_mosaic.version = 11 : i64} {
  func.func @_downsample_block_kernel(%arg0: i32, %arg1: memref<1x5x256xf32, #tpu.memory_space<vmem>>, %arg2: memref<1x4x256xf32, #tpu.memory_space<vmem>>, %arg3: memref<3x256x512xbf16, #tpu.memory_space<vmem>>, %arg4: memref<1x512xf32, #tpu.memory_space<vmem>>, %arg5: memref<3x512x512xbf16, #tpu.memory_space<vmem>>, %arg6: memref<1x512xf32, #tpu.memory_space<vmem>>, %arg7: memref<256x512xbf16, #tpu.memory_space<vmem>>, %arg8: memref<1x512xf32, #tpu.memory_space<vmem>>, %arg9: memref<1x4x512xf32, #tpu.memory_space<vmem>>, %arg10: memref<6x512xf32, #tpu.memory_space<vmem>>) attributes {dimension_semantics = [#tpu.dimension_semantics<parallel>], iteration_bounds = array<i64: 2>, scalar_prefetch = 0 : i64, scratch_operands = 1 : i64, tpu.core_type = #tpu.core_type<tc>, window_params = [{transform_indices = @transform_0, window_bounds = array<i64: 1, 5, 256>}, {transform_indices = @transform_1, window_bounds = array<i64: 1, 4, 256>}, {pipeline_mode = #tpu.pipeline_mode<synchronous>, transform_indices = @transform_2, window_bounds = array<i64: 3, 256, 512>}, {pipeline_mode = #tpu.pipeline_mode<synchronous>, transform_indices = @transform_3, window_bounds = array<i64: 1, 512>}, {pipeline_mode = #tpu.pipeline_mode<synchronous>, transform_indices = @transform_4, window_bounds = array<i64: 3, 512, 512>}, {pipeline_mode = #tpu.pipeline_mode<synchronous>, transform_indices = @transform_5, window_bounds = array<i64: 1, 512>}, {pipeline_mode = #tpu.pipeline_mode<synchronous>, transform_indices = @transform_6, window_bounds = array<i64: 256, 512>}, {pipeline_mode = #tpu.pipeline_mode<synchronous>, transform_indices = @transform_7, window_bounds = array<i64: 1, 512>}, {transform_indices = @transform_8, window_bounds = array<i64: 1, 4, 512>}]} {
    %c0 = arith.constant 0 : index
    %c0_0 = arith.constant 0 : index
    %c0_1 = arith.constant 0 : index
    %0 = vector.load %arg2[%c0, %c0_0, %c0_1] : memref<1x4x256xf32, #tpu.memory_space<vmem>>, vector<1x4x256xf32>
    %1 = vector.shape_cast %0 : vector<1x4x256xf32> to vector<4x256xf32>
    %2 = arith.truncf %1 : vector<4x256xf32> to vector<4x256xbf16>
    %c0_2 = arith.constant 0 : index
    %c0_3 = arith.constant 0 : index
    %c0_4 = arith.constant 0 : index
    %3 = vector.load %arg1[%c0_2, %c0_3, %c0_4] : memref<1x5x256xf32, #tpu.memory_space<vmem>>, vector<1x4x256xf32>
    %4 = vector.shape_cast %3 : vector<1x4x256xf32> to vector<4x256xf32>
    %5 = arith.truncf %4 : vector<4x256xf32> to vector<4x256xbf16>
    %c0_5 = arith.constant 0 : index
    %c0_6 = arith.constant 0 : index
    %c0_7 = arith.constant 0 : index
    %6 = vector.load %arg3[%c0_5, %c0_6, %c0_7] : memref<3x256x512xbf16, #tpu.memory_space<vmem>>, vector<1x256x512xbf16>
    %7 = vector.shape_cast %6 : vector<1x256x512xbf16> to vector<256x512xbf16>
    %cst = arith.constant dense<0.000000e+00> : vector<4x512xf32>
    %8 = tpu.matmul %5, %7, %cst {dimension_numbers = #tpu.dot_dimension_numbers<[1], [0], [0], [1], [0, 0, 1, 1], [], []>} : vector<4x256xbf16>, vector<256x512xbf16>, vector<4x512xf32> -> vector<4x512xf32>
    %c1 = arith.constant 1 : index
    %c0_8 = arith.constant 0 : index
    %c0_9 = arith.constant 0 : index
    %9 = vector.load %arg3[%c1, %c0_8, %c0_9] : memref<3x256x512xbf16, #tpu.memory_space<vmem>>, vector<1x256x512xbf16>
    %10 = vector.shape_cast %9 : vector<1x256x512xbf16> to vector<256x512xbf16>
    %cst_10 = arith.constant dense<0.000000e+00> : vector<4x512xf32>
    %11 = tpu.matmul %2, %10, %cst_10 {dimension_numbers = #tpu.dot_dimension_numbers<[1], [0], [0], [1], [0, 0, 1, 1], [], []>} : vector<4x256xbf16>, vector<256x512xbf16>, vector<4x512xf32> -> vector<4x512xf32>
    %12 = arith.addf %8, %11 : vector<4x512xf32>
    %c0_11 = arith.constant 0 : index
    %c1_12 = arith.constant 1 : index
    %c0_13 = arith.constant 0 : index
    %13 = vector.load %arg1[%c0_11, %c1_12, %c0_13] : memref<1x5x256xf32, #tpu.memory_space<vmem>>, vector<1x4x256xf32>
    %14 = vector.shape_cast %13 : vector<1x4x256xf32> to vector<4x256xf32>
    %15 = arith.truncf %14 : vector<4x256xf32> to vector<4x256xbf16>
    %c2 = arith.constant 2 : index
    %c0_14 = arith.constant 0 : index
    %c0_15 = arith.constant 0 : index
    %16 = vector.load %arg3[%c2, %c0_14, %c0_15] : memref<3x256x512xbf16, #tpu.memory_space<vmem>>, vector<1x256x512xbf16>
    %17 = vector.shape_cast %16 : vector<1x256x512xbf16> to vector<256x512xbf16>
    %cst_16 = arith.constant dense<0.000000e+00> : vector<4x512xf32>
    %18 = tpu.matmul %15, %17, %cst_16 {dimension_numbers = #tpu.dot_dimension_numbers<[1], [0], [0], [1], [0, 0, 1, 1], [], []>} : vector<4x256xbf16>, vector<256x512xbf16>, vector<4x512xf32> -> vector<4x512xf32>
    %19 = arith.addf %12, %18 : vector<4x512xf32>
    %c0_17 = arith.constant 0 : index
    %c0_18 = arith.constant 0 : index
    %20 = vector.load %arg4[%c0_17, %c0_18] : memref<1x512xf32, #tpu.memory_space<vmem>>, vector<1x512xf32>
    %21 = vector.broadcast %20 : vector<1x512xf32> to vector<4x512xf32>
    %22 = arith.addf %19, %21 : vector<4x512xf32>
    %cst_19 = arith.constant 0.000000e+00 : f32
    %23 = vector.broadcast %cst_19 : f32 to vector<4x512xf32>
    %24 = arith.maximumf %22, %23 : vector<4x512xf32>
    %c0_20 = arith.constant 0 : index
    %c0_21 = arith.constant 0 : index
    %25 = vector.load %arg7[%c0_20, %c0_21] : memref<256x512xbf16, #tpu.memory_space<vmem>>, vector<256x512xbf16>
    %cst_22 = arith.constant dense<0.000000e+00> : vector<4x512xf32>
    %26 = tpu.matmul %2, %25, %cst_22 {dimension_numbers = #tpu.dot_dimension_numbers<[1], [0], [0], [1], [0, 0, 1, 1], [], []>} : vector<4x256xbf16>, vector<256x512xbf16>, vector<4x512xf32> -> vector<4x512xf32>
    %c0_23 = arith.constant 0 : index
    %c0_24 = arith.constant 0 : index
    %27 = vector.load %arg8[%c0_23, %c0_24] : memref<1x512xf32, #tpu.memory_space<vmem>>, vector<1x512xf32>
    %28 = vector.broadcast %27 : vector<1x512xf32> to vector<4x512xf32>
    %29 = arith.addf %26, %28 : vector<4x512xf32>
    %cst_25 = arith.constant 0.000000e+00 : f32
    %30 = vector.broadcast %cst_25 : f32 to vector<6x512xf32>
    %c0_26 = arith.constant 0 : index
    %c0_27 = arith.constant 0 : index
    %31 = vector.load %arg10[%c0_26, %c0_27] : memref<6x512xf32, #tpu.memory_space<vmem>>, vector<6x512xf32>
    tpu.vector_store %arg10[%c0_26, %c0_27], %30 {strides = array<i32>} : memref<6x512xf32, #tpu.memory_space<vmem>>, vector<6x512xf32>,
    %c1_28 = arith.constant 1 : index
    %c0_29 = arith.constant 0 : index
    %32 = vector.load %arg10[%c1_28, %c0_29] : memref<6x512xf32, #tpu.memory_space<vmem>>, vector<4x512xf32>
    tpu.vector_store %arg10[%c1_28, %c0_29], %24 {strides = array<i32>} : memref<6x512xf32, #tpu.memory_space<vmem>>, vector<4x512xf32>,
    %cst_30 = arith.constant 0.000000e+00 : f32
    %33 = vector.broadcast %cst_30 : f32 to vector<4x512xf32>
    %c0_31 = arith.constant 0 : index
    %c0_32 = arith.constant 0 : index
    %34 = vector.load %arg10[%c0_31, %c0_32] : memref<6x512xf32, #tpu.memory_space<vmem>>, vector<4x512xf32>
    %35 = arith.truncf %34 : vector<4x512xf32> to vector<4x512xbf16>
    %c0_33 = arith.constant 0 : index
    %c0_34 = arith.constant 0 : index
    %c0_35 = arith.constant 0 : index
    %36 = vector.load %arg5[%c0_33, %c0_34, %c0_35] : memref<3x512x512xbf16, #tpu.memory_space<vmem>>, vector<1x512x512xbf16>
    %37 = vector.shape_cast %36 : vector<1x512x512xbf16> to vector<512x512xbf16>
    %cst_36 = arith.constant dense<0.000000e+00> : vector<4x512xf32>
    %38 = tpu.matmul %35, %37, %cst_36 {dimension_numbers = #tpu.dot_dimension_numbers<[1], [0], [0], [1], [0, 0, 1, 1], [], []>} : vector<4x512xbf16>, vector<512x512xbf16>, vector<4x512xf32> -> vector<4x512xf32>
    %39 = arith.addf %33, %38 : vector<4x512xf32>
    %c1_37 = arith.constant 1 : index
    %c0_38 = arith.constant 0 : index
    %40 = vector.load %arg10[%c1_37, %c0_38] : memref<6x512xf32, #tpu.memory_space<vmem>>, vector<4x512xf32>
    %41 = arith.truncf %40 : vector<4x512xf32> to vector<4x512xbf16>
    %c1_39 = arith.constant 1 : index
    %c0_40 = arith.constant 0 : index
    %c0_41 = arith.constant 0 : index
    %42 = vector.load %arg5[%c1_39, %c0_40, %c0_41] : memref<3x512x512xbf16, #tpu.memory_space<vmem>>, vector<1x512x512xbf16>
    %43 = vector.shape_cast %42 : vector<1x512x512xbf16> to vector<512x512xbf16>
    %cst_42 = arith.constant dense<0.000000e+00> : vector<4x512xf32>
    %44 = tpu.matmul %41, %43, %cst_42 {dimension_numbers = #tpu.dot_dimension_numbers<[1], [0], [0], [1], [0, 0, 1, 1], [], []>} : vector<4x512xbf16>, vector<512x512xbf16>, vector<4x512xf32> -> vector<4x512xf32>
    %45 = arith.addf %39, %44 : vector<4x512xf32>
    %c2_43 = arith.constant 2 : index
    %c0_44 = arith.constant 0 : index
    %46 = vector.load %arg10[%c2_43, %c0_44] : memref<6x512xf32, #tpu.memory_space<vmem>>, vector<4x512xf32>
    %47 = arith.truncf %46 : vector<4x512xf32> to vector<4x512xbf16>
    %c2_45 = arith.constant 2 : index
    %c0_46 = arith.constant 0 : index
    %c0_47 = arith.constant 0 : index
    %48 = vector.load %arg5[%c2_45, %c0_46, %c0_47] : memref<3x512x512xbf16, #tpu.memory_space<vmem>>, vector<1x512x512xbf16>
    %49 = vector.shape_cast %48 : vector<1x512x512xbf16> to vector<512x512xbf16>
    %cst_48 = arith.constant dense<0.000000e+00> : vector<4x512xf32>
    %50 = tpu.matmul %47, %49, %cst_48 {dimension_numbers = #tpu.dot_dimension_numbers<[1], [0], [0], [1], [0, 0, 1, 1], [], []>} : vector<4x512xbf16>, vector<512x512xbf16>, vector<4x512xf32> -> vector<4x512xf32>
    %51 = arith.addf %45, %50 : vector<4x512xf32>
    %c0_49 = arith.constant 0 : index
    %c0_50 = arith.constant 0 : index
    %52 = vector.load %arg6[%c0_49, %c0_50] : memref<1x512xf32, #tpu.memory_space<vmem>>, vector<1x512xf32>
    %53 = vector.broadcast %52 : vector<1x512xf32> to vector<4x512xf32>
    %54 = arith.addf %51, %53 : vector<4x512xf32>
    %55 = arith.addf %54, %29 : vector<4x512xf32>
    %cst_51 = arith.constant 0.000000e+00 : f32
    %56 = vector.broadcast %cst_51 : f32 to vector<4x512xf32>
    %57 = arith.maximumf %55, %56 : vector<4x512xf32>
    %c0_52 = arith.constant 0 : index
    %c0_53 = arith.constant 0 : index
    %c0_54 = arith.constant 0 : index
    %58 = vector.load %arg9[%c0_52, %c0_53, %c0_54] : memref<1x4x512xf32, #tpu.memory_space<vmem>>, vector<1x4x512xf32>
    %59 = vector.shape_cast %58 : vector<1x4x512xf32> to vector<4x512xf32>
    %60 = vector.shape_cast %57 : vector<4x512xf32> to vector<1x4x512xf32>
    tpu.vector_store %arg9[%c0_52, %c0_53, %c0_54], %60 {strides = array<i32>} : memref<1x4x512xf32, #tpu.memory_space<vmem>>, vector<1x4x512xf32>,
    return
  }
  func.func @transform_0(%arg0: i32) -> (i32, i32, i32) {
    %c0_i32 = arith.constant 0 : i32
    %c0_i32_0 = arith.constant 0 : i32
    %c0_i32_1 = arith.constant 0 : i32
    return %arg0, %c0_i32, %c0_i32_0 : i32, i32, i32
  }
  func.func @transform_1(%arg0: i32) -> (i32, i32, i32) {
    %c0_i32 = arith.constant 0 : i32
    %c0_i32_0 = arith.constant 0 : i32
    %c0_i32_1 = arith.constant 0 : i32
    return %arg0, %c0_i32, %c0_i32_0 : i32, i32, i32
  }
  func.func @transform_2(%arg0: i32) -> (i32, i32, i32) {
    %c0_i32 = arith.constant 0 : i32
    %c0_i32_0 = arith.constant 0 : i32
    %c0_i32_1 = arith.constant 0 : i32
    %c0_i32_2 = arith.constant 0 : i32
    return %c0_i32, %c0_i32_0, %c0_i32_1 : i32, i32, i32
  }
  func.func @transform_3(%arg0: i32) -> (i32, i32) {
    %c0_i32 = arith.constant 0 : i32
    %c0_i32_0 = arith.constant 0 : i32
    %c0_i32_1 = arith.constant 0 : i32
    return %c0_i32, %c0_i32_0 : i32, i32
  }
  func.func @transform_4(%arg0: i32) -> (i32, i32, i32) {
    %c0_i32 = arith.constant 0 : i32
    %c0_i32_0 = arith.constant 0 : i32
    %c0_i32_1 = arith.constant 0 : i32
    %c0_i32_2 = arith.constant 0 : i32
    return %c0_i32, %c0_i32_0, %c0_i32_1 : i32, i32, i32
  }
  func.func @transform_5(%arg0: i32) -> (i32, i32) {
    %c0_i32 = arith.constant 0 : i32
    %c0_i32_0 = arith.constant 0 : i32
    %c0_i32_1 = arith.constant 0 : i32
    return %c0_i32, %c0_i32_0 : i32, i32
  }
  func.func @transform_6(%arg0: i32) -> (i32, i32) {
    %c0_i32 = arith.constant 0 : i32
    %c0_i32_0 = arith.constant 0 : i32
    %c0_i32_1 = arith.constant 0 : i32
    return %c0_i32, %c0_i32_0 : i32, i32
  }
  func.func @transform_7(%arg0: i32) -> (i32, i32) {
    %c0_i32 = arith.constant 0 : i32
    %c0_i32_0 = arith.constant 0 : i32
    %c0_i32_1 = arith.constant 0 : i32
    return %c0_i32, %c0_i32_0 : i32, i32
  }
  func.func @transform_8(%arg0: i32) -> (i32, i32, i32) {
    %c0_i32 = arith.constant 0 : i32
    %c0_i32_0 = arith.constant 0 : i32
    %c0_i32_1 = arith.constant 0 : i32
    return %arg0, %c0_i32, %c0_i32_0 : i32, i32, i32
  }
}

module attributes {stable_mosaic.version = 11 : i64} {
  func.func @_identity_block_kernel(%arg0: i32, %arg1: memref<1x6x512xf32, #tpu.memory_space<vmem>>, %arg2: memref<3x512x512xbf16, #tpu.memory_space<vmem>>, %arg3: memref<1x512xf32, #tpu.memory_space<vmem>>, %arg4: memref<3x512x512xbf16, #tpu.memory_space<vmem>>, %arg5: memref<1x512xf32, #tpu.memory_space<vmem>>, %arg6: memref<1x4x512xf32, #tpu.memory_space<vmem>>, %arg7: memref<6x512xf32, #tpu.memory_space<vmem>>) attributes {dimension_semantics = [#tpu.dimension_semantics<parallel>], iteration_bounds = array<i64: 2>, scalar_prefetch = 0 : i64, scratch_operands = 1 : i64, tpu.core_type = #tpu.core_type<tc>, window_params = [{transform_indices = @transform_0, window_bounds = array<i64: 1, 6, 512>}, {pipeline_mode = #tpu.pipeline_mode<synchronous>, transform_indices = @transform_1, window_bounds = array<i64: 3, 512, 512>}, {pipeline_mode = #tpu.pipeline_mode<synchronous>, transform_indices = @transform_2, window_bounds = array<i64: 1, 512>}, {pipeline_mode = #tpu.pipeline_mode<synchronous>, transform_indices = @transform_3, window_bounds = array<i64: 3, 512, 512>}, {pipeline_mode = #tpu.pipeline_mode<synchronous>, transform_indices = @transform_4, window_bounds = array<i64: 1, 512>}, {transform_indices = @transform_5, window_bounds = array<i64: 1, 4, 512>}]} {
    %cst = arith.constant 0.000000e+00 : f32
    %0 = vector.broadcast %cst : f32 to vector<4x512xf32>
    %c0 = arith.constant 0 : index
    %c0_0 = arith.constant 0 : index
    %c0_1 = arith.constant 0 : index
    %1 = vector.load %arg1[%c0, %c0_0, %c0_1] : memref<1x6x512xf32, #tpu.memory_space<vmem>>, vector<1x4x512xf32>
    %2 = vector.shape_cast %1 : vector<1x4x512xf32> to vector<4x512xf32>
    %3 = arith.truncf %2 : vector<4x512xf32> to vector<4x512xbf16>
    %c0_2 = arith.constant 0 : index
    %c0_3 = arith.constant 0 : index
    %c0_4 = arith.constant 0 : index
    %4 = vector.load %arg2[%c0_2, %c0_3, %c0_4] : memref<3x512x512xbf16, #tpu.memory_space<vmem>>, vector<1x512x512xbf16>
    %5 = vector.shape_cast %4 : vector<1x512x512xbf16> to vector<512x512xbf16>
    %cst_5 = arith.constant dense<0.000000e+00> : vector<4x512xf32>
    %6 = tpu.matmul %3, %5, %cst_5 {dimension_numbers = #tpu.dot_dimension_numbers<[1], [0], [0], [1], [0, 0, 1, 1], [], []>} : vector<4x512xbf16>, vector<512x512xbf16>, vector<4x512xf32> -> vector<4x512xf32>
    %7 = arith.addf %0, %6 : vector<4x512xf32>
    %c0_6 = arith.constant 0 : index
    %c1 = arith.constant 1 : index
    %c0_7 = arith.constant 0 : index
    %8 = vector.load %arg1[%c0_6, %c1, %c0_7] : memref<1x6x512xf32, #tpu.memory_space<vmem>>, vector<1x4x512xf32>
    %9 = vector.shape_cast %8 : vector<1x4x512xf32> to vector<4x512xf32>
    %10 = arith.truncf %9 : vector<4x512xf32> to vector<4x512xbf16>
    %c1_8 = arith.constant 1 : index
    %c0_9 = arith.constant 0 : index
    %c0_10 = arith.constant 0 : index
    %11 = vector.load %arg2[%c1_8, %c0_9, %c0_10] : memref<3x512x512xbf16, #tpu.memory_space<vmem>>, vector<1x512x512xbf16>
    %12 = vector.shape_cast %11 : vector<1x512x512xbf16> to vector<512x512xbf16>
    %cst_11 = arith.constant dense<0.000000e+00> : vector<4x512xf32>
    %13 = tpu.matmul %10, %12, %cst_11 {dimension_numbers = #tpu.dot_dimension_numbers<[1], [0], [0], [1], [0, 0, 1, 1], [], []>} : vector<4x512xbf16>, vector<512x512xbf16>, vector<4x512xf32> -> vector<4x512xf32>
    %14 = arith.addf %7, %13 : vector<4x512xf32>
    %c0_12 = arith.constant 0 : index
    %c2 = arith.constant 2 : index
    %c0_13 = arith.constant 0 : index
    %15 = vector.load %arg1[%c0_12, %c2, %c0_13] : memref<1x6x512xf32, #tpu.memory_space<vmem>>, vector<1x4x512xf32>
    %16 = vector.shape_cast %15 : vector<1x4x512xf32> to vector<4x512xf32>
    %17 = arith.truncf %16 : vector<4x512xf32> to vector<4x512xbf16>
    %c2_14 = arith.constant 2 : index
    %c0_15 = arith.constant 0 : index
    %c0_16 = arith.constant 0 : index
    %18 = vector.load %arg2[%c2_14, %c0_15, %c0_16] : memref<3x512x512xbf16, #tpu.memory_space<vmem>>, vector<1x512x512xbf16>
    %19 = vector.shape_cast %18 : vector<1x512x512xbf16> to vector<512x512xbf16>
    %cst_17 = arith.constant dense<0.000000e+00> : vector<4x512xf32>
    %20 = tpu.matmul %17, %19, %cst_17 {dimension_numbers = #tpu.dot_dimension_numbers<[1], [0], [0], [1], [0, 0, 1, 1], [], []>} : vector<4x512xbf16>, vector<512x512xbf16>, vector<4x512xf32> -> vector<4x512xf32>
    %21 = arith.addf %14, %20 : vector<4x512xf32>
    %c0_18 = arith.constant 0 : index
    %c0_19 = arith.constant 0 : index
    %22 = vector.load %arg3[%c0_18, %c0_19] : memref<1x512xf32, #tpu.memory_space<vmem>>, vector<1x512xf32>
    %23 = vector.broadcast %22 : vector<1x512xf32> to vector<4x512xf32>
    %24 = arith.addf %21, %23 : vector<4x512xf32>
    %cst_20 = arith.constant 0.000000e+00 : f32
    %25 = vector.broadcast %cst_20 : f32 to vector<4x512xf32>
    %26 = arith.maximumf %24, %25 : vector<4x512xf32>
    %cst_21 = arith.constant 0.000000e+00 : f32
    %27 = vector.broadcast %cst_21 : f32 to vector<6x512xf32>
    %c0_22 = arith.constant 0 : index
    %c0_23 = arith.constant 0 : index
    %28 = vector.load %arg7[%c0_22, %c0_23] : memref<6x512xf32, #tpu.memory_space<vmem>>, vector<6x512xf32>
    tpu.vector_store %arg7[%c0_22, %c0_23], %27 {strides = array<i32>} : memref<6x512xf32, #tpu.memory_space<vmem>>, vector<6x512xf32>,
    %c1_24 = arith.constant 1 : index
    %c0_25 = arith.constant 0 : index
    %29 = vector.load %arg7[%c1_24, %c0_25] : memref<6x512xf32, #tpu.memory_space<vmem>>, vector<4x512xf32>
    tpu.vector_store %arg7[%c1_24, %c0_25], %26 {strides = array<i32>} : memref<6x512xf32, #tpu.memory_space<vmem>>, vector<4x512xf32>,
    %cst_26 = arith.constant 0.000000e+00 : f32
    %30 = vector.broadcast %cst_26 : f32 to vector<4x512xf32>
    %c0_27 = arith.constant 0 : index
    %c0_28 = arith.constant 0 : index
    %31 = vector.load %arg7[%c0_27, %c0_28] : memref<6x512xf32, #tpu.memory_space<vmem>>, vector<4x512xf32>
    %32 = arith.truncf %31 : vector<4x512xf32> to vector<4x512xbf16>
    %c0_29 = arith.constant 0 : index
    %c0_30 = arith.constant 0 : index
    %c0_31 = arith.constant 0 : index
    %33 = vector.load %arg4[%c0_29, %c0_30, %c0_31] : memref<3x512x512xbf16, #tpu.memory_space<vmem>>, vector<1x512x512xbf16>
    %34 = vector.shape_cast %33 : vector<1x512x512xbf16> to vector<512x512xbf16>
    %cst_32 = arith.constant dense<0.000000e+00> : vector<4x512xf32>
    %35 = tpu.matmul %32, %34, %cst_32 {dimension_numbers = #tpu.dot_dimension_numbers<[1], [0], [0], [1], [0, 0, 1, 1], [], []>} : vector<4x512xbf16>, vector<512x512xbf16>, vector<4x512xf32> -> vector<4x512xf32>
    %36 = arith.addf %30, %35 : vector<4x512xf32>
    %c1_33 = arith.constant 1 : index
    %c0_34 = arith.constant 0 : index
    %37 = vector.load %arg7[%c1_33, %c0_34] : memref<6x512xf32, #tpu.memory_space<vmem>>, vector<4x512xf32>
    %38 = arith.truncf %37 : vector<4x512xf32> to vector<4x512xbf16>
    %c1_35 = arith.constant 1 : index
    %c0_36 = arith.constant 0 : index
    %c0_37 = arith.constant 0 : index
    %39 = vector.load %arg4[%c1_35, %c0_36, %c0_37] : memref<3x512x512xbf16, #tpu.memory_space<vmem>>, vector<1x512x512xbf16>
    %40 = vector.shape_cast %39 : vector<1x512x512xbf16> to vector<512x512xbf16>
    %cst_38 = arith.constant dense<0.000000e+00> : vector<4x512xf32>
    %41 = tpu.matmul %38, %40, %cst_38 {dimension_numbers = #tpu.dot_dimension_numbers<[1], [0], [0], [1], [0, 0, 1, 1], [], []>} : vector<4x512xbf16>, vector<512x512xbf16>, vector<4x512xf32> -> vector<4x512xf32>
    %42 = arith.addf %36, %41 : vector<4x512xf32>
    %c2_39 = arith.constant 2 : index
    %c0_40 = arith.constant 0 : index
    %43 = vector.load %arg7[%c2_39, %c0_40] : memref<6x512xf32, #tpu.memory_space<vmem>>, vector<4x512xf32>
    %44 = arith.truncf %43 : vector<4x512xf32> to vector<4x512xbf16>
    %c2_41 = arith.constant 2 : index
    %c0_42 = arith.constant 0 : index
    %c0_43 = arith.constant 0 : index
    %45 = vector.load %arg4[%c2_41, %c0_42, %c0_43] : memref<3x512x512xbf16, #tpu.memory_space<vmem>>, vector<1x512x512xbf16>
    %46 = vector.shape_cast %45 : vector<1x512x512xbf16> to vector<512x512xbf16>
    %cst_44 = arith.constant dense<0.000000e+00> : vector<4x512xf32>
    %47 = tpu.matmul %44, %46, %cst_44 {dimension_numbers = #tpu.dot_dimension_numbers<[1], [0], [0], [1], [0, 0, 1, 1], [], []>} : vector<4x512xbf16>, vector<512x512xbf16>, vector<4x512xf32> -> vector<4x512xf32>
    %48 = arith.addf %42, %47 : vector<4x512xf32>
    %c0_45 = arith.constant 0 : index
    %c0_46 = arith.constant 0 : index
    %49 = vector.load %arg5[%c0_45, %c0_46] : memref<1x512xf32, #tpu.memory_space<vmem>>, vector<1x512xf32>
    %50 = vector.broadcast %49 : vector<1x512xf32> to vector<4x512xf32>
    %51 = arith.addf %48, %50 : vector<4x512xf32>
    %c0_47 = arith.constant 0 : index
    %c1_48 = arith.constant 1 : index
    %c0_49 = arith.constant 0 : index
    %52 = vector.load %arg1[%c0_47, %c1_48, %c0_49] : memref<1x6x512xf32, #tpu.memory_space<vmem>>, vector<1x4x512xf32>
    %53 = vector.shape_cast %52 : vector<1x4x512xf32> to vector<4x512xf32>
    %54 = arith.addf %51, %53 : vector<4x512xf32>
    %cst_50 = arith.constant 0.000000e+00 : f32
    %55 = vector.broadcast %cst_50 : f32 to vector<4x512xf32>
    %56 = arith.maximumf %54, %55 : vector<4x512xf32>
    %c0_51 = arith.constant 0 : index
    %c0_52 = arith.constant 0 : index
    %c0_53 = arith.constant 0 : index
    %57 = vector.load %arg6[%c0_51, %c0_52, %c0_53] : memref<1x4x512xf32, #tpu.memory_space<vmem>>, vector<1x4x512xf32>
    %58 = vector.shape_cast %57 : vector<1x4x512xf32> to vector<4x512xf32>
    %59 = vector.shape_cast %56 : vector<4x512xf32> to vector<1x4x512xf32>
    tpu.vector_store %arg6[%c0_51, %c0_52, %c0_53], %59 {strides = array<i32>} : memref<1x4x512xf32, #tpu.memory_space<vmem>>, vector<1x4x512xf32>,
    return
  }
  func.func @transform_0(%arg0: i32) -> (i32, i32, i32) {
    %c0_i32 = arith.constant 0 : i32
    %c0_i32_0 = arith.constant 0 : i32
    %c0_i32_1 = arith.constant 0 : i32
    return %arg0, %c0_i32, %c0_i32_0 : i32, i32, i32
  }
  func.func @transform_1(%arg0: i32) -> (i32, i32, i32) {
    %c0_i32 = arith.constant 0 : i32
    %c0_i32_0 = arith.constant 0 : i32
    %c0_i32_1 = arith.constant 0 : i32
    %c0_i32_2 = arith.constant 0 : i32
    return %c0_i32, %c0_i32_0, %c0_i32_1 : i32, i32, i32
  }
  func.func @transform_2(%arg0: i32) -> (i32, i32) {
    %c0_i32 = arith.constant 0 : i32
    %c0_i32_0 = arith.constant 0 : i32
    %c0_i32_1 = arith.constant 0 : i32
    return %c0_i32, %c0_i32_0 : i32, i32
  }
  func.func @transform_3(%arg0: i32) -> (i32, i32, i32) {
    %c0_i32 = arith.constant 0 : i32
    %c0_i32_0 = arith.constant 0 : i32
    %c0_i32_1 = arith.constant 0 : i32
    %c0_i32_2 = arith.constant 0 : i32
    return %c0_i32, %c0_i32_0, %c0_i32_1 : i32, i32, i32
  }
  func.func @transform_4(%arg0: i32) -> (i32, i32) {
    %c0_i32 = arith.constant 0 : i32
    %c0_i32_0 = arith.constant 0 : i32
    %c0_i32_1 = arith.constant 0 : i32
    return %c0_i32, %c0_i32_0 : i32, i32
  }
  func.func @transform_5(%arg0: i32) -> (i32, i32, i32) {
    %c0_i32 = arith.constant 0 : i32
    %c0_i32_0 = arith.constant 0 : i32
    %c0_i32_1 = arith.constant 0 : i32
    return %arg0, %c0_i32, %c0_i32_0 : i32, i32, i32
  }
}

</mosaic_0001>

<bundles_post_ra>
// kernel: _lambda_.17
= control target key start
LH: loop header
LB: loop body
LE: loop exit
PB: predicated region body
PF: predicated region fallthrough
CT: control target
= control target key end

     0   :  { %8 = vsyncpa [#allocation3], 0  ;;  %s513_s0 = inlined_call_operand.vmem [shape: bf16[128,14], index: 0, kind: input, shape index: {}]   ;;  %s514_s1 = inlined_call_operand.hbm [shape: bf16[14,128], index: 1, kind: input, shape index: {}]   ;;  %s515_s2 = inlined_call_operand.hbm [shape: f32[1,128], index: 2, kind: input, shape index: {}]   ;;  %s516_s3 = inlined_call_operand.vmem [shape: f32[128,128], index: 3, kind: output, shape index: {}]  }
   0x1   :  { %9 = vsyncpa [#allocation5], 0  ;;  %s385_s12 = smov [#allocation2]   ;;  %s337_s16 = scalar_lea.hbm %s514_s1, 128 }
   0x2   :  { %s17_s13 = sshll.u32 %s385_s12, 4  ;;  %p338_p0 = scmp.ne.s32.totalorder %s514_s1, %s337_s16  ;;  %s18_s13 = int_to_ptr.vmem [resolvable:$true] %s17_s13 }
   0x3   :  { %p341_p1 = scmp.lt.u32.totalorder %s337_s16, %s514_s1 }
   0x5   :  { %p343_p2 = pnand %p341_p1, %p338_p0 }
   0x7   :  { %346 = shalt.err (!%p343_p2)
}
   0x8   :  { %s347_s21 = scalar_lea.vmem %s18_s13, 128  ;;  %p352_p4 = scmp.lt.s32.totalorder %s18_s13, %s18_s13 }
   0x9   :  { %p348_p3 = scmp.ne.s32.totalorder %s18_s13, %s347_s21  ;;  %p353_p5 = scmp.lt.s32.totalorder %s347_s21, %s347_s21 }
   0xb   :  { %p354_p6 = por %p353_p5, %p352_p4 }
   0xd   :  { %p355_p7 = pnand %p354_p6, %p348_p3 }
   0xf   :  { %358 = shalt.err (!%p355_p7)
}
  0x10   :  { %s386_s22 = smov 64   ;;  %s387_s23 = smov 4  }
  0x11   :  { %23 = dma.hbm_to_vmem [thread:$0]  %s514_s1, 128, %s18_s13, [#allocation3], %s386_s22, %s386_s22, %s387_s23  }
  0x12   :  { %s388_s26 = smov [#allocation4]   ;;  %s359_s30 = scalar_lea.hbm %s515_s2, 16 }
  0x13   :  { %s30_s27 = sshll.u32 %s388_s26, 4  ;;  %p360_p8 = scmp.ne.s32.totalorder %s515_s2, %s359_s30  ;;  %s31_s27 = int_to_ptr.vmem [resolvable:$true] %s30_s27 }
  0x14   :  { %p363_p9 = scmp.lt.u32.totalorder %s359_s30, %s515_s2 }
  0x16   :  { %p365_p10 = pnand %p363_p9, %p360_p8 }
  0x18   :  { %368 = shalt.err (!%p365_p10)
}
  0x19   :  { %s369_s8 = scalar_lea.vmem %s31_s27, 16  ;;  %s373_s1 = scalar_lea.vmem %s31_s27, 32 }
  0x1a   :  { %p370_p11 = scmp.ne.s32.totalorder %s31_s27, %s369_s8  ;;  %p374_p12 = scmp.lt.s32.totalorder %s31_s27, %s31_s27 }
  0x1b   :  { %p375_p13 = scmp.lt.s32.totalorder %s373_s1, %s369_s8 }
  0x1d   :  { %p376_p0 = por %p375_p13, %p374_p12 }
  0x1f   :  { %p377_p1 = pnand %p376_p0, %p370_p11 }
  0x21   :  { %380 = shalt.err (!%p377_p1)
}
  0x22   :  { %33 = dma.hbm_to_vmem [thread:$0]  %s515_s2, 16, %s31_s27, [#allocation5]  }
  0x23   :  { %381 = dma.done.wait [#allocation3], 128  }
  0x24   :  { %382 = vsyncadd [#allocation3], 4294967168 }
  0x25   :  { %383 = dma.done.wait [#allocation5], 16  }
  0x26   :  { %384 = vsyncadd [#allocation5], 4294967280  ;;  %vm136_vm0 = vcmask 1046528   ;;  %v328_v0 = vld [vmem:[#allocation2] sm:$0x7f]   ;;  %vm111_vm1 = vcmask 113664  }
  0x27   :  { %v329_v1 = vld [vmem:[%s513_s0] sm:$0xff]   ;;  %322 = vmatprep.subr.msk.bf16.mxu0 %vm136_vm0, %v328_v0  ;;  %323 = vmatprep.subr.msk.bf16.mxu1 %vm136_vm0, %v328_v0  ;;  %v138_v2 = vsel %vm136_vm0, %v328_v0, 0  ;;  %v331_v4 = vld [vmem:[%s513_s0 + $0x8] sm:$0xff]   ;;  %v333_v6 = vld [vmem:[%s513_s0 + $0x10] sm:$0xff]  }
  0x28   :  { %v330_v3 = vld [vmem:[%s513_s0 + $0x20] sm:$0xff]   ;;  %303 = vmatpush3.bf16.msra.mxu0 %v138_v2  ;;  %321 = vmatpush3.bf16.msra.mxu1 %v138_v2  ;;  %v332_v5 = vld [vmem:[%s513_s0 + $0x28] sm:$0xff]   ;;  %v334_v7 = vld [vmem:[%s513_s0 + $0x30] sm:$0xff]  }
  0x29   :  { %304 = vmatprep.mubr.msk.bf16.mxu0 %vm111_vm1, %v329_v1  ;;  %312 = vmatprep.mubr.msk.bf16.mxu1 %vm111_vm1, %v330_v3  ;;  %v335_v8 = vld [vmem:[%s513_s0 + $0x18] sm:$0xff]   ;;  %v275_v10 = vld [vmem:[#allocation4] ss:$0 sm:$0xff] }
  0x2a   :  { %v336_v9 = vld [vmem:[%s513_s0 + $0x38] sm:$0xff]  }
  0x2b   :  { %305 = vmatmul.mubr.msk.bf16.vlgmr.msra.gmra.mrb[0].mxu0 %vm111_vm1, %v331_v4  ;;  %313 = vmatmul.mubr.msk.bf16.vlgmr.msra.gmra.mrb[0].mxu1 %vm111_vm1, %v332_v5 }
  0x2c   :  { %308 = vmatprep.mubr.msk.bf16.mxu0 %vm111_vm1, %v333_v6  ;;  %316 = vmatprep.mubr.msk.bf16.mxu1 %vm111_vm1, %v334_v7 }
  0x33   :  { %309 = vmatmul.mubr.msk.bf16.gmra.mrb[4].mxu0 %vm111_vm1, %v335_v8  ;;  %317 = vmatmul.mubr.msk.bf16.gmra.mrb[4].mxu1 %vm111_vm1, %v336_v9 }
  0xfe   :  { %v306_v11 = vpop.f32.mrb[0].mxu0  ;;  %v314_v12 = vpop.f32.mrb[0].mxu1 }
  0xff   :  { %v183_v13 = vadd.f32 %v306_v11, %v275_v10  ;;  %v215_v14 = vadd.f32 %v314_v12, %v275_v10  ;;  %v174_v15 = vpop.f32.mrb[1].mxu0  ;;  %v206_v16 = vpop.f32.mrb[1].mxu1 }
 0x100   :  { %v175_v17 = vadd.f32 %v275_v10, %v174_v15  ;;  %v207_v18 = vadd.f32 %v275_v10, %v206_v16  ;;  %v307_v19 = vpop.f32.mrb[2].mxu0  ;;  %v315_v20 = vpop.f32.mrb[2].mxu1 }
 0x101   :  { %v239_v21 = vmax.f32 %v183_v13, 0.0  ;;  %v247_v22 = vmax.f32 %v215_v14, 0.0  ;;  %v186_v23 = vadd.f32 %v307_v19, %v275_v10  ;;  %v218_v24 = vadd.f32 %v315_v20, %v275_v10  ;;  %v177_v25 = vpop.f32.mrb[3].mxu0  ;;  %v209_v26 = vpop.f32.mrb[3].mxu1 }
 0x102   :  { %v237_v27 = vmax.f32 %v175_v17, 0.0  ;;  %v245_v28 = vmax.f32 %v207_v18, 0.0  ;;  %v178_v29 = vadd.f32 %v275_v10, %v177_v25  ;;  %v210_v30 = vadd.f32 %v275_v10, %v209_v26 }
 0x103   :  { %255 = vst [vmem:[%s516_s3 + $0x10] sm:$0xff] %v239_v21  ;;  %263 = vst [vmem:[%s516_s3 + $0x50] sm:$0xff] %v247_v22  ;;  %v240_v31 = vmax.f32 %v186_v23, 0.0  ;;  %v248_v32 = vmax.f32 %v218_v24, 0.0 }
 0x104   :  { %253 = vst [vmem:[%s516_s3] sm:$0xff] %v237_v27  ;;  %261 = vst [vmem:[%s516_s3 + $0x40] sm:$0xff] %v245_v28  ;;  %v238_v33 = vmax.f32 %v178_v29, 0.0  ;;  %v246_v34 = vmax.f32 %v210_v30, 0.0 }
 0x105   :  { %256 = vst [vmem:[%s516_s3 + $0x18] sm:$0xff] %v240_v31  ;;  %264 = vst [vmem:[%s516_s3 + $0x58] sm:$0xff] %v248_v32 }
 0x106   :  { %254 = vst [vmem:[%s516_s3 + $0x8] sm:$0xff] %v238_v33  ;;  %262 = vst [vmem:[%s516_s3 + $0x48] sm:$0xff] %v246_v34  ;;  %v310_v35 = vpop.f32.mrb[4].mxu0  ;;  %v318_v36 = vpop.f32.mrb[4].mxu1 }
 0x107   :  { %v199_v37 = vadd.f32 %v310_v35, %v275_v10  ;;  %v231_v38 = vadd.f32 %v318_v36, %v275_v10  ;;  %v190_v39 = vpop.f32.mrb[5].mxu0  ;;  %v222_v40 = vpop.f32.mrb[5].mxu1 }
 0x108   :  { %v191_v41 = vadd.f32 %v275_v10, %v190_v39  ;;  %v223_v42 = vadd.f32 %v275_v10, %v222_v40  ;;  %v311_v43 = vpop.f32.mrb[6].mxu0  ;;  %v319_v44 = vpop.f32.mrb[6].mxu1 }
 0x109   :  { %v243_v45 = vmax.f32 %v199_v37, 0.0  ;;  %v251_v46 = vmax.f32 %v231_v38, 0.0  ;;  %v202_v47 = vadd.f32 %v311_v43, %v275_v10  ;;  %v234_v48 = vadd.f32 %v319_v44, %v275_v10  ;;  %v193_v49 = vpop.f32.mrb[7].mxu0  ;;  %v225_v50 = vpop.f32.mrb[7].mxu1 }
 0x10a   :  { %v241_v51 = vmax.f32 %v191_v41, 0.0  ;;  %v249_v52 = vmax.f32 %v223_v42, 0.0  ;;  %v194_v53 = vadd.f32 %v275_v10, %v193_v49  ;;  %v226_v54 = vadd.f32 %v275_v10, %v225_v50 }
 0x10b   :  { %259 = vst [vmem:[%s516_s3 + $0x30] sm:$0xff] %v243_v45  ;;  %267 = vst [vmem:[%s516_s3 + $0x70] sm:$0xff] %v251_v46  ;;  %v244_v55 = vmax.f32 %v202_v47, 0.0  ;;  %v252_v56 = vmax.f32 %v234_v48, 0.0 }
 0x10c   :  { %257 = vst [vmem:[%s516_s3 + $0x20] sm:$0xff] %v241_v51  ;;  %265 = vst [vmem:[%s516_s3 + $0x60] sm:$0xff] %v249_v52  ;;  %v242_v57 = vmax.f32 %v194_v53, 0.0  ;;  %v250_v58 = vmax.f32 %v226_v54, 0.0 }
 0x10d   :  { %260 = vst [vmem:[%s516_s3 + $0x38] sm:$0xff] %v244_v55  ;;  %268 = vst [vmem:[%s516_s3 + $0x78] sm:$0xff] %v252_v56 }
 0x10e   :  { %258 = vst [vmem:[%s516_s3 + $0x28] sm:$0xff] %v242_v57  ;;  %266 = vst [vmem:[%s516_s3 + $0x68] sm:$0xff] %v250_v58 }
 0x10f   :  { %273 = vsyncpa [#allocation3], 1 }
 0x110   :  { %274 = vsyncpa [#allocation5], 1 }

// kernel: _lambda_.18
= control target key start
LH: loop header
LB: loop body
LE: loop exit
PB: predicated region body
PF: predicated region fallthrough
CT: control target
= control target key end

     0   :  { %10 = vsyncpa [#allocation4], 0  ;;  %s1636_s0 = inlined_call_operand.vmem [shape: f32[2,34,64], index: 0, kind: input, shape index: {}]   ;;  %s1637_s1 = inlined_call_operand.hbm [shape: bf16[3,64,64], index: 1, kind: input, shape index: {}]   ;;  %s1638_s2 = inlined_call_operand.hbm [shape: f32[1,64], index: 2, kind: input, shape index: {}]   ;;  %s1639_s3 = inlined_call_operand.hbm [shape: bf16[3,64,64], index: 3, kind: input, shape index: {}]   ;;  %s1640_s4 = inlined_call_operand.hbm [shape: f32[1,64], index: 4, kind: input, shape index: {}]   ;;  %s1641_s5 = inlined_call_operand.vmem [shape: f32[2,32,64], index: 5, kind: output, shape index: {}]  }
   0x1   :  { %11 = vsyncpa [#allocation6], 0 }
   0x2   :  { %12 = vsyncpa [#allocation9], 0  ;;  %s1427_s18 = smov 0  }
   0x3 LB: > { %s1390_s19 = smov [#allocation5]   ;;  %s1433_s21 = sadd.s32 4294967295, %s1388_s18   ;;  %s1388_s18 = sphi %s1427_s18, %s18_s18  }
   0x4   : > { %s185_s20 = sshll.u32 %s1390_s19, 4  ;;  %p1002_p0 = scmp.ge.s32.totalorder %s1388_s18, 1  ;;  %s1438_s20 = int_to_ptr.vmem [resolvable:$true] %s185_s20 }
   0x5   : > { %p159_p1 = scmp.lt.s32.totalorder %s1388_s18, 3  ;;  %p1642_p2 = scmp.eq.s32.totalorder %s1433_s21, 0 }
   0x6   : > { %s1391_s23 = smov [#allocation3]   ;;  %s1392_s26 = smov [#allocation7]  }
   0x7   : > { %p1440_p3 = pnand %p1002_p0, %p159_p1  ;;  %s171_s24 = sshll.u32 %s1391_s23, 4  ;;  %s1446_s24 = int_to_ptr.vmem [resolvable:$true] %s171_s24 }
   0x8   : > { %s195_s27 = sshll.u32 %s1392_s26, 4  ;;  %s1393_s28 = smov [#allocation8]   ;;  %s1454_s27 = int_to_ptr.vmem [resolvable:$true] %s195_s27 }
   0x9   : > { %s1644_s22 = scalar_select %p1440_p3, 1, 0 }
   0xa   : > { %p1198_p4 = pneg %p1440_p3  ;;  %s1456_s29 = sshll.u32 %s1393_s28, 4  ;;  %s210_s29 = int_to_ptr.vmem [resolvable:$true] %s1456_s29 }
   0xb   : > { %s1258_s7 = scalar_lea.hbm %s1638_s2, 16 }
   0xc   : > { %p1450_p5 = pnand %p1642_p2, %p1198_p4  ;;  %p1259_p6 = scmp.ne.s32.totalorder %s1638_s2, %s1258_s7 }
   0xd   : > { %p1265_p10 = scmp.lt.u32.totalorder %s1258_s7, %s1638_s2 }
   0xe   : > { %p1466_p7 = pneg %p1450_p5 }
  0x10   : > { %p1261_p8 = pnand %p1466_p7, %p1259_p6 }
  0x12   : > { %p1262_p9 = pneg %p1261_p8 }
  0x14   : > { %p1267_p11 = pnand %p1265_p10, %p1262_p9 }
  0x16   : > { %1270 = shalt.err (!%p1267_p11)
}
  0x17   : > { %s1271_s13 = scalar_lea.vmem %s1438_s20, 16  ;;  %s1278_s14 = scalar_lea.vmem %s1438_s20, 32 }
  0x18   : > { %p1272_p12 = scmp.ne.s32.totalorder %s1438_s20, %s1271_s13  ;;  %p1279_p1 = scmp.lt.s32.totalorder %s1438_s20, %s1438_s20 }
  0x19   : > { %p1280_p4 = scmp.lt.s32.totalorder %s1278_s14, %s1271_s13 }
  0x1a   : > { %p1274_p13 = pnand %p1272_p12, %p1466_p7 }
  0x1b   : > { %p1281_p6 = por %p1280_p4, %p1279_p1 }
  0x1c   : > { %p1275_p0 = pneg %p1274_p13 }
  0x1e   : > { %p1282_p8 = pnand %p1281_p6, %p1275_p0 }
  0x20   : > { %1285 = shalt.err (!%p1282_p8)
}
  0x21   : > { %1204 = dma.hbm_to_vmem [thread:$0]  (!%p1450_p5), %s1638_s2, 16, %s1438_s20, [#allocation6]  }
  0x22   : > { %s1286_s23 = scalar_lea.hbm %s1637_s1, 1536 }
  0x23   : > { %p1287_p9 = scmp.ne.s32.totalorder %s1637_s1, %s1286_s23  ;;  %p1293_p12 = scmp.lt.u32.totalorder %s1286_s23, %s1637_s1 }
  0x25   : > { %p1289_p10 = pnand %p1287_p9, %p1466_p7 }
  0x27   : > { %p1290_p11 = pneg %p1289_p10 }
  0x29   : > { %p1295_p13 = pnand %p1293_p12, %p1290_p11 }
  0x2b   : > { %1298 = shalt.err (!%p1295_p13)
}
  0x2c   : > { %s1299_s20 = scalar_lea.vmem %s1446_s24, 1536  ;;  %p1307_p6 = scmp.lt.s32.totalorder %s1446_s24, %s1446_s24 }
  0x2d   : > { %p1300_p0 = scmp.ne.s32.totalorder %s1446_s24, %s1299_s20  ;;  %p1308_p8 = scmp.lt.s32.totalorder %s1299_s20, %s1299_s20 }
  0x2f   : > { %p1302_p1 = pnand %p1300_p0, %p1466_p7  ;;  %p1309_p9 = por %p1308_p8, %p1307_p6 }
  0x31   : > { %p1303_p4 = pneg %p1302_p1 }
  0x33   : > { %p1310_p10 = pnand %p1309_p9, %p1303_p4 }
  0x35   : > { %1313 = shalt.err (!%p1310_p10)
}
  0x36   : > { %s1394_s7 = smov 64   ;;  %s1395_s8 = smov 4  }
  0x37   : > { %1201 = dma.hbm_to_vmem [thread:$0]  (!%p1450_p5), %s1637_s1, 1536, %s1446_s24, [#allocation4], %s1394_s7, %s1394_s7, %s1395_s8  }
  0x38   : > { %s1314_s14 = scalar_lea.hbm %s1639_s3, 1536 }
  0x39   : > { %p1315_p11 = scmp.ne.s32.totalorder %s1639_s3, %s1314_s14  ;;  %p1321_p0 = scmp.lt.u32.totalorder %s1314_s14, %s1639_s3 }
  0x3b   : > { %p1317_p12 = pnand %p1315_p11, %p1466_p7 }
  0x3d   : > { %p1318_p13 = pneg %p1317_p12 }
  0x3f   : > { %p1323_p1 = pnand %p1321_p0, %p1318_p13 }
  0x41   : > { %1326 = shalt.err (!%p1323_p1)
}
  0x42   : > { %s1327_s24 = scalar_lea.vmem %s1454_s27, 1536  ;;  %p1335_p9 = scmp.lt.s32.totalorder %s1454_s27, %s1454_s27 }
  0x43   : > { %p1328_p4 = scmp.ne.s32.totalorder %s1454_s27, %s1327_s24  ;;  %p1336_p10 = scmp.lt.s32.totalorder %s1327_s24, %s1327_s24 }
  0x45   : > { %p1330_p6 = pnand %p1328_p4, %p1466_p7  ;;  %p1337_p11 = por %p1336_p10, %p1335_p9 }
  0x47   : > { %p1331_p8 = pneg %p1330_p6 }
  0x49   : > { %p1338_p12 = pnand %p1337_p11, %p1331_p8 }
  0x4b   : > { %1341 = shalt.err (!%p1338_p12)
}
  0x4c   : > { %1207 = dma.hbm_to_vmem [thread:$0]  (!%p1450_p5), %s1639_s3, 1536, %s1454_s27, [#allocation6], %s1394_s7, %s1394_s7, %s1395_s8  }
  0x4d   : > { %s1342_s6 = scalar_lea.hbm %s1640_s4, 16 }
  0x4e   : > { %p1343_p13 = scmp.ne.s32.totalorder %s1640_s4, %s1342_s6  ;;  %p1349_p4 = scmp.lt.u32.totalorder %s1342_s6, %s1640_s4 }
  0x50   : > { %p1345_p0 = pnand %p1343_p13, %p1466_p7 }
  0x52   : > { %p1346_p1 = pneg %p1345_p0 }
  0x54   : > { %p1351_p6 = pnand %p1349_p4, %p1346_p1 }
  0x56   : > { %1354 = shalt.err (!%p1351_p6)
}
  0x57   : > { %s1355_s13 = scalar_lea.vmem %s210_s29, 16  ;;  %s1362_s27 = scalar_lea.vmem %s210_s29, 32 }
  0x58   : > { %p1356_p8 = scmp.ne.s32.totalorder %s210_s29, %s1355_s13  ;;  %p1363_p11 = scmp.lt.s32.totalorder %s210_s29, %s210_s29 }
  0x59   : > { %p1364_p12 = scmp.lt.s32.totalorder %s1362_s27, %s1355_s13 }
  0x5a   : > { %p1358_p9 = pnand %p1356_p8, %p1466_p7 }
  0x5b   : > { %p1365_p2 = por %p1364_p12, %p1363_p11 }
  0x5c   : > { %p1359_p10 = pneg %p1358_p9 }
  0x5e   : > { %p1366_p3 = pnand %p1365_p2, %p1359_p10 }
  0x60   : > { %1369 = shalt.err (!%p1366_p3)
}
  0x61   : > { %1210 = dma.hbm_to_vmem [thread:$0]  (!%p1450_p5), %s1640_s4, 16, %s210_s29, [#allocation9]  }
  0x62   : > { %p1647_p13 = scmp.ne.s32.totalorder %s1644_s22, 0 }
  0x63   : > { %p1648_p0 = scmp.eq.s32.totalorder (!%p1647_p13), %s1433_s21, 0 }
  0x64   : > { %230 = sbr.rel (%p1647_p13) target bundleno = 647 (0x287), region = 40 }
  0x6b   : > { %1375 = dma.done.wait (%p1648_p0), [#allocation4], 1536   ;;  %p1649_p7 = pmov %p1648_p0 }
  0x6c   : > { %p1650_p1 = pmov %p1648_p0 }
  0x6d   : > { %1377 = vsyncadd (%p1649_p7), [#allocation4], 4294965760 }
  0x6e   : > { %1379 = dma.done.wait (%p1650_p1), [#allocation6], 1552   ;;  %p1651_p2 = pmov %p1648_p0 }
  0x6f   : > { %p1652_p3 = pmov %p1648_p0 }
  0x70   : > { %1381 = vsyncadd (%p1651_p2), [#allocation6], 4294965744 }
  0x71   : > { %1383 = dma.done.wait (%p1652_p3), [#allocation9], 16   ;;  %p1653_p5 = pmov %p1648_p0 }
  0x72   : > { %p270_p4 = scmp.lt.s32.totalorder %s1433_s21, 1  ;;  %v1234_v0 = vld [vmem:[#allocation3 + $0x20] sm:$0xff]   ;;  %v1235_v1 = vld [vmem:[#allocation3 + $0x28] sm:$0xff]   ;;  %v1236_v2 = vld [vmem:[#allocation3 + $0x30] sm:$0xff]   ;;  %vm334_vm0 = vcmask 523264   ;;  %v1396_v31 = vmov 0.0  }
  0x73   : > { %1385 = vsyncadd (%p1653_p5), [#allocation9], 4294967280  ;;  %1093 = vmatprep.subr.bf16.mxu0 %v1234_v0  ;;  %v1237_v6 = vld [vmem:[#allocation3 + $0x38] sm:$0xff]   ;;  %v1238_v7 = vld [vmem:[#allocation3] sm:$0xff]   ;;  %584 = vst.msk [vmem:[#allocation2 + $0x10] sm:$0xff] %vm334_vm0, %v1396_v31  ;;  %vm586_vm1 = vcmask 517120  }
  0x74   : > { %s1655_s21 = smov (!%p270_p4, %s1433_s21), 1  ;;  %1094 = vmatpush3.bf16.msra.mxu0 %v1234_v0  ;;  %v1239_v13 = vld [vmem:[#allocation3 + $0x8] sm:$0xff]   ;;  %v1240_v15 = vld [vmem:[#allocation3 + $0x10] sm:$0xff]   ;;  %v1241_v16 = vld [vmem:[#allocation3 + $0x18] sm:$0xff]   ;;  %585 = vst.msk [vmem:[#allocation2 + $0x18] sm:$0xff] %vm334_vm0, %v1396_v31 }
  0x75   : > { %s1181_s22 = smul.u32 40, %s1655_s21  ;;  %1095 = vmatprep.subr.bf16.mxu0 %v1235_v1  ;;  %v1242_v19 = vld [vmem:[#allocation3 + $0x40] sm:$0xff]   ;;  %v1243_v24 = vld [vmem:[#allocation3 + $0x48] sm:$0xff]   ;;  %v1244_v25 = vld [vmem:[#allocation3 + $0x50] sm:$0xff]   ;;  %582 = vst.msk [vmem:[#allocation2] sm:$0xff] %vm334_vm0, %v1396_v31  ;;  %s1056_s14 = sshll.u32 %s1655_s21, 5 }
  0x76   : > { %v1245_v26 = vld [vmem:[#allocation3 + $0x58] sm:$0xff]   ;;  %v1246_v30 = vld [vmem:[#allocation7 + $0x20] sm:$0xff]   ;;  %583 = vst.msk [vmem:[#allocation2 + $0x8] sm:$0xff] %vm334_vm0, %v1396_v31  ;;  %v1247_v32 = vld [vmem:[#allocation7 + $0x28] sm:$0xff]   ;;  %s279_s17 = scalar_lea.vmem %s1641_s5, %s1056_s14 }
  0x77   : > { %s1575_s10 = scalar_lea.vmem %s1636_s0, %s1181_s22  ;;  %1129 = vmatprep.subr.bf16.mxu1 %v1246_v30  ;;  %587 = vst.msk [vmem:[#allocation2 + $0x20] sm:$0x3] %vm586_vm1, %v1396_v31  ;;  %v1248_v33 = vld [vmem:[#allocation7 + $0x30] sm:$0xff]   ;;  %v1249_v34 = vld [vmem:[#allocation7 + $0x38] sm:$0xff]   ;;  %v1250_v35 = vld [vmem:[#allocation7] sm:$0xff]  }
  0x78   : > { %v1578_v3 = vld [vmem:[%s1575_s10 + $0x1] sm:$0xff]  ;;  %v1581_v4 = vld [vmem:[%s1575_s10 + $0x9] sm:$0xff]  ;;  %1096 = vmatpush3.bf16.msra.mxu0 %v1235_v1  ;;  %v1587_v8 = vld [vmem:[%s1575_s10 + $0x11] sm:$0xff]  ;;  %1130 = vmatpush3.bf16.msra.mxu1 %v1246_v30 }
  0x79   : > { %v299_v5 = vpack.c.bf16 %v1581_v4, %v1578_v3  ;;  %1097 = vmatprep.subr.bf16.mxu0 %v1236_v2  ;;  %v1590_v9 = vld [vmem:[%s1575_s10 + $0x19] sm:$0xff]  ;;  %v282_v11 = vld [vmem:[%s1575_s10 + $0x8] sm:$0xff]  ;;  %v283_v17 = vld [vmem:[%s1575_s10 + $0x10] sm:$0xff]  ;;  %1131 = vmatprep.subr.bf16.mxu1 %v1247_v32 }
  0x7a   : > { %v281_v10 = vld [vmem:[%s1575_s10] sm:$0xff]  ;;  %v300_v12 = vpack.c.bf16 %v1590_v9, %v1587_v8  ;;  %v284_v18 = vld [vmem:[%s1575_s10 + $0x18] sm:$0xff]  ;;  %v470_v21 = vld [vmem:[%s1575_s10 + $0xa] sm:$0xff] }
  0x7b   : > { %1101 = vmatprep.mubr.msk.bf16.mxu0 %vm334_vm0, %v299_v5  ;;  %v285_v14 = vpack.c.bf16 %v282_v11, %v281_v10  ;;  %v469_v20 = vld [vmem:[%s1575_s10 + $0x2] sm:$0xff]  ;;  %v286_v22 = vpack.c.bf16 %v284_v18, %v283_v17  ;;  %v471_v27 = vld [vmem:[%s1575_s10 + $0x12] sm:$0xff]  ;;  %v472_v28 = vld [vmem:[%s1575_s10 + $0x1a] sm:$0xff] }
  0x7c   : > { %1098 = vmatpush3.bf16.msra.mxu0 %v1236_v2  ;;  %v473_v23 = vpack.c.bf16 %v470_v21, %v469_v20  ;;  %v474_v29 = vpack.c.bf16 %v472_v28, %v471_v27  ;;  %1132 = vmatpush3.bf16.msra.mxu1 %v1247_v32  ;;  %v1034_v36 = vld [vmem:[#allocation5] ss:$0 sm:$0xff]  ;;  %v1251_v57 = vld [vmem:[#allocation7 + $0x8] sm:$0xff]   ;;  %v1252_v59 = vld [vmem:[#allocation7 + $0x10] sm:$0xff]  }
  0x7d   : > { %1099 = vmatprep.subr.bf16.mxu0 %v1237_v6  ;;  %1133 = vmatprep.subr.bf16.mxu1 %v1248_v33  ;;  %v1253_v60 = vld [vmem:[#allocation7 + $0x18] sm:$0xff]   ;;  %v1254_v61 = vld [vmem:[#allocation7 + $0x40] sm:$0xff]   ;;  %v1255_v5 = vld [vmem:[#allocation7 + $0x48] sm:$0xff]  }
  0x7e   : > { %v1257_v10 = vld [vmem:[#allocation7 + $0x58] sm:$0xff]  }
  0x80   : > { %1100 = vmatpush3.bf16.msra.mxu0 %v1237_v6  ;;  %1134 = vmatpush3.bf16.msra.mxu1 %v1248_v33 }
  0x81   : > { %1105 = vmatprep.subr.bf16.mxu0 %v1238_v7  ;;  %1135 = vmatprep.subr.bf16.mxu1 %v1249_v34 }
  0x83   : > { %1102 = vmatmul.mubr.msk.bf16.vlgmr.msra.gmra.mrb[0].mxu0 %vm334_vm0, %v300_v12 }
  0x84   : > { %1106 = vmatpush3.bf16.msra.mxu0 %v1238_v7  ;;  %1113 = vmatprep.mubr.msk.bf16.mxu0 %vm334_vm0, %v285_v14  ;;  %v1256_v7 = vld [vmem:[#allocation7 + $0x50] sm:$0xff]   ;;  %v1053_v14 = vld [vmem:[#allocation8] ss:$0 sm:$0xff] }
  0x85   : > { %1107 = vmatprep.subr.bf16.mxu0 %v1239_v13  ;;  %1136 = vmatpush3.bf16.msra.mxu1 %v1249_v34 }
  0x86   : > { %1141 = vmatprep.subr.bf16.mxu1 %v1250_v35 }
  0x88   : > { %1108 = vmatpush3.bf16.msra.mxu0 %v1239_v13 }
  0x89   : > { %1109 = vmatprep.subr.bf16.mxu0 %v1240_v15 }
  0x8c   : > { %1110 = vmatpush3.bf16.msra.mxu0 %v1240_v15 }
  0x8d   : > { %1111 = vmatprep.subr.bf16.mxu0 %v1241_v16 }
  0x90   : > { %1112 = vmatpush3.bf16.msra.mxu0 %v1241_v16 }
  0x91   : > { %1117 = vmatprep.subr.bf16.mxu0 %v1242_v19 }
  0x93   : > { %1114 = vmatmul.mubr.msk.bf16.vlgmr.msra.gmra.mrb[0].mxu0 %vm334_vm0, %v286_v22 }
  0x94   : > { %1118 = vmatpush3.bf16.msra.mxu0 %v1242_v19  ;;  %1125 = vmatprep.mubr.msk.bf16.mxu0 %vm334_vm0, %v473_v23 }
  0x95   : > { %1119 = vmatprep.subr.bf16.mxu0 %v1243_v24 }
  0x98   : > { %1120 = vmatpush3.bf16.msra.mxu0 %v1243_v24 }
  0x99   : > { %1121 = vmatprep.subr.bf16.mxu0 %v1244_v25 }
  0x9c   : > { %1122 = vmatpush3.bf16.msra.mxu0 %v1244_v25 }
  0x9d   : > { %1123 = vmatprep.subr.bf16.mxu0 %v1245_v26 }
  0xa0   : > { %1124 = vmatpush3.bf16.msra.mxu0 %v1245_v26 }
  0xa3   : > { %1126 = vmatmul.mubr.msk.bf16.vlgmr.msra.gmra.mrb[0].mxu0 %vm334_vm0, %v474_v29 }
 0x176   : > { %v1127_v37 = vpop.f32.mrb[0].mxu0 }
 0x177   : > { %v576_v38 = vadd.f32 %v1127_v37, %v1034_v36  ;;  %v548_v39 = vpop.f32.mrb[1].mxu0 }
 0x178   : > { %v574_v40 = vadd.f32 %v1034_v36, %v548_v39  ;;  %v1128_v41 = vpop.f32.mrb[2].mxu0 }
 0x179   : > { %v580_v42 = vmax.f32 %v576_v38, 0.0  ;;  %v577_v43 = vadd.f32 %v1128_v41, %v1034_v36  ;;  %v551_v44 = vpop.f32.mrb[3].mxu0 }
 0x17a   : > { %v578_v45 = vmax.f32 %v574_v40, 0.0  ;;  %v575_v46 = vadd.f32 %v1034_v36, %v551_v44 }
 0x17b   : > { %590 = vst.msk [vmem:[#allocation2 + $0x11] sm:$0xff] %vm334_vm0, %v580_v42  ;;  %v581_v47 = vmax.f32 %v577_v43, 0.0 }
 0x17c   : > { %588 = vst.msk [vmem:[#allocation2 + $0x1] sm:$0xff] %vm334_vm0, %v578_v45  ;;  %v579_v48 = vmax.f32 %v575_v46, 0.0 }
 0x17d   : > { %591 = vst.msk [vmem:[#allocation2 + $0x19] sm:$0xff] %vm334_vm0, %v581_v47 }
 0x17e   : > { %589 = vst.msk [vmem:[#allocation2 + $0x9] sm:$0xff] %vm334_vm0, %v579_v48 }
 0x182   : > { %v608_v54 = vld [vmem:[#allocation2 + $0x11] sm:$0xff] }
 0x183   : > { %v606_v50 = vld [vmem:[#allocation2 + $0x1] sm:$0xff] }
 0x184   : > { %v609_v49 = vld [vmem:[#allocation2 + $0x19] sm:$0xff] }
 0x185   : > { %v607_v51 = vld [vmem:[#allocation2 + $0x9] sm:$0xff]  ;;  %v611_v55 = vpack.c.bf16 %v609_v49, %v608_v54  ;;  %v592_v56 = vld [vmem:[#allocation2] sm:$0xff]  ;;  %v595_v63 = vld [vmem:[#allocation2 + $0x18] sm:$0xff] }
 0x186   : > { %v593_v52 = vld [vmem:[#allocation2 + $0x8] sm:$0xff]  ;;  %v610_v53 = vpack.c.bf16 %v607_v51, %v606_v50  ;;  %v594_v62 = vld [vmem:[#allocation2 + $0x10] sm:$0xff]  ;;  %v782_v12 = vld [vmem:[#allocation2 + $0x1a] sm:$0xff] }
 0x187   : > { %v596_v58 = vpack.c.bf16 %v593_v52, %v592_v56  ;;  %v779_v0 = vld [vmem:[#allocation2 + $0x2] sm:$0xff]  ;;  %v780_v1 = vld [vmem:[#allocation2 + $0xa] sm:$0xff]  ;;  %v597_v2 = vpack.c.bf16 %v595_v63, %v594_v62  ;;  %v781_v11 = vld [vmem:[#allocation2 + $0x12] sm:$0xff] }
 0x188   : > { %1137 = vmatprep.mubr.msk.bf16.mxu1 %vm334_vm0, %v610_v53  ;;  %v783_v6 = vpack.c.bf16 %v780_v1, %v779_v0  ;;  %v784_v13 = vpack.c.bf16 %v782_v12, %v781_v11 }
 0x189   : > { %1138 = vmatmul.mubr.msk.bf16.vlgmr.msra.gmra.mrb[0].mxu1 %vm334_vm0, %v611_v55 }
 0x18a   : > { %1142 = vmatpush3.bf16.msra.mxu1 %v1250_v35  ;;  %1149 = vmatprep.mubr.msk.bf16.mxu1 %vm334_vm0, %v596_v58 }
 0x18b   : > { %1143 = vmatprep.subr.bf16.mxu1 %v1251_v57 }
 0x18e   : > { %1144 = vmatpush3.bf16.msra.mxu1 %v1251_v57 }
 0x18f   : > { %1145 = vmatprep.subr.bf16.mxu1 %v1252_v59 }
 0x192   : > { %1146 = vmatpush3.bf16.msra.mxu1 %v1252_v59 }
 0x193   : > { %1147 = vmatprep.subr.bf16.mxu1 %v1253_v60 }
 0x196   : > { %1148 = vmatpush3.bf16.msra.mxu1 %v1253_v60 }
 0x197   : > { %1153 = vmatprep.subr.bf16.mxu1 %v1254_v61 }
 0x199   : > { %1150 = vmatmul.mubr.msk.bf16.vlgmr.msra.gmra.mrb[0].mxu1 %vm334_vm0, %v597_v2 }
 0x19a   : > { %1154 = vmatpush3.bf16.msra.mxu1 %v1254_v61  ;;  %1161 = vmatprep.mubr.msk.bf16.mxu1 %vm334_vm0, %v783_v6 }
 0x19b   : > { %1155 = vmatprep.subr.bf16.mxu1 %v1255_v5 }
 0x19e   : > { %1156 = vmatpush3.bf16.msra.mxu1 %v1255_v5 }
 0x19f   : > { %1157 = vmatprep.subr.bf16.mxu1 %v1256_v7 }
 0x1a2   : > { %1158 = vmatpush3.bf16.msra.mxu1 %v1256_v7 }
 0x1a3   : > { %1159 = vmatprep.subr.bf16.mxu1 %v1257_v10 }
 0x1a6   : > { %1160 = vmatpush3.bf16.msra.mxu1 %v1257_v10 }
 0x1a9   : > { %1162 = vmatmul.mubr.msk.bf16.vlgmr.msra.gmra.mrb[0].mxu1 %vm334_vm0, %v784_v13 }
 0x27c   : > { %v1163_v15 = vpop.f32.mrb[0].mxu1 }
 0x27d   : > { %v886_v16 = vadd.f32 %v1163_v15, %v1053_v14  ;;  %v858_v17 = vpop.f32.mrb[1].mxu1 }
 0x27e   : > { %v884_v18 = vadd.f32 %v1053_v14, %v858_v17  ;;  %v1164_v19 = vpop.f32.mrb[2].mxu1 }
 0x27f   : > { %v894_v20 = vadd.f32 %v886_v16, %v1587_v8  ;;  %v887_v21 = vadd.f32 %v1164_v19, %v1053_v14  ;;  %v861_v22 = vpop.f32.mrb[3].mxu1 }
 0x280   : > { %v892_v23 = vadd.f32 %v884_v18, %v1578_v3  ;;  %v885_v24 = vadd.f32 %v1053_v14, %v861_v22 }
 0x281   : > { %v898_v25 = vmax.f32 %v894_v20, 0.0  ;;  %v895_v26 = vadd.f32 %v887_v21, %v1590_v9 }
 0x282   : > { %v896_v27 = vmax.f32 %v892_v23, 0.0  ;;  %v893_v28 = vadd.f32 %v885_v24, %v1581_v4 }
 0x283   : > { %902 = vst.msk [vmem:[%s279_s17 + $0x10] sm:$0xff] %vm334_vm0, %v898_v25  ;;  %v899_v29 = vmax.f32 %v895_v26, 0.0 }
 0x284   : > { %900 = vst.msk [vmem:[%s279_s17] sm:$0xff] %vm334_vm0, %v896_v27  ;;  %v897_v8 = vmax.f32 %v893_v28, 0.0 }
 0x285   : > { %903 = vst.msk [vmem:[%s279_s17 + $0x18] sm:$0xff] %vm334_vm0, %v899_v29 }
 0x286   : > { %901 = vst.msk [vmem:[%s279_s17 + $0x8] sm:$0xff] %vm334_vm0, %v897_v8 }
 0x287 PF: > { %s18_s18 = sadd.s32 1, %s1388_s18  }
 0x288   : > { %p15_p6 = scmp.ge.s32.totalorder %s18_s18, 4  }
 0x28a   :  { %17 = sbr.rel (!%p15_p6) target bundleno = 3 (0x3), region = 91 }
 0x291   :  { %925 = vsyncpa [#allocation4], 1 }
 0x292   :  { %927 = vsyncpa [#allocation4 + $0x1], 1 }
 0x293   :  { %928 = vsyncpa [#allocation6], 1 }
 0x294   :  { %929 = vsyncpa [#allocation9], 1 }

// kernel: _lambda_.22
= control target key start
LH: loop header
LB: loop body
LE: loop exit
PB: predicated region body
PF: predicated region fallthrough
CT: control target
= control target key end

     0   :  { %s1368_s18 = smov 0   ;;  %s1622_s0 = inlined_call_operand.vmem [shape: f32[2,18,128], index: 0, kind: input, shape index: {}]   ;;  %s1623_s1 = inlined_call_operand.vmem [shape: bf16[3,128,128], index: 1, kind: input, shape index: {}]   ;;  %s1624_s2 = inlined_call_operand.vmem [shape: f32[1,128], index: 2, kind: input, shape index: {}]   ;;  %s1625_s3 = inlined_call_operand.vmem [shape: bf16[3,128,128], index: 3, kind: input, shape index: {}]   ;;  %s1626_s4 = inlined_call_operand.vmem [shape: f32[1,128], index: 4, kind: input, shape index: {}]   ;;  %s1627_s5 = inlined_call_operand.vmem [shape: f32[2,16,128], index: 5, kind: output, shape index: {}]  }
   0x1 LB: > { %s970_s19 = sadd.s32 4294967295, %s1334_s18   ;;  %p974_p0 = scmp.ge.s32.totalorder %s1334_s18, 1  ;;  %s1334_s18 = sphi %s1368_s18, %s15_s18  }
   0x2   : > { %p187_p1 = scmp.lt.s32.totalorder %s1334_s18, 3 }
   0x4   : > { %p188_p2 = pnand %p974_p0, %p187_p1 }
   0x5   : > { %v1280_v0 = vld [vmem:[%s1623_s1 + $0x40] sm:$0xff] (!%p188_p2)   ;;  %v1336_v1 = vmov (!%p188_p2), 0.0   ;;  %v1282_v3 = vld [vmem:[%s1623_s1 + $0x48] sm:$0xff] (!%p188_p2)   ;;  %vm1337_vm0 = vmmov (!%p188_p2), 0   ;;  %v1284_v5 = vld [vmem:[%s1623_s1 + $0x50] sm:$0xff] (!%p188_p2)   ;;  %p215_p3 = scmp.lt.s32.totalorder (!%p188_p2), %s970_s19, 1 }
   0x6   : > { %191 = sbr.rel (%p188_p2) target bundleno = 547 (0x223), region = 40  ;;  %1149 = vmatprep.subr.bf16.mxu0 (!%p188_p2), %v1336_v1  ;;  %565 = vst [vmem:[#allocation2] sm:$0xff] (!%p188_p2), %v1336_v1  ;;  %566 = vst [vmem:[#allocation2 + $0x8] sm:$0xff] (!%p188_p2), %v1336_v1  ;;  %1169 = vmatprep.subr.bf16.mxu1 (!%p188_p2), %v1336_v1  ;;  %v1281_v2 = vld [vmem:[%s1623_s1] sm:$0xff] (!%p188_p2)   ;;  %v1283_v4 = vld [vmem:[%s1623_s1 + $0x8] sm:$0xff] (!%p188_p2)  }
   0x7   : > { %567 = vst [vmem:[#allocation2 + $0x10] sm:$0x3] (!%p188_p2), %v1336_v1  ;;  %1150 = vmatpush3.bf16.msra.mxu0 (!%p188_p2), %v1280_v0  ;;  %1165 = vmatprep.mubr.msk.bf16.mxu0 (!%p188_p2), %vm1337_vm0, %v1336_v1  ;;  %v1285_v6 = vld [vmem:[%s1623_s1 + $0x10] sm:$0xff] (!%p188_p2)   ;;  %v1286_v7 = vld [vmem:[%s1623_s1 + $0x58] sm:$0xff] (!%p188_p2)   ;;  %v1288_v9 = vld [vmem:[%s1623_s1 + $0x60] sm:$0xff] (!%p188_p2)  }
   0x8   : > { %1170 = vmatpush3.bf16.msra.mxu1 (!%p188_p2), %v1281_v2  ;;  %1151 = vmatprep.subr.bf16.mxu0 (!%p188_p2), %v1336_v1  ;;  %v1287_v8 = vld [vmem:[%s1623_s1 + $0x18] sm:$0xff] (!%p188_p2)   ;;  %v1289_v10 = vld [vmem:[%s1623_s1 + $0x20] sm:$0xff] (!%p188_p2)   ;;  %v1290_v11 = vld [vmem:[%s1623_s1 + $0x68] sm:$0xff] (!%p188_p2)  }
   0x9   : > { %1171 = vmatprep.subr.bf16.mxu1 (!%p188_p2), %v1336_v1  ;;  %1185 = vmatprep.mubr.msk.bf16.mxu1 (!%p188_p2), %vm1337_vm0, %v1336_v1  ;;  %v1291_v12 = vld [vmem:[%s1623_s1 + $0x28] sm:$0xff] (!%p188_p2)   ;;  %v1292_v13 = vld [vmem:[%s1623_s1 + $0x70] sm:$0xff] (!%p188_p2)   ;;  %v1294_v15 = vld [vmem:[%s1623_s1 + $0x78] sm:$0xff] (!%p188_p2)  }
   0xa   : > { %v1293_v14 = vld [vmem:[%s1623_s1 + $0x30] sm:$0xff] (!%p188_p2)   ;;  %v1295_v17 = vld [vmem:[%s1623_s1 + $0x38] sm:$0xff] (!%p188_p2)   ;;  %v1296_v21 = vld [vmem:[%s1623_s1 + $0x80] sm:$0xff] (!%p188_p2)  }
   0xb   : > { %1152 = vmatpush3.bf16.msra.mxu0 (!%p188_p2), %v1282_v3  ;;  %v1297_v24 = vld [vmem:[%s1623_s1 + $0x88] sm:$0xff] (!%p188_p2)   ;;  %v1298_v25 = vld [vmem:[%s1623_s1 + $0x90] sm:$0xff] (!%p188_p2)   ;;  %v1299_v26 = vld [vmem:[%s1623_s1 + $0x98] sm:$0xff] (!%p188_p2)  }
   0xc   : > { %1172 = vmatpush3.bf16.msra.mxu1 (!%p188_p2), %v1283_v4  ;;  %1153 = vmatprep.subr.bf16.mxu0 (!%p188_p2), %v1336_v1  ;;  %v1300_v27 = vld [vmem:[%s1623_s1 + $0xa0] sm:$0xff] (!%p188_p2)   ;;  %v1301_v28 = vld [vmem:[%s1623_s1 + $0xa8] sm:$0xff] (!%p188_p2)   ;;  %v1302_v29 = vld [vmem:[%s1623_s1 + $0xb0] sm:$0xff] (!%p188_p2)  }
   0xd   : > { %1173 = vmatprep.subr.bf16.mxu1 %v1336_v1  ;;  %s1629_s19 = smov (!%p215_p3, %s970_s19), 1  ;;  %v1303_v30 = vld [vmem:[%s1623_s1 + $0xb8] sm:$0xff]   ;;  %v1304_v34 = vld [vmem:[%s1625_s3 + $0x40] sm:$0xff]   ;;  %v1306_v36 = vld [vmem:[%s1625_s3 + $0x48] sm:$0xff]  }
   0xe   : > { %s1269_s15 = smul.u32 24, %s1629_s19  ;;  %v1305_v35 = vld [vmem:[%s1625_s3] sm:$0xff]   ;;  %v1307_v37 = vld [vmem:[%s1625_s3 + $0x8] sm:$0xff]   ;;  %v1308_v38 = vld [vmem:[%s1625_s3 + $0x50] sm:$0xff]   ;;  %s1094_s7 = sshll.u32 %s1629_s19, 4 }
   0xf   : > { %1154 = vmatpush3.bf16.msra.mxu0 %v1284_v5  ;;  %v1309_v39 = vld [vmem:[%s1625_s3 + $0x10] sm:$0xff]   ;;  %v1310_v40 = vld [vmem:[%s1625_s3 + $0x58] sm:$0xff]   ;;  %v1312_v41 = vld [vmem:[%s1625_s3 + $0x60] sm:$0xff]   ;;  %s224_s10 = scalar_lea.vmem %s1627_s5, %s1094_s7 }
  0x10   : > { %1174 = vmatpush3.bf16.msra.mxu1 %v1285_v6  ;;  %1155 = vmatprep.subr.bf16.mxu0 %v1336_v1  ;;  %s1441_s24 = scalar_lea.vmem %s1622_s0, %s1269_s15  ;;  %v1314_v42 = vld [vmem:[%s1625_s3 + $0x68] sm:$0xff]   ;;  %v1311_v43 = vld [vmem:[%s1625_s3 + $0x18] sm:$0xff]   ;;  %v1316_v44 = vld [vmem:[%s1625_s3 + $0x70] sm:$0xff]  }
  0x11   : > { %1175 = vmatprep.subr.bf16.mxu1 %v1336_v1  ;;  %v1455_v16 = vld [vmem:[%s1441_s24 + $0x1] sm:$0xff]  ;;  %v1461_v18 = vld [vmem:[%s1441_s24 + $0x9] sm:$0xff]  ;;  %v1318_v46 = vld [vmem:[%s1625_s3 + $0x78] sm:$0xff]  }
  0x12   : > { %v226_v19 = vld [vmem:[%s1441_s24] sm:$0xff]  ;;  %v227_v20 = vld [vmem:[%s1441_s24 + $0x8] sm:$0xff]  ;;  %v247_v22 = vpack.c.bf16 %v1461_v18, %v1455_v16  ;;  %v1317_v48 = vld [vmem:[%s1625_s3 + $0x30] sm:$0xff]  }
  0x13   : > { %1156 = vmatpush3.bf16.msra.mxu0 %v1286_v7  ;;  %v228_v23 = vpack.c.bf16 %v227_v20, %v226_v19  ;;  %v443_v31 = vld [vmem:[%s1441_s24 + $0x2] sm:$0xff]  ;;  %v444_v32 = vld [vmem:[%s1441_s24 + $0xa] sm:$0xff]  ;;  %v1319_v49 = vld [vmem:[%s1625_s3 + $0x38] sm:$0xff]  }
  0x14   : > { %1176 = vmatpush3.bf16.msra.mxu1 %v1287_v8  ;;  %1157 = vmatprep.subr.bf16.mxu0 %v1336_v1  ;;  %v445_v33 = vpack.c.bf16 %v444_v32, %v443_v31  ;;  %v1313_v45 = vld [vmem:[%s1625_s3 + $0x20] sm:$0xff]   ;;  %v1315_v47 = vld [vmem:[%s1625_s3 + $0x28] sm:$0xff]   ;;  %v1326_v20 = vld [vmem:[%s1625_s3 + $0xb0] sm:$0xff]  }
  0x15   : > { %1177 = vmatprep.subr.bf16.mxu1 %v1336_v1  ;;  %v1034_v61 = vld [vmem:[%s1624_s2] ss:$0 sm:$0xff]  ;;  %v1325_v19 = vld [vmem:[%s1625_s3 + $0xa8] sm:$0xff]  }
  0x16   : > { %v1320_v8 = vld [vmem:[%s1625_s3 + $0x80] sm:$0xff]  }
  0x17   : > { %1158 = vmatpush3.bf16.msra.mxu0 %v1288_v9 }
  0x18   : > { %1178 = vmatpush3.bf16.msra.mxu1 %v1289_v10  ;;  %1159 = vmatprep.subr.bf16.mxu0 %v1336_v1  ;;  %v1321_v10 = vld [vmem:[%s1625_s3 + $0x88] sm:$0xff]  }
  0x19   : > { %1179 = vmatprep.subr.bf16.mxu1 %v1336_v1 }
  0x1b   : > { %1160 = vmatpush3.bf16.msra.mxu0 %v1290_v11 }
  0x1c   : > { %1180 = vmatpush3.bf16.msra.mxu1 %v1291_v12  ;;  %1161 = vmatprep.subr.bf16.mxu0 %v1336_v1 }
  0x1d   : > { %1181 = vmatprep.subr.bf16.mxu1 %v1336_v1 }
  0x1f   : > { %1162 = vmatpush3.bf16.msra.mxu0 %v1292_v13  ;;  %v1322_v13 = vld [vmem:[%s1625_s3 + $0x90] sm:$0xff]  }
  0x20   : > { %1182 = vmatpush3.bf16.msra.mxu1 %v1293_v14  ;;  %1163 = vmatprep.subr.bf16.mxu0 %v1336_v1 }
  0x21   : > { %1183 = vmatprep.subr.bf16.mxu1 %v1336_v1 }
  0x23   : > { %1164 = vmatpush3.bf16.msra.mxu0 %v1294_v15  ;;  %v1323_v15 = vld [vmem:[%s1625_s3 + $0x98] sm:$0xff]  }
  0x24   : > { %1184 = vmatpush3.bf16.msra.mxu1 %v1295_v17  ;;  %1189 = vmatprep.subr.bf16.mxu0 %v1336_v1  ;;  %v1324_v17 = vld [vmem:[%s1625_s3 + $0xa0] sm:$0xff]  }
  0x25   : > { %1209 = vmatprep.subr.bf16.mxu1 %v1336_v1 }
  0x26   : > { %1166 = vmatmul.mubr.bf16.vlgmr.msra.gmra.mrb[0].mxu0 %v247_v22 }
  0x27   : > { %1186 = vmatmul.mubr.bf16.vlgmr.msra.gmra.mrb[0].mxu1 %v228_v23  ;;  %1190 = vmatpush3.bf16.msra.mxu0 %v1296_v21  ;;  %v1327_v21 = vld [vmem:[%s1625_s3 + $0xb8] sm:$0xff]  }
  0x28   : > { %1191 = vmatprep.subr.bf16.mxu0 %v1336_v1  ;;  %1205 = vmatprep.mubr.msk.bf16.mxu0 %vm1337_vm0, %v1336_v1 }
  0x29   : > { %1225 = vmatprep.mubr.msk.bf16.mxu1 %vm1337_vm0, %v1336_v1  ;;  %1210 = vmatpush3.bf16.msra.mxu1 %v1304_v34 }
  0x2a   : > { %1211 = vmatprep.subr.bf16.mxu1 %v1336_v1 }
  0x2b   : > { %1192 = vmatpush3.bf16.msra.mxu0 %v1297_v24 }
  0x2c   : > { %1193 = vmatprep.subr.bf16.mxu0 %v1336_v1 }
  0x2d   : > { %1212 = vmatpush3.bf16.msra.mxu1 %v1306_v36 }
  0x2e   : > { %1213 = vmatprep.subr.bf16.mxu1 %v1336_v1 }
  0x2f   : > { %1194 = vmatpush3.bf16.msra.mxu0 %v1298_v25 }
  0x30   : > { %1195 = vmatprep.subr.bf16.mxu0 %v1336_v1 }
  0x31   : > { %1214 = vmatpush3.bf16.msra.mxu1 %v1308_v38 }
  0x32   : > { %1215 = vmatprep.subr.bf16.mxu1 %v1336_v1 }
  0x33   : > { %1196 = vmatpush3.bf16.msra.mxu0 %v1299_v26 }
  0x34   : > { %1197 = vmatprep.subr.bf16.mxu0 %v1336_v1 }
  0x35   : > { %1216 = vmatpush3.bf16.msra.mxu1 %v1310_v40 }
  0x36   : > { %1217 = vmatprep.subr.bf16.mxu1 %v1336_v1 }
  0x37   : > { %1198 = vmatpush3.bf16.msra.mxu0 %v1300_v27 }
  0x38   : > { %1199 = vmatprep.subr.bf16.mxu0 %v1336_v1 }
  0x39   : > { %1218 = vmatpush3.bf16.msra.mxu1 %v1312_v41 }
  0x3a   : > { %1219 = vmatprep.subr.bf16.mxu1 %v1336_v1 }
  0x3b   : > { %1200 = vmatpush3.bf16.msra.mxu0 %v1301_v28 }
  0x3c   : > { %1201 = vmatprep.subr.bf16.mxu0 %v1336_v1 }
  0x3d   : > { %1220 = vmatpush3.bf16.msra.mxu1 %v1314_v42 }
  0x3e   : > { %1221 = vmatprep.subr.bf16.mxu1 %v1336_v1 }
  0x3f   : > { %1202 = vmatpush3.bf16.msra.mxu0 %v1302_v29 }
  0x40   : > { %1203 = vmatprep.subr.bf16.mxu0 %v1336_v1 }
  0x41   : > { %1222 = vmatpush3.bf16.msra.mxu1 %v1316_v44 }
  0x42   : > { %1223 = vmatprep.subr.bf16.mxu1 %v1336_v1 }
  0x43   : > { %1204 = vmatpush3.bf16.msra.mxu0 %v1303_v30 }
  0x44   : > { %1229 = vmatprep.subr.bf16.mxu0 %v1336_v1 }
  0x45   : > { %1224 = vmatpush3.bf16.msra.mxu1 %v1318_v46 }
  0x46   : > { %1206 = vmatmul.mubr.bf16.vlgmr.msra.gmra.mrb[4].mxu0 %v445_v33  ;;  %1249 = vmatprep.subr.bf16.mxu1 %v1336_v1 }
  0x47   : > { %1245 = vmatprep.mubr.msk.bf16.mxu0 %vm1337_vm0, %v1336_v1  ;;  %1230 = vmatpush3.bf16.msra.mxu0 %v1305_v35 }
  0x48   : > { %1231 = vmatprep.subr.bf16.mxu0 %v1336_v1 }
  0x4b   : > { %1232 = vmatpush3.bf16.msra.mxu0 %v1307_v37 }
  0x4c   : > { %1233 = vmatprep.subr.bf16.mxu0 %v1336_v1 }
  0x4f   : > { %1234 = vmatpush3.bf16.msra.mxu0 %v1309_v39 }
  0x50   : > { %1235 = vmatprep.subr.bf16.mxu0 %v1336_v1 }
  0x53   : > { %1236 = vmatpush3.bf16.msra.mxu0 %v1311_v43 }
  0x54   : > { %1237 = vmatprep.subr.bf16.mxu0 %v1336_v1 }
  0x57   : > { %1238 = vmatpush3.bf16.msra.mxu0 %v1313_v45 }
  0x58   : > { %1239 = vmatprep.subr.bf16.mxu0 %v1336_v1 }
  0x5b   : > { %1240 = vmatpush3.bf16.msra.mxu0 %v1315_v47 }
  0x5c   : > { %1241 = vmatprep.subr.bf16.mxu0 %v1336_v1 }
  0x5f   : > { %1242 = vmatpush3.bf16.msra.mxu0 %v1317_v48 }
  0x60   : > { %1243 = vmatprep.subr.bf16.mxu0 %v1336_v1 }
  0x63   : > { %1244 = vmatpush3.bf16.msra.mxu0 %v1319_v49 }
  0xf9   : > { %v347_v50 = vpop.f32.mrb[0].mxu0 }
  0xfa   : > { %v436_v51 = vpop.f32.mrb[0].mxu1  ;;  %v1167_v52 = vpop.f32.mrb[1].mxu0 }
  0xfb   : > { %v437_v53 = vadd.f32 %v436_v51, %v347_v50  ;;  %v1187_v54 = vpop.f32.mrb[1].mxu1  ;;  %v350_v55 = vpop.f32.mrb[2].mxu0 }
  0xfc   : > { %v439_v56 = vpop.f32.mrb[2].mxu1  ;;  %v1168_v57 = vpop.f32.mrb[3].mxu0 }
  0xfd   : > { %v440_v58 = vadd.f32 %v439_v56, %v350_v55  ;;  %v1188_v59 = vpop.f32.mrb[3].mxu1 }
 0x119   : > { %v545_v60 = vpop.f32.mrb[4].mxu0 }
 0x11a   : > { %v552_v62 = vadd.f32 %v545_v60, %v437_v53  ;;  %v1207_v63 = vpop.f32.mrb[5].mxu0 }
 0x11b   : > { %v548_v0 = vpop.f32.mrb[6].mxu0 }
 0x11c   : > { %v561_v2 = vadd.f32 %v1034_v61, %v552_v62  ;;  %v553_v3 = vadd.f32 %v548_v0, %v440_v58  ;;  %v1208_v4 = vpop.f32.mrb[7].mxu0 }
 0x11e   : > { %v563_v5 = vmax.f32 %v561_v2, 0.0  ;;  %v562_v6 = vadd.f32 %v1034_v61, %v553_v3 }
 0x120   : > { %568 = vst [vmem:[#allocation2 + $0x1] sm:$0xff] %v563_v5  ;;  %v564_v7 = vmax.f32 %v562_v6, 0.0 }
 0x122   : > { %569 = vst [vmem:[#allocation2 + $0x9] sm:$0xff] %v564_v7  ;;  %v591_v9 = vpack.c.bf16 %v564_v7, %v563_v5 }
 0x124   : > { %1226 = vmatmul.mubr.bf16.vlgmr.msra.gmra.mrb[4].mxu1 %v591_v9 }
 0x125   : > { %1250 = vmatpush3.bf16.msra.mxu1 %v1320_v8  ;;  %1265 = vmatprep.mubr.msk.bf16.mxu1 %vm1337_vm0, %v1336_v1 }
 0x126   : > { %1251 = vmatprep.subr.bf16.mxu1 %v1336_v1 }
 0x127   : > { %v570_v11 = vld [vmem:[#allocation2] sm:$0xff] }
 0x129   : > { %v571_v12 = vld [vmem:[#allocation2 + $0x8] sm:$0xff]  ;;  %1252 = vmatpush3.bf16.msra.mxu1 %v1321_v10 }
 0x12a   : > { %v572_v14 = vpack.c.bf16 %v571_v12, %v570_v11  ;;  %1253 = vmatprep.subr.bf16.mxu1 %v1336_v1  ;;  %v787_v22 = vld [vmem:[#allocation2 + $0x2] sm:$0xff]  ;;  %v788_v23 = vld [vmem:[#allocation2 + $0xa] sm:$0xff] }
 0x12b   : > { %v789_v24 = vpack.c.bf16 %v788_v23, %v787_v22 }
 0x12c   : > { %1246 = vmatmul.mubr.bf16.vlgmr.msra.gmra.mrb[8].mxu0 %v572_v14 }
 0x12d   : > { %1254 = vmatpush3.bf16.msra.mxu1 %v1322_v13 }
 0x12e   : > { %1255 = vmatprep.subr.bf16.mxu1 %v1336_v1 }
 0x131   : > { %1256 = vmatpush3.bf16.msra.mxu1 %v1323_v15 }
 0x132   : > { %1257 = vmatprep.subr.bf16.mxu1 %v1336_v1 }
 0x135   : > { %1258 = vmatpush3.bf16.msra.mxu1 %v1324_v17 }
 0x136   : > { %1259 = vmatprep.subr.bf16.mxu1 %v1336_v1 }
 0x139   : > { %1260 = vmatpush3.bf16.msra.mxu1 %v1325_v19 }
 0x13a   : > { %1261 = vmatprep.subr.bf16.mxu1 %v1336_v1 }
 0x13d   : > { %1262 = vmatpush3.bf16.msra.mxu1 %v1326_v20 }
 0x13e   : > { %1263 = vmatprep.subr.bf16.mxu1 %v1336_v1  ;;  %v1091_v1 = vld [vmem:[%s1626_s4] ss:$0 sm:$0xff] }
 0x141   : > { %1264 = vmatpush3.bf16.msra.mxu1 %v1327_v21 }
 0x144   : > { %1266 = vmatmul.mubr.bf16.vlgmr.msra.gmra.mrb[8].mxu1 %v789_v24 }
 0x1f7   : > { %v691_v25 = vpop.f32.mrb[4].mxu1 }
 0x1f8   : > { %v1227_v26 = vpop.f32.mrb[5].mxu1 }
 0x1f9   : > { %v694_v27 = vpop.f32.mrb[6].mxu1 }
 0x1fa   : > { %v1228_v28 = vpop.f32.mrb[7].mxu1 }
 0x1ff   : > { %v780_v29 = vpop.f32.mrb[8].mxu0 }
 0x200   : > { %v781_v30 = vadd.f32 %v780_v29, %v691_v25  ;;  %v1247_v31 = vpop.f32.mrb[9].mxu0 }
 0x201   : > { %v783_v32 = vpop.f32.mrb[10].mxu0 }
 0x202   : > { %v784_v33 = vadd.f32 %v783_v32, %v694_v27  ;;  %v1248_v34 = vpop.f32.mrb[11].mxu0 }
 0x217   : > { %v889_v35 = vpop.f32.mrb[8].mxu1 }
 0x218   : > { %v896_v36 = vadd.f32 %v889_v35, %v781_v30  ;;  %v1267_v37 = vpop.f32.mrb[9].mxu1 }
 0x219   : > { %v892_v38 = vpop.f32.mrb[10].mxu1 }
 0x21a   : > { %v905_v39 = vadd.f32 %v1091_v1, %v896_v36  ;;  %v897_v40 = vadd.f32 %v892_v38, %v784_v33  ;;  %v1268_v41 = vpop.f32.mrb[11].mxu1 }
 0x21c   : > { %v909_v42 = vadd.f32 %v905_v39, %v1455_v16  ;;  %v906_v43 = vadd.f32 %v1091_v1, %v897_v40 }
 0x21e   : > { %v911_v44 = vmax.f32 %v909_v42, 0.0  ;;  %v910_v45 = vadd.f32 %v906_v43, %v1461_v18 }
 0x220   : > { %913 = vst [vmem:[%s224_s10] sm:$0xff] %v911_v44  ;;  %v912_v46 = vmax.f32 %v910_v45, 0.0 }
 0x222   : > { %914 = vst [vmem:[%s224_s10 + $0x8] sm:$0xff] %v912_v46 }
 0x223 PF: > { %s15_s18 = sadd.s32 1, %s1334_s18  }
 0x224   : > { %p12_p4 = scmp.ge.s32.totalorder %s15_s18, 4  }
 0x226   :  { %14 = sbr.rel (!%p12_p4) target bundleno = 1 (0x1), region = 74 }

// kernel: _lambda_.21
= control target key start
LH: loop header
LB: loop body
LE: loop exit
PB: predicated region body
PF: predicated region fallthrough
CT: control target
= control target key end

     0   :  { %s1457_s27 = smov 0   ;;  %s1675_s0 = inlined_call_operand.vmem [shape: f32[2,17,64], index: 0, kind: input, shape index: {}]   ;;  %s1676_s1 = inlined_call_operand.vmem [shape: f32[2,16,64], index: 1, kind: input, shape index: {}]   ;;  %s1677_s2 = inlined_call_operand.vmem [shape: bf16[3,64,128], index: 2, kind: input, shape index: {}]   ;;  %s1678_s3 = inlined_call_operand.vmem [shape: f32[1,128], index: 3, kind: input, shape index: {}]   ;;  %s1679_s4 = inlined_call_operand.vmem [shape: bf16[3,128,128], index: 4, kind: input, shape index: {}]   ;;  %s1680_s5 = inlined_call_operand.vmem [shape: f32[1,128], index: 5, kind: input, shape index: {}]   ;;  %s1681_s6 = inlined_call_operand.vmem [shape: bf16[64,128], index: 6, kind: input, shape index: {}]   ;;  %s1682_s7 = inlined_call_operand.vmem [shape: f32[1,128], index: 7, kind: input, shape index: {}]   ;;  %s1683_s8 = inlined_call_operand.vmem [shape: f32[2,16,128], index: 8, kind: output, shape index: {}]  }
   0x1 LB: > { %s1075_s28 = sadd.s32 4294967295, %s1408_s27   ;;  %p1079_p0 = scmp.ge.s32.totalorder %s1408_s27, 1  ;;  %s1408_s27 = sphi %s1457_s27, %s18_s27  }
   0x2   : > { %p272_p1 = scmp.lt.s32.totalorder %s1408_s27, 3 }
   0x4   : > { %p273_p2 = pnand %p1079_p0, %p272_p1 }
   0x5   : > { %v1362_v0 = vld [vmem:[%s1677_s2 + $0x20] sm:$0xff] (!%p273_p2)   ;;  %v1410_v1 = vmov (!%p273_p2), 0.0   ;;  %v1363_v2 = vld [vmem:[%s1677_s2 + $0x28] sm:$0xff] (!%p273_p2)   ;;  %vm1411_vm0 = vmmov (!%p273_p2), 0   ;;  %p311_p3 = scmp.lt.s32.totalorder (!%p273_p2), %s1075_s28, 1  ;;  %v1364_v3 = vld [vmem:[%s1677_s2 + $0x30] sm:$0xff] (!%p273_p2)  }
   0x6   : > { %276 = sbr.rel (%p273_p2) target bundleno = 537 (0x219), region = 52  ;;  %1231 = vmatprep.subr.bf16.mxu0 (!%p273_p2), %v1410_v1  ;;  %660 = vst [vmem:[#allocation2] sm:$0xff] (!%p273_p2), %v1410_v1  ;;  %661 = vst [vmem:[#allocation2 + $0x8] sm:$0xff] (!%p273_p2), %v1410_v1  ;;  %1267 = vmatprep.subr.bf16.mxu1 (!%p273_p2), %v1410_v1  ;;  %v1365_v4 = vld [vmem:[%s1677_s2 + $0x38] sm:$0xff] (!%p273_p2)   ;;  %vm374_vm1 = vcmask (!%p273_p2), 523264   ;;  %v1366_v8 = vld [vmem:[%s1677_s2] sm:$0xff] (!%p273_p2)  }
   0x7   : > { %662 = vst [vmem:[#allocation2 + $0x10] sm:$0x3] (!%p273_p2), %v1410_v1  ;;  %1232 = vmatpush3.bf16.msra.mxu0 (!%p273_p2), %v1362_v0  ;;  %1239 = vmatprep.mubr.msk.bf16.mxu0 (!%p273_p2), %vm1411_vm0, %v1410_v1  ;;  %v1367_v9 = vld [vmem:[%s1677_s2 + $0x8] sm:$0xff] (!%p273_p2)   ;;  %v1368_v10 = vld [vmem:[%s1677_s2 + $0x10] sm:$0xff] (!%p273_p2)   ;;  %v1369_v11 = vld [vmem:[%s1677_s2 + $0x18] sm:$0xff] (!%p273_p2)  }
   0x8   : > { %1233 = vmatprep.subr.bf16.mxu0 (!%p273_p2), %v1410_v1  ;;  %1275 = vmatprep.mubr.msk.bf16.mxu1 (!%p273_p2), %vm1411_vm0, %v1410_v1  ;;  %v1370_v14 = vld [vmem:[%s1677_s2 + $0x40] sm:$0xff] (!%p273_p2)   ;;  %v1371_v16 = vld [vmem:[%s1677_s2 + $0x48] sm:$0xff] (!%p273_p2)   ;;  %v1372_v17 = vld [vmem:[%s1677_s2 + $0x50] sm:$0xff] (!%p273_p2)  }
   0x9   : > { %v1373_v18 = vld [vmem:[%s1677_s2 + $0x58] sm:$0xff] (!%p273_p2)   ;;  %v1374_v22 = vld [vmem:[%s1681_s6] sm:$0xff] (!%p273_p2)   ;;  %v1375_v23 = vld [vmem:[%s1681_s6 + $0x8] sm:$0xff] (!%p273_p2)  }
   0xa   : > { %1268 = vmatpush3.bf16.msra.mxu1 (!%p273_p2), %v1374_v22  ;;  %v1376_v24 = vld [vmem:[%s1681_s6 + $0x10] sm:$0xff] (!%p273_p2)   ;;  %v1377_v25 = vld [vmem:[%s1681_s6 + $0x18] sm:$0xff] (!%p273_p2)   ;;  %v1379_v26 = vld [vmem:[%s1679_s4 + $0x40] sm:$0xff] (!%p273_p2)  }
   0xb   : > { %1234 = vmatpush3.bf16.msra.mxu0 (!%p273_p2), %v1363_v2  ;;  %1269 = vmatprep.subr.bf16.mxu1 (!%p273_p2), %v1410_v1  ;;  %v1381_v27 = vld [vmem:[%s1679_s4 + $0x48] sm:$0xff] (!%p273_p2)   ;;  %v1378_v28 = vld [vmem:[%s1679_s4] sm:$0xff] (!%p273_p2)   ;;  %v1383_v29 = vld [vmem:[%s1679_s4 + $0x50] sm:$0xff] (!%p273_p2)  }
   0xc   : > { %1235 = vmatprep.subr.bf16.mxu0 (!%p273_p2), %v1410_v1  ;;  %v1380_v30 = vld [vmem:[%s1679_s4 + $0x8] sm:$0xff] (!%p273_p2)   ;;  %v1385_v31 = vld [vmem:[%s1679_s4 + $0x58] sm:$0xff] (!%p273_p2)   ;;  %v1382_v32 = vld [vmem:[%s1679_s4 + $0x10] sm:$0xff] (!%p273_p2)  }
   0xd   : > { %s1685_s28 = smov (!%p311_p3, %s1075_s28), 1  ;;  %v1387_v33 = vld [vmem:[%s1679_s4 + $0x60] sm:$0xff]   ;;  %v1384_v34 = vld [vmem:[%s1679_s4 + $0x18] sm:$0xff]   ;;  %v1389_v35 = vld [vmem:[%s1679_s4 + $0x68] sm:$0xff]  }
   0xe   : > { %s1182_s13 = sshll.u32 %s1685_s28, 4  ;;  %s1351_s19 = smul.u32 24, %s1685_s28  ;;  %1270 = vmatpush3.bf16.msra.mxu1 %v1375_v23  ;;  %v1386_v36 = vld [vmem:[%s1679_s4 + $0x20] sm:$0xff]   ;;  %v1391_v37 = vld [vmem:[%s1679_s4 + $0x70] sm:$0xff]   ;;  %v1388_v38 = vld [vmem:[%s1679_s4 + $0x28] sm:$0xff]  }
   0xf   : > { %s320_s16 = scalar_lea.vmem %s1676_s1, %s1182_s13  ;;  %1236 = vmatpush3.bf16.msra.mxu0 %v1364_v3  ;;  %1271 = vmatprep.subr.bf16.mxu1 %v1410_v1  ;;  %v1393_v39 = vld [vmem:[%s1679_s4 + $0x78] sm:$0xff]   ;;  %v1390_v40 = vld [vmem:[%s1679_s4 + $0x30] sm:$0xff]   ;;  %v1116_v53 = vld [vmem:[%s1678_s3] ss:$0 sm:$0xff]  ;;  %s325_s29 = scalar_lea.vmem %s1683_s8, %s1182_s13 }
  0x10   : > { %v327_v5 = vld [vmem:[%s320_s16] sm:$0xff]  ;;  %v328_v6 = vld [vmem:[%s320_s16 + $0x8] sm:$0xff]  ;;  %1237 = vmatprep.subr.bf16.mxu0 %v1410_v1  ;;  %s315_s30 = scalar_lea.vmem %s1675_s0, %s1351_s19  ;;  %v1392_v41 = vld [vmem:[%s1679_s4 + $0x38] sm:$0xff]  }
  0x11   : > { %v329_v7 = vpack.c.bf16 %v328_v6, %v327_v5  ;;  %v330_v12 = vld [vmem:[%s315_s30] sm:$0xff]  ;;  %v331_v13 = vld [vmem:[%s315_s30 + $0x8] sm:$0xff]  ;;  %v1396_v6 = vld [vmem:[%s1679_s4 + $0x90] sm:$0xff]  }
  0x12   : > { %v332_v15 = vpack.c.bf16 %v331_v13, %v330_v12  ;;  %v487_v19 = vld [vmem:[%s315_s30 + $0x1] sm:$0xff]  ;;  %v488_v20 = vld [vmem:[%s315_s30 + $0x9] sm:$0xff]  ;;  %1272 = vmatpush3.bf16.msra.mxu1 %v1376_v24 }
  0x13   : > { %1238 = vmatpush3.bf16.msra.mxu0 %v1365_v4  ;;  %v489_v21 = vpack.c.bf16 %v488_v20, %v487_v19  ;;  %1273 = vmatprep.subr.bf16.mxu1 %v1410_v1  ;;  %v1394_v3 = vld [vmem:[%s1679_s4 + $0x80] sm:$0xff]   ;;  %v1395_v5 = vld [vmem:[%s1679_s4 + $0x88] sm:$0xff]  }
  0x14   : > { %1243 = vmatprep.subr.bf16.mxu0 %v1410_v1  ;;  %v1117_v19 = vld [vmem:[%s1682_s7] ss:$0 sm:$0xff] }
  0x16   : > { %1240 = vmatmul.mubr.msk.bf16.vlgmr.msra.gmra.mrb[0].mxu0 %vm374_vm1, %v329_v7  ;;  %1274 = vmatpush3.bf16.msra.mxu1 %v1377_v25 }
  0x17   : > { %1244 = vmatpush3.bf16.msra.mxu0 %v1366_v8  ;;  %1251 = vmatprep.mubr.msk.bf16.mxu0 %vm1411_vm0, %v1410_v1  ;;  %v1398_v8 = vld [vmem:[%s1679_s4 + $0xa0] sm:$0xff]  }
  0x18   : > { %1245 = vmatprep.subr.bf16.mxu0 %v1410_v1  ;;  %1299 = vmatprep.subr.bf16.mxu1 %v1410_v1 }
  0x19   : > { %1276 = vmatmul.mubr.msk.bf16.vlgmr.msra.gmra.mrb[0].mxu1 %vm374_vm1, %v329_v7  ;;  %v1397_v7 = vld [vmem:[%s1679_s4 + $0x98] sm:$0xff]  }
  0x1a   : > { %1315 = vmatprep.mubr.msk.bf16.mxu1 %vm1411_vm0, %v1410_v1  ;;  %1300 = vmatpush3.bf16.msra.mxu1 %v1378_v28  ;;  %v1179_v28 = vld [vmem:[%s1680_s5] ss:$0 sm:$0xff] }
  0x1b   : > { %1246 = vmatpush3.bf16.msra.mxu0 %v1367_v9  ;;  %1301 = vmatprep.subr.bf16.mxu1 %v1410_v1  ;;  %v1399_v9 = vld [vmem:[%s1679_s4 + $0xa8] sm:$0xff]  }
  0x1c   : > { %1247 = vmatprep.subr.bf16.mxu0 %v1410_v1 }
  0x1e   : > { %1302 = vmatpush3.bf16.msra.mxu1 %v1380_v30 }
  0x1f   : > { %1248 = vmatpush3.bf16.msra.mxu0 %v1368_v10  ;;  %1303 = vmatprep.subr.bf16.mxu1 %v1410_v1  ;;  %v1400_v10 = vld [vmem:[%s1679_s4 + $0xb0] sm:$0xff]  }
  0x20   : > { %1249 = vmatprep.subr.bf16.mxu0 %v1410_v1 }
  0x22   : > { %1304 = vmatpush3.bf16.msra.mxu1 %v1382_v32 }
  0x23   : > { %1250 = vmatpush3.bf16.msra.mxu0 %v1369_v11  ;;  %1305 = vmatprep.subr.bf16.mxu1 %v1410_v1  ;;  %v1401_v11 = vld [vmem:[%s1679_s4 + $0xb8] sm:$0xff]  }
  0x24   : > { %1255 = vmatprep.subr.bf16.mxu0 %v1410_v1 }
  0x26   : > { %1252 = vmatmul.mubr.msk.bf16.vlgmr.msra.gmra.mrb[4].mxu0 %vm374_vm1, %v332_v15  ;;  %1306 = vmatpush3.bf16.msra.mxu1 %v1384_v34 }
  0x27   : > { %1256 = vmatpush3.bf16.msra.mxu0 %v1370_v14  ;;  %1263 = vmatprep.mubr.msk.bf16.mxu0 %vm1411_vm0, %v1410_v1 }
  0x28   : > { %1257 = vmatprep.subr.bf16.mxu0 %v1410_v1  ;;  %1307 = vmatprep.subr.bf16.mxu1 %v1410_v1 }
  0x2a   : > { %1308 = vmatpush3.bf16.msra.mxu1 %v1386_v36 }
  0x2b   : > { %1258 = vmatpush3.bf16.msra.mxu0 %v1371_v16  ;;  %1309 = vmatprep.subr.bf16.mxu1 %v1410_v1 }
  0x2c   : > { %1259 = vmatprep.subr.bf16.mxu0 %v1410_v1 }
  0x2e   : > { %1310 = vmatpush3.bf16.msra.mxu1 %v1388_v38 }
  0x2f   : > { %1260 = vmatpush3.bf16.msra.mxu0 %v1372_v17  ;;  %1311 = vmatprep.subr.bf16.mxu1 %v1410_v1 }
  0x30   : > { %1261 = vmatprep.subr.bf16.mxu0 %v1410_v1 }
  0x32   : > { %1312 = vmatpush3.bf16.msra.mxu1 %v1390_v40 }
  0x33   : > { %1262 = vmatpush3.bf16.msra.mxu0 %v1373_v18  ;;  %1313 = vmatprep.subr.bf16.mxu1 %v1410_v1 }
  0x34   : > { %1279 = vmatprep.subr.bf16.mxu0 %v1410_v1 }
  0x36   : > { %1264 = vmatmul.mubr.msk.bf16.vlgmr.msra.gmra.mrb[8].mxu0 %vm374_vm1, %v489_v21  ;;  %1314 = vmatpush3.bf16.msra.mxu1 %v1392_v41 }
  0x37   : > { %1295 = vmatprep.mubr.msk.bf16.mxu0 %vm1411_vm0, %v1410_v1  ;;  %1280 = vmatpush3.bf16.msra.mxu0 %v1379_v26 }
  0x38   : > { %1281 = vmatprep.subr.bf16.mxu0 %v1410_v1  ;;  %1319 = vmatprep.subr.bf16.mxu1 %v1410_v1 }
  0x3b   : > { %1282 = vmatpush3.bf16.msra.mxu0 %v1381_v27 }
  0x3c   : > { %1283 = vmatprep.subr.bf16.mxu0 %v1410_v1 }
  0x3f   : > { %1284 = vmatpush3.bf16.msra.mxu0 %v1383_v29 }
  0x40   : > { %1285 = vmatprep.subr.bf16.mxu0 %v1410_v1 }
  0x43   : > { %1286 = vmatpush3.bf16.msra.mxu0 %v1385_v31 }
  0x44   : > { %1287 = vmatprep.subr.bf16.mxu0 %v1410_v1 }
  0x47   : > { %1288 = vmatpush3.bf16.msra.mxu0 %v1387_v33 }
  0x48   : > { %1289 = vmatprep.subr.bf16.mxu0 %v1410_v1 }
  0x4b   : > { %1290 = vmatpush3.bf16.msra.mxu0 %v1389_v35 }
  0x4c   : > { %1291 = vmatprep.subr.bf16.mxu0 %v1410_v1 }
  0x4f   : > { %1292 = vmatpush3.bf16.msra.mxu0 %v1391_v37 }
  0x50   : > { %1293 = vmatprep.subr.bf16.mxu0 %v1410_v1 }
  0x53   : > { %1294 = vmatpush3.bf16.msra.mxu0 %v1393_v39 }
  0xe9   : > { %v412_v42 = vpop.f32.mrb[0].mxu0 }
  0xea   : > { %v1241_v43 = vpop.f32.mrb[1].mxu0 }
  0xeb   : > { %v415_v44 = vpop.f32.mrb[2].mxu0 }
  0xec   : > { %v1242_v45 = vpop.f32.mrb[3].mxu0  ;;  %v653_v15 = vpop.f32.mrb[0].mxu1 }
  0xed   : > { %v1277_v16 = vpop.f32.mrb[1].mxu1  ;;  %v654_v20 = vadd.f32 %v1117_v19, %v653_v15 }
  0xee   : > { %v656_v17 = vpop.f32.mrb[2].mxu1 }
  0xef   : > { %v1278_v18 = vpop.f32.mrb[3].mxu1  ;;  %v657_v22 = vadd.f32 %v1117_v19, %v656_v17 }
  0xf9   : > { %v480_v46 = vpop.f32.mrb[4].mxu0 }
  0xfa   : > { %v481_v47 = vadd.f32 %v480_v46, %v412_v42  ;;  %v1253_v48 = vpop.f32.mrb[5].mxu0 }
  0xfb   : > { %v483_v49 = vpop.f32.mrb[6].mxu0 }
  0xfc   : > { %v484_v50 = vadd.f32 %v483_v49, %v415_v44  ;;  %v1254_v51 = vpop.f32.mrb[7].mxu0 }
 0x109   : > { %v560_v52 = vpop.f32.mrb[8].mxu0 }
 0x10a   : > { %v567_v54 = vadd.f32 %v560_v52, %v481_v47  ;;  %v1265_v55 = vpop.f32.mrb[9].mxu0 }
 0x10b   : > { %v563_v56 = vpop.f32.mrb[10].mxu0 }
 0x10c   : > { %v576_v57 = vadd.f32 %v1116_v53, %v567_v54  ;;  %v568_v58 = vadd.f32 %v563_v56, %v484_v50  ;;  %v1266_v59 = vpop.f32.mrb[11].mxu0 }
 0x10e   : > { %v578_v60 = vmax.f32 %v576_v57, 0.0  ;;  %v577_v61 = vadd.f32 %v1116_v53, %v568_v58 }
 0x110   : > { %663 = vst [vmem:[#allocation2 + $0x1] sm:$0xff] %v578_v60  ;;  %v579_v62 = vmax.f32 %v577_v61, 0.0 }
 0x112   : > { %664 = vst [vmem:[#allocation2 + $0x9] sm:$0xff] %v579_v62  ;;  %v686_v63 = vpack.c.bf16 %v579_v62, %v578_v60 }
 0x114   : > { %1296 = vmatmul.mubr.bf16.vlgmr.msra.gmra.mrb[12].mxu0 %v686_v63 }
 0x117   : > { %v665_v0 = vld [vmem:[#allocation2] sm:$0xff] }
 0x119   : > { %v666_v2 = vld [vmem:[#allocation2 + $0x8] sm:$0xff] }
 0x11a   : > { %v667_v4 = vpack.c.bf16 %v666_v2, %v665_v0  ;;  %v882_v12 = vld [vmem:[#allocation2 + $0x2] sm:$0xff]  ;;  %v883_v13 = vld [vmem:[#allocation2 + $0xa] sm:$0xff] }
 0x11b   : > { %v884_v14 = vpack.c.bf16 %v883_v13, %v882_v12 }
 0x11c   : > { %1316 = vmatmul.mubr.bf16.vlgmr.msra.gmra.mrb[4].mxu1 %v667_v4 }
 0x11d   : > { %1320 = vmatpush3.bf16.msra.mxu1 %v1394_v3  ;;  %1335 = vmatprep.mubr.msk.bf16.mxu1 %vm1411_vm0, %v1410_v1 }
 0x11e   : > { %1321 = vmatprep.subr.bf16.mxu1 %v1410_v1 }
 0x121   : > { %1322 = vmatpush3.bf16.msra.mxu1 %v1395_v5 }
 0x122   : > { %1323 = vmatprep.subr.bf16.mxu1 %v1410_v1 }
 0x125   : > { %1324 = vmatpush3.bf16.msra.mxu1 %v1396_v6 }
 0x126   : > { %1325 = vmatprep.subr.bf16.mxu1 %v1410_v1 }
 0x129   : > { %1326 = vmatpush3.bf16.msra.mxu1 %v1397_v7 }
 0x12a   : > { %1327 = vmatprep.subr.bf16.mxu1 %v1410_v1 }
 0x12d   : > { %1328 = vmatpush3.bf16.msra.mxu1 %v1398_v8 }
 0x12e   : > { %1329 = vmatprep.subr.bf16.mxu1 %v1410_v1 }
 0x131   : > { %1330 = vmatpush3.bf16.msra.mxu1 %v1399_v9 }
 0x132   : > { %1331 = vmatprep.subr.bf16.mxu1 %v1410_v1 }
 0x135   : > { %1332 = vmatpush3.bf16.msra.mxu1 %v1400_v10 }
 0x136   : > { %1333 = vmatprep.subr.bf16.mxu1 %v1410_v1 }
 0x139   : > { %1334 = vmatpush3.bf16.msra.mxu1 %v1401_v11 }
 0x13c   : > { %1336 = vmatmul.mubr.bf16.vlgmr.msra.gmra.mrb[4].mxu1 %v884_v14 }
 0x1e7   : > { %v786_v21 = vpop.f32.mrb[12].mxu0 }
 0x1e8   : > { %v1340_v23 = vadd.f32 %v786_v21, %v654_v20  ;;  %v1297_v24 = vpop.f32.mrb[13].mxu0 }
 0x1e9   : > { %v789_v1 = vpop.f32.mrb[14].mxu0 }
 0x1ea   : > { %v1344_v25 = vadd.f32 %v789_v1, %v657_v22  ;;  %v1298_v26 = vpop.f32.mrb[15].mxu0 }
 0x20f   : > { %v984_v27 = vpop.f32.mrb[4].mxu1 }
 0x210   : > { %v1341_v29 = vadd.f32 %v1340_v23, %v984_v27  ;;  %v1337_v30 = vpop.f32.mrb[5].mxu1 }
 0x211   : > { %v987_v31 = vpop.f32.mrb[6].mxu1 }
 0x212   : > { %v1342_v32 = vadd.f32 %v1341_v29, %v1179_v28  ;;  %v1345_v33 = vadd.f32 %v1344_v25, %v987_v31  ;;  %v1338_v34 = vpop.f32.mrb[7].mxu1 }
 0x214   : > { %v1004_v35 = vmax.f32 %v1342_v32, 0.0  ;;  %v1346_v36 = vadd.f32 %v1345_v33, %v1179_v28 }
 0x216   : > { %1006 = vst [vmem:[%s325_s29] sm:$0xff] %v1004_v35  ;;  %v1005_v37 = vmax.f32 %v1346_v36, 0.0 }
 0x218   : > { %1007 = vst [vmem:[%s325_s29 + $0x8] sm:$0xff] %v1005_v37 }
 0x219 PF: > { %s18_s27 = sadd.s32 1, %s1408_s27  }
 0x21a   : > { %p15_p4 = scmp.ge.s32.totalorder %s18_s27, 4  }
 0x21c   :  { %17 = sbr.rel (!%p15_p4) target bundleno = 1 (0x1), region = 89 }

// kernel: _lambda_.25
= control target key start
LH: loop header
LB: loop body
LE: loop exit
PB: predicated region body
PF: predicated region fallthrough
CT: control target
= control target key end

     0   :  { %s2339_s27 = smov 0   ;;  %s2878_s0 = inlined_call_operand.vmem [shape: f32[2,9,128], index: 0, kind: input, shape index: {}]   ;;  %s2879_s1 = inlined_call_operand.vmem [shape: f32[2,8,128], index: 1, kind: input, shape index: {}]   ;;  %s2880_s2 = inlined_call_operand.vmem [shape: bf16[3,128,256], index: 2, kind: input, shape index: {}]   ;;  %s2881_s3 = inlined_call_operand.vmem [shape: f32[1,256], index: 3, kind: input, shape index: {}]   ;;  %s2882_s4 = inlined_call_operand.vmem [shape: bf16[3,256,256], index: 4, kind: input, shape index: {}]   ;;  %s2883_s5 = inlined_call_operand.vmem [shape: f32[1,256], index: 5, kind: input, shape index: {}]   ;;  %s2884_s6 = inlined_call_operand.vmem [shape: bf16[128,256], index: 6, kind: input, shape index: {}]   ;;  %s2885_s7 = inlined_call_operand.vmem [shape: f32[1,256], index: 7, kind: input, shape index: {}]   ;;  %s2886_s8 = inlined_call_operand.vmem [shape: f32[2,8,256], index: 8, kind: output, shape index: {}]  }
   0x1 LB: > { %s1752_s28 = sadd.s32 4294967295, %s2290_s27   ;;  %p1756_p0 = scmp.ge.s32.totalorder %s2290_s27, 1  ;;  %s2290_s27 = sphi %s2339_s27, %s18_s27  }
   0x2   : > { %p271_p1 = scmp.lt.s32.totalorder %s2290_s27, 3 }
   0x4   : > { %p272_p2 = pnand %p1756_p0, %p271_p1 }
   0x5   : > { %v2044_v0 = vld [vmem:[%s2880_s2 + $0x84] ss:$8 sps:$4 sm:$0xff] (!%p272_p2)   ;;  %v2046_v1 = vld [vmem:[%s2880_s2 + $0x80] ss:$8 sps:$4 sm:$0xff] (!%p272_p2)   ;;  %v2292_v2 = vmov (!%p272_p2), 0   ;;  %p309_p3 = scmp.lt.s32.totalorder (!%p272_p2), %s1752_s28, 1 }
   0x6   : > { %275 = sbr.rel (%p272_p2) target bundleno = 619 (0x26b), region = 52  ;;  %473 = vmatprep.mubr.bf16.mxu0 (!%p272_p2), %v2292_v2  ;;  %901 = vmatprep.mubr.bf16.mxu1 (!%p272_p2), %v2292_v2  ;;  %v2047_v3 = vld [vmem:[%s2880_s2 + $0x94] ss:$8 sps:$4 sm:$0xff] (!%p272_p2)   ;;  %v2049_v4 = vld [vmem:[%s2880_s2 + $0x90] ss:$8 sps:$4 sm:$0xff] (!%p272_p2)  }
   0x7   : > { %441 = vmatprep.subr.bf16.mxu0 (!%p272_p2), %v2044_v0  ;;  %v2050_v5 = vld [vmem:[%s2880_s2 + $0xa4] ss:$8 sps:$4 sm:$0xff] (!%p272_p2)   ;;  %v2052_v6 = vld [vmem:[%s2880_s2 + $0xa0] ss:$8 sps:$4 sm:$0xff] (!%p272_p2)   ;;  %v2053_v7 = vld [vmem:[%s2880_s2 + $0xb4] ss:$8 sps:$4 sm:$0xff] (!%p272_p2)  }
   0x8   : > { %442 = vmatpush1.bf16.msra.mxu0 (!%p272_p2), %v2046_v1  ;;  %v2055_v8 = vld [vmem:[%s2880_s2 + $0xb0] ss:$8 sps:$4 sm:$0xff] (!%p272_p2)   ;;  %v2056_v9 = vld [vmem:[%s2880_s2 + $0xc4] ss:$8 sps:$4 sm:$0xff] (!%p272_p2)   ;;  %v2058_v10 = vld [vmem:[%s2880_s2 + $0xc0] ss:$8 sps:$4 sm:$0xff] (!%p272_p2)  }
   0x9   : > { %443 = vmatprep.subr.bf16.mxu0 (!%p272_p2), %v2047_v3  ;;  %v2059_v11 = vld [vmem:[%s2880_s2 + $0xd4] ss:$8 sps:$4 sm:$0xff] (!%p272_p2)   ;;  %v2061_v12 = vld [vmem:[%s2880_s2 + $0xd0] ss:$8 sps:$4 sm:$0xff] (!%p272_p2)   ;;  %v2062_v13 = vld [vmem:[%s2880_s2 + $0xe4] ss:$8 sps:$4 sm:$0xff] (!%p272_p2)  }
   0xa   : > { %v2064_v14 = vld [vmem:[%s2880_s2 + $0xe0] ss:$8 sps:$4 sm:$0xff] (!%p272_p2)   ;;  %v2065_v15 = vld [vmem:[%s2880_s2 + $0xf4] ss:$8 sps:$4 sm:$0xff] (!%p272_p2)   ;;  %v2067_v16 = vld [vmem:[%s2880_s2 + $0xf0] ss:$8 sps:$4 sm:$0xff] (!%p272_p2)  }
   0xb   : > { %v2070_v18 = vld [vmem:[%s2880_s2 + $0x4] ss:$8 sps:$4 sm:$0xff] (!%p272_p2)   ;;  %v2068_v20 = vld [vmem:[%s2880_s2] ss:$8 sps:$4 sm:$0xff] (!%p272_p2)   ;;  %v2073_v21 = vld [vmem:[%s2880_s2 + $0x14] ss:$8 sps:$4 sm:$0xff] (!%p272_p2)  }
   0xc   : > { %444 = vmatpush1.bf16.msra.mxu0 (!%p272_p2), %v2049_v4  ;;  %v2116_v22 = vld [vmem:[%s2884_s6 + $0x4] ss:$8 sps:$4 sm:$0xff] (!%p272_p2)   ;;  %v2118_v23 = vld [vmem:[%s2884_s6] ss:$8 sps:$4 sm:$0xff] (!%p272_p2)   ;;  %v2071_v24 = vld [vmem:[%s2880_s2 + $0x10] ss:$8 sps:$4 sm:$0xff] (!%p272_p2)  }
   0xd   : > { %445 = vmatprep.subr.bf16.mxu0 %v2050_v5  ;;  %s2888_s28 = smov (!%p309_p3, %s1752_s28), 1  ;;  %v2119_v25 = vld [vmem:[%s2884_s6 + $0x14] ss:$8 sps:$4 sm:$0xff]   ;;  %v2076_v26 = vld [vmem:[%s2880_s2 + $0x24] ss:$8 sps:$4 sm:$0xff]   ;;  %869 = vmatprep.subr.bf16.mxu1 %v2116_v22 }
   0xe   : > { %s1759_s13 = sshll.u32 %s2888_s28, 3  ;;  %v2074_v27 = vld [vmem:[%s2880_s2 + $0x20] ss:$8 sps:$4 sm:$0xff]   ;;  %870 = vmatpush1.bf16.msra.mxu1 %v2118_v23  ;;  %v2121_v28 = vld [vmem:[%s2884_s6 + $0x10] ss:$8 sps:$4 sm:$0xff]   ;;  %s2020_s25 = sshll.u32 %s2888_s28, 4 }
   0xf   : > { %s317_s20 = scalar_lea.vmem %s2879_s1, %s1759_s13  ;;  %v2079_v29 = vld [vmem:[%s2880_s2 + $0x34] ss:$8 sps:$4 sm:$0xff]   ;;  %871 = vmatprep.subr.bf16.mxu1 %v2119_v25  ;;  %v2122_v30 = vld [vmem:[%s2884_s6 + $0x24] ss:$8 sps:$4 sm:$0xff]   ;;  %v2124_v31 = vld [vmem:[%s2884_s6 + $0x20] ss:$8 sps:$4 sm:$0xff]   ;;  %s2482_s12 = scalar_lea.vmem %s2878_s0, %s2020_s25 }
  0x10   : > { %446 = vmatpush1.bf16.msra.mxu0 %v2052_v6  ;;  %v324_v17 = vld [vmem:[%s317_s20] sm:$0xff]  ;;  %v2125_v32 = vld [vmem:[%s2884_s6 + $0x34] ss:$8 sps:$4 sm:$0xff]   ;;  %v2077_v33 = vld [vmem:[%s2880_s2 + $0x30] ss:$8 sps:$4 sm:$0xff]  }
  0x11   : > { %447 = vmatprep.subr.bf16.mxu0 %v2053_v7  ;;  %v2406_v19 = vpack.c.bf16 %v324_v17, %v324_v17  ;;  %v2082_v34 = vld [vmem:[%s2880_s2 + $0x44] ss:$8 sps:$4 sm:$0xff]   ;;  %v2127_v35 = vld [vmem:[%s2884_s6 + $0x30] ss:$8 sps:$4 sm:$0xff]   ;;  %v2080_v36 = vld [vmem:[%s2880_s2 + $0x40] ss:$8 sps:$4 sm:$0xff]  }
  0x12   : > { %872 = vmatpush1.bf16.msra.mxu1 %v2121_v28  ;;  %v2085_v37 = vld [vmem:[%s2880_s2 + $0x54] ss:$8 sps:$4 sm:$0xff]   ;;  %v2083_v38 = vld [vmem:[%s2880_s2 + $0x50] ss:$8 sps:$4 sm:$0xff]   ;;  %v2088_v39 = vld [vmem:[%s2880_s2 + $0x64] ss:$8 sps:$4 sm:$0xff]  }
  0x13   : > { %873 = vmatprep.subr.bf16.mxu1 %v2122_v30  ;;  %v2086_v40 = vld [vmem:[%s2880_s2 + $0x60] ss:$8 sps:$4 sm:$0xff]   ;;  %v2091_v41 = vld [vmem:[%s2880_s2 + $0x74] ss:$8 sps:$4 sm:$0xff]   ;;  %v2089_v42 = vld [vmem:[%s2880_s2 + $0x70] ss:$8 sps:$4 sm:$0xff]  }
  0x14   : > { %448 = vmatpush1.bf16.msra.mxu0 %v2055_v8  ;;  %v326_v43 = vld [vmem:[%s2482_s12] sm:$0xff]  ;;  %v2097_v47 = vld [vmem:[%s2880_s2 + $0x114] ss:$8 sps:$4 sm:$0xff]   ;;  %v2095_v48 = vld [vmem:[%s2880_s2 + $0x110] ss:$8 sps:$4 sm:$0xff]  }
  0x15   : > { %449 = vmatprep.subr.bf16.mxu0 %v2056_v9  ;;  %v2094_v44 = vld [vmem:[%s2880_s2 + $0x104] ss:$8 sps:$4 sm:$0xff]   ;;  %v2092_v45 = vld [vmem:[%s2880_s2 + $0x100] ss:$8 sps:$4 sm:$0xff]   ;;  %v327_v46 = vpack.c.bf16 %v326_v43, %v326_v43  ;;  %v2103_v51 = vld [vmem:[%s2880_s2 + $0x134] ss:$8 sps:$4 sm:$0xff]  }
  0x16   : > { %874 = vmatpush1.bf16.msra.mxu1 %v2124_v31  ;;  %v2100_v49 = vld [vmem:[%s2880_s2 + $0x124] ss:$8 sps:$4 sm:$0xff]   ;;  %v2098_v50 = vld [vmem:[%s2880_s2 + $0x120] ss:$8 sps:$4 sm:$0xff]   ;;  %v2101_v52 = vld [vmem:[%s2880_s2 + $0x130] ss:$8 sps:$4 sm:$0xff]  }
  0x17   : > { %875 = vmatprep.subr.bf16.mxu1 %v2125_v32  ;;  %v2106_v53 = vld [vmem:[%s2880_s2 + $0x144] ss:$8 sps:$4 sm:$0xff]   ;;  %v2104_v54 = vld [vmem:[%s2880_s2 + $0x140] ss:$8 sps:$4 sm:$0xff]   ;;  %v2109_v55 = vld [vmem:[%s2880_s2 + $0x154] ss:$8 sps:$4 sm:$0xff]  }
  0x18   : > { %450 = vmatpush1.bf16.msra.mxu0 %v2058_v10  ;;  %v2107_v56 = vld [vmem:[%s2880_s2 + $0x150] ss:$8 sps:$4 sm:$0xff]   ;;  %v2112_v57 = vld [vmem:[%s2880_s2 + $0x164] ss:$8 sps:$4 sm:$0xff]   ;;  %v2110_v58 = vld [vmem:[%s2880_s2 + $0x160] ss:$8 sps:$4 sm:$0xff]  }
  0x19   : > { %451 = vmatprep.subr.bf16.mxu0 %v2059_v11  ;;  %v2115_v59 = vld [vmem:[%s2880_s2 + $0x174] ss:$8 sps:$4 sm:$0xff]   ;;  %v2113_v60 = vld [vmem:[%s2880_s2 + $0x170] ss:$8 sps:$4 sm:$0xff]   ;;  %v603_v61 = vld [vmem:[%s2482_s12 + $0x1] sm:$0xff]  ;;  %s322_s12 = scalar_lea.vmem %s2886_s8, %s2020_s25 }
  0x1a   : > { %876 = vmatpush1.bf16.msra.mxu1 %v2127_v35  ;;  %v604_v62 = vpack.c.bf16 %v603_v61, %v603_v61  ;;  %v2128_v63 = vld [vmem:[%s2884_s6 + $0x44] ss:$8 sps:$4 sm:$0xff]   ;;  %v2130_v0 = vld [vmem:[%s2884_s6 + $0x40] ss:$8 sps:$4 sm:$0xff]   ;;  %v2131_v1 = vld [vmem:[%s2884_s6 + $0x54] ss:$8 sps:$4 sm:$0xff]  }
  0x1b   : > { %877 = vmatprep.subr.bf16.mxu1 %v2128_v63  ;;  %v2134_v3 = vld [vmem:[%s2884_s6 + $0x64] ss:$8 sps:$4 sm:$0xff]   ;;  %v2146_v4 = vld [vmem:[%s2882_s4 + $0x100] ss:$8 sps:$4 sm:$0xff]   ;;  %v2137_v7 = vld [vmem:[%s2884_s6 + $0x74] ss:$8 sps:$4 sm:$0xff]  }
  0x1c   : > { %452 = vmatpush1.bf16.msra.mxu0 %v2061_v12  ;;  %v2148_v5 = vld [vmem:[%s2882_s4 + $0x104] ss:$8 sps:$4 sm:$0xff]   ;;  %v2136_v6 = vld [vmem:[%s2884_s6 + $0x60] ss:$8 sps:$4 sm:$0xff]   ;;  %v2154_v8 = vld [vmem:[%s2882_s4 + $0x114] ss:$8 sps:$4 sm:$0xff]  }
  0x1d   : > { %453 = vmatprep.subr.bf16.mxu0 %v2062_v13  ;;  %v2152_v9 = vld [vmem:[%s2882_s4 + $0x110] ss:$8 sps:$4 sm:$0xff]   ;;  %v2142_v11 = vld [vmem:[%s2882_s4 + $0x4] ss:$8 sps:$4 sm:$0xff]   ;;  %v2140_v12 = vld [vmem:[%s2882_s4] ss:$8 sps:$4 sm:$0xff]  }
  0x1e   : > { %878 = vmatpush1.bf16.msra.mxu1 %v2130_v0  ;;  %v2139_v10 = vld [vmem:[%s2884_s6 + $0x70] ss:$8 sps:$4 sm:$0xff]   ;;  %v2145_v13 = vld [vmem:[%s2882_s4 + $0x14] ss:$8 sps:$4 sm:$0xff]   ;;  %v2161_v22 = vld [vmem:[%s2882_s4 + $0x40] ss:$8 sps:$4 sm:$0xff]  }
  0x1f   : > { %879 = vmatprep.subr.bf16.mxu1 %v2131_v1  ;;  %v2157_v17 = vld [vmem:[%s2882_s4 + $0x34] ss:$8 sps:$4 sm:$0xff]   ;;  %v2175_v28 = vld [vmem:[%s2882_s4 + $0x64] ss:$8 sps:$4 sm:$0xff]   ;;  %v2173_v30 = vld [vmem:[%s2882_s4 + $0x60] ss:$8 sps:$4 sm:$0xff]  }
  0x20   : > { %454 = vmatpush1.bf16.msra.mxu0 %v2064_v14  ;;  %v2143_v14 = vld [vmem:[%s2882_s4 + $0x10] ss:$8 sps:$4 sm:$0xff]   ;;  %v2166_v23 = vld [vmem:[%s2882_s4 + $0x134] ss:$8 sps:$4 sm:$0xff]   ;;  %v2184_v35 = vld [vmem:[%s2882_s4 + $0x164] ss:$8 sps:$4 sm:$0xff]  }
  0x21   : > { %455 = vmatprep.subr.bf16.mxu0 %v2065_v15  ;;  %v2151_v15 = vld [vmem:[%s2882_s4 + $0x24] ss:$8 sps:$4 sm:$0xff]   ;;  %v2169_v25 = vld [vmem:[%s2882_s4 + $0x54] ss:$8 sps:$4 sm:$0xff]   ;;  %v2218_v61 = vld [vmem:[%s2882_s4 + $0x1c0] ss:$8 sps:$4 sm:$0xff]  }
  0x22   : > { %v2178_v31 = vld [vmem:[%s2882_s4 + $0x154] ss:$8 sps:$4 sm:$0xff]   ;;  %v2196_v43 = vld [vmem:[%s2882_s4 + $0x184] ss:$8 sps:$4 sm:$0xff]   ;;  %v2224_v1 = vld [vmem:[%s2882_s4 + $0x1d0] ss:$8 sps:$4 sm:$0xff]  }
  0x23   : > { %v2181_v32 = vld [vmem:[%s2882_s4 + $0x74] ss:$8 sps:$4 sm:$0xff]   ;;  %v2223_v63 = vld [vmem:[%s2882_s4 + $0xe4] ss:$8 sps:$4 sm:$0xff]  }
  0x24   : > { %456 = vmatpush1.bf16.msra.mxu0 %v2067_v16  ;;  %v2149_v16 = vld [vmem:[%s2882_s4 + $0x20] ss:$8 sps:$4 sm:$0xff]   ;;  %v2226_v0 = vld [vmem:[%s2882_s4 + $0x1d4] ss:$8 sps:$4 sm:$0xff]  }
  0x25   : > { %562 = vmatprep.subr.bf16.mxu0 %v2070_v18  ;;  %v2155_v18 = vld [vmem:[%s2882_s4 + $0x30] ss:$8 sps:$4 sm:$0xff]  }
  0x27   : > { %474 = vmatmul.mubr.bf16.vlgmr.msra.gmra.mrb[0].mxu0 %v2406_v19 }
  0x28   : > { %563 = vmatpush1.bf16.msra.mxu0 %v2068_v20  ;;  %594 = vmatprep.mubr.bf16.mxu0 %v2292_v2  ;;  %v2158_v20 = vld [vmem:[%s2882_s4 + $0x120] ss:$8 sps:$4 sm:$0xff]  }
  0x29   : > { %564 = vmatprep.subr.bf16.mxu0 %v2073_v21  ;;  %v2163_v21 = vld [vmem:[%s2882_s4 + $0x44] ss:$8 sps:$4 sm:$0xff]  }
  0x2c   : > { %565 = vmatpush1.bf16.msra.mxu0 %v2071_v24  ;;  %v2164_v24 = vld [vmem:[%s2882_s4 + $0x130] ss:$8 sps:$4 sm:$0xff]  }
  0x2d   : > { %566 = vmatprep.subr.bf16.mxu0 %v2076_v26  ;;  %v2167_v26 = vld [vmem:[%s2882_s4 + $0x50] ss:$8 sps:$4 sm:$0xff]  }
  0x30   : > { %567 = vmatpush1.bf16.msra.mxu0 %v2074_v27  ;;  %v2172_v27 = vld [vmem:[%s2882_s4 + $0x144] ss:$8 sps:$4 sm:$0xff]  }
  0x31   : > { %568 = vmatprep.subr.bf16.mxu0 %v2079_v29  ;;  %v2170_v29 = vld [vmem:[%s2882_s4 + $0x140] ss:$8 sps:$4 sm:$0xff]  }
  0x34   : > { %569 = vmatpush1.bf16.msra.mxu0 %v2077_v33  ;;  %v2176_v33 = vld [vmem:[%s2882_s4 + $0x150] ss:$8 sps:$4 sm:$0xff]  }
  0x35   : > { %570 = vmatprep.subr.bf16.mxu0 %v2082_v34  ;;  %v2179_v34 = vld [vmem:[%s2882_s4 + $0x70] ss:$8 sps:$4 sm:$0xff]  }
  0x38   : > { %571 = vmatpush1.bf16.msra.mxu0 %v2080_v36  ;;  %v2187_v36 = vld [vmem:[%s2882_s4 + $0x84] ss:$8 sps:$4 sm:$0xff]  }
  0x39   : > { %572 = vmatprep.subr.bf16.mxu0 %v2085_v37  ;;  %v2182_v37 = vld [vmem:[%s2882_s4 + $0x160] ss:$8 sps:$4 sm:$0xff]  }
  0x3c   : > { %573 = vmatpush1.bf16.msra.mxu0 %v2083_v38  ;;  %v2185_v38 = vld [vmem:[%s2882_s4 + $0x80] ss:$8 sps:$4 sm:$0xff]  }
  0x3d   : > { %574 = vmatprep.subr.bf16.mxu0 %v2088_v39  ;;  %v2190_v39 = vld [vmem:[%s2882_s4 + $0x174] ss:$8 sps:$4 sm:$0xff]  }
  0x40   : > { %575 = vmatpush1.bf16.msra.mxu0 %v2086_v40  ;;  %v2193_v40 = vld [vmem:[%s2882_s4 + $0x94] ss:$8 sps:$4 sm:$0xff]  }
  0x41   : > { %576 = vmatprep.subr.bf16.mxu0 %v2091_v41  ;;  %v2188_v41 = vld [vmem:[%s2882_s4 + $0x170] ss:$8 sps:$4 sm:$0xff]  }
  0x44   : > { %577 = vmatpush1.bf16.msra.mxu0 %v2089_v42  ;;  %v2191_v42 = vld [vmem:[%s2882_s4 + $0x90] ss:$8 sps:$4 sm:$0xff]  }
  0x45   : > { %702 = vmatprep.subr.bf16.mxu0 %v2094_v44  ;;  %v2199_v44 = vld [vmem:[%s2882_s4 + $0xa4] ss:$8 sps:$4 sm:$0xff]  }
  0x47   : > { %595 = vmatmul.mubr.bf16.vlgmr.msra.gmra.mrb[4].mxu0 %v327_v46  ;;  %v2197_v46 = vld [vmem:[%s2882_s4 + $0xa0] ss:$8 sps:$4 sm:$0xff]  }
  0x48   : > { %703 = vmatpush1.bf16.msra.mxu0 %v2092_v45  ;;  %734 = vmatprep.mubr.bf16.mxu0 %v2292_v2  ;;  %v2133_v2 = vld [vmem:[%s2884_s6 + $0x50] ss:$8 sps:$4 sm:$0xff]   ;;  %v2194_v45 = vld [vmem:[%s2882_s4 + $0x180] ss:$8 sps:$4 sm:$0xff]  }
  0x49   : > { %704 = vmatprep.subr.bf16.mxu0 %v2097_v47  ;;  %880 = vmatpush1.bf16.msra.mxu1 %v2133_v2  ;;  %v2202_v47 = vld [vmem:[%s2882_s4 + $0x194] ss:$8 sps:$4 sm:$0xff]  }
  0x4a   : > { %881 = vmatprep.subr.bf16.mxu1 %v2134_v3  ;;  %v2229_v2 = vld [vmem:[%s2882_s4 + $0xf4] ss:$8 sps:$4 sm:$0xff]   ;;  %v2227_v3 = vld [vmem:[%s2882_s4 + $0xf0] ss:$8 sps:$4 sm:$0xff]  }
  0x4c   : > { %705 = vmatpush1.bf16.msra.mxu0 %v2095_v48  ;;  %v2200_v48 = vld [vmem:[%s2882_s4 + $0x190] ss:$8 sps:$4 sm:$0xff]  }
  0x4d   : > { %706 = vmatprep.subr.bf16.mxu0 %v2100_v49  ;;  %882 = vmatpush1.bf16.msra.mxu1 %v2136_v6  ;;  %v2205_v49 = vld [vmem:[%s2882_s4 + $0xb4] ss:$8 sps:$4 sm:$0xff]   ;;  %v2235_v6 = vld [vmem:[%s2882_s4 + $0x204] ss:$8 sps:$4 sm:$0xff]  }
  0x4e   : > { %883 = vmatprep.subr.bf16.mxu1 %v2137_v7  ;;  %v2236_v7 = vld [vmem:[%s2882_s4 + $0x1f0] ss:$8 sps:$4 sm:$0xff]  }
  0x50   : > { %707 = vmatpush1.bf16.msra.mxu0 %v2098_v50  ;;  %v2203_v50 = vld [vmem:[%s2882_s4 + $0xb0] ss:$8 sps:$4 sm:$0xff]  }
  0x51   : > { %708 = vmatprep.subr.bf16.mxu0 %v2103_v51  ;;  %884 = vmatpush1.bf16.msra.mxu1 %v2139_v10  ;;  %v2208_v51 = vld [vmem:[%s2882_s4 + $0x1a4] ss:$8 sps:$4 sm:$0xff]  }
  0x52   : > { %1376 = vmatprep.subr.bf16.mxu1 %v2142_v11 }
  0x54   : > { %709 = vmatpush1.bf16.msra.mxu0 %v2101_v52  ;;  %902 = vmatmul.mubr.bf16.vlgmr.msra.gmra.mrb[0].mxu1 %v2406_v19  ;;  %v2160_v19 = vld [vmem:[%s2882_s4 + $0x124] ss:$8 sps:$4 sm:$0xff]   ;;  %v2206_v52 = vld [vmem:[%s2882_s4 + $0x1a0] ss:$8 sps:$4 sm:$0xff]  }
  0x55   : > { %710 = vmatprep.subr.bf16.mxu0 %v2106_v53  ;;  %1377 = vmatpush1.bf16.msra.mxu1 %v2140_v12  ;;  %v2211_v53 = vld [vmem:[%s2882_s4 + $0xc4] ss:$8 sps:$4 sm:$0xff]  }
  0x56   : > { %1378 = vmatprep.subr.bf16.mxu1 %v2145_v13 }
  0x58   : > { %711 = vmatpush1.bf16.msra.mxu0 %v2104_v54  ;;  %v2209_v54 = vld [vmem:[%s2882_s4 + $0xc0] ss:$8 sps:$4 sm:$0xff]  }
  0x59   : > { %712 = vmatprep.subr.bf16.mxu0 %v2109_v55  ;;  %1379 = vmatpush1.bf16.msra.mxu1 %v2143_v14  ;;  %v2214_v55 = vld [vmem:[%s2882_s4 + $0x1b4] ss:$8 sps:$4 sm:$0xff]  }
  0x5a   : > { %1380 = vmatprep.subr.bf16.mxu1 %v2151_v15 }
  0x5c   : > { %713 = vmatpush1.bf16.msra.mxu0 %v2107_v56  ;;  %v2293_v56 = vmov 0.0  }
  0x5d   : > { %714 = vmatprep.subr.bf16.mxu0 %v2112_v57  ;;  %1381 = vmatpush1.bf16.msra.mxu1 %v2149_v16  ;;  %910 = vst [vmem:[#allocation2] sm:$0xff] %v2293_v56  ;;  %912 = vst [vmem:[#allocation2 + $0x10] sm:$0x3] %v2293_v56  ;;  %v2212_v57 = vld [vmem:[%s2882_s4 + $0x1b0] ss:$8 sps:$4 sm:$0xff]  }
  0x5e   : > { %1382 = vmatprep.subr.bf16.mxu1 %v2157_v17  ;;  %911 = vst [vmem:[#allocation2 + $0x8] sm:$0xff] %v2293_v56  ;;  %913 = vst [vmem:[#allocation2 + $0x18] sm:$0x3] %v2293_v56  ;;  %v2239_v56 = vld [vmem:[%s2882_s4 + $0x210] ss:$8 sps:$4 sm:$0xff]  }
  0x60   : > { %715 = vmatpush1.bf16.msra.mxu0 %v2110_v58  ;;  %v2217_v58 = vld [vmem:[%s2882_s4 + $0xd4] ss:$8 sps:$4 sm:$0xff]  }
  0x61   : > { %716 = vmatprep.subr.bf16.mxu0 %v2115_v59  ;;  %1383 = vmatpush1.bf16.msra.mxu1 %v2155_v18  ;;  %v2215_v59 = vld [vmem:[%s2882_s4 + $0xd0] ss:$8 sps:$4 sm:$0xff]  }
  0x62   : > { %1384 = vmatprep.subr.bf16.mxu1 %v2163_v21 }
  0x64   : > { %717 = vmatpush1.bf16.msra.mxu0 %v2113_v60  ;;  %v2220_v60 = vld [vmem:[%s2882_s4 + $0x1c4] ss:$8 sps:$4 sm:$0xff]  }
  0x65   : > { %1175 = vmatprep.subr.bf16.mxu0 %v2148_v5  ;;  %1385 = vmatpush1.bf16.msra.mxu1 %v2161_v22  ;;  %v2230_v5 = vld [vmem:[%s2882_s4 + $0x1e0] ss:$8 sps:$4 sm:$0xff]  }
  0x66   : > { %1386 = vmatprep.subr.bf16.mxu1 %v2169_v25  ;;  %v745_v22 = vld [vmem:[%s2881_s3] sm:$0x3] }
  0x67   : > { %735 = vmatmul.mubr.bf16.vlgmr.msra.gmra.mrb[8].mxu0 %v604_v62  ;;  %v2221_v62 = vld [vmem:[%s2882_s4 + $0xe0] ss:$8 sps:$4 sm:$0xff]  }
  0x68   : > { %1176 = vmatpush1.bf16.msra.mxu0 %v2146_v4  ;;  %v2232_v4 = vld [vmem:[%s2882_s4 + $0x1e4] ss:$8 sps:$4 sm:$0xff]  }
  0x69   : > { %1177 = vmatprep.subr.bf16.mxu0 %v2154_v8  ;;  %1387 = vmatpush1.bf16.msra.mxu1 %v2167_v26  ;;  %v2238_v8 = vld [vmem:[%s2882_s4 + $0x1f4] ss:$8 sps:$4 sm:$0xff]  }
  0x6a   : > { %1388 = vmatprep.subr.bf16.mxu1 %v2175_v28 }
  0x6c   : > { %1178 = vmatpush1.bf16.msra.mxu0 %v2152_v9 }
  0x6d   : > { %1179 = vmatprep.subr.bf16.mxu0 %v2160_v19  ;;  %1389 = vmatpush1.bf16.msra.mxu1 %v2173_v30  ;;  %v747_v19 = vlaneseq }
  0x6e   : > { %1390 = vmatprep.subr.bf16.mxu1 %v2181_v32 }
  0x70   : > { %1180 = vmatpush1.bf16.msra.mxu0 %v2158_v20  ;;  %v748_v20 = vshrl.u32 %v747_v19, 7  ;;  %v2268_v19 = vld [vmem:[%s2882_s4 + $0x2a4] ss:$8 sps:$4 sm:$0xff]  }
  0x71   : > { %1181 = vmatprep.subr.bf16.mxu0 %v2166_v23  ;;  %1391 = vmatpush1.bf16.msra.mxu1 %v2179_v34 }
  0x72   : > { %1392 = vmatprep.subr.bf16.mxu1 %v2187_v36  ;;  %v2758_v21 = vsub.s32 0, %v748_v20  ;;  %v2763_v23 = vsub.s32 1, %v748_v20  ;;  %v2266_v20 = vld [vmem:[%s2882_s4 + $0x2a0] ss:$8 sps:$4 sm:$0xff]  }
  0x74   : > { %1182 = vmatpush1.bf16.msra.mxu0 %v2164_v24  ;;  %v750_v24 = vrot.slane %v745_v22, %v2758_v21  ;;  %v754_v26 = vrot.slane %v745_v22, %v2763_v23  ;;  %v2271_v22 = vld [vmem:[%s2882_s4 + $0x2b4] ss:$8 sps:$4 sm:$0xff]  }
  0x75   : > { %1183 = vmatprep.subr.bf16.mxu0 %v2172_v27  ;;  %1393 = vmatpush1.bf16.msra.mxu1 %v2185_v38 }
  0x76   : > { %1394 = vmatprep.subr.bf16.mxu1 %v2193_v40 }
  0x78   : > { %1184 = vmatpush1.bf16.msra.mxu0 %v2170_v29 }
  0x79   : > { %1185 = vmatprep.subr.bf16.mxu0 %v2178_v31  ;;  %1395 = vmatpush1.bf16.msra.mxu1 %v2191_v42 }
  0x7a   : > { %1396 = vmatprep.subr.bf16.mxu1 %v2199_v44 }
  0x7c   : > { %1186 = vmatpush1.bf16.msra.mxu0 %v2176_v33 }
  0x7d   : > { %1187 = vmatprep.subr.bf16.mxu0 %v2184_v35  ;;  %1397 = vmatpush1.bf16.msra.mxu1 %v2197_v46  ;;  %v2233_v46 = vld [vmem:[%s2882_s4 + $0x200] ss:$8 sps:$4 sm:$0xff]  }
  0x7e   : > { %1398 = vmatprep.subr.bf16.mxu1 %v2205_v49 }
  0x80   : > { %1188 = vmatpush1.bf16.msra.mxu0 %v2182_v37 }
  0x81   : > { %1189 = vmatprep.subr.bf16.mxu0 %v2190_v39  ;;  %1399 = vmatpush1.bf16.msra.mxu1 %v2203_v50 }
  0x82   : > { %1400 = vmatprep.subr.bf16.mxu1 %v2211_v53 }
  0x84   : > { %1190 = vmatpush1.bf16.msra.mxu0 %v2188_v41 }
  0x85   : > { %1191 = vmatprep.subr.bf16.mxu0 %v2196_v43  ;;  %1401 = vmatpush1.bf16.msra.mxu1 %v2209_v54 }
  0x86   : > { %1402 = vmatprep.subr.bf16.mxu1 %v2217_v58 }
  0x88   : > { %1192 = vmatpush1.bf16.msra.mxu0 %v2194_v45 }
  0x89   : > { %1193 = vmatprep.subr.bf16.mxu0 %v2202_v47  ;;  %1403 = vmatpush1.bf16.msra.mxu1 %v2215_v59 }
  0x8a   : > { %1404 = vmatprep.subr.bf16.mxu1 %v2223_v63 }
  0x8c   : > { %1194 = vmatpush1.bf16.msra.mxu0 %v2200_v48 }
  0x8d   : > { %1195 = vmatprep.subr.bf16.mxu0 %v2208_v51  ;;  %1405 = vmatpush1.bf16.msra.mxu1 %v2221_v62  ;;  %v2241_v51 = vld [vmem:[%s2882_s4 + $0x214] ss:$8 sps:$4 sm:$0xff]  }
  0x8e   : > { %1406 = vmatprep.subr.bf16.mxu1 %v2229_v2  ;;  %v2245_v2 = vld [vmem:[%s2882_s4 + $0x230] ss:$8 sps:$4 sm:$0xff]  }
  0x90   : > { %1196 = vmatpush1.bf16.msra.mxu0 %v2206_v52 }
  0x91   : > { %1197 = vmatprep.subr.bf16.mxu0 %v2214_v55  ;;  %1407 = vmatpush1.bf16.msra.mxu1 %v2227_v3  ;;  %v2250_v3 = vld [vmem:[%s2882_s4 + $0x244] ss:$8 sps:$4 sm:$0xff]  }
  0x92   : > { %1622 = vmatprep.subr.bf16.mxu1 %v2235_v6 }
  0x94   : > { %1198 = vmatpush1.bf16.msra.mxu0 %v2212_v57 }
  0x95   : > { %1199 = vmatprep.subr.bf16.mxu0 %v2220_v60  ;;  %v2244_v60 = vld [vmem:[%s2882_s4 + $0x224] ss:$8 sps:$4 sm:$0xff]  }
  0x98   : > { %1200 = vmatpush1.bf16.msra.mxu0 %v2218_v61 }
  0x99   : > { %1201 = vmatprep.subr.bf16.mxu0 %v2226_v0  ;;  %v2242_v0 = vld [vmem:[%s2882_s4 + $0x220] ss:$8 sps:$4 sm:$0xff]  }
  0x9c   : > { %1202 = vmatpush1.bf16.msra.mxu0 %v2224_v1  ;;  %v2247_v1 = vld [vmem:[%s2882_s4 + $0x234] ss:$8 sps:$4 sm:$0xff]  }
  0x9d   : > { %1203 = vmatprep.subr.bf16.mxu0 %v2232_v4  ;;  %v2248_v4 = vld [vmem:[%s2882_s4 + $0x240] ss:$8 sps:$4 sm:$0xff]  }
  0xa0   : > { %1204 = vmatpush1.bf16.msra.mxu0 %v2230_v5  ;;  %v2253_v5 = vld [vmem:[%s2882_s4 + $0x254] ss:$8 sps:$4 sm:$0xff]  }
  0xa1   : > { %1205 = vmatprep.subr.bf16.mxu0 %v2238_v8 }
  0xa4   : > { %1206 = vmatpush1.bf16.msra.mxu0 %v2236_v7  ;;  %v2251_v7 = vld [vmem:[%s2882_s4 + $0x250] ss:$8 sps:$4 sm:$0xff]  }
  0xfa   : > { %v475_v9 = vpop.f32.mrb[0].mxu0 }
  0xfb   : > { %v477_v10 = vpop.f32.mrb[1].mxu0 }
  0xfc   : > { %v479_v11 = vpop.f32.mrb[2].mxu0 }
  0xfd   : > { %v480_v12 = vpop.f32.mrb[3].mxu0 }
  0xfe   : > { %v2254_v12 = vld [vmem:[%s2882_s4 + $0x260] ss:$8 sps:$4 sm:$0xff]  }
 0x11a   : > { %v596_v13 = vpop.f32.mrb[4].mxu0 }
 0x11b   : > { %v597_v14 = vadd.f32 %v596_v13, %v475_v9  ;;  %v598_v15 = vpop.f32.mrb[5].mxu0  ;;  %v2256_v9 = vld [vmem:[%s2882_s4 + $0x264] ss:$8 sps:$4 sm:$0xff]   ;;  %v2259_v13 = vld [vmem:[%s2882_s4 + $0x274] ss:$8 sps:$4 sm:$0xff]  }
 0x11c   : > { %v599_v16 = vadd.f32 %v598_v15, %v477_v10  ;;  %v600_v17 = vpop.f32.mrb[6].mxu0  ;;  %v2262_v15 = vld [vmem:[%s2882_s4 + $0x284] ss:$8 sps:$4 sm:$0xff]  }
 0x11d   : > { %v601_v18 = vpop.f32.mrb[7].mxu0  ;;  %v2265_v17 = vld [vmem:[%s2882_s4 + $0x294] ss:$8 sps:$4 sm:$0xff]  }
 0x11e   : > { %v2263_v18 = vld [vmem:[%s2882_s4 + $0x290] ss:$8 sps:$4 sm:$0xff]  }
 0x127   : > { %v903_v6 = vpop.f32.mrb[0].mxu1 }
 0x128   : > { %v905_v8 = vpop.f32.mrb[1].mxu1 }
 0x129   : > { %v907_v10 = vpop.f32.mrb[2].mxu1 }
 0x12a   : > { %v908_v11 = vpop.f32.mrb[3].mxu1 }
 0x13a   : > { %v736_v25 = vpop.f32.mrb[8].mxu0 }
 0x13b   : > { %v743_v27 = vadd.f32 %v736_v25, %v597_v14  ;;  %v738_v28 = vpop.f32.mrb[9].mxu0  ;;  %v2257_v14 = vld [vmem:[%s2882_s4 + $0x270] ss:$8 sps:$4 sm:$0xff]   ;;  %v2274_v25 = vld [vmem:[%s2882_s4 + $0x2c4] ss:$8 sps:$4 sm:$0xff]  }
 0x13c   : > { %v744_v29 = vadd.f32 %v738_v28, %v599_v16  ;;  %v740_v30 = vpop.f32.mrb[10].mxu0  ;;  %v2260_v16 = vld [vmem:[%s2882_s4 + $0x280] ss:$8 sps:$4 sm:$0xff]   ;;  %v2275_v28 = vld [vmem:[%s2882_s4 + $0x2d0] ss:$8 sps:$4 sm:$0xff]  }
 0x13d   : > { %v757_v31 = vadd.f32 %v750_v24, %v743_v27  ;;  %v741_v32 = vpop.f32.mrb[11].mxu0  ;;  %v2269_v24 = vld [vmem:[%s2882_s4 + $0x2b0] ss:$8 sps:$4 sm:$0xff]   ;;  %v2277_v27 = vld [vmem:[%s2882_s4 + $0x2d4] ss:$8 sps:$4 sm:$0xff]  }
 0x13e   : > { %v758_v33 = vadd.f32 %v754_v26, %v744_v29  ;;  %v2272_v26 = vld [vmem:[%s2882_s4 + $0x2c0] ss:$8 sps:$4 sm:$0xff]   ;;  %v2280_v29 = vld [vmem:[%s2882_s4 + $0x2e4] ss:$8 sps:$4 sm:$0xff]  }
 0x13f   : > { %v759_v34 = vmax.f32 %v757_v31, 0.0  ;;  %v2278_v30 = vld [vmem:[%s2882_s4 + $0x2e0] ss:$8 sps:$4 sm:$0xff]   ;;  %v2283_v31 = vld [vmem:[%s2882_s4 + $0x2f4] ss:$8 sps:$4 sm:$0xff]  }
 0x140   : > { %v760_v35 = vmax.f32 %v758_v33, 0.0 }
 0x141   : > { %v916_v36 = vrot.slane %v759_v34, 7  ;;  %v2281_v34 = vld [vmem:[%s2882_s4 + $0x2f0] ss:$8 sps:$4 sm:$0xff]  }
 0x142   : > { %v917_v37 = vrot.slane %v760_v35, 7 }
 0x143   : > { %920 = vst [vmem:[#allocation2] sm:$0xfe] %v916_v36  ;;  %922 = vst [vmem:[#allocation2 + $0x10] sm:$0x1] %v916_v36 }
 0x144   : > { %921 = vst [vmem:[#allocation2 + $0x8] sm:$0xfe] %v917_v37  ;;  %923 = vst [vmem:[#allocation2 + $0x18] sm:$0x1] %v917_v37  ;;  %v777_v37 = vld [vmem:[%s2885_s7] sm:$0x3] }
 0x14a   : > { %v924_v38 = vld [vmem:[#allocation2] sm:$0xff]  ;;  %v962_v40 = vld [vmem:[#allocation2 + $0x10] sm:$0x1] }
 0x14b   : > { %v960_v39 = vld [vmem:[#allocation2] sm:$0xfe]  ;;  %v925_v41 = vld [vmem:[#allocation2 + $0x8] sm:$0xff]  ;;  %v1420_v43 = vld [vmem:[#allocation2 + $0x18] sm:$0x3]  ;;  %v926_v50 = vpack.c.bf16 %v924_v38, %v924_v38  ;;  %v782_v38 = vrot.slane %v777_v37, %v2758_v21 }
 0x14c   : > { %v1418_v42 = vld [vmem:[#allocation2 + $0x8] sm:$0xfc]  ;;  %v964_v44 = vpack.c.bf16 %v962_v40, %v960_v39  ;;  %v927_v45 = vpack.c.bf16 %v925_v41, %v925_v41  ;;  %v963_v49 = vld [vmem:[#allocation2 + $0x18] sm:$0x1]  ;;  %v1417_v32 = vld [vmem:[#allocation2] sm:$0xfc]  ;;  %v786_v39 = vrot.slane %v777_v37, %v2763_v23 }
 0x14d   : > { %v1422_v47 = vpack.c.bf16 %v1420_v43, %v1418_v42  ;;  %v961_v48 = vld [vmem:[#allocation2 + $0x8] sm:$0xfe]  ;;  %v1419_v33 = vld [vmem:[#allocation2 + $0x10] sm:$0x3]  ;;  %v904_v40 = vadd.f32 %v903_v6, %v782_v38 }
 0x14e   : > { %v965_v52 = vpack.c.bf16 %v963_v49, %v961_v48  ;;  %v1002_v53 = vshll.u32 %v964_v44, 16  ;;  %1408 = vmatprep.mubr.bf16.mxu1 %v927_v45  ;;  %v1000_v61 = vshrl.u32 %v964_v44, 16  ;;  %v1421_v35 = vpack.c.bf16 %v1419_v33, %v1417_v32  ;;  %v1665_v48 = vld [vmem:[%s2883_s5] sm:$0x3] }
 0x14f   : > { %v1459_v54 = vrot.slane %v1422_v47, 1  ;;  %1409 = vmatmul.mubr.bf16.vlgmr.msra.gmra.mrb[4].mxu1 %v926_v50  ;;  %v906_v41 = vadd.f32 %v905_v8, %v786_v39  ;;  %v1670_v49 = vrot.slane %v1665_v48, %v2758_v21 }
 0x150   : > { %v1009_v55 = vshll.u32 %v965_v52, 16  ;;  %1623 = vmatpush1.bf16.msra.mxu1 %v2233_v46  ;;  %v1004_v57 = vrot.slane %v1002_v53, 1  ;;  %v1007_v58 = vshrl.u32 %v965_v52, 16  ;;  %v1458_v36 = vrot.slane %v1421_v35, 1 }
 0x151   : > { %1654 = vmatprep.mubr.bf16.mxu1 %v1459_v54  ;;  %1624 = vmatprep.subr.bf16.mxu1 %v2241_v51  ;;  %v1674_v51 = vrot.slane %v1665_v48, %v2763_v23 }
 0x152   : > { %v1011_v59 = vrot.slane %v1009_v55, 1  ;;  %v1005_v63 = vor.u32 %v1004_v57, %v1000_v61 }
 0x154   : > { %v1012_v62 = vor.u32 %v1011_v59, %v1007_v58  ;;  %1625 = vmatpush1.bf16.msra.mxu1 %v2239_v56 }
 0x155   : > { %1626 = vmatprep.subr.bf16.mxu1 %v2244_v60 }
 0x156   : > { %1207 = vmatprep.mubr.bf16.mxu0 %v1012_v62 }
 0x157   : > { %1208 = vmatmul.mubr.bf16.vlgmr.msra.gmra.mrb[12].mxu0 %v1005_v63 }
 0x158   : > { %1627 = vmatpush1.bf16.msra.mxu1 %v2242_v0 }
 0x159   : > { %1628 = vmatprep.subr.bf16.mxu1 %v2247_v1 }
 0x15c   : > { %1629 = vmatpush1.bf16.msra.mxu1 %v2245_v2 }
 0x15d   : > { %1630 = vmatprep.subr.bf16.mxu1 %v2250_v3 }
 0x160   : > { %1631 = vmatpush1.bf16.msra.mxu1 %v2248_v4 }
 0x161   : > { %1632 = vmatprep.subr.bf16.mxu1 %v2253_v5 }
 0x164   : > { %1633 = vmatpush1.bf16.msra.mxu1 %v2251_v7 }
 0x165   : > { %1634 = vmatprep.subr.bf16.mxu1 %v2256_v9 }
 0x168   : > { %1635 = vmatpush1.bf16.msra.mxu1 %v2254_v12 }
 0x169   : > { %1636 = vmatprep.subr.bf16.mxu1 %v2259_v13 }
 0x16c   : > { %1637 = vmatpush1.bf16.msra.mxu1 %v2257_v14 }
 0x16d   : > { %1638 = vmatprep.subr.bf16.mxu1 %v2262_v15 }
 0x170   : > { %1639 = vmatpush1.bf16.msra.mxu1 %v2260_v16 }
 0x171   : > { %1640 = vmatprep.subr.bf16.mxu1 %v2265_v17 }
 0x174   : > { %1641 = vmatpush1.bf16.msra.mxu1 %v2263_v18 }
 0x175   : > { %1642 = vmatprep.subr.bf16.mxu1 %v2268_v19 }
 0x178   : > { %1643 = vmatpush1.bf16.msra.mxu1 %v2266_v20 }
 0x179   : > { %1644 = vmatprep.subr.bf16.mxu1 %v2271_v22 }
 0x17c   : > { %1645 = vmatpush1.bf16.msra.mxu1 %v2269_v24 }
 0x17d   : > { %1646 = vmatprep.subr.bf16.mxu1 %v2274_v25 }
 0x180   : > { %1647 = vmatpush1.bf16.msra.mxu1 %v2272_v26 }
 0x181   : > { %1648 = vmatprep.subr.bf16.mxu1 %v2277_v27 }
 0x184   : > { %1649 = vmatpush1.bf16.msra.mxu1 %v2275_v28 }
 0x185   : > { %1650 = vmatprep.subr.bf16.mxu1 %v2280_v29 }
 0x188   : > { %1651 = vmatpush1.bf16.msra.mxu1 %v2278_v30 }
 0x189   : > { %1652 = vmatprep.subr.bf16.mxu1 %v2283_v31 }
 0x18c   : > { %1653 = vmatpush1.bf16.msra.mxu1 %v2281_v34 }
 0x18f   : > { %1655 = vmatmul.mubr.bf16.vlgmr.msra.gmra.mrb[4].mxu1 %v1458_v36 }
 0x22a   : > { %v1209_v42 = vpop.f32.mrb[12].mxu0 }
 0x22b   : > { %v2023_v43 = vadd.f32 %v1209_v42, %v904_v40  ;;  %v1211_v44 = vpop.f32.mrb[13].mxu0 }
 0x22c   : > { %v2027_v45 = vadd.f32 %v1211_v44, %v906_v41  ;;  %v1213_v46 = vpop.f32.mrb[14].mxu0 }
 0x22d   : > { %v1214_v47 = vpop.f32.mrb[15].mxu0 }
 0x262   : > { %v1656_v50 = vpop.f32.mrb[4].mxu1 }
 0x263   : > { %v2024_v52 = vadd.f32 %v2023_v43, %v1656_v50  ;;  %v1658_v53 = vpop.f32.mrb[5].mxu1 }
 0x264   : > { %v2028_v54 = vadd.f32 %v2027_v45, %v1658_v53  ;;  %v1660_v55 = vpop.f32.mrb[6].mxu1 }
 0x265   : > { %v2025_v56 = vadd.f32 %v2024_v52, %v1670_v49  ;;  %v1661_v57 = vpop.f32.mrb[7].mxu1 }
 0x266   : > { %v2029_v58 = vadd.f32 %v2028_v54, %v1674_v51 }
 0x267   : > { %v1681_v59 = vmax.f32 %v2025_v56, 0.0 }
 0x268   : > { %v1682_v60 = vmax.f32 %v2029_v58, 0.0 }
 0x269   : > { %1683 = vst [vmem:[%s322_s12] sm:$0xff] %v1681_v59 }
 0x26a   : > { %1684 = vst [vmem:[%s322_s12 + $0x8] sm:$0xff] %v1682_v60 }
 0x26b PF: > { %s18_s27 = sadd.s32 1, %s2290_s27  }
 0x26c   : > { %p15_p4 = scmp.ge.s32.totalorder %s18_s27, 4  }
 0x26e   :  { %17 = sbr.rel (!%p15_p4) target bundleno = 1 (0x1), region = 89 }

// kernel: _lambda_.26
= control target key start
LH: loop header
LB: loop body
LE: loop exit
PB: predicated region body
PF: predicated region fallthrough
CT: control target
= control target key end

     0   :  { %s2498_s18 = smov 0   ;;  %s3133_s0 = inlined_call_operand.vmem [shape: f32[2,10,256], index: 0, kind: input, shape index: {}]   ;;  %s3134_s1 = inlined_call_operand.vmem [shape: bf16[3,256,256], index: 1, kind: input, shape index: {}]   ;;  %s3135_s2 = inlined_call_operand.vmem [shape: f32[1,256], index: 2, kind: input, shape index: {}]   ;;  %s3136_s3 = inlined_call_operand.vmem [shape: bf16[3,256,256], index: 3, kind: input, shape index: {}]   ;;  %s3137_s4 = inlined_call_operand.vmem [shape: f32[1,256], index: 4, kind: input, shape index: {}]   ;;  %s3138_s5 = inlined_call_operand.vmem [shape: f32[2,8,256], index: 5, kind: output, shape index: {}]  }
   0x1 LB: > { %s1829_s19 = sadd.s32 4294967295, %s2465_s18   ;;  %p1833_p0 = scmp.ge.s32.totalorder %s2465_s18, 1  ;;  %s2465_s18 = sphi %s2498_s18, %s15_s18  }
   0x2   : > { %p187_p1 = scmp.lt.s32.totalorder %s2465_s18, 3 }
   0x4   : > { %p188_p2 = pnand %p1833_p0, %p187_p1 }
   0x5   : > { %v2171_v0 = vld [vmem:[%s3134_s1 + $0x104] ss:$8 sps:$4 sm:$0xff] (!%p188_p2)   ;;  %v2175_v2 = vld [vmem:[%s3134_s1 + $0x100] ss:$8 sps:$4 sm:$0xff] (!%p188_p2)   ;;  %v2177_v4 = vld [vmem:[%s3134_s1 + $0x114] ss:$8 sps:$4 sm:$0xff] (!%p188_p2)  }
   0x6   : > { %191 = sbr.rel (%p188_p2) target bundleno = 659 (0x293), region = 40  ;;  %v2173_v1 = vld [vmem:[%s3134_s1 + $0x4] ss:$8 sps:$4 sm:$0xff] (!%p188_p2)   ;;  %476 = vmatprep.subr.bf16.mxu0 (!%p188_p2), %v2171_v0  ;;  %v2176_v3 = vld [vmem:[%s3134_s1] ss:$8 sps:$4 sm:$0xff] (!%p188_p2)   ;;  %p215_p3 = scmp.lt.s32.totalorder (!%p188_p2), %s1829_s19, 1 }
   0x7   : > { %677 = vmatprep.subr.bf16.mxu1 (!%p188_p2), %v2173_v1  ;;  %477 = vmatpush1.bf16.msra.mxu0 (!%p188_p2), %v2175_v2  ;;  %v2179_v5 = vld [vmem:[%s3134_s1 + $0x14] ss:$8 sps:$4 sm:$0xff] (!%p188_p2)   ;;  %v2181_v6 = vld [vmem:[%s3134_s1 + $0x110] ss:$8 sps:$4 sm:$0xff] (!%p188_p2)   ;;  %v2183_v8 = vld [vmem:[%s3134_s1 + $0x124] ss:$8 sps:$4 sm:$0xff] (!%p188_p2)  }
   0x8   : > { %678 = vmatpush1.bf16.msra.mxu1 (!%p188_p2), %v2176_v3  ;;  %478 = vmatprep.subr.bf16.mxu0 (!%p188_p2), %v2177_v4  ;;  %v2182_v7 = vld [vmem:[%s3134_s1 + $0x10] ss:$8 sps:$4 sm:$0xff] (!%p188_p2)   ;;  %v2185_v9 = vld [vmem:[%s3134_s1 + $0x24] ss:$8 sps:$4 sm:$0xff] (!%p188_p2)   ;;  %v2187_v10 = vld [vmem:[%s3134_s1 + $0x120] ss:$8 sps:$4 sm:$0xff] (!%p188_p2)  }
   0x9   : > { %679 = vmatprep.subr.bf16.mxu1 (!%p188_p2), %v2179_v5  ;;  %v2188_v11 = vld [vmem:[%s3134_s1 + $0x20] ss:$8 sps:$4 sm:$0xff] (!%p188_p2)   ;;  %v2189_v12 = vld [vmem:[%s3134_s1 + $0x134] ss:$8 sps:$4 sm:$0xff] (!%p188_p2)   ;;  %v2193_v14 = vld [vmem:[%s3134_s1 + $0x130] ss:$8 sps:$4 sm:$0xff] (!%p188_p2)  }
   0xa   : > { %v2191_v13 = vld [vmem:[%s3134_s1 + $0x34] ss:$8 sps:$4 sm:$0xff] (!%p188_p2)   ;;  %v2194_v15 = vld [vmem:[%s3134_s1 + $0x30] ss:$8 sps:$4 sm:$0xff] (!%p188_p2)   ;;  %v2195_v16 = vld [vmem:[%s3134_s1 + $0x144] ss:$8 sps:$4 sm:$0xff] (!%p188_p2)  }
   0xb   : > { %479 = vmatpush1.bf16.msra.mxu0 (!%p188_p2), %v2181_v6  ;;  %v2197_v17 = vld [vmem:[%s3134_s1 + $0x44] ss:$8 sps:$4 sm:$0xff] (!%p188_p2)   ;;  %v2199_v18 = vld [vmem:[%s3134_s1 + $0x140] ss:$8 sps:$4 sm:$0xff] (!%p188_p2)   ;;  %v2201_v20 = vld [vmem:[%s3134_s1 + $0x154] ss:$8 sps:$4 sm:$0xff] (!%p188_p2)  }
   0xc   : > { %680 = vmatpush1.bf16.msra.mxu1 (!%p188_p2), %v2182_v7  ;;  %480 = vmatprep.subr.bf16.mxu0 (!%p188_p2), %v2183_v8  ;;  %v2200_v19 = vld [vmem:[%s3134_s1 + $0x40] ss:$8 sps:$4 sm:$0xff] (!%p188_p2)   ;;  %v2203_v21 = vld [vmem:[%s3134_s1 + $0x54] ss:$8 sps:$4 sm:$0xff] (!%p188_p2)   ;;  %v2205_v22 = vld [vmem:[%s3134_s1 + $0x150] ss:$8 sps:$4 sm:$0xff] (!%p188_p2)  }
   0xd   : > { %681 = vmatprep.subr.bf16.mxu1 %v2185_v9  ;;  %v2206_v23 = vld [vmem:[%s3134_s1 + $0x50] ss:$8 sps:$4 sm:$0xff]   ;;  %v2207_v24 = vld [vmem:[%s3134_s1 + $0x164] ss:$8 sps:$4 sm:$0xff]   ;;  %v2211_v26 = vld [vmem:[%s3134_s1 + $0x160] ss:$8 sps:$4 sm:$0xff]  }
   0xe   : > { %v2209_v25 = vld [vmem:[%s3134_s1 + $0x64] ss:$8 sps:$4 sm:$0xff]   ;;  %v2212_v27 = vld [vmem:[%s3134_s1 + $0x60] ss:$8 sps:$4 sm:$0xff]   ;;  %v2213_v28 = vld [vmem:[%s3134_s1 + $0x174] ss:$8 sps:$4 sm:$0xff]  }
   0xf   : > { %481 = vmatpush1.bf16.msra.mxu0 %v2187_v10  ;;  %v2215_v29 = vld [vmem:[%s3134_s1 + $0x74] ss:$8 sps:$4 sm:$0xff]   ;;  %v2217_v30 = vld [vmem:[%s3134_s1 + $0x170] ss:$8 sps:$4 sm:$0xff]   ;;  %v2219_v32 = vld [vmem:[%s3134_s1 + $0x184] ss:$8 sps:$4 sm:$0xff]  }
  0x10   : > { %682 = vmatpush1.bf16.msra.mxu1 %v2188_v11  ;;  %482 = vmatprep.subr.bf16.mxu0 %v2189_v12  ;;  %v2218_v31 = vld [vmem:[%s3134_s1 + $0x70] ss:$8 sps:$4 sm:$0xff]   ;;  %v2221_v33 = vld [vmem:[%s3134_s1 + $0x84] ss:$8 sps:$4 sm:$0xff]   ;;  %v2223_v34 = vld [vmem:[%s3134_s1 + $0x180] ss:$8 sps:$4 sm:$0xff]  }
  0x11   : > { %683 = vmatprep.subr.bf16.mxu1 %v2191_v13  ;;  %v2224_v35 = vld [vmem:[%s3134_s1 + $0x80] ss:$8 sps:$4 sm:$0xff]   ;;  %v2225_v36 = vld [vmem:[%s3134_s1 + $0x194] ss:$8 sps:$4 sm:$0xff]   ;;  %s3140_s19 = smov (!%p215_p3, %s1829_s19), 1  ;;  %vm1759_vm0 = vcmask 1046528  }
  0x12   : > { %v2227_v37 = vld [vmem:[%s3134_s1 + $0x94] ss:$8 sps:$4 sm:$0xff]   ;;  %v2229_v38 = vld [vmem:[%s3134_s1 + $0x190] ss:$8 sps:$4 sm:$0xff]   ;;  %v2231_v40 = vld [vmem:[%s3134_s1 + $0x1a4] ss:$8 sps:$4 sm:$0xff]  }
  0x13   : > { %483 = vmatpush1.bf16.msra.mxu0 %v2193_v14  ;;  %v2230_v39 = vld [vmem:[%s3134_s1 + $0x90] ss:$8 sps:$4 sm:$0xff]   ;;  %s2160_s8 = sshll.u32 %s3140_s19, 5  ;;  %v2233_v41 = vld [vmem:[%s3134_s1 + $0xa4] ss:$8 sps:$4 sm:$0xff]   ;;  %s2161_s9 = sshll.u32 %s3140_s19, 4 }
  0x14   : > { %684 = vmatpush1.bf16.msra.mxu1 %v2194_v15  ;;  %484 = vmatprep.subr.bf16.mxu0 %v2195_v16  ;;  %v2235_v42 = vld [vmem:[%s3134_s1 + $0x1a0] ss:$8 sps:$4 sm:$0xff]   ;;  %s2648_s17 = scalar_lea.vmem %s3133_s0, %s2160_s8  ;;  %v2237_v44 = vld [vmem:[%s3134_s1 + $0x1b4] ss:$8 sps:$4 sm:$0xff]   ;;  %v2241_v49 = vld [vmem:[%s3134_s1 + $0x1b0] ss:$8 sps:$4 sm:$0xff]   ;;  %s224_s11 = scalar_lea.vmem %s3138_s5, %s2161_s9 }
  0x15   : > { %685 = vmatprep.subr.bf16.mxu1 %v2197_v17  ;;  %v2236_v43 = vld [vmem:[%s3134_s1 + $0xa0] ss:$8 sps:$4 sm:$0xff]   ;;  %v2239_v45 = vld [vmem:[%s3134_s1 + $0xb4] ss:$8 sps:$4 sm:$0xff]   ;;  %v264_v47 = vld [vmem:[%s2648_s17 + $0x18] sm:$0x1] }
  0x16   : > { %v262_v46 = vld [vmem:[%s2648_s17 + $0x8] sm:$0xfe]  ;;  %v2242_v50 = vld [vmem:[%s3134_s1 + $0xb0] ss:$8 sps:$4 sm:$0xff]   ;;  %v261_v60 = vld [vmem:[%s2648_s17] sm:$0xfe] }
  0x17   : > { %485 = vmatpush1.bf16.msra.mxu0 %v2199_v18  ;;  %v226_v48 = vld [vmem:[%s2648_s17 + $0x8] sm:$0xff]  ;;  %v266_v51 = vpack.c.bf16 %v264_v47, %v262_v46  ;;  %v263_v61 = vld [vmem:[%s2648_s17 + $0x10] sm:$0x1]  ;;  %v2249_v62 = vld [vmem:[%s3134_s1 + $0x1d4] ss:$8 sps:$4 sm:$0xff]  }
  0x18   : > { %686 = vmatpush1.bf16.msra.mxu1 %v2200_v19  ;;  %486 = vmatprep.subr.bf16.mxu0 %v2201_v20  ;;  %v228_v52 = vpack.c.bf16 %v226_v48, %v226_v48  ;;  %v2243_v53 = vld [vmem:[%s3134_s1 + $0x1c4] ss:$8 sps:$4 sm:$0xff]   ;;  %v2247_v55 = vld [vmem:[%s3134_s1 + $0x1c0] ss:$8 sps:$4 sm:$0xff]   ;;  %v2251_v63 = vld [vmem:[%s3134_s1 + $0xd4] ss:$8 sps:$4 sm:$0xff]   ;;  %v265_v1 = vpack.c.bf16 %v263_v61, %v261_v60 }
  0x19   : > { %687 = vmatprep.subr.bf16.mxu1 %v2203_v21  ;;  %v2245_v54 = vld [vmem:[%s3134_s1 + $0xc4] ss:$8 sps:$4 sm:$0xff]   ;;  %v308_v56 = vshrl.u32 %v266_v51, 16  ;;  %v310_v57 = vshll.u32 %v266_v51, 16  ;;  %v2248_v58 = vld [vmem:[%s3134_s1 + $0xc0] ss:$8 sps:$4 sm:$0xff]  }
  0x1a   : > { %709 = vmatprep.mubr.bf16.mxu1 %v228_v52  ;;  %v2253_v2 = vld [vmem:[%s3134_s1 + $0x1d0] ss:$8 sps:$4 sm:$0xff]   ;;  %v2255_v4 = vld [vmem:[%s3134_s1 + $0x1e4] ss:$8 sps:$4 sm:$0xff]   ;;  %v303_v6 = vshll.u32 %v265_v1, 16  ;;  %v301_v12 = vshrl.u32 %v265_v1, 16 }
  0x1b   : > { %487 = vmatpush1.bf16.msra.mxu0 %v2205_v22  ;;  %v312_v59 = vrot.slane %v310_v57, 1  ;;  %v2254_v3 = vld [vmem:[%s3134_s1 + $0xd0] ss:$8 sps:$4 sm:$0xff]   ;;  %v2257_v5 = vld [vmem:[%s3134_s1 + $0xe4] ss:$8 sps:$4 sm:$0xff]  }
  0x1c   : > { %688 = vmatpush1.bf16.msra.mxu1 %v2206_v23  ;;  %488 = vmatprep.subr.bf16.mxu0 %v2207_v24  ;;  %v2259_v7 = vld [vmem:[%s3134_s1 + $0x1e0] ss:$8 sps:$4 sm:$0xff]   ;;  %v2261_v9 = vld [vmem:[%s3134_s1 + $0x1f4] ss:$8 sps:$4 sm:$0xff]   ;;  %v2265_v11 = vld [vmem:[%s3134_s1 + $0x1f0] ss:$8 sps:$4 sm:$0xff]  }
  0x1d   : > { %689 = vmatprep.subr.bf16.mxu1 %v2209_v25  ;;  %v313_v0 = vor.u32 %v312_v59, %v308_v56  ;;  %v2260_v8 = vld [vmem:[%s3134_s1 + $0xe0] ss:$8 sps:$4 sm:$0xff]   ;;  %v2263_v10 = vld [vmem:[%s3134_s1 + $0xf4] ss:$8 sps:$4 sm:$0xff]   ;;  %v305_v13 = vrot.slane %v303_v6, 1 }
  0x1e   : > { %v2266_v14 = vld [vmem:[%s3134_s1 + $0xf0] ss:$8 sps:$4 sm:$0xff]   ;;  %v225_v15 = vld [vmem:[%s2648_s17] sm:$0xff]  ;;  %v2272_v20 = vld [vmem:[%s3134_s1 + $0x214] ss:$8 sps:$4 sm:$0xff]  }
  0x1f   : > { %489 = vmatpush1.bf16.msra.mxu0 %v2211_v26  ;;  %508 = vmatprep.mubr.bf16.mxu0 %v313_v0  ;;  %v2269_v16 = vld [vmem:[%s3134_s1 + $0x204] ss:$8 sps:$4 sm:$0xff]   ;;  %v306_v17 = vor.u32 %v305_v13, %v301_v12  ;;  %v227_v18 = vpack.c.bf16 %v225_v15, %v225_v15  ;;  %v2267_v19 = vld [vmem:[%s3134_s1 + $0x200] ss:$8 sps:$4 sm:$0xff]   ;;  %v2270_v21 = vld [vmem:[%s3134_s1 + $0x210] ss:$8 sps:$4 sm:$0xff]  }
  0x20   : > { %690 = vmatpush1.bf16.msra.mxu1 %v2212_v27  ;;  %490 = vmatprep.subr.bf16.mxu0 %v2213_v28  ;;  %v719_v22 = vld [vmem:[%s2648_s17 + $0x8] sm:$0xfc]  ;;  %v721_v23 = vld [vmem:[%s2648_s17 + $0x18] sm:$0x3]  ;;  %v2278_v28 = vld [vmem:[%s3134_s1 + $0x234] ss:$8 sps:$4 sm:$0xff]  }
  0x21   : > { %691 = vmatprep.subr.bf16.mxu1 %v2215_v29  ;;  %v2275_v24 = vld [vmem:[%s3134_s1 + $0x224] ss:$8 sps:$4 sm:$0xff]   ;;  %v723_v25 = vpack.c.bf16 %v721_v23, %v719_v22  ;;  %v2273_v27 = vld [vmem:[%s3134_s1 + $0x220] ss:$8 sps:$4 sm:$0xff]   ;;  %v2276_v29 = vld [vmem:[%s3134_s1 + $0x230] ss:$8 sps:$4 sm:$0xff]  }
  0x22   : > { %v2305_v46 = vld [vmem:[%s3134_s1 + $0x2c4] ss:$8 sps:$4 sm:$0xff]   ;;  %v2303_v47 = vld [vmem:[%s3134_s1 + $0x2c0] ss:$8 sps:$4 sm:$0xff]   ;;  %v2308_v48 = vld [vmem:[%s3134_s1 + $0x2d4] ss:$8 sps:$4 sm:$0xff]  }
  0x23   : > { %491 = vmatpush1.bf16.msra.mxu0 %v2217_v30  ;;  %v760_v26 = vrot.slane %v723_v25, 1  ;;  %v2281_v30 = vld [vmem:[%s3134_s1 + $0x244] ss:$8 sps:$4 sm:$0xff]   ;;  %v2309_v51 = vld [vmem:[%s3134_s1 + $0x2e0] ss:$8 sps:$4 sm:$0xff]  }
  0x24   : > { %692 = vmatpush1.bf16.msra.mxu1 %v2218_v31  ;;  %492 = vmatprep.subr.bf16.mxu0 %v2219_v32  ;;  %v2279_v31 = vld [vmem:[%s3134_s1 + $0x240] ss:$8 sps:$4 sm:$0xff]   ;;  %v2284_v32 = vld [vmem:[%s3134_s1 + $0x254] ss:$8 sps:$4 sm:$0xff]   ;;  %v2312_v56 = vld [vmem:[%s3134_s1 + $0x2f0] ss:$8 sps:$4 sm:$0xff]  }
  0x25   : > { %693 = vmatprep.subr.bf16.mxu1 %v2221_v33  ;;  %v2282_v33 = vld [vmem:[%s3134_s1 + $0x250] ss:$8 sps:$4 sm:$0xff]   ;;  %v718_v52 = vld [vmem:[%s2648_s17] sm:$0xfc]  ;;  %v2320_v60 = vld [vmem:[%s3136_s3 + $0x14] ss:$8 sps:$4 sm:$0xff]  }
  0x26   : > { %v2317_v59 = vld [vmem:[%s3136_s3 + $0x4] ss:$8 sps:$4 sm:$0xff]   ;;  %v2321_v61 = vld [vmem:[%s3136_s3 + $0x100] ss:$8 sps:$4 sm:$0xff]   ;;  %v2329_v0 = vld [vmem:[%s3136_s3 + $0x114] ss:$8 sps:$4 sm:$0xff]  }
  0x27   : > { %493 = vmatpush1.bf16.msra.mxu0 %v2223_v34  ;;  %v2287_v34 = vld [vmem:[%s3134_s1 + $0x264] ss:$8 sps:$4 sm:$0xff]   ;;  %v2333_v6 = vld [vmem:[%s3136_s3 + $0x120] ss:$8 sps:$4 sm:$0xff]   ;;  %v2344_v13 = vld [vmem:[%s3136_s3 + $0x54] ss:$8 sps:$4 sm:$0xff]  }
  0x28   : > { %694 = vmatpush1.bf16.msra.mxu1 %v2224_v35  ;;  %494 = vmatprep.subr.bf16.mxu0 %v2225_v36  ;;  %v2285_v35 = vld [vmem:[%s3134_s1 + $0x260] ss:$8 sps:$4 sm:$0xff]   ;;  %v2290_v36 = vld [vmem:[%s3134_s1 + $0x274] ss:$8 sps:$4 sm:$0xff]   ;;  %v2326_v1 = vld [vmem:[%s3136_s3 + $0x24] ss:$8 sps:$4 sm:$0xff]  }
  0x29   : > { %695 = vmatprep.subr.bf16.mxu1 %v2227_v37  ;;  %v2288_v37 = vld [vmem:[%s3134_s1 + $0x270] ss:$8 sps:$4 sm:$0xff]   ;;  %v2336_v12 = vld [vmem:[%s3136_s3 + $0x40] ss:$8 sps:$4 sm:$0xff]   ;;  %v2353_v15 = vld [vmem:[%s3136_s3 + $0x154] ss:$8 sps:$4 sm:$0xff]  }
  0x2a   : > { %v2357_v22 = vld [vmem:[%s3136_s3 + $0x160] ss:$8 sps:$4 sm:$0xff]   ;;  %v2365_v23 = vld [vmem:[%s3136_s3 + $0x174] ss:$8 sps:$4 sm:$0xff]   ;;  %v2362_v25 = vld [vmem:[%s3136_s3 + $0x84] ss:$8 sps:$4 sm:$0xff]  }
  0x2b   : > { %495 = vmatpush1.bf16.msra.mxu0 %v2229_v38  ;;  %v2293_v38 = vld [vmem:[%s3134_s1 + $0x284] ss:$8 sps:$4 sm:$0xff]  }
  0x2c   : > { %696 = vmatpush1.bf16.msra.mxu1 %v2230_v39  ;;  %496 = vmatprep.subr.bf16.mxu0 %v2231_v40  ;;  %v2291_v39 = vld [vmem:[%s3134_s1 + $0x280] ss:$8 sps:$4 sm:$0xff]   ;;  %v2296_v40 = vld [vmem:[%s3134_s1 + $0x294] ss:$8 sps:$4 sm:$0xff]  }
  0x2d   : > { %697 = vmatprep.subr.bf16.mxu1 %v2233_v41  ;;  %v2294_v41 = vld [vmem:[%s3134_s1 + $0x290] ss:$8 sps:$4 sm:$0xff]  }
  0x2f   : > { %497 = vmatpush1.bf16.msra.mxu0 %v2235_v42  ;;  %v2299_v42 = vld [vmem:[%s3134_s1 + $0x2a4] ss:$8 sps:$4 sm:$0xff]  }
  0x30   : > { %698 = vmatpush1.bf16.msra.mxu1 %v2236_v43  ;;  %498 = vmatprep.subr.bf16.mxu0 %v2237_v44  ;;  %v2297_v43 = vld [vmem:[%s3134_s1 + $0x2a0] ss:$8 sps:$4 sm:$0xff]   ;;  %v2302_v44 = vld [vmem:[%s3134_s1 + $0x2b4] ss:$8 sps:$4 sm:$0xff]  }
  0x31   : > { %699 = vmatprep.subr.bf16.mxu1 %v2239_v45  ;;  %v2300_v45 = vld [vmem:[%s3134_s1 + $0x2b0] ss:$8 sps:$4 sm:$0xff]  }
  0x33   : > { %499 = vmatpush1.bf16.msra.mxu0 %v2241_v49  ;;  %v2306_v49 = vld [vmem:[%s3134_s1 + $0x2d0] ss:$8 sps:$4 sm:$0xff]  }
  0x34   : > { %700 = vmatpush1.bf16.msra.mxu1 %v2242_v50  ;;  %500 = vmatprep.subr.bf16.mxu0 %v2243_v53  ;;  %v2311_v50 = vld [vmem:[%s3134_s1 + $0x2e4] ss:$8 sps:$4 sm:$0xff]   ;;  %v720_v53 = vld [vmem:[%s2648_s17 + $0x10] sm:$0x3] }
  0x35   : > { %701 = vmatprep.subr.bf16.mxu1 %v2245_v54  ;;  %v2314_v54 = vld [vmem:[%s3134_s1 + $0x2f4] ss:$8 sps:$4 sm:$0xff]  }
  0x37   : > { %501 = vmatpush1.bf16.msra.mxu0 %v2247_v55  ;;  %v722_v55 = vpack.c.bf16 %v720_v53, %v718_v52  ;;  %v2404_v52 = vld [vmem:[%s3136_s3 + $0xf4] ss:$8 sps:$4 sm:$0xff]   ;;  %v2399_v53 = vld [vmem:[%s3136_s3 + $0x1d0] ss:$8 sps:$4 sm:$0xff]  }
  0x38   : > { %702 = vmatpush1.bf16.msra.mxu1 %v2248_v58  ;;  %502 = vmatprep.subr.bf16.mxu0 %v2249_v62  ;;  %v2315_v58 = vld [vmem:[%s3136_s3] ss:$8 sps:$4 sm:$0xff]   ;;  %v2323_v62 = vld [vmem:[%s3136_s3 + $0x104] ss:$8 sps:$4 sm:$0xff]  }
  0x39   : > { %703 = vmatprep.subr.bf16.mxu1 %v2251_v63  ;;  %v759_v57 = vrot.slane %v722_v55, 1  ;;  %v2318_v63 = vld [vmem:[%s3136_s3 + $0x10] ss:$8 sps:$4 sm:$0xff]  }
  0x3a   : > { %v2402_v55 = vld [vmem:[%s3136_s3 + $0xf0] ss:$8 sps:$4 sm:$0xff]  }
  0x3b   : > { %503 = vmatpush1.bf16.msra.mxu0 %v2253_v2  ;;  %v2327_v2 = vld [vmem:[%s3136_s3 + $0x110] ss:$8 sps:$4 sm:$0xff]  }
  0x3c   : > { %704 = vmatpush1.bf16.msra.mxu1 %v2254_v3  ;;  %504 = vmatprep.subr.bf16.mxu0 %v2255_v4  ;;  %v2335_v3 = vld [vmem:[%s3136_s3 + $0x124] ss:$8 sps:$4 sm:$0xff]   ;;  %v2324_v4 = vld [vmem:[%s3136_s3 + $0x20] ss:$8 sps:$4 sm:$0xff]  }
  0x3d   : > { %705 = vmatprep.subr.bf16.mxu1 %v2257_v5  ;;  %v2332_v5 = vld [vmem:[%s3136_s3 + $0x34] ss:$8 sps:$4 sm:$0xff]  }
  0x3f   : > { %505 = vmatpush1.bf16.msra.mxu0 %v2259_v7  ;;  %v2341_v7 = vld [vmem:[%s3136_s3 + $0x134] ss:$8 sps:$4 sm:$0xff]  }
  0x40   : > { %706 = vmatpush1.bf16.msra.mxu1 %v2260_v8  ;;  %506 = vmatprep.subr.bf16.mxu0 %v2261_v9  ;;  %v2330_v8 = vld [vmem:[%s3136_s3 + $0x30] ss:$8 sps:$4 sm:$0xff]   ;;  %v2338_v9 = vld [vmem:[%s3136_s3 + $0x44] ss:$8 sps:$4 sm:$0xff]  }
  0x41   : > { %707 = vmatprep.subr.bf16.mxu1 %v2263_v10  ;;  %v2339_v10 = vld [vmem:[%s3136_s3 + $0x130] ss:$8 sps:$4 sm:$0xff]  }
  0x43   : > { %507 = vmatpush1.bf16.msra.mxu0 %v2265_v11  ;;  %v2347_v11 = vld [vmem:[%s3136_s3 + $0x144] ss:$8 sps:$4 sm:$0xff]  }
  0x44   : > { %708 = vmatpush1.bf16.msra.mxu1 %v2266_v14  ;;  %923 = vmatprep.subr.bf16.mxu0 %v2269_v16  ;;  %v2345_v14 = vld [vmem:[%s3136_s3 + $0x140] ss:$8 sps:$4 sm:$0xff]   ;;  %v2342_v16 = vld [vmem:[%s3136_s3 + $0x50] ss:$8 sps:$4 sm:$0xff]  }
  0x45   : > { %1247 = vmatprep.subr.bf16.mxu1 %v2323_v62 }
  0x46   : > { %509 = vmatmul.mubr.bf16.vlgmr.msra.gmra.mrb[0].mxu0 %v306_v17  ;;  %v2350_v17 = vld [vmem:[%s3136_s3 + $0x64] ss:$8 sps:$4 sm:$0xff]  }
  0x47   : > { %710 = vmatmul.mubr.bf16.vlgmr.msra.gmra.mrb[0].mxu1 %v227_v18  ;;  %924 = vmatpush1.bf16.msra.mxu0 %v2267_v19  ;;  %v2351_v18 = vld [vmem:[%s3136_s3 + $0x150] ss:$8 sps:$4 sm:$0xff]   ;;  %v2359_v19 = vld [vmem:[%s3136_s3 + $0x164] ss:$8 sps:$4 sm:$0xff]  }
  0x48   : > { %925 = vmatprep.subr.bf16.mxu0 %v2272_v20  ;;  %955 = vmatprep.mubr.bf16.mxu0 %v760_v26  ;;  %v2348_v20 = vld [vmem:[%s3136_s3 + $0x60] ss:$8 sps:$4 sm:$0xff]   ;;  %v2363_v26 = vld [vmem:[%s3136_s3 + $0x170] ss:$8 sps:$4 sm:$0xff]  }
  0x49   : > { %1248 = vmatpush1.bf16.msra.mxu1 %v2321_v61 }
  0x4a   : > { %1249 = vmatprep.subr.bf16.mxu1 %v2329_v0 }
  0x4b   : > { %926 = vmatpush1.bf16.msra.mxu0 %v2270_v21  ;;  %v2356_v21 = vld [vmem:[%s3136_s3 + $0x74] ss:$8 sps:$4 sm:$0xff]  }
  0x4c   : > { %927 = vmatprep.subr.bf16.mxu0 %v2275_v24  ;;  %v2354_v24 = vld [vmem:[%s3136_s3 + $0x70] ss:$8 sps:$4 sm:$0xff]  }
  0x4d   : > { %1250 = vmatpush1.bf16.msra.mxu1 %v2327_v2 }
  0x4e   : > { %1251 = vmatprep.subr.bf16.mxu1 %v2335_v3 }
  0x4f   : > { %928 = vmatpush1.bf16.msra.mxu0 %v2273_v27  ;;  %v2371_v27 = vld [vmem:[%s3136_s3 + $0x184] ss:$8 sps:$4 sm:$0xff]  }
  0x50   : > { %929 = vmatprep.subr.bf16.mxu0 %v2278_v28  ;;  %v2360_v28 = vld [vmem:[%s3136_s3 + $0x80] ss:$8 sps:$4 sm:$0xff]  }
  0x51   : > { %1252 = vmatpush1.bf16.msra.mxu1 %v2333_v6  ;;  %v968_v6 = vlaneseq }
  0x52   : > { %1253 = vmatprep.subr.bf16.mxu1 %v2341_v7 }
  0x53   : > { %930 = vmatpush1.bf16.msra.mxu0 %v2276_v29  ;;  %v2368_v29 = vld [vmem:[%s3136_s3 + $0x94] ss:$8 sps:$4 sm:$0xff]   ;;  %v3011_v7 = vshrl.u32 %v968_v6, 7  ;;  %v2449_v6 = vld [vmem:[%s3136_s3 + $0x2c4] ss:$8 sps:$4 sm:$0xff]  }
  0x54   : > { %931 = vmatprep.subr.bf16.mxu0 %v2281_v30  ;;  %v2369_v30 = vld [vmem:[%s3136_s3 + $0x180] ss:$8 sps:$4 sm:$0xff]  }
  0x55   : > { %1254 = vmatpush1.bf16.msra.mxu1 %v2339_v10  ;;  %v974_v10 = vsub.s32 1, %v3011_v7 }
  0x56   : > { %1255 = vmatprep.subr.bf16.mxu1 %v2347_v11 }
  0x57   : > { %932 = vmatpush1.bf16.msra.mxu0 %v2279_v31  ;;  %v2377_v31 = vld [vmem:[%s3136_s3 + $0x194] ss:$8 sps:$4 sm:$0xff]  }
  0x58   : > { %933 = vmatprep.subr.bf16.mxu0 %v2284_v32  ;;  %v2366_v32 = vld [vmem:[%s3136_s3 + $0x90] ss:$8 sps:$4 sm:$0xff]  }
  0x59   : > { %1256 = vmatpush1.bf16.msra.mxu1 %v2345_v14 }
  0x5a   : > { %1257 = vmatprep.subr.bf16.mxu1 %v2353_v15 }
  0x5b   : > { %934 = vmatpush1.bf16.msra.mxu0 %v2282_v33  ;;  %v2374_v33 = vld [vmem:[%s3136_s3 + $0xa4] ss:$8 sps:$4 sm:$0xff]  }
  0x5c   : > { %935 = vmatprep.subr.bf16.mxu0 %v2287_v34  ;;  %v2375_v34 = vld [vmem:[%s3136_s3 + $0x190] ss:$8 sps:$4 sm:$0xff]  }
  0x5d   : > { %1258 = vmatpush1.bf16.msra.mxu1 %v2351_v18 }
  0x5e   : > { %1259 = vmatprep.subr.bf16.mxu1 %v2359_v19 }
  0x5f   : > { %936 = vmatpush1.bf16.msra.mxu0 %v2285_v35  ;;  %v2372_v35 = vld [vmem:[%s3136_s3 + $0xa0] ss:$8 sps:$4 sm:$0xff]  }
  0x60   : > { %937 = vmatprep.subr.bf16.mxu0 %v2290_v36  ;;  %v2380_v36 = vld [vmem:[%s3136_s3 + $0xb4] ss:$8 sps:$4 sm:$0xff]  }
  0x61   : > { %1260 = vmatpush1.bf16.msra.mxu1 %v2357_v22 }
  0x62   : > { %1261 = vmatprep.subr.bf16.mxu1 %v2365_v23 }
  0x63   : > { %938 = vmatpush1.bf16.msra.mxu0 %v2288_v37  ;;  %v2378_v37 = vld [vmem:[%s3136_s3 + $0xb0] ss:$8 sps:$4 sm:$0xff]  }
  0x64   : > { %939 = vmatprep.subr.bf16.mxu0 %v2293_v38  ;;  %v2381_v38 = vld [vmem:[%s3136_s3 + $0x1a0] ss:$8 sps:$4 sm:$0xff]  }
  0x65   : > { %1262 = vmatpush1.bf16.msra.mxu1 %v2363_v26 }
  0x66   : > { %1263 = vmatprep.subr.bf16.mxu1 %v2371_v27 }
  0x67   : > { %940 = vmatpush1.bf16.msra.mxu0 %v2291_v39  ;;  %v2383_v39 = vld [vmem:[%s3136_s3 + $0x1a4] ss:$8 sps:$4 sm:$0xff]  }
  0x68   : > { %941 = vmatprep.subr.bf16.mxu0 %v2296_v40  ;;  %v2386_v40 = vld [vmem:[%s3136_s3 + $0xc4] ss:$8 sps:$4 sm:$0xff]  }
  0x69   : > { %1264 = vmatpush1.bf16.msra.mxu1 %v2369_v30 }
  0x6a   : > { %1265 = vmatprep.subr.bf16.mxu1 %v2377_v31 }
  0x6b   : > { %942 = vmatpush1.bf16.msra.mxu0 %v2294_v41  ;;  %v2384_v41 = vld [vmem:[%s3136_s3 + $0xc0] ss:$8 sps:$4 sm:$0xff]  }
  0x6c   : > { %943 = vmatprep.subr.bf16.mxu0 %v2299_v42  ;;  %v2389_v42 = vld [vmem:[%s3136_s3 + $0x1b4] ss:$8 sps:$4 sm:$0xff]  }
  0x6d   : > { %1266 = vmatpush1.bf16.msra.mxu1 %v2375_v34 }
  0x6e   : > { %1267 = vmatprep.subr.bf16.mxu1 %v2383_v39 }
  0x6f   : > { %944 = vmatpush1.bf16.msra.mxu0 %v2297_v43  ;;  %v2387_v43 = vld [vmem:[%s3136_s3 + $0x1b0] ss:$8 sps:$4 sm:$0xff]  }
  0x70   : > { %945 = vmatprep.subr.bf16.mxu0 %v2302_v44  ;;  %v2467_v44 = vmov 0.0  }
  0x71   : > { %1268 = vmatpush1.bf16.msra.mxu1 %v2381_v38  ;;  %982 = vst [vmem:[#allocation2] sm:$0xff] %v2467_v44  ;;  %984 = vst [vmem:[#allocation2 + $0x10] sm:$0x3] %v2467_v44 }
  0x72   : > { %983 = vst [vmem:[#allocation2 + $0x8] sm:$0xff] %v2467_v44  ;;  %985 = vst [vmem:[#allocation2 + $0x18] sm:$0x3] %v2467_v44  ;;  %1269 = vmatprep.subr.bf16.mxu1 %v2389_v42 }
  0x73   : > { %946 = vmatpush1.bf16.msra.mxu0 %v2300_v45  ;;  %v2392_v45 = vld [vmem:[%s3136_s3 + $0xd4] ss:$8 sps:$4 sm:$0xff]  }
  0x74   : > { %947 = vmatprep.subr.bf16.mxu0 %v2305_v46  ;;  %v2390_v46 = vld [vmem:[%s3136_s3 + $0xd0] ss:$8 sps:$4 sm:$0xff]  }
  0x75   : > { %1270 = vmatpush1.bf16.msra.mxu1 %v2387_v43 }
  0x77   : > { %948 = vmatpush1.bf16.msra.mxu0 %v2303_v47  ;;  %v2395_v47 = vld [vmem:[%s3136_s3 + $0x1c4] ss:$8 sps:$4 sm:$0xff]  }
  0x78   : > { %949 = vmatprep.subr.bf16.mxu0 %v2308_v48  ;;  %v2393_v48 = vld [vmem:[%s3136_s3 + $0x1c0] ss:$8 sps:$4 sm:$0xff]   ;;  %1271 = vmatprep.subr.bf16.mxu1 %v2395_v47  ;;  %v2416_v47 = vld [vmem:[%s3136_s3 + $0x214] ss:$8 sps:$4 sm:$0xff]  }
  0x79   : > { %1272 = vmatpush1.bf16.msra.mxu1 %v2393_v48 }
  0x7b   : > { %950 = vmatpush1.bf16.msra.mxu0 %v2306_v49  ;;  %v2396_v49 = vld [vmem:[%s3136_s3 + $0xe0] ss:$8 sps:$4 sm:$0xff]  }
  0x7c   : > { %951 = vmatprep.subr.bf16.mxu0 %v2311_v50  ;;  %v2398_v50 = vld [vmem:[%s3136_s3 + $0xe4] ss:$8 sps:$4 sm:$0xff]  }
  0x7f   : > { %952 = vmatpush1.bf16.msra.mxu0 %v2309_v51  ;;  %v2401_v51 = vld [vmem:[%s3136_s3 + $0x1d4] ss:$8 sps:$4 sm:$0xff]  }
  0x80   : > { %953 = vmatprep.subr.bf16.mxu0 %v2314_v54  ;;  %1273 = vmatprep.subr.bf16.mxu1 %v2401_v51  ;;  %v2407_v54 = vld [vmem:[%s3136_s3 + $0x1e4] ss:$8 sps:$4 sm:$0xff]   ;;  %v2417_v51 = vld [vmem:[%s3136_s3 + $0x220] ss:$8 sps:$4 sm:$0xff]  }
  0x81   : > { %1274 = vmatpush1.bf16.msra.mxu1 %v2399_v53  ;;  %v2420_v53 = vld [vmem:[%s3136_s3 + $0x230] ss:$8 sps:$4 sm:$0xff]  }
  0x82   : > { %1275 = vmatprep.subr.bf16.mxu1 %v2407_v54  ;;  %v2425_v54 = vld [vmem:[%s3136_s3 + $0x244] ss:$8 sps:$4 sm:$0xff]  }
  0x83   : > { %954 = vmatpush1.bf16.msra.mxu0 %v2312_v56  ;;  %v2405_v56 = vld [vmem:[%s3136_s3 + $0x1e0] ss:$8 sps:$4 sm:$0xff]  }
  0x84   : > { %1448 = vmatprep.subr.bf16.mxu0 %v2317_v59  ;;  %v2413_v59 = vld [vmem:[%s3136_s3 + $0x204] ss:$8 sps:$4 sm:$0xff]  }
  0x85   : > { %1276 = vmatpush1.bf16.msra.mxu1 %v2405_v56  ;;  %v2428_v56 = vld [vmem:[%s3136_s3 + $0x254] ss:$8 sps:$4 sm:$0xff]  }
  0x86   : > { %956 = vmatmul.mubr.bf16.vlgmr.msra.gmra.mrb[4].mxu0 %v759_v57  ;;  %v2410_v57 = vld [vmem:[%s3136_s3 + $0x1f4] ss:$8 sps:$4 sm:$0xff]  }
  0x87   : > { %1449 = vmatpush1.bf16.msra.mxu0 %v2315_v58  ;;  %v2408_v58 = vld [vmem:[%s3136_s3 + $0x1f0] ss:$8 sps:$4 sm:$0xff]   ;;  %1277 = vmatprep.subr.bf16.mxu1 %v2410_v57 }
  0x88   : > { %1450 = vmatprep.subr.bf16.mxu0 %v2320_v60  ;;  %v2426_v57 = vld [vmem:[%s3136_s3 + $0x250] ss:$8 sps:$4 sm:$0xff]  }
  0x89   : > { %1278 = vmatpush1.bf16.msra.mxu1 %v2408_v58  ;;  %v2431_v58 = vld [vmem:[%s3136_s3 + $0x264] ss:$8 sps:$4 sm:$0xff]  }
  0x8a   : > { %1694 = vmatprep.subr.bf16.mxu1 %v2413_v59  ;;  %v2429_v59 = vld [vmem:[%s3136_s3 + $0x260] ss:$8 sps:$4 sm:$0xff]  }
  0x8b   : > { %1451 = vmatpush1.bf16.msra.mxu0 %v2318_v63 }
  0x8c   : > { %1452 = vmatprep.subr.bf16.mxu0 %v2326_v1 }
  0x8f   : > { %1453 = vmatpush1.bf16.msra.mxu0 %v2324_v4 }
  0x90   : > { %1454 = vmatprep.subr.bf16.mxu0 %v2332_v5 }
  0x93   : > { %1455 = vmatpush1.bf16.msra.mxu0 %v2330_v8  ;;  %v970_v8 = vsub.s32 0, %v3011_v7 }
  0x94   : > { %1456 = vmatprep.subr.bf16.mxu0 %v2338_v9  ;;  %v966_v9 = vld [vmem:[%s3135_s2] sm:$0x3] }
  0x95   : > { %v971_v11 = vrot.slane %v966_v9, %v970_v8 }
  0x97   : > { %1457 = vmatpush1.bf16.msra.mxu0 %v2336_v12 }
  0x98   : > { %1458 = vmatprep.subr.bf16.mxu0 %v2344_v13  ;;  %v975_v13 = vrot.slane %v966_v9, %v974_v10  ;;  %v2447_v9 = vld [vmem:[%s3136_s3 + $0x2c0] ss:$8 sps:$4 sm:$0xff]  }
  0x9b   : > { %1459 = vmatpush1.bf16.msra.mxu0 %v2342_v16 }
  0x9c   : > { %1460 = vmatprep.subr.bf16.mxu0 %v2350_v17 }
  0x9f   : > { %1461 = vmatpush1.bf16.msra.mxu0 %v2348_v20 }
  0xa0   : > { %1462 = vmatprep.subr.bf16.mxu0 %v2356_v21 }
  0xa3   : > { %1463 = vmatpush1.bf16.msra.mxu0 %v2354_v24 }
  0xa4   : > { %1464 = vmatprep.subr.bf16.mxu0 %v2362_v25 }
  0xa7   : > { %1465 = vmatpush1.bf16.msra.mxu0 %v2360_v28 }
  0xa8   : > { %1466 = vmatprep.subr.bf16.mxu0 %v2368_v29 }
  0xab   : > { %1467 = vmatpush1.bf16.msra.mxu0 %v2366_v32 }
  0xac   : > { %1468 = vmatprep.subr.bf16.mxu0 %v2374_v33 }
  0xaf   : > { %1469 = vmatpush1.bf16.msra.mxu0 %v2372_v35 }
  0xb0   : > { %1470 = vmatprep.subr.bf16.mxu0 %v2380_v36 }
  0xb3   : > { %1471 = vmatpush1.bf16.msra.mxu0 %v2378_v37 }
  0xb4   : > { %1472 = vmatprep.subr.bf16.mxu0 %v2386_v40 }
  0xb7   : > { %1473 = vmatpush1.bf16.msra.mxu0 %v2384_v41 }
  0xb8   : > { %1474 = vmatprep.subr.bf16.mxu0 %v2392_v45  ;;  %v2411_v45 = vld [vmem:[%s3136_s3 + $0x200] ss:$8 sps:$4 sm:$0xff]  }
  0xbb   : > { %1475 = vmatpush1.bf16.msra.mxu0 %v2390_v46 }
  0xbc   : > { %1476 = vmatprep.subr.bf16.mxu0 %v2398_v50  ;;  %v2419_v50 = vld [vmem:[%s3136_s3 + $0x224] ss:$8 sps:$4 sm:$0xff]  }
  0xbf   : > { %1477 = vmatpush1.bf16.msra.mxu0 %v2396_v49  ;;  %v2414_v49 = vld [vmem:[%s3136_s3 + $0x210] ss:$8 sps:$4 sm:$0xff]  }
  0xc0   : > { %1478 = vmatprep.subr.bf16.mxu0 %v2404_v52  ;;  %v2422_v52 = vld [vmem:[%s3136_s3 + $0x234] ss:$8 sps:$4 sm:$0xff]  }
  0xc3   : > { %1479 = vmatpush1.bf16.msra.mxu0 %v2402_v55  ;;  %v2423_v55 = vld [vmem:[%s3136_s3 + $0x240] ss:$8 sps:$4 sm:$0xff]  }
 0x119   : > { %v510_v60 = vpop.f32.mrb[0].mxu0 }
 0x11a   : > { %v711_v61 = vpop.f32.mrb[0].mxu1  ;;  %v512_v63 = vpop.f32.mrb[1].mxu0 }
 0x11b   : > { %v712_v62 = vadd.f32 %v711_v61, %v510_v60  ;;  %v713_v0 = vpop.f32.mrb[1].mxu1  ;;  %v514_v2 = vpop.f32.mrb[2].mxu0  ;;  %v2434_v60 = vld [vmem:[%s3136_s3 + $0x274] ss:$8 sps:$4 sm:$0xff]   ;;  %v2432_v61 = vld [vmem:[%s3136_s3 + $0x270] ss:$8 sps:$4 sm:$0xff]  }
 0x11c   : > { %v714_v1 = vadd.f32 %v713_v0, %v512_v63  ;;  %v715_v3 = vpop.f32.mrb[2].mxu1  ;;  %v515_v4 = vpop.f32.mrb[3].mxu0  ;;  %v2435_v63 = vld [vmem:[%s3136_s3 + $0x280] ss:$8 sps:$4 sm:$0xff]   ;;  %v2440_v0 = vld [vmem:[%s3136_s3 + $0x294] ss:$8 sps:$4 sm:$0xff]  }
 0x11d   : > { %v716_v5 = vpop.f32.mrb[3].mxu1  ;;  %v2443_v2 = vld [vmem:[%s3136_s3 + $0x2a4] ss:$8 sps:$4 sm:$0xff]   ;;  %v2441_v3 = vld [vmem:[%s3136_s3 + $0x2a0] ss:$8 sps:$4 sm:$0xff]  }
 0x11e   : > { %v2446_v4 = vld [vmem:[%s3136_s3 + $0x2b4] ss:$8 sps:$4 sm:$0xff]   ;;  %v2444_v5 = vld [vmem:[%s3136_s3 + $0x2b0] ss:$8 sps:$4 sm:$0xff]  }
 0x159   : > { %v957_v12 = vpop.f32.mrb[4].mxu0 }
 0x15a   : > { %v964_v14 = vadd.f32 %v957_v12, %v712_v62  ;;  %v959_v15 = vpop.f32.mrb[5].mxu0  ;;  %v2437_v62 = vld [vmem:[%s3136_s3 + $0x284] ss:$8 sps:$4 sm:$0xff]   ;;  %v2450_v12 = vld [vmem:[%s3136_s3 + $0x2d0] ss:$8 sps:$4 sm:$0xff]  }
 0x15b   : > { %v965_v16 = vadd.f32 %v959_v15, %v714_v1  ;;  %v961_v17 = vpop.f32.mrb[6].mxu0  ;;  %v2438_v1 = vld [vmem:[%s3136_s3 + $0x290] ss:$8 sps:$4 sm:$0xff]   ;;  %v2458_v15 = vld [vmem:[%s3136_s3 + $0x2f4] ss:$8 sps:$4 sm:$0xff]  }
 0x15c   : > { %v978_v18 = vadd.f32 %v971_v11, %v964_v14  ;;  %v962_v19 = vpop.f32.mrb[7].mxu0  ;;  %v2452_v11 = vld [vmem:[%s3136_s3 + $0x2d4] ss:$8 sps:$4 sm:$0xff]   ;;  %v2453_v14 = vld [vmem:[%s3136_s3 + $0x2e0] ss:$8 sps:$4 sm:$0xff]  }
 0x15d   : > { %v979_v20 = vadd.f32 %v975_v13, %v965_v16  ;;  %v2455_v13 = vld [vmem:[%s3136_s3 + $0x2e4] ss:$8 sps:$4 sm:$0xff]  }
 0x15e   : > { %v980_v21 = vmax.f32 %v978_v18, 0.0  ;;  %v2456_v18 = vld [vmem:[%s3136_s3 + $0x2f0] ss:$8 sps:$4 sm:$0xff]  }
 0x15f   : > { %v981_v22 = vmax.f32 %v979_v20, 0.0 }
 0x160   : > { %v988_v23 = vrot.slane %v980_v21, 7 }
 0x161   : > { %v989_v24 = vrot.slane %v981_v22, 7 }
 0x162   : > { %992 = vst [vmem:[#allocation2] sm:$0xfe] %v988_v23  ;;  %994 = vst [vmem:[#allocation2 + $0x10] sm:$0x1] %v988_v23 }
 0x163   : > { %993 = vst [vmem:[#allocation2 + $0x8] sm:$0xfe] %v989_v24  ;;  %995 = vst [vmem:[#allocation2 + $0x18] sm:$0x1] %v989_v24 }
 0x169   : > { %v996_v25 = vld [vmem:[#allocation2] sm:$0xff]  ;;  %v1034_v27 = vld [vmem:[#allocation2 + $0x10] sm:$0x1] }
 0x16a   : > { %v1032_v26 = vld [vmem:[#allocation2] sm:$0xfe]  ;;  %v997_v28 = vld [vmem:[#allocation2 + $0x8] sm:$0xff]  ;;  %v1035_v30 = vld [vmem:[#allocation2 + $0x18] sm:$0x1]  ;;  %v998_v34 = vpack.c.bf16 %v996_v25, %v996_v25 }
 0x16b   : > { %v1033_v29 = vld [vmem:[#allocation2 + $0x8] sm:$0xfe]  ;;  %v1036_v31 = vpack.c.bf16 %v1034_v27, %v1032_v26  ;;  %v999_v32 = vpack.c.bf16 %v997_v28, %v997_v28  ;;  %v1492_v37 = vld [vmem:[#allocation2 + $0x18] sm:$0x3]  ;;  %v1489_v16 = vld [vmem:[#allocation2] sm:$0xfc] }
 0x16c   : > { %v1037_v33 = vpack.c.bf16 %v1035_v30, %v1033_v29  ;;  %v1490_v36 = vld [vmem:[#allocation2 + $0x8] sm:$0xfc]  ;;  %v1491_v17 = vld [vmem:[#allocation2 + $0x10] sm:$0x3] }
 0x16d   : > { %v1074_v35 = vshll.u32 %v1036_v31, 16  ;;  %1480 = vmatprep.mubr.bf16.mxu0 %v999_v32  ;;  %v1494_v42 = vpack.c.bf16 %v1492_v37, %v1490_v36  ;;  %v1072_v43 = vshrl.u32 %v1036_v31, 16  ;;  %v1493_v19 = vpack.c.bf16 %v1491_v17, %v1489_v16  ;;  %v1751_v31 = vld [vmem:[%s2648_s17] sm:$0xfe]  ;;  %v1753_v32 = vld [vmem:[%s2648_s17 + $0x10] sm:$0x1] }
 0x16e   : > { %v1081_v38 = vshll.u32 %v1037_v33, 16  ;;  %1481 = vmatmul.mubr.bf16.vlgmr.msra.gmra.mrb[8].mxu0 %v998_v34  ;;  %v1079_v40 = vshrl.u32 %v1037_v33, 16  ;;  %v1737_v33 = vld [vmem:[%s3137_s4] sm:$0x3]  ;;  %v1752_v34 = vld [vmem:[%s2648_s17 + $0x8] sm:$0xfe] }
 0x16f   : > { %v1076_v39 = vrot.slane %v1074_v35, 1  ;;  %v1531_v48 = vrot.slane %v1494_v42, 1  ;;  %v1530_v20 = vrot.slane %v1493_v19, 1  ;;  %v1754_v35 = vld [vmem:[%s2648_s17 + $0x18] sm:$0x1]  ;;  %v1760_v36 = vrot.slane %v1751_v31, 1 }
 0x170   : > { %v1083_v41 = vrot.slane %v1081_v38, 1  ;;  %v1761_v37 = vrot.slane %v1753_v32, 1  ;;  %v1742_v38 = vrot.slane %v1737_v33, %v970_v8  ;;  %v1746_v42 = vrot.slane %v1737_v33, %v974_v10 }
 0x171   : > { %v1077_v46 = vor.u32 %v1076_v39, %v1072_v43  ;;  %v1763_v39 = vrot.slane %v1752_v34, 1 }
 0x172   : > { %v1084_v44 = vor.u32 %v1083_v41, %v1079_v40  ;;  %v1764_v40 = vrot.slane %v1754_v35, 1 }
 0x174   : > { %1279 = vmatprep.mubr.bf16.mxu1 %v1084_v44 }
 0x175   : > { %1280 = vmatmul.mubr.bf16.vlgmr.msra.gmra.mrb[4].mxu1 %v1077_v46 }
 0x176   : > { %1695 = vmatpush1.bf16.msra.mxu1 %v2411_v45  ;;  %1726 = vmatprep.mubr.bf16.mxu1 %v1531_v48  ;;  %v1762_v45 = vsel %vm1759_vm0, %v1760_v36, %v1761_v37 }
 0x177   : > { %1696 = vmatprep.subr.bf16.mxu1 %v2416_v47 }
 0x17a   : > { %1697 = vmatpush1.bf16.msra.mxu1 %v2414_v49  ;;  %v1765_v49 = vsel %vm1759_vm0, %v1763_v39, %v1764_v40 }
 0x17b   : > { %1698 = vmatprep.subr.bf16.mxu1 %v2419_v50 }
 0x17e   : > { %1699 = vmatpush1.bf16.msra.mxu1 %v2417_v51 }
 0x17f   : > { %1700 = vmatprep.subr.bf16.mxu1 %v2422_v52 }
 0x182   : > { %1701 = vmatpush1.bf16.msra.mxu1 %v2420_v53 }
 0x183   : > { %1702 = vmatprep.subr.bf16.mxu1 %v2425_v54 }
 0x186   : > { %1703 = vmatpush1.bf16.msra.mxu1 %v2423_v55 }
 0x187   : > { %1704 = vmatprep.subr.bf16.mxu1 %v2428_v56 }
 0x18a   : > { %1705 = vmatpush1.bf16.msra.mxu1 %v2426_v57 }
 0x18b   : > { %1706 = vmatprep.subr.bf16.mxu1 %v2431_v58 }
 0x18e   : > { %1707 = vmatpush1.bf16.msra.mxu1 %v2429_v59 }
 0x18f   : > { %1708 = vmatprep.subr.bf16.mxu1 %v2434_v60 }
 0x192   : > { %1709 = vmatpush1.bf16.msra.mxu1 %v2432_v61 }
 0x193   : > { %1710 = vmatprep.subr.bf16.mxu1 %v2437_v62 }
 0x196   : > { %1711 = vmatpush1.bf16.msra.mxu1 %v2435_v63 }
 0x197   : > { %1712 = vmatprep.subr.bf16.mxu1 %v2440_v0 }
 0x19a   : > { %1713 = vmatpush1.bf16.msra.mxu1 %v2438_v1 }
 0x19b   : > { %1714 = vmatprep.subr.bf16.mxu1 %v2443_v2 }
 0x19e   : > { %1715 = vmatpush1.bf16.msra.mxu1 %v2441_v3 }
 0x19f   : > { %1716 = vmatprep.subr.bf16.mxu1 %v2446_v4 }
 0x1a2   : > { %1717 = vmatpush1.bf16.msra.mxu1 %v2444_v5 }
 0x1a3   : > { %1718 = vmatprep.subr.bf16.mxu1 %v2449_v6 }
 0x1a6   : > { %1719 = vmatpush1.bf16.msra.mxu1 %v2447_v9 }
 0x1a7   : > { %1720 = vmatprep.subr.bf16.mxu1 %v2452_v11 }
 0x1aa   : > { %1721 = vmatpush1.bf16.msra.mxu1 %v2450_v12 }
 0x1ab   : > { %1722 = vmatprep.subr.bf16.mxu1 %v2455_v13 }
 0x1ae   : > { %1723 = vmatpush1.bf16.msra.mxu1 %v2453_v14 }
 0x1af   : > { %1724 = vmatprep.subr.bf16.mxu1 %v2458_v15 }
 0x1b2   : > { %1725 = vmatpush1.bf16.msra.mxu1 %v2456_v18 }
 0x1b5   : > { %1727 = vmatmul.mubr.bf16.vlgmr.msra.gmra.mrb[8].mxu1 %v1530_v20 }
 0x241   : > { %v1482_v21 = vpop.f32.mrb[8].mxu0 }
 0x242   : > { %v1484_v22 = vpop.f32.mrb[9].mxu0 }
 0x243   : > { %v1486_v23 = vpop.f32.mrb[10].mxu0 }
 0x244   : > { %v1487_v24 = vpop.f32.mrb[11].mxu0 }
 0x248   : > { %v1281_v25 = vpop.f32.mrb[4].mxu1 }
 0x249   : > { %v1483_v26 = vadd.f32 %v1482_v21, %v1281_v25  ;;  %v1283_v27 = vpop.f32.mrb[5].mxu1 }
 0x24a   : > { %v1485_v28 = vadd.f32 %v1484_v22, %v1283_v27  ;;  %v1285_v29 = vpop.f32.mrb[6].mxu1 }
 0x24b   : > { %v1286_v30 = vpop.f32.mrb[7].mxu1 }
 0x288   : > { %v1728_v41 = vpop.f32.mrb[8].mxu1 }
 0x289   : > { %v1735_v43 = vadd.f32 %v1728_v41, %v1483_v26  ;;  %v1730_v44 = vpop.f32.mrb[9].mxu1 }
 0x28a   : > { %v1736_v46 = vadd.f32 %v1730_v44, %v1485_v28  ;;  %v1732_v47 = vpop.f32.mrb[10].mxu1 }
 0x28b   : > { %v1749_v48 = vadd.f32 %v1742_v38, %v1735_v43  ;;  %v1733_v50 = vpop.f32.mrb[11].mxu1 }
 0x28c   : > { %v1750_v51 = vadd.f32 %v1746_v42, %v1736_v46 }
 0x28d   : > { %v1768_v52 = vadd.f32 %v1762_v45, %v1749_v48 }
 0x28e   : > { %v1769_v8 = vadd.f32 %v1765_v49, %v1750_v51 }
 0x28f   : > { %v1770_v53 = vmax.f32 %v1768_v52, 0.0 }
 0x290   : > { %v1771_v54 = vmax.f32 %v1769_v8, 0.0 }
 0x291   : > { %1772 = vst [vmem:[%s224_s11] sm:$0xff] %v1770_v53 }
 0x292   : > { %1773 = vst [vmem:[%s224_s11 + $0x8] sm:$0xff] %v1771_v54 }
 0x293 PF: > { %s15_s18 = sadd.s32 1, %s2465_s18  }
 0x294   : > { %p12_p4 = scmp.ge.s32.totalorder %s15_s18, 4  }
 0x296   :  { %14 = sbr.rel (!%p12_p4) target bundleno = 1 (0x1), region = 74 }

// kernel: _lambda_.31
= control target key start
LH: loop header
LB: loop body
LE: loop exit
PB: predicated region body
PF: predicated region fallthrough
CT: control target
= control target key end

     0   :  { %s7399_s27 = smov 0   ;;  %s9410_s0 = inlined_call_operand.vmem [shape: f32[2,5,256], index: 0, kind: input, shape index: {}]   ;;  %s9411_s1 = inlined_call_operand.vmem [shape: f32[2,4,256], index: 1, kind: input, shape index: {}]   ;;  %s9412_s2 = inlined_call_operand.vmem [shape: bf16[3,256,512], index: 2, kind: input, shape index: {}]   ;;  %s9413_s3 = inlined_call_operand.vmem [shape: f32[1,512], index: 3, kind: input, shape index: {}]   ;;  %s9414_s4 = inlined_call_operand.vmem [shape: bf16[3,512,512], index: 4, kind: input, shape index: {}]   ;;  %s9415_s5 = inlined_call_operand.vmem [shape: f32[1,512], index: 5, kind: input, shape index: {}]   ;;  %s9416_s6 = inlined_call_operand.vmem [shape: bf16[256,512], index: 6, kind: input, shape index: {}]   ;;  %s9417_s7 = inlined_call_operand.vmem [shape: f32[1,512], index: 7, kind: input, shape index: {}]   ;;  %s9418_s8 = inlined_call_operand.vmem [shape: f32[2,4,512], index: 8, kind: output, shape index: {}]  }
   0x1 LB: > { %s5279_s28 = sadd.s32 4294967295, %s7351_s27   ;;  %p5283_p0 = scmp.ge.s32.totalorder %s7351_s27, 1  ;;  %s7351_s27 = sphi %s7399_s27, %s18_s27  }
   0x2   : > { %p272_p1 = scmp.lt.s32.totalorder %s7351_s27, 3 }
   0x4   : > { %p273_p2 = pnand %p5283_p0, %p272_p1 }
   0x5   : > { %v6384_v0 = vld [vmem:[%s9412_s2 + $0x204] ss:$16 sps:$4 sm:$0xff] (!%p273_p2)   ;;  %v6386_v1 = vld [vmem:[%s9412_s2 + $0x20c] ss:$16 sps:$4 sm:$0xff] (!%p273_p2)   ;;  %v6388_v2 = vld [vmem:[%s9412_s2 + $0x200] ss:$16 sps:$4 sm:$0xff] (!%p273_p2)  }
   0x6   : > { %276 = sbr.rel (%p273_p2) target bundleno = 979 (0x3d3), region = 52  ;;  %785 = vmatprep.subr.bf16.mxu0 (!%p273_p2), %v6384_v0  ;;  %v6389_v3 = vld [vmem:[%s9412_s2 + $0x208] ss:$16 sps:$4 sm:$0xff] (!%p273_p2)   ;;  %826 = vmatprep.subr.bf16.mxu1 (!%p273_p2), %v6386_v1  ;;  %v6390_v4 = vld [vmem:[%s9412_s2 + $0x224] ss:$16 sps:$4 sm:$0xff] (!%p273_p2)   ;;  %p311_p3 = scmp.lt.s32.totalorder (!%p273_p2), %s5279_s28, 1 }
   0x7   : > { %786 = vmatpush1.bf16.msra.mxu0 (!%p273_p2), %v6388_v2  ;;  %827 = vmatpush1.bf16.msra.mxu1 (!%p273_p2), %v6389_v3  ;;  %v6392_v5 = vld [vmem:[%s9412_s2 + $0x22c] ss:$16 sps:$4 sm:$0xff] (!%p273_p2)   ;;  %v6394_v6 = vld [vmem:[%s9412_s2 + $0x220] ss:$16 sps:$4 sm:$0xff] (!%p273_p2)   ;;  %v6395_v7 = vld [vmem:[%s9412_s2 + $0x228] ss:$16 sps:$4 sm:$0xff] (!%p273_p2)  }
   0x8   : > { %787 = vmatprep.subr.bf16.mxu0 (!%p273_p2), %v6390_v4  ;;  %828 = vmatprep.subr.bf16.mxu1 (!%p273_p2), %v6392_v5  ;;  %v6396_v8 = vld [vmem:[%s9412_s2 + $0x244] ss:$16 sps:$4 sm:$0xff] (!%p273_p2)   ;;  %v6398_v9 = vld [vmem:[%s9412_s2 + $0x24c] ss:$16 sps:$4 sm:$0xff] (!%p273_p2)   ;;  %v6400_v10 = vld [vmem:[%s9412_s2 + $0x240] ss:$16 sps:$4 sm:$0xff] (!%p273_p2)  }
   0x9   : > { %v6401_v11 = vld [vmem:[%s9412_s2 + $0x248] ss:$16 sps:$4 sm:$0xff] (!%p273_p2)   ;;  %v6402_v12 = vld [vmem:[%s9412_s2 + $0x264] ss:$16 sps:$4 sm:$0xff] (!%p273_p2)   ;;  %v6404_v13 = vld [vmem:[%s9412_s2 + $0x26c] ss:$16 sps:$4 sm:$0xff] (!%p273_p2)  }
   0xa   : > { %v6406_v14 = vld [vmem:[%s9412_s2 + $0x260] ss:$16 sps:$4 sm:$0xff] (!%p273_p2)   ;;  %v6407_v15 = vld [vmem:[%s9412_s2 + $0x268] ss:$16 sps:$4 sm:$0xff] (!%p273_p2)   ;;  %v6408_v16 = vld [vmem:[%s9412_s2 + $0x284] ss:$16 sps:$4 sm:$0xff] (!%p273_p2)  }
   0xb   : > { %788 = vmatpush1.bf16.msra.mxu0 (!%p273_p2), %v6394_v6  ;;  %829 = vmatpush1.bf16.msra.mxu1 (!%p273_p2), %v6395_v7  ;;  %v6410_v17 = vld [vmem:[%s9412_s2 + $0x28c] ss:$16 sps:$4 sm:$0xff] (!%p273_p2)   ;;  %v6412_v18 = vld [vmem:[%s9412_s2 + $0x280] ss:$16 sps:$4 sm:$0xff] (!%p273_p2)   ;;  %v6413_v19 = vld [vmem:[%s9412_s2 + $0x288] ss:$16 sps:$4 sm:$0xff] (!%p273_p2)  }
   0xc   : > { %789 = vmatprep.subr.bf16.mxu0 (!%p273_p2), %v6396_v8  ;;  %830 = vmatprep.subr.bf16.mxu1 (!%p273_p2), %v6398_v9  ;;  %v6414_v20 = vld [vmem:[%s9412_s2 + $0x2a4] ss:$16 sps:$4 sm:$0xff] (!%p273_p2)   ;;  %v6416_v21 = vld [vmem:[%s9412_s2 + $0x2ac] ss:$16 sps:$4 sm:$0xff] (!%p273_p2)   ;;  %v6418_v22 = vld [vmem:[%s9412_s2 + $0x2a0] ss:$16 sps:$4 sm:$0xff] (!%p273_p2)  }
   0xd   : > { %v6419_v23 = vld [vmem:[%s9412_s2 + $0x2a8] ss:$16 sps:$4 sm:$0xff]   ;;  %v6420_v24 = vld [vmem:[%s9412_s2 + $0x2c4] ss:$16 sps:$4 sm:$0xff]   ;;  %v6422_v25 = vld [vmem:[%s9412_s2 + $0x2cc] ss:$16 sps:$4 sm:$0xff]  }
   0xe   : > { %v6424_v26 = vld [vmem:[%s9412_s2 + $0x2c0] ss:$16 sps:$4 sm:$0xff]   ;;  %v6425_v27 = vld [vmem:[%s9412_s2 + $0x2c8] ss:$16 sps:$4 sm:$0xff]   ;;  %v6426_v28 = vld [vmem:[%s9412_s2 + $0x2e4] ss:$16 sps:$4 sm:$0xff]  }
   0xf   : > { %790 = vmatpush1.bf16.msra.mxu0 %v6400_v10  ;;  %831 = vmatpush1.bf16.msra.mxu1 %v6401_v11  ;;  %v6428_v29 = vld [vmem:[%s9412_s2 + $0x2ec] ss:$16 sps:$4 sm:$0xff]   ;;  %v6430_v30 = vld [vmem:[%s9412_s2 + $0x2e0] ss:$16 sps:$4 sm:$0xff]   ;;  %v6431_v31 = vld [vmem:[%s9412_s2 + $0x2e8] ss:$16 sps:$4 sm:$0xff]  }
  0x10   : > { %791 = vmatprep.subr.bf16.mxu0 %v6402_v12  ;;  %832 = vmatprep.subr.bf16.mxu1 %v6404_v13  ;;  %v6432_v32 = vld [vmem:[%s9412_s2 + $0x304] ss:$16 sps:$4 sm:$0xff]   ;;  %v6434_v33 = vld [vmem:[%s9412_s2 + $0x30c] ss:$16 sps:$4 sm:$0xff]   ;;  %v6436_v34 = vld [vmem:[%s9412_s2 + $0x300] ss:$16 sps:$4 sm:$0xff]  }
  0x11   : > { %v6437_v35 = vld [vmem:[%s9412_s2 + $0x308] ss:$16 sps:$4 sm:$0xff]   ;;  %v6438_v36 = vld [vmem:[%s9412_s2 + $0x324] ss:$16 sps:$4 sm:$0xff]   ;;  %s9420_s28 = smov (!%p311_p3, %s5279_s28), 1 }
  0x12   : > { %v6440_v37 = vld [vmem:[%s9412_s2 + $0x32c] ss:$16 sps:$4 sm:$0xff]   ;;  %v6442_v38 = vld [vmem:[%s9412_s2 + $0x320] ss:$16 sps:$4 sm:$0xff]   ;;  %v6443_v39 = vld [vmem:[%s9412_s2 + $0x328] ss:$16 sps:$4 sm:$0xff]  }
  0x13   : > { %792 = vmatpush1.bf16.msra.mxu0 %v6406_v14  ;;  %833 = vmatpush1.bf16.msra.mxu1 %v6407_v15  ;;  %v6444_v40 = vld [vmem:[%s9412_s2 + $0x344] ss:$16 sps:$4 sm:$0xff]   ;;  %s6317_s9 = sshll.u32 %s9420_s28, 3  ;;  %v6446_v41 = vld [vmem:[%s9412_s2 + $0x34c] ss:$16 sps:$4 sm:$0xff]   ;;  %s6316_s17 = sshll.u32 %s9420_s28, 4 }
  0x14   : > { %793 = vmatprep.subr.bf16.mxu0 %v6408_v16  ;;  %834 = vmatprep.subr.bf16.mxu1 %v6410_v17  ;;  %v6448_v42 = vld [vmem:[%s9412_s2 + $0x340] ss:$16 sps:$4 sm:$0xff]   ;;  %v6449_v43 = vld [vmem:[%s9412_s2 + $0x348] ss:$16 sps:$4 sm:$0xff]   ;;  %s320_s18 = scalar_lea.vmem %s9411_s1, %s6317_s9  ;;  %v6450_v44 = vld [vmem:[%s9412_s2 + $0x364] ss:$16 sps:$4 sm:$0xff]   ;;  %s7689_s26 = scalar_lea.vmem %s9410_s0, %s6316_s17 }
  0x15   : > { %v6452_v45 = vld [vmem:[%s9412_s2 + $0x36c] ss:$16 sps:$4 sm:$0xff]   ;;  %v326_v46 = vld [vmem:[%s320_s18] sm:$0xff]  ;;  %v6455_v49 = vld [vmem:[%s9412_s2 + $0x368] ss:$16 sps:$4 sm:$0xff]   ;;  %s325_s12 = scalar_lea.vmem %s9418_s8, %s6316_s17 }
  0x16   : > { %v6454_v47 = vld [vmem:[%s9412_s2 + $0x360] ss:$16 sps:$4 sm:$0xff]   ;;  %v328_v48 = vcombine.high %v326_v46, %v326_v46  ;;  %v6456_v50 = vld [vmem:[%s9412_s2 + $0x384] ss:$16 sps:$4 sm:$0xff]   ;;  %v6458_v51 = vld [vmem:[%s9412_s2 + $0x38c] ss:$16 sps:$4 sm:$0xff]   ;;  %v7619_v5 = vpack.c.bf16 %v326_v46, %v326_v46 }
  0x17   : > { %794 = vmatpush1.bf16.msra.mxu0 %v6412_v18  ;;  %835 = vmatpush1.bf16.msra.mxu1 %v6413_v19  ;;  %v6460_v53 = vld [vmem:[%s9412_s2 + $0x380] ss:$16 sps:$4 sm:$0xff]   ;;  %v6461_v54 = vld [vmem:[%s9412_s2 + $0x388] ss:$16 sps:$4 sm:$0xff]   ;;  %v6462_v55 = vld [vmem:[%s9412_s2 + $0x3a4] ss:$16 sps:$4 sm:$0xff]  }
  0x18   : > { %795 = vmatprep.subr.bf16.mxu0 %v6414_v20  ;;  %836 = vmatprep.subr.bf16.mxu1 %v6416_v21  ;;  %v7567_v52 = vpack.c.bf16 %v328_v48, %v328_v48  ;;  %v6464_v56 = vld [vmem:[%s9412_s2 + $0x3ac] ss:$16 sps:$4 sm:$0xff]   ;;  %v6466_v57 = vld [vmem:[%s9412_s2 + $0x3a0] ss:$16 sps:$4 sm:$0xff]   ;;  %v6467_v58 = vld [vmem:[%s9412_s2 + $0x3a8] ss:$16 sps:$4 sm:$0xff]  }
  0x19   : > { %v6468_v59 = vld [vmem:[%s9412_s2 + $0x3c4] ss:$16 sps:$4 sm:$0xff]   ;;  %v6470_v60 = vld [vmem:[%s9412_s2 + $0x3cc] ss:$16 sps:$4 sm:$0xff]   ;;  %v6472_v61 = vld [vmem:[%s9412_s2 + $0x3c0] ss:$16 sps:$4 sm:$0xff]  }
  0x1a   : > { %817 = vmatprep.mubr.bf16.mxu0 %v7567_v52  ;;  %858 = vmatprep.mubr.bf16.mxu1 %v7567_v52  ;;  %v6473_v62 = vld [vmem:[%s9412_s2 + $0x3c8] ss:$16 sps:$4 sm:$0xff]   ;;  %v6474_v63 = vld [vmem:[%s9412_s2 + $0x3e4] ss:$16 sps:$4 sm:$0xff]   ;;  %v6476_v0 = vld [vmem:[%s9412_s2 + $0x3ec] ss:$16 sps:$4 sm:$0xff]  }
  0x1b   : > { %796 = vmatpush1.bf16.msra.mxu0 %v6418_v22  ;;  %837 = vmatpush1.bf16.msra.mxu1 %v6419_v23  ;;  %v6478_v1 = vld [vmem:[%s9412_s2 + $0x3e0] ss:$16 sps:$4 sm:$0xff]   ;;  %v6479_v2 = vld [vmem:[%s9412_s2 + $0x3e8] ss:$16 sps:$4 sm:$0xff]   ;;  %v6483_v3 = vld [vmem:[%s9412_s2 + $0x4] ss:$16 sps:$4 sm:$0xff]  }
  0x1c   : > { %797 = vmatprep.subr.bf16.mxu0 %v6420_v24  ;;  %838 = vmatprep.subr.bf16.mxu1 %v6422_v25  ;;  %v6486_v4 = vld [vmem:[%s9412_s2 + $0xc] ss:$16 sps:$4 sm:$0xff]   ;;  %v6481_v6 = vld [vmem:[%s9412_s2] ss:$16 sps:$4 sm:$0xff]   ;;  %v6484_v7 = vld [vmem:[%s9412_s2 + $0x8] ss:$16 sps:$4 sm:$0xff]  }
  0x1d   : > { %v6489_v8 = vld [vmem:[%s9412_s2 + $0x24] ss:$16 sps:$4 sm:$0xff]   ;;  %v6492_v9 = vld [vmem:[%s9412_s2 + $0x2c] ss:$16 sps:$4 sm:$0xff]   ;;  %v6487_v10 = vld [vmem:[%s9412_s2 + $0x20] ss:$16 sps:$4 sm:$0xff]  }
  0x1e   : > { %v6490_v11 = vld [vmem:[%s9412_s2 + $0x28] ss:$16 sps:$4 sm:$0xff]   ;;  %v6495_v12 = vld [vmem:[%s9412_s2 + $0x44] ss:$16 sps:$4 sm:$0xff]   ;;  %v6498_v13 = vld [vmem:[%s9412_s2 + $0x4c] ss:$16 sps:$4 sm:$0xff]  }
  0x1f   : > { %798 = vmatpush1.bf16.msra.mxu0 %v6424_v26  ;;  %839 = vmatpush1.bf16.msra.mxu1 %v6425_v27  ;;  %v6493_v14 = vld [vmem:[%s9412_s2 + $0x40] ss:$16 sps:$4 sm:$0xff]   ;;  %v6496_v15 = vld [vmem:[%s9412_s2 + $0x48] ss:$16 sps:$4 sm:$0xff]   ;;  %v6501_v16 = vld [vmem:[%s9412_s2 + $0x64] ss:$16 sps:$4 sm:$0xff]  }
  0x20   : > { %799 = vmatprep.subr.bf16.mxu0 %v6426_v28  ;;  %840 = vmatprep.subr.bf16.mxu1 %v6428_v29  ;;  %v6504_v17 = vld [vmem:[%s9412_s2 + $0x6c] ss:$16 sps:$4 sm:$0xff]   ;;  %v6499_v18 = vld [vmem:[%s9412_s2 + $0x60] ss:$16 sps:$4 sm:$0xff]   ;;  %v6502_v19 = vld [vmem:[%s9412_s2 + $0x68] ss:$16 sps:$4 sm:$0xff]  }
  0x21   : > { %v6507_v20 = vld [vmem:[%s9412_s2 + $0x84] ss:$16 sps:$4 sm:$0xff]   ;;  %v6510_v21 = vld [vmem:[%s9412_s2 + $0x8c] ss:$16 sps:$4 sm:$0xff]   ;;  %v6505_v22 = vld [vmem:[%s9412_s2 + $0x80] ss:$16 sps:$4 sm:$0xff]  }
  0x22   : > { %v6508_v23 = vld [vmem:[%s9412_s2 + $0x88] ss:$16 sps:$4 sm:$0xff]   ;;  %v6513_v24 = vld [vmem:[%s9412_s2 + $0xa4] ss:$16 sps:$4 sm:$0xff]   ;;  %v6516_v25 = vld [vmem:[%s9412_s2 + $0xac] ss:$16 sps:$4 sm:$0xff]  }
  0x23   : > { %800 = vmatpush1.bf16.msra.mxu0 %v6430_v30  ;;  %841 = vmatpush1.bf16.msra.mxu1 %v6431_v31  ;;  %v6511_v26 = vld [vmem:[%s9412_s2 + $0xa0] ss:$16 sps:$4 sm:$0xff]   ;;  %v6514_v27 = vld [vmem:[%s9412_s2 + $0xa8] ss:$16 sps:$4 sm:$0xff]   ;;  %v6519_v28 = vld [vmem:[%s9412_s2 + $0xc4] ss:$16 sps:$4 sm:$0xff]  }
  0x24   : > { %801 = vmatprep.subr.bf16.mxu0 %v6432_v32  ;;  %842 = vmatprep.subr.bf16.mxu1 %v6434_v33  ;;  %v6522_v29 = vld [vmem:[%s9412_s2 + $0xcc] ss:$16 sps:$4 sm:$0xff]   ;;  %v333_v30 = vld [vmem:[%s7689_s26 + $0x8] sm:$0xf]  ;;  %v6517_v32 = vld [vmem:[%s9412_s2 + $0xc0] ss:$16 sps:$4 sm:$0xff]  }
  0x25   : > { %v335_v31 = vpack.c.bf16 %v333_v30, %v333_v30  ;;  %v6520_v33 = vld [vmem:[%s9412_s2 + $0xc8] ss:$16 sps:$4 sm:$0xff]   ;;  %v6543_v46 = vld [vmem:[%s9412_s2 + $0x144] ss:$16 sps:$4 sm:$0xff]   ;;  %v6541_v48 = vld [vmem:[%s9412_s2 + $0x140] ss:$16 sps:$4 sm:$0xff]  }
  0x26   : > { %v6595_v30 = vld [vmem:[%s9412_s2 + $0x460] ss:$16 sps:$4 sm:$0xff]  }
  0x27   : > { %802 = vmatpush1.bf16.msra.mxu0 %v6436_v34  ;;  %843 = vmatpush1.bf16.msra.mxu1 %v6437_v35  ;;  %v6525_v34 = vld [vmem:[%s9412_s2 + $0xe4] ss:$16 sps:$4 sm:$0xff]   ;;  %v6528_v35 = vld [vmem:[%s9412_s2 + $0xec] ss:$16 sps:$4 sm:$0xff]  }
  0x28   : > { %803 = vmatprep.subr.bf16.mxu0 %v6438_v36  ;;  %844 = vmatprep.subr.bf16.mxu1 %v6440_v37  ;;  %v6523_v36 = vld [vmem:[%s9412_s2 + $0xe0] ss:$16 sps:$4 sm:$0xff]   ;;  %v6526_v37 = vld [vmem:[%s9412_s2 + $0xe8] ss:$16 sps:$4 sm:$0xff]  }
  0x2b   : > { %804 = vmatpush1.bf16.msra.mxu0 %v6442_v38  ;;  %845 = vmatpush1.bf16.msra.mxu1 %v6443_v39  ;;  %v6531_v38 = vld [vmem:[%s9412_s2 + $0x104] ss:$16 sps:$4 sm:$0xff]   ;;  %v6534_v39 = vld [vmem:[%s9412_s2 + $0x10c] ss:$16 sps:$4 sm:$0xff]  }
  0x2c   : > { %805 = vmatprep.subr.bf16.mxu0 %v6444_v40  ;;  %846 = vmatprep.subr.bf16.mxu1 %v6446_v41  ;;  %v6529_v40 = vld [vmem:[%s9412_s2 + $0x100] ss:$16 sps:$4 sm:$0xff]   ;;  %v6532_v41 = vld [vmem:[%s9412_s2 + $0x108] ss:$16 sps:$4 sm:$0xff]  }
  0x2f   : > { %806 = vmatpush1.bf16.msra.mxu0 %v6448_v42  ;;  %847 = vmatpush1.bf16.msra.mxu1 %v6449_v43  ;;  %v6537_v42 = vld [vmem:[%s9412_s2 + $0x124] ss:$16 sps:$4 sm:$0xff]   ;;  %v6540_v43 = vld [vmem:[%s9412_s2 + $0x12c] ss:$16 sps:$4 sm:$0xff]  }
  0x30   : > { %807 = vmatprep.subr.bf16.mxu0 %v6450_v44  ;;  %848 = vmatprep.subr.bf16.mxu1 %v6452_v45  ;;  %v6535_v44 = vld [vmem:[%s9412_s2 + $0x120] ss:$16 sps:$4 sm:$0xff]   ;;  %v6538_v45 = vld [vmem:[%s9412_s2 + $0x128] ss:$16 sps:$4 sm:$0xff]  }
  0x33   : > { %808 = vmatpush1.bf16.msra.mxu0 %v6454_v47  ;;  %849 = vmatpush1.bf16.msra.mxu1 %v6455_v49  ;;  %v6546_v47 = vld [vmem:[%s9412_s2 + $0x14c] ss:$16 sps:$4 sm:$0xff]   ;;  %v6544_v49 = vld [vmem:[%s9412_s2 + $0x148] ss:$16 sps:$4 sm:$0xff]  }
  0x34   : > { %809 = vmatprep.subr.bf16.mxu0 %v6456_v50  ;;  %850 = vmatprep.subr.bf16.mxu1 %v6458_v51  ;;  %v6549_v50 = vld [vmem:[%s9412_s2 + $0x164] ss:$16 sps:$4 sm:$0xff]   ;;  %v6552_v51 = vld [vmem:[%s9412_s2 + $0x16c] ss:$16 sps:$4 sm:$0xff]  }
  0x37   : > { %810 = vmatpush1.bf16.msra.mxu0 %v6460_v53  ;;  %851 = vmatpush1.bf16.msra.mxu1 %v6461_v54  ;;  %v6547_v53 = vld [vmem:[%s9412_s2 + $0x160] ss:$16 sps:$4 sm:$0xff]   ;;  %v6550_v54 = vld [vmem:[%s9412_s2 + $0x168] ss:$16 sps:$4 sm:$0xff]  }
  0x38   : > { %811 = vmatprep.subr.bf16.mxu0 %v6462_v55  ;;  %852 = vmatprep.subr.bf16.mxu1 %v6464_v56  ;;  %v6555_v55 = vld [vmem:[%s9412_s2 + $0x184] ss:$16 sps:$4 sm:$0xff]   ;;  %v6558_v56 = vld [vmem:[%s9412_s2 + $0x18c] ss:$16 sps:$4 sm:$0xff]  }
  0x3b   : > { %812 = vmatpush1.bf16.msra.mxu0 %v6466_v57  ;;  %853 = vmatpush1.bf16.msra.mxu1 %v6467_v58  ;;  %v6553_v57 = vld [vmem:[%s9412_s2 + $0x180] ss:$16 sps:$4 sm:$0xff]   ;;  %v6556_v58 = vld [vmem:[%s9412_s2 + $0x188] ss:$16 sps:$4 sm:$0xff]  }
  0x3c   : > { %813 = vmatprep.subr.bf16.mxu0 %v6468_v59  ;;  %854 = vmatprep.subr.bf16.mxu1 %v6470_v60  ;;  %v6561_v59 = vld [vmem:[%s9412_s2 + $0x1a4] ss:$16 sps:$4 sm:$0xff]   ;;  %v6564_v60 = vld [vmem:[%s9412_s2 + $0x1ac] ss:$16 sps:$4 sm:$0xff]  }
  0x3f   : > { %814 = vmatpush1.bf16.msra.mxu0 %v6472_v61  ;;  %855 = vmatpush1.bf16.msra.mxu1 %v6473_v62  ;;  %v6559_v61 = vld [vmem:[%s9412_s2 + $0x1a0] ss:$16 sps:$4 sm:$0xff]   ;;  %v6562_v62 = vld [vmem:[%s9412_s2 + $0x1a8] ss:$16 sps:$4 sm:$0xff]  }
  0x40   : > { %815 = vmatprep.subr.bf16.mxu0 %v6474_v63  ;;  %856 = vmatprep.subr.bf16.mxu1 %v6476_v0  ;;  %v6567_v63 = vld [vmem:[%s9412_s2 + $0x1c4] ss:$16 sps:$4 sm:$0xff]   ;;  %v6570_v0 = vld [vmem:[%s9412_s2 + $0x1cc] ss:$16 sps:$4 sm:$0xff]  }
  0x43   : > { %816 = vmatpush1.bf16.msra.mxu0 %v6478_v1  ;;  %857 = vmatpush1.bf16.msra.mxu1 %v6479_v2  ;;  %v6565_v1 = vld [vmem:[%s9412_s2 + $0x1c0] ss:$16 sps:$4 sm:$0xff]   ;;  %v6568_v2 = vld [vmem:[%s9412_s2 + $0x1c8] ss:$16 sps:$4 sm:$0xff]  }
  0x44   : > { %1187 = vmatprep.subr.bf16.mxu0 %v6483_v3  ;;  %1228 = vmatprep.subr.bf16.mxu1 %v6486_v4  ;;  %v6573_v3 = vld [vmem:[%s9412_s2 + $0x1e4] ss:$16 sps:$4 sm:$0xff]   ;;  %v6576_v4 = vld [vmem:[%s9412_s2 + $0x1ec] ss:$16 sps:$4 sm:$0xff]  }
  0x46   : > { %818 = vmatmul.mubr.bf16.vlgmr.msra.gmra.mrb[0].mxu0 %v7619_v5  ;;  %859 = vmatmul.mubr.bf16.vlgmr.msra.gmra.mrb[0].mxu1 %v7619_v5 }
  0x47   : > { %1188 = vmatpush1.bf16.msra.mxu0 %v6481_v6  ;;  %1229 = vmatpush1.bf16.msra.mxu1 %v6484_v7  ;;  %v6571_v6 = vld [vmem:[%s9412_s2 + $0x1e0] ss:$16 sps:$4 sm:$0xff]   ;;  %v6574_v7 = vld [vmem:[%s9412_s2 + $0x1e8] ss:$16 sps:$4 sm:$0xff]  }
  0x48   : > { %1189 = vmatprep.subr.bf16.mxu0 %v6489_v8  ;;  %1230 = vmatprep.subr.bf16.mxu1 %v6492_v9  ;;  %v332_v8 = vld [vmem:[%s7689_s26] sm:$0xf]  ;;  %v6579_v9 = vld [vmem:[%s9412_s2 + $0x404] ss:$16 sps:$4 sm:$0xff]  }
  0x49   : > { %1219 = vmatprep.mubr.bf16.mxu0 %v335_v31  ;;  %1260 = vmatprep.mubr.bf16.mxu1 %v335_v31  ;;  %v6598_v31 = vld [vmem:[%s9412_s2 + $0x468] ss:$16 sps:$4 sm:$0xff]  }
  0x4b   : > { %1190 = vmatpush1.bf16.msra.mxu0 %v6487_v10  ;;  %1231 = vmatpush1.bf16.msra.mxu1 %v6490_v11  ;;  %v6582_v10 = vld [vmem:[%s9412_s2 + $0x40c] ss:$16 sps:$4 sm:$0xff]   ;;  %v334_v11 = vpack.c.bf16 %v332_v8, %v332_v8 }
  0x4c   : > { %1191 = vmatprep.subr.bf16.mxu0 %v6495_v12  ;;  %1232 = vmatprep.subr.bf16.mxu1 %v6498_v13  ;;  %v6577_v12 = vld [vmem:[%s9412_s2 + $0x400] ss:$16 sps:$4 sm:$0xff]   ;;  %v6580_v13 = vld [vmem:[%s9412_s2 + $0x408] ss:$16 sps:$4 sm:$0xff]   ;;  %v6660_v8 = vld [vmem:[%s9412_s2 + $0x5ac] ss:$16 sps:$4 sm:$0xff]  }
  0x4f   : > { %1192 = vmatpush1.bf16.msra.mxu0 %v6493_v14  ;;  %1233 = vmatpush1.bf16.msra.mxu1 %v6496_v15  ;;  %v6585_v14 = vld [vmem:[%s9412_s2 + $0x424] ss:$16 sps:$4 sm:$0xff]   ;;  %v6588_v15 = vld [vmem:[%s9412_s2 + $0x42c] ss:$16 sps:$4 sm:$0xff]  }
  0x50   : > { %1193 = vmatprep.subr.bf16.mxu0 %v6501_v16  ;;  %1234 = vmatprep.subr.bf16.mxu1 %v6504_v17  ;;  %v1270_v16 = vld [vmem:[%s7689_s26 + $0x8] sm:$0x1e]  ;;  %v6583_v17 = vld [vmem:[%s9412_s2 + $0x420] ss:$16 sps:$4 sm:$0xff]  }
  0x53   : > { %1194 = vmatpush1.bf16.msra.mxu0 %v6499_v18  ;;  %1235 = vmatpush1.bf16.msra.mxu1 %v6502_v19  ;;  %v6586_v18 = vld [vmem:[%s9412_s2 + $0x428] ss:$16 sps:$4 sm:$0xff]   ;;  %v1272_v19 = vpack.c.bf16 %v1270_v16, %v1270_v16  ;;  %v6669_v16 = vld [vmem:[%s9412_s2 + $0x5e4] ss:$16 sps:$4 sm:$0xff]  }
  0x54   : > { %1195 = vmatprep.subr.bf16.mxu0 %v6507_v20  ;;  %1236 = vmatprep.subr.bf16.mxu1 %v6510_v21  ;;  %v6591_v20 = vld [vmem:[%s9412_s2 + $0x444] ss:$16 sps:$4 sm:$0xff]   ;;  %v6594_v21 = vld [vmem:[%s9412_s2 + $0x44c] ss:$16 sps:$4 sm:$0xff]  }
  0x57   : > { %1196 = vmatpush1.bf16.msra.mxu0 %v6505_v22  ;;  %1237 = vmatpush1.bf16.msra.mxu1 %v6508_v23  ;;  %v1346_v22 = vshrl.u32 %v1272_v19, 16  ;;  %v1348_v23 = vshll.u32 %v1272_v19, 16  ;;  %v6667_v19 = vld [vmem:[%s9412_s2 + $0x5e0] ss:$16 sps:$4 sm:$0xff]  }
  0x58   : > { %1197 = vmatprep.subr.bf16.mxu0 %v6513_v24  ;;  %1238 = vmatprep.subr.bf16.mxu1 %v6516_v25  ;;  %v6589_v24 = vld [vmem:[%s9412_s2 + $0x440] ss:$16 sps:$4 sm:$0xff]   ;;  %v6592_v25 = vld [vmem:[%s9412_s2 + $0x448] ss:$16 sps:$4 sm:$0xff]  }
  0x5b   : > { %1198 = vmatpush1.bf16.msra.mxu0 %v6511_v26  ;;  %1239 = vmatpush1.bf16.msra.mxu1 %v6514_v27  ;;  %v1350_v26 = vrot.slane %v1348_v23, 1  ;;  %v6597_v27 = vld [vmem:[%s9412_s2 + $0x464] ss:$16 sps:$4 sm:$0xff]  }
  0x5c   : > { %1199 = vmatprep.subr.bf16.mxu0 %v6519_v28  ;;  %1240 = vmatprep.subr.bf16.mxu1 %v6522_v29  ;;  %v6600_v28 = vld [vmem:[%s9412_s2 + $0x46c] ss:$16 sps:$4 sm:$0xff]   ;;  %v6675_v23 = vld [vmem:[%s9416_s6 + $0x4] ss:$16 sps:$4 sm:$0xff]  }
  0x5d   : > { %v1351_v29 = vor.u32 %v1350_v26, %v1346_v22  ;;  %v6676_v26 = vld [vmem:[%s9416_s6 + $0x8] ss:$16 sps:$4 sm:$0xff]  }
  0x5f   : > { %1200 = vmatpush1.bf16.msra.mxu0 %v6517_v32  ;;  %1241 = vmatpush1.bf16.msra.mxu1 %v6520_v33  ;;  %v6603_v32 = vld [vmem:[%s9412_s2 + $0x484] ss:$16 sps:$4 sm:$0xff]   ;;  %v6606_v33 = vld [vmem:[%s9412_s2 + $0x48c] ss:$16 sps:$4 sm:$0xff]  }
  0x60   : > { %1201 = vmatprep.subr.bf16.mxu0 %v6525_v34  ;;  %1242 = vmatprep.subr.bf16.mxu1 %v6528_v35  ;;  %v6601_v34 = vld [vmem:[%s9412_s2 + $0x480] ss:$16 sps:$4 sm:$0xff]   ;;  %v6604_v35 = vld [vmem:[%s9412_s2 + $0x488] ss:$16 sps:$4 sm:$0xff]  }
  0x63   : > { %1202 = vmatpush1.bf16.msra.mxu0 %v6523_v36  ;;  %1243 = vmatpush1.bf16.msra.mxu1 %v6526_v37  ;;  %v6609_v36 = vld [vmem:[%s9412_s2 + $0x4a4] ss:$16 sps:$4 sm:$0xff]   ;;  %v6612_v37 = vld [vmem:[%s9412_s2 + $0x4ac] ss:$16 sps:$4 sm:$0xff]  }
  0x64   : > { %1203 = vmatprep.subr.bf16.mxu0 %v6531_v38  ;;  %1244 = vmatprep.subr.bf16.mxu1 %v6534_v39  ;;  %v6607_v38 = vld [vmem:[%s9412_s2 + $0x4a0] ss:$16 sps:$4 sm:$0xff]   ;;  %v6610_v39 = vld [vmem:[%s9412_s2 + $0x4a8] ss:$16 sps:$4 sm:$0xff]  }
  0x67   : > { %1204 = vmatpush1.bf16.msra.mxu0 %v6529_v40  ;;  %1245 = vmatpush1.bf16.msra.mxu1 %v6532_v41  ;;  %v6615_v40 = vld [vmem:[%s9412_s2 + $0x4c4] ss:$16 sps:$4 sm:$0xff]   ;;  %v6618_v41 = vld [vmem:[%s9412_s2 + $0x4cc] ss:$16 sps:$4 sm:$0xff]  }
  0x68   : > { %1205 = vmatprep.subr.bf16.mxu0 %v6537_v42  ;;  %1246 = vmatprep.subr.bf16.mxu1 %v6540_v43  ;;  %v6613_v42 = vld [vmem:[%s9412_s2 + $0x4c0] ss:$16 sps:$4 sm:$0xff]   ;;  %v6616_v43 = vld [vmem:[%s9412_s2 + $0x4c8] ss:$16 sps:$4 sm:$0xff]  }
  0x6b   : > { %1206 = vmatpush1.bf16.msra.mxu0 %v6535_v44  ;;  %1247 = vmatpush1.bf16.msra.mxu1 %v6538_v45  ;;  %v6621_v44 = vld [vmem:[%s9412_s2 + $0x4e4] ss:$16 sps:$4 sm:$0xff]   ;;  %v6624_v45 = vld [vmem:[%s9412_s2 + $0x4ec] ss:$16 sps:$4 sm:$0xff]  }
  0x6c   : > { %1207 = vmatprep.subr.bf16.mxu0 %v6543_v46  ;;  %1248 = vmatprep.subr.bf16.mxu1 %v6546_v47  ;;  %v6619_v46 = vld [vmem:[%s9412_s2 + $0x4e0] ss:$16 sps:$4 sm:$0xff]   ;;  %v6622_v47 = vld [vmem:[%s9412_s2 + $0x4e8] ss:$16 sps:$4 sm:$0xff]  }
  0x6f   : > { %1208 = vmatpush1.bf16.msra.mxu0 %v6541_v48  ;;  %1249 = vmatpush1.bf16.msra.mxu1 %v6544_v49  ;;  %v6627_v48 = vld [vmem:[%s9412_s2 + $0x504] ss:$16 sps:$4 sm:$0xff]   ;;  %v6630_v49 = vld [vmem:[%s9412_s2 + $0x50c] ss:$16 sps:$4 sm:$0xff]  }
  0x70   : > { %1209 = vmatprep.subr.bf16.mxu0 %v6549_v50  ;;  %1250 = vmatprep.subr.bf16.mxu1 %v6552_v51  ;;  %v6625_v50 = vld [vmem:[%s9412_s2 + $0x500] ss:$16 sps:$4 sm:$0xff]   ;;  %v6628_v51 = vld [vmem:[%s9412_s2 + $0x508] ss:$16 sps:$4 sm:$0xff]  }
  0x73   : > { %1210 = vmatpush1.bf16.msra.mxu0 %v6547_v53  ;;  %1251 = vmatpush1.bf16.msra.mxu1 %v6550_v54  ;;  %v6633_v53 = vld [vmem:[%s9412_s2 + $0x524] ss:$16 sps:$4 sm:$0xff]   ;;  %v6636_v54 = vld [vmem:[%s9412_s2 + $0x52c] ss:$16 sps:$4 sm:$0xff]  }
  0x74   : > { %1211 = vmatprep.subr.bf16.mxu0 %v6555_v55  ;;  %1252 = vmatprep.subr.bf16.mxu1 %v6558_v56  ;;  %v6631_v55 = vld [vmem:[%s9412_s2 + $0x520] ss:$16 sps:$4 sm:$0xff]   ;;  %v6634_v56 = vld [vmem:[%s9412_s2 + $0x528] ss:$16 sps:$4 sm:$0xff]  }
  0x77   : > { %1212 = vmatpush1.bf16.msra.mxu0 %v6553_v57  ;;  %1253 = vmatpush1.bf16.msra.mxu1 %v6556_v58  ;;  %v6639_v57 = vld [vmem:[%s9412_s2 + $0x544] ss:$16 sps:$4 sm:$0xff]   ;;  %v6642_v58 = vld [vmem:[%s9412_s2 + $0x54c] ss:$16 sps:$4 sm:$0xff]  }
  0x78   : > { %1213 = vmatprep.subr.bf16.mxu0 %v6561_v59  ;;  %1254 = vmatprep.subr.bf16.mxu1 %v6564_v60  ;;  %v6637_v59 = vld [vmem:[%s9412_s2 + $0x540] ss:$16 sps:$4 sm:$0xff]   ;;  %v6640_v60 = vld [vmem:[%s9412_s2 + $0x548] ss:$16 sps:$4 sm:$0xff]  }
  0x7b   : > { %1214 = vmatpush1.bf16.msra.mxu0 %v6559_v61  ;;  %1255 = vmatpush1.bf16.msra.mxu1 %v6562_v62  ;;  %v6645_v61 = vld [vmem:[%s9412_s2 + $0x564] ss:$16 sps:$4 sm:$0xff]   ;;  %v6648_v62 = vld [vmem:[%s9412_s2 + $0x56c] ss:$16 sps:$4 sm:$0xff]  }
  0x7c   : > { %1215 = vmatprep.subr.bf16.mxu0 %v6567_v63  ;;  %1256 = vmatprep.subr.bf16.mxu1 %v6570_v0  ;;  %v6643_v63 = vld [vmem:[%s9412_s2 + $0x560] ss:$16 sps:$4 sm:$0xff]   ;;  %v6646_v0 = vld [vmem:[%s9412_s2 + $0x568] ss:$16 sps:$4 sm:$0xff]  }
  0x7f   : > { %1216 = vmatpush1.bf16.msra.mxu0 %v6565_v1  ;;  %1257 = vmatpush1.bf16.msra.mxu1 %v6568_v2  ;;  %v6651_v1 = vld [vmem:[%s9412_s2 + $0x584] ss:$16 sps:$4 sm:$0xff]   ;;  %v6654_v2 = vld [vmem:[%s9412_s2 + $0x58c] ss:$16 sps:$4 sm:$0xff]  }
  0x80   : > { %1217 = vmatprep.subr.bf16.mxu0 %v6573_v3  ;;  %1258 = vmatprep.subr.bf16.mxu1 %v6576_v4  ;;  %v6649_v3 = vld [vmem:[%s9412_s2 + $0x580] ss:$16 sps:$4 sm:$0xff]   ;;  %v6652_v4 = vld [vmem:[%s9412_s2 + $0x588] ss:$16 sps:$4 sm:$0xff]  }
  0x83   : > { %1218 = vmatpush1.bf16.msra.mxu0 %v6571_v6  ;;  %1259 = vmatpush1.bf16.msra.mxu1 %v6574_v7  ;;  %v1269_v6 = vld [vmem:[%s7689_s26] sm:$0x1e] }
  0x84   : > { %1674 = vmatprep.subr.bf16.mxu0 %v6579_v9  ;;  %1715 = vmatprep.subr.bf16.mxu1 %v6582_v10  ;;  %v6657_v7 = vld [vmem:[%s9412_s2 + $0x5a4] ss:$16 sps:$4 sm:$0xff]   ;;  %v6655_v9 = vld [vmem:[%s9412_s2 + $0x5a0] ss:$16 sps:$4 sm:$0xff]   ;;  %v6658_v10 = vld [vmem:[%s9412_s2 + $0x5a8] ss:$16 sps:$4 sm:$0xff]  }
  0x86   : > { %1220 = vmatmul.mubr.bf16.vlgmr.msra.gmra.mrb[4].mxu0 %v334_v11  ;;  %1261 = vmatmul.mubr.bf16.vlgmr.msra.gmra.mrb[4].mxu1 %v334_v11  ;;  %v6663_v11 = vld [vmem:[%s9412_s2 + $0x5c4] ss:$16 sps:$4 sm:$0xff]  }
  0x87   : > { %1675 = vmatpush1.bf16.msra.mxu0 %v6577_v12  ;;  %1716 = vmatpush1.bf16.msra.mxu1 %v6580_v13  ;;  %v6666_v12 = vld [vmem:[%s9412_s2 + $0x5cc] ss:$16 sps:$4 sm:$0xff]   ;;  %v1271_v13 = vpack.c.bf16 %v1269_v6, %v1269_v6 }
  0x88   : > { %1676 = vmatprep.subr.bf16.mxu0 %v6585_v14  ;;  %1717 = vmatprep.subr.bf16.mxu1 %v6588_v15  ;;  %v6661_v14 = vld [vmem:[%s9412_s2 + $0x5c0] ss:$16 sps:$4 sm:$0xff]   ;;  %v6664_v15 = vld [vmem:[%s9412_s2 + $0x5c8] ss:$16 sps:$4 sm:$0xff]   ;;  %v6744_v6 = vld [vmem:[%s9416_s6 + $0x16c] ss:$16 sps:$4 sm:$0xff]  }
  0x89   : > { %1706 = vmatprep.mubr.bf16.mxu0 %v1351_v29  ;;  %1747 = vmatprep.mubr.bf16.mxu1 %v1351_v29  ;;  %v6684_v29 = vld [vmem:[%s9416_s6 + $0x2c] ss:$16 sps:$4 sm:$0xff]  }
  0x8b   : > { %1677 = vmatpush1.bf16.msra.mxu0 %v6583_v17  ;;  %1718 = vmatpush1.bf16.msra.mxu1 %v6586_v18  ;;  %v6672_v17 = vld [vmem:[%s9412_s2 + $0x5ec] ss:$16 sps:$4 sm:$0xff]   ;;  %v1341_v18 = vshll.u32 %v1271_v13, 16 }
  0x8c   : > { %1678 = vmatprep.subr.bf16.mxu0 %v6591_v20  ;;  %1719 = vmatprep.subr.bf16.mxu1 %v6594_v21  ;;  %v6670_v20 = vld [vmem:[%s9412_s2 + $0x5e8] ss:$16 sps:$4 sm:$0xff]   ;;  %v1339_v21 = vshrl.u32 %v1271_v13, 16  ;;  %v6753_v13 = vld [vmem:[%s9416_s6 + $0x1a4] ss:$16 sps:$4 sm:$0xff]  }
  0x8d   : > { %v1343_v22 = vrot.slane %v1341_v18, 1  ;;  %v6762_v18 = vld [vmem:[%s9416_s6 + $0x1cc] ss:$16 sps:$4 sm:$0xff]  }
  0x8f   : > { %1679 = vmatpush1.bf16.msra.mxu0 %v6589_v24  ;;  %1720 = vmatpush1.bf16.msra.mxu1 %v6592_v25  ;;  %v6678_v24 = vld [vmem:[%s9416_s6 + $0xc] ss:$16 sps:$4 sm:$0xff]   ;;  %v6673_v25 = vld [vmem:[%s9416_s6] ss:$16 sps:$4 sm:$0xff]  }
  0x90   : > { %1680 = vmatprep.subr.bf16.mxu0 %v6597_v27  ;;  %1721 = vmatprep.subr.bf16.mxu1 %v6600_v28  ;;  %v1344_v27 = vor.u32 %v1343_v22, %v1339_v21  ;;  %v6681_v28 = vld [vmem:[%s9416_s6 + $0x24] ss:$16 sps:$4 sm:$0xff]   ;;  %v6768_v22 = vld [vmem:[%s9416_s6 + $0x1ec] ss:$16 sps:$4 sm:$0xff]  }
  0x91   : > { %v6765_v21 = vld [vmem:[%s9416_s6 + $0x1e4] ss:$16 sps:$4 sm:$0xff]  }
  0x93   : > { %1681 = vmatpush1.bf16.msra.mxu0 %v6595_v30  ;;  %1722 = vmatpush1.bf16.msra.mxu1 %v6598_v31  ;;  %v6679_v30 = vld [vmem:[%s9416_s6 + $0x20] ss:$16 sps:$4 sm:$0xff]   ;;  %v6682_v31 = vld [vmem:[%s9416_s6 + $0x28] ss:$16 sps:$4 sm:$0xff]  }
  0x94   : > { %1682 = vmatprep.subr.bf16.mxu0 %v6603_v32  ;;  %1723 = vmatprep.subr.bf16.mxu1 %v6606_v33  ;;  %v6687_v32 = vld [vmem:[%s9416_s6 + $0x44] ss:$16 sps:$4 sm:$0xff]   ;;  %v6690_v33 = vld [vmem:[%s9416_s6 + $0x4c] ss:$16 sps:$4 sm:$0xff]  }
  0x97   : > { %1683 = vmatpush1.bf16.msra.mxu0 %v6601_v34  ;;  %1724 = vmatpush1.bf16.msra.mxu1 %v6604_v35  ;;  %v6685_v34 = vld [vmem:[%s9416_s6 + $0x40] ss:$16 sps:$4 sm:$0xff]   ;;  %v6688_v35 = vld [vmem:[%s9416_s6 + $0x48] ss:$16 sps:$4 sm:$0xff]  }
  0x98   : > { %1684 = vmatprep.subr.bf16.mxu0 %v6609_v36  ;;  %1725 = vmatprep.subr.bf16.mxu1 %v6612_v37  ;;  %v6693_v36 = vld [vmem:[%s9416_s6 + $0x64] ss:$16 sps:$4 sm:$0xff]   ;;  %v6696_v37 = vld [vmem:[%s9416_s6 + $0x6c] ss:$16 sps:$4 sm:$0xff]  }
  0x9b   : > { %1685 = vmatpush1.bf16.msra.mxu0 %v6607_v38  ;;  %1726 = vmatpush1.bf16.msra.mxu1 %v6610_v39  ;;  %v6691_v38 = vld [vmem:[%s9416_s6 + $0x60] ss:$16 sps:$4 sm:$0xff]   ;;  %v6699_v39 = vld [vmem:[%s9416_s6 + $0x84] ss:$16 sps:$4 sm:$0xff]  }
  0x9c   : > { %1686 = vmatprep.subr.bf16.mxu0 %v6615_v40  ;;  %1727 = vmatprep.subr.bf16.mxu1 %v6618_v41  ;;  %v6702_v40 = vld [vmem:[%s9416_s6 + $0x8c] ss:$16 sps:$4 sm:$0xff]   ;;  %v6697_v41 = vld [vmem:[%s9416_s6 + $0x80] ss:$16 sps:$4 sm:$0xff]  }
  0x9f   : > { %1687 = vmatpush1.bf16.msra.mxu0 %v6613_v42  ;;  %1728 = vmatpush1.bf16.msra.mxu1 %v6616_v43  ;;  %v6700_v42 = vld [vmem:[%s9416_s6 + $0x88] ss:$16 sps:$4 sm:$0xff]   ;;  %v6705_v43 = vld [vmem:[%s9416_s6 + $0xa4] ss:$16 sps:$4 sm:$0xff]  }
  0xa0   : > { %1688 = vmatprep.subr.bf16.mxu0 %v6621_v44  ;;  %1729 = vmatprep.subr.bf16.mxu1 %v6624_v45  ;;  %v6708_v44 = vld [vmem:[%s9416_s6 + $0xac] ss:$16 sps:$4 sm:$0xff]   ;;  %v6703_v45 = vld [vmem:[%s9416_s6 + $0xa0] ss:$16 sps:$4 sm:$0xff]  }
  0xa3   : > { %1689 = vmatpush1.bf16.msra.mxu0 %v6619_v46  ;;  %1730 = vmatpush1.bf16.msra.mxu1 %v6622_v47  ;;  %v6706_v46 = vld [vmem:[%s9416_s6 + $0xa8] ss:$16 sps:$4 sm:$0xff]   ;;  %v6711_v47 = vld [vmem:[%s9416_s6 + $0xc4] ss:$16 sps:$4 sm:$0xff]  }
  0xa4   : > { %1690 = vmatprep.subr.bf16.mxu0 %v6627_v48  ;;  %1731 = vmatprep.subr.bf16.mxu1 %v6630_v49  ;;  %v6714_v48 = vld [vmem:[%s9416_s6 + $0xcc] ss:$16 sps:$4 sm:$0xff]   ;;  %v6709_v49 = vld [vmem:[%s9416_s6 + $0xc0] ss:$16 sps:$4 sm:$0xff]  }
  0xa7   : > { %1691 = vmatpush1.bf16.msra.mxu0 %v6625_v50  ;;  %1732 = vmatpush1.bf16.msra.mxu1 %v6628_v51  ;;  %v6712_v50 = vld [vmem:[%s9416_s6 + $0xc8] ss:$16 sps:$4 sm:$0xff]   ;;  %v6717_v51 = vld [vmem:[%s9416_s6 + $0xe4] ss:$16 sps:$4 sm:$0xff]  }
  0xa8   : > { %1692 = vmatprep.subr.bf16.mxu0 %v6633_v53  ;;  %1733 = vmatprep.subr.bf16.mxu1 %v6636_v54  ;;  %v6720_v53 = vld [vmem:[%s9416_s6 + $0xec] ss:$16 sps:$4 sm:$0xff]   ;;  %v6715_v54 = vld [vmem:[%s9416_s6 + $0xe0] ss:$16 sps:$4 sm:$0xff]  }
  0xab   : > { %1693 = vmatpush1.bf16.msra.mxu0 %v6631_v55  ;;  %1734 = vmatpush1.bf16.msra.mxu1 %v6634_v56  ;;  %v6718_v55 = vld [vmem:[%s9416_s6 + $0xe8] ss:$16 sps:$4 sm:$0xff]   ;;  %v6723_v56 = vld [vmem:[%s9416_s6 + $0x104] ss:$16 sps:$4 sm:$0xff]  }
  0xac   : > { %1694 = vmatprep.subr.bf16.mxu0 %v6639_v57  ;;  %1735 = vmatprep.subr.bf16.mxu1 %v6642_v58  ;;  %v6726_v57 = vld [vmem:[%s9416_s6 + $0x10c] ss:$16 sps:$4 sm:$0xff]   ;;  %v6721_v58 = vld [vmem:[%s9416_s6 + $0x100] ss:$16 sps:$4 sm:$0xff]  }
  0xaf   : > { %1695 = vmatpush1.bf16.msra.mxu0 %v6637_v59  ;;  %1736 = vmatpush1.bf16.msra.mxu1 %v6640_v60  ;;  %v6724_v59 = vld [vmem:[%s9416_s6 + $0x108] ss:$16 sps:$4 sm:$0xff]   ;;  %v6729_v60 = vld [vmem:[%s9416_s6 + $0x124] ss:$16 sps:$4 sm:$0xff]  }
  0xb0   : > { %1696 = vmatprep.subr.bf16.mxu0 %v6645_v61  ;;  %1737 = vmatprep.subr.bf16.mxu1 %v6648_v62  ;;  %v6732_v61 = vld [vmem:[%s9416_s6 + $0x12c] ss:$16 sps:$4 sm:$0xff]   ;;  %v6727_v62 = vld [vmem:[%s9416_s6 + $0x120] ss:$16 sps:$4 sm:$0xff]  }
  0xb3   : > { %1697 = vmatpush1.bf16.msra.mxu0 %v6643_v63  ;;  %1738 = vmatpush1.bf16.msra.mxu1 %v6646_v0  ;;  %v6730_v63 = vld [vmem:[%s9416_s6 + $0x128] ss:$16 sps:$4 sm:$0xff]   ;;  %v6735_v0 = vld [vmem:[%s9416_s6 + $0x144] ss:$16 sps:$4 sm:$0xff]  }
  0xb4   : > { %1698 = vmatprep.subr.bf16.mxu0 %v6651_v1  ;;  %1739 = vmatprep.subr.bf16.mxu1 %v6654_v2  ;;  %v6738_v1 = vld [vmem:[%s9416_s6 + $0x14c] ss:$16 sps:$4 sm:$0xff]   ;;  %v6733_v2 = vld [vmem:[%s9416_s6 + $0x140] ss:$16 sps:$4 sm:$0xff]  }
  0xb7   : > { %1699 = vmatpush1.bf16.msra.mxu0 %v6649_v3  ;;  %1740 = vmatpush1.bf16.msra.mxu1 %v6652_v4  ;;  %v6736_v3 = vld [vmem:[%s9416_s6 + $0x148] ss:$16 sps:$4 sm:$0xff]   ;;  %v6741_v4 = vld [vmem:[%s9416_s6 + $0x164] ss:$16 sps:$4 sm:$0xff]  }
  0xb8   : > { %1700 = vmatprep.subr.bf16.mxu0 %v6657_v7  ;;  %1741 = vmatprep.subr.bf16.mxu1 %v6660_v8  ;;  %v6739_v7 = vld [vmem:[%s9416_s6 + $0x160] ss:$16 sps:$4 sm:$0xff]   ;;  %v6742_v8 = vld [vmem:[%s9416_s6 + $0x168] ss:$16 sps:$4 sm:$0xff]  }
  0xbb   : > { %1701 = vmatpush1.bf16.msra.mxu0 %v6655_v9  ;;  %1742 = vmatpush1.bf16.msra.mxu1 %v6658_v10  ;;  %v6747_v9 = vld [vmem:[%s9416_s6 + $0x184] ss:$16 sps:$4 sm:$0xff]   ;;  %v6750_v10 = vld [vmem:[%s9416_s6 + $0x18c] ss:$16 sps:$4 sm:$0xff]  }
  0xbc   : > { %1702 = vmatprep.subr.bf16.mxu0 %v6663_v11  ;;  %1743 = vmatprep.subr.bf16.mxu1 %v6666_v12  ;;  %v6745_v11 = vld [vmem:[%s9416_s6 + $0x180] ss:$16 sps:$4 sm:$0xff]   ;;  %v6748_v12 = vld [vmem:[%s9416_s6 + $0x188] ss:$16 sps:$4 sm:$0xff]  }
  0xbf   : > { %1703 = vmatpush1.bf16.msra.mxu0 %v6661_v14  ;;  %1744 = vmatpush1.bf16.msra.mxu1 %v6664_v15  ;;  %v6756_v14 = vld [vmem:[%s9416_s6 + $0x1ac] ss:$16 sps:$4 sm:$0xff]   ;;  %v6751_v15 = vld [vmem:[%s9416_s6 + $0x1a0] ss:$16 sps:$4 sm:$0xff]  }
  0xc0   : > { %1704 = vmatprep.subr.bf16.mxu0 %v6669_v16  ;;  %1745 = vmatprep.subr.bf16.mxu1 %v6672_v17  ;;  %v6754_v16 = vld [vmem:[%s9416_s6 + $0x1a8] ss:$16 sps:$4 sm:$0xff]   ;;  %v6759_v17 = vld [vmem:[%s9416_s6 + $0x1c4] ss:$16 sps:$4 sm:$0xff]  }
  0xc3   : > { %1705 = vmatpush1.bf16.msra.mxu0 %v6667_v19  ;;  %1746 = vmatpush1.bf16.msra.mxu1 %v6670_v20  ;;  %v6757_v19 = vld [vmem:[%s9416_s6 + $0x1c0] ss:$16 sps:$4 sm:$0xff]   ;;  %v6760_v20 = vld [vmem:[%s9416_s6 + $0x1c8] ss:$16 sps:$4 sm:$0xff]  }
  0xc4   : > { %2196 = vmatprep.subr.bf16.mxu0 %v6675_v23  ;;  %2237 = vmatprep.subr.bf16.mxu1 %v6678_v24  ;;  %v6763_v23 = vld [vmem:[%s9416_s6 + $0x1e0] ss:$16 sps:$4 sm:$0xff]   ;;  %v6766_v24 = vld [vmem:[%s9416_s6 + $0x1e8] ss:$16 sps:$4 sm:$0xff]  }
  0xc6   : > { %1707 = vmatmul.mubr.bf16.vlgmr.msra.gmra.mrb[8].mxu0 %v1344_v27  ;;  %1748 = vmatmul.mubr.bf16.vlgmr.msra.gmra.mrb[8].mxu1 %v1344_v27  ;;  %v6769_v27 = vld [vmem:[%s9414_s4 + $0x400] ss:$16 sps:$4 sm:$0xff]  }
  0xc7   : > { %2197 = vmatpush1.bf16.msra.mxu0 %v6673_v25  ;;  %2238 = vmatpush1.bf16.msra.mxu1 %v6676_v26  ;;  %v6771_v25 = vld [vmem:[%s9414_s4 + $0x404] ss:$16 sps:$4 sm:$0xff]   ;;  %v6774_v26 = vld [vmem:[%s9414_s4 + $0x40c] ss:$16 sps:$4 sm:$0xff]  }
  0xc8   : > { %2198 = vmatprep.subr.bf16.mxu0 %v6681_v28  ;;  %2239 = vmatprep.subr.bf16.mxu1 %v6684_v29  ;;  %v6772_v28 = vld [vmem:[%s9414_s4 + $0x408] ss:$16 sps:$4 sm:$0xff]   ;;  %v6777_v29 = vld [vmem:[%s9414_s4 + $0x424] ss:$16 sps:$4 sm:$0xff]  }
  0xc9   : > { %2228 = vmatprep.mubr.bf16.mxu0 %v7567_v52  ;;  %2269 = vmatprep.mubr.bf16.mxu1 %v7567_v52  ;;  %v6694_v52 = vld [vmem:[%s9416_s6 + $0x68] ss:$16 sps:$4 sm:$0xff]  }
  0xcb   : > { %2199 = vmatpush1.bf16.msra.mxu0 %v6679_v30  ;;  %2240 = vmatpush1.bf16.msra.mxu1 %v6682_v31  ;;  %v6780_v30 = vld [vmem:[%s9414_s4 + $0x42c] ss:$16 sps:$4 sm:$0xff]   ;;  %v6775_v31 = vld [vmem:[%s9414_s4 + $0x420] ss:$16 sps:$4 sm:$0xff]  }
  0xcc   : > { %2200 = vmatprep.subr.bf16.mxu0 %v6687_v32  ;;  %2241 = vmatprep.subr.bf16.mxu1 %v6690_v33  ;;  %v6778_v32 = vld [vmem:[%s9414_s4 + $0x428] ss:$16 sps:$4 sm:$0xff]   ;;  %v6783_v33 = vld [vmem:[%s9414_s4 + $0x444] ss:$16 sps:$4 sm:$0xff]  }
  0xcf   : > { %2201 = vmatpush1.bf16.msra.mxu0 %v6685_v34  ;;  %2242 = vmatpush1.bf16.msra.mxu1 %v6688_v35  ;;  %v6786_v34 = vld [vmem:[%s9414_s4 + $0x44c] ss:$16 sps:$4 sm:$0xff]   ;;  %v6781_v35 = vld [vmem:[%s9414_s4 + $0x440] ss:$16 sps:$4 sm:$0xff]  }
  0xd0   : > { %2202 = vmatprep.subr.bf16.mxu0 %v6693_v36  ;;  %2243 = vmatprep.subr.bf16.mxu1 %v6696_v37  ;;  %v6789_v36 = vld [vmem:[%s9414_s4 + $0x464] ss:$16 sps:$4 sm:$0xff]   ;;  %v6792_v37 = vld [vmem:[%s9414_s4 + $0x46c] ss:$16 sps:$4 sm:$0xff]  }
  0xd3   : > { %2203 = vmatpush1.bf16.msra.mxu0 %v6691_v38  ;;  %2244 = vmatpush1.bf16.msra.mxu1 %v6694_v52  ;;  %v6787_v38 = vld [vmem:[%s9414_s4 + $0x460] ss:$16 sps:$4 sm:$0xff]   ;;  %v6790_v52 = vld [vmem:[%s9414_s4 + $0x468] ss:$16 sps:$4 sm:$0xff]  }
  0xd4   : > { %2204 = vmatprep.subr.bf16.mxu0 %v6699_v39  ;;  %2245 = vmatprep.subr.bf16.mxu1 %v6702_v40  ;;  %v6795_v39 = vld [vmem:[%s9414_s4 + $0x484] ss:$16 sps:$4 sm:$0xff]   ;;  %v6798_v40 = vld [vmem:[%s9414_s4 + $0x48c] ss:$16 sps:$4 sm:$0xff]  }
  0xd7   : > { %2205 = vmatpush1.bf16.msra.mxu0 %v6697_v41  ;;  %2246 = vmatpush1.bf16.msra.mxu1 %v6700_v42  ;;  %v6793_v41 = vld [vmem:[%s9414_s4 + $0x480] ss:$16 sps:$4 sm:$0xff]   ;;  %v6796_v42 = vld [vmem:[%s9414_s4 + $0x488] ss:$16 sps:$4 sm:$0xff]  }
  0xd8   : > { %2206 = vmatprep.subr.bf16.mxu0 %v6705_v43  ;;  %2247 = vmatprep.subr.bf16.mxu1 %v6708_v44  ;;  %v6801_v43 = vld [vmem:[%s9414_s4 + $0x4a4] ss:$16 sps:$4 sm:$0xff]   ;;  %v6804_v44 = vld [vmem:[%s9414_s4 + $0x4ac] ss:$16 sps:$4 sm:$0xff]  }
  0xdb   : > { %2207 = vmatpush1.bf16.msra.mxu0 %v6703_v45  ;;  %2248 = vmatpush1.bf16.msra.mxu1 %v6706_v46  ;;  %v6799_v45 = vld [vmem:[%s9414_s4 + $0x4a0] ss:$16 sps:$4 sm:$0xff]   ;;  %v6802_v46 = vld [vmem:[%s9414_s4 + $0x4a8] ss:$16 sps:$4 sm:$0xff]  }
  0xdc   : > { %2208 = vmatprep.subr.bf16.mxu0 %v6711_v47  ;;  %2249 = vmatprep.subr.bf16.mxu1 %v6714_v48  ;;  %v6807_v47 = vld [vmem:[%s9414_s4 + $0x4c4] ss:$16 sps:$4 sm:$0xff]   ;;  %v6810_v48 = vld [vmem:[%s9414_s4 + $0x4cc] ss:$16 sps:$4 sm:$0xff]  }
  0xdf   : > { %2209 = vmatpush1.bf16.msra.mxu0 %v6709_v49  ;;  %2250 = vmatpush1.bf16.msra.mxu1 %v6712_v50 }
  0xe0   : > { %2210 = vmatprep.subr.bf16.mxu0 %v6717_v51  ;;  %2251 = vmatprep.subr.bf16.mxu1 %v6720_v53 }
  0xe3   : > { %2211 = vmatpush1.bf16.msra.mxu0 %v6715_v54  ;;  %2252 = vmatpush1.bf16.msra.mxu1 %v6718_v55  ;;  %v6805_v54 = vld [vmem:[%s9414_s4 + $0x4c0] ss:$16 sps:$4 sm:$0xff]   ;;  %v6808_v55 = vld [vmem:[%s9414_s4 + $0x4c8] ss:$16 sps:$4 sm:$0xff]  }
  0xe4   : > { %2212 = vmatprep.subr.bf16.mxu0 %v6723_v56  ;;  %2253 = vmatprep.subr.bf16.mxu1 %v6726_v57 }
  0xe7   : > { %2213 = vmatpush1.bf16.msra.mxu0 %v6721_v58  ;;  %2254 = vmatpush1.bf16.msra.mxu1 %v6724_v59  ;;  %v6813_v58 = vld [vmem:[%s9414_s4 + $0x4e4] ss:$16 sps:$4 sm:$0xff]   ;;  %v6816_v59 = vld [vmem:[%s9414_s4 + $0x4ec] ss:$16 sps:$4 sm:$0xff]  }
  0xe8   : > { %2214 = vmatprep.subr.bf16.mxu0 %v6729_v60  ;;  %2255 = vmatprep.subr.bf16.mxu1 %v6732_v61 }
  0xeb   : > { %2215 = vmatpush1.bf16.msra.mxu0 %v6727_v62  ;;  %2256 = vmatpush1.bf16.msra.mxu1 %v6730_v63  ;;  %v6811_v62 = vld [vmem:[%s9414_s4 + $0x4e0] ss:$16 sps:$4 sm:$0xff]   ;;  %v6814_v63 = vld [vmem:[%s9414_s4 + $0x4e8] ss:$16 sps:$4 sm:$0xff]  }
  0xec   : > { %2216 = vmatprep.subr.bf16.mxu0 %v6735_v0  ;;  %2257 = vmatprep.subr.bf16.mxu1 %v6738_v1  ;;  %v6819_v0 = vld [vmem:[%s9414_s4 + $0x504] ss:$16 sps:$4 sm:$0xff]   ;;  %v6822_v1 = vld [vmem:[%s9414_s4 + $0x50c] ss:$16 sps:$4 sm:$0xff]  }
  0xef   : > { %2217 = vmatpush1.bf16.msra.mxu0 %v6733_v2  ;;  %2258 = vmatpush1.bf16.msra.mxu1 %v6736_v3  ;;  %v7353_v2 = vmov 0.0   ;;  %v6817_v3 = vld [vmem:[%s9414_s4 + $0x500] ss:$16 sps:$4 sm:$0xff]  }
  0xf0   : > { %2218 = vmatprep.subr.bf16.mxu0 %v6741_v4  ;;  %2259 = vmatprep.subr.bf16.mxu1 %v6744_v6  ;;  %2278 = vst [vmem:[#allocation2] sm:$0x3f] %v7353_v2  ;;  %2279 = vst [vmem:[#allocation2 + $0x8] sm:$0x3f] %v7353_v2  ;;  %v6820_v4 = vld [vmem:[%s9414_s4 + $0x508] ss:$16 sps:$4 sm:$0xff]  }
  0xf1   : > { %2280 = vst [vmem:[#allocation2 + $0x10] sm:$0x3f] %v7353_v2  ;;  %2281 = vst [vmem:[#allocation2 + $0x18] sm:$0x3f] %v7353_v2  ;;  %v6825_v6 = vld [vmem:[%s9414_s4 + $0x524] ss:$16 sps:$4 sm:$0xff]  }
  0xf3   : > { %2219 = vmatpush1.bf16.msra.mxu0 %v6739_v7  ;;  %2260 = vmatpush1.bf16.msra.mxu1 %v6742_v8  ;;  %v6828_v7 = vld [vmem:[%s9414_s4 + $0x52c] ss:$16 sps:$4 sm:$0xff]   ;;  %v6823_v8 = vld [vmem:[%s9414_s4 + $0x520] ss:$16 sps:$4 sm:$0xff]  }
  0xf4   : > { %2220 = vmatprep.subr.bf16.mxu0 %v6747_v9  ;;  %2261 = vmatprep.subr.bf16.mxu1 %v6750_v10  ;;  %v6826_v9 = vld [vmem:[%s9414_s4 + $0x528] ss:$16 sps:$4 sm:$0xff]   ;;  %v6831_v10 = vld [vmem:[%s9414_s4 + $0x544] ss:$16 sps:$4 sm:$0xff]  }
  0xf7   : > { %2221 = vmatpush1.bf16.msra.mxu0 %v6745_v11  ;;  %2262 = vmatpush1.bf16.msra.mxu1 %v6748_v12  ;;  %v6834_v11 = vld [vmem:[%s9414_s4 + $0x54c] ss:$16 sps:$4 sm:$0xff]   ;;  %v6829_v12 = vld [vmem:[%s9414_s4 + $0x540] ss:$16 sps:$4 sm:$0xff]  }
  0xf8   : > { %2222 = vmatprep.subr.bf16.mxu0 %v6753_v13  ;;  %2263 = vmatprep.subr.bf16.mxu1 %v6756_v14  ;;  %v6832_v13 = vld [vmem:[%s9414_s4 + $0x548] ss:$16 sps:$4 sm:$0xff]   ;;  %v6837_v14 = vld [vmem:[%s9414_s4 + $0x564] ss:$16 sps:$4 sm:$0xff]  }
  0xfb   : > { %2223 = vmatpush1.bf16.msra.mxu0 %v6751_v15  ;;  %2264 = vmatpush1.bf16.msra.mxu1 %v6754_v16  ;;  %v6840_v15 = vld [vmem:[%s9414_s4 + $0x56c] ss:$16 sps:$4 sm:$0xff]   ;;  %v6835_v16 = vld [vmem:[%s9414_s4 + $0x560] ss:$16 sps:$4 sm:$0xff]  }
  0xfc   : > { %2224 = vmatprep.subr.bf16.mxu0 %v6759_v17  ;;  %2265 = vmatprep.subr.bf16.mxu1 %v6762_v18  ;;  %v6838_v17 = vld [vmem:[%s9414_s4 + $0x568] ss:$16 sps:$4 sm:$0xff]   ;;  %v6843_v18 = vld [vmem:[%s9414_s4 + $0x584] ss:$16 sps:$4 sm:$0xff]  }
  0xff   : > { %2225 = vmatpush1.bf16.msra.mxu0 %v6757_v19  ;;  %2266 = vmatpush1.bf16.msra.mxu1 %v6760_v20  ;;  %v6846_v19 = vld [vmem:[%s9414_s4 + $0x58c] ss:$16 sps:$4 sm:$0xff]   ;;  %v6841_v20 = vld [vmem:[%s9414_s4 + $0x580] ss:$16 sps:$4 sm:$0xff]  }
 0x100   : > { %2226 = vmatprep.subr.bf16.mxu0 %v6765_v21  ;;  %2267 = vmatprep.subr.bf16.mxu1 %v6768_v22  ;;  %v6844_v21 = vld [vmem:[%s9414_s4 + $0x588] ss:$16 sps:$4 sm:$0xff]   ;;  %v6849_v22 = vld [vmem:[%s9414_s4 + $0x5a4] ss:$16 sps:$4 sm:$0xff]  }
 0x103   : > { %2227 = vmatpush1.bf16.msra.mxu0 %v6763_v23  ;;  %2268 = vmatpush1.bf16.msra.mxu1 %v6766_v24  ;;  %v6852_v23 = vld [vmem:[%s9414_s4 + $0x5ac] ss:$16 sps:$4 sm:$0xff]   ;;  %v6847_v24 = vld [vmem:[%s9414_s4 + $0x5a0] ss:$16 sps:$4 sm:$0xff]  }
 0x104   : > { %3243 = vmatprep.subr.bf16.mxu0 %v6771_v25  ;;  %3325 = vmatprep.subr.bf16.mxu1 %v6774_v26  ;;  %v6850_v25 = vld [vmem:[%s9414_s4 + $0x5a8] ss:$16 sps:$4 sm:$0xff]   ;;  %v6855_v26 = vld [vmem:[%s9414_s4 + $0x5c4] ss:$16 sps:$4 sm:$0xff]  }
 0x106   : > { %2229 = vmatmul.mubr.bf16.vlgmr.msra.gmra.mrb[12].mxu0 %v7619_v5  ;;  %2270 = vmatmul.mubr.bf16.vlgmr.msra.gmra.mrb[12].mxu1 %v7619_v5  ;;  %v6784_v5 = vld [vmem:[%s9414_s4 + $0x448] ss:$16 sps:$4 sm:$0xff]  }
 0x107   : > { %3244 = vmatpush1.bf16.msra.mxu0 %v6769_v27  ;;  %3326 = vmatpush1.bf16.msra.mxu1 %v6772_v28  ;;  %v6858_v27 = vld [vmem:[%s9414_s4 + $0x5cc] ss:$16 sps:$4 sm:$0xff]   ;;  %v6853_v28 = vld [vmem:[%s9414_s4 + $0x5c0] ss:$16 sps:$4 sm:$0xff]  }
 0x108   : > { %3245 = vmatprep.subr.bf16.mxu0 %v6777_v29  ;;  %3327 = vmatprep.subr.bf16.mxu1 %v6780_v30  ;;  %v6856_v29 = vld [vmem:[%s9414_s4 + $0x5c8] ss:$16 sps:$4 sm:$0xff]   ;;  %v6861_v30 = vld [vmem:[%s9414_s4 + $0x5e4] ss:$16 sps:$4 sm:$0xff]  }
 0x10b   : > { %3246 = vmatpush1.bf16.msra.mxu0 %v6775_v31  ;;  %3328 = vmatpush1.bf16.msra.mxu1 %v6778_v32  ;;  %v6864_v31 = vld [vmem:[%s9414_s4 + $0x5ec] ss:$16 sps:$4 sm:$0xff]   ;;  %v6859_v32 = vld [vmem:[%s9414_s4 + $0x5e0] ss:$16 sps:$4 sm:$0xff]  }
 0x10c   : > { %3247 = vmatprep.subr.bf16.mxu0 %v6783_v33  ;;  %3329 = vmatprep.subr.bf16.mxu1 %v6786_v34  ;;  %v6862_v33 = vld [vmem:[%s9414_s4 + $0x5e8] ss:$16 sps:$4 sm:$0xff]   ;;  %v6867_v34 = vld [vmem:[%s9414_s4 + $0x604] ss:$16 sps:$4 sm:$0xff]  }
 0x10f   : > { %3248 = vmatpush1.bf16.msra.mxu0 %v6781_v35  ;;  %3330 = vmatpush1.bf16.msra.mxu1 %v6784_v5  ;;  %v6870_v35 = vld [vmem:[%s9414_s4 + $0x60c] ss:$16 sps:$4 sm:$0xff]  }
 0x110   : > { %3249 = vmatprep.subr.bf16.mxu0 %v6789_v36  ;;  %3331 = vmatprep.subr.bf16.mxu1 %v6792_v37 }
 0x113   : > { %3250 = vmatpush1.bf16.msra.mxu0 %v6787_v38  ;;  %3332 = vmatpush1.bf16.msra.mxu1 %v6790_v52 }
 0x114   : > { %3251 = vmatprep.subr.bf16.mxu0 %v6795_v39  ;;  %3333 = vmatprep.subr.bf16.mxu1 %v6798_v40 }
 0x117   : > { %3252 = vmatpush1.bf16.msra.mxu0 %v6793_v41  ;;  %3334 = vmatpush1.bf16.msra.mxu1 %v6796_v42 }
 0x118   : > { %3253 = vmatprep.subr.bf16.mxu0 %v6801_v43  ;;  %3335 = vmatprep.subr.bf16.mxu1 %v6804_v44 }
 0x119   : > { %v8287_v49 = vpop.f32.mrb[0].mxu0  ;;  %v8289_v50 = vpop.f32.mrb[0].mxu1 }
 0x11a   : > { %v8291_v51 = vpop.f32.mrb[1].mxu0  ;;  %v8293_v53 = vpop.f32.mrb[1].mxu1 }
 0x11b   : > { %v823_v56 = vpop.f32.mrb[2].mxu0  ;;  %v864_v57 = vpop.f32.mrb[2].mxu1  ;;  %3254 = vmatpush1.bf16.msra.mxu0 %v6799_v45  ;;  %3336 = vmatpush1.bf16.msra.mxu1 %v6802_v46  ;;  %v1762_v46 = vlaneseq }
 0x11c   : > { %v824_v60 = vpop.f32.mrb[3].mxu0  ;;  %v865_v61 = vpop.f32.mrb[3].mxu1  ;;  %3255 = vmatprep.subr.bf16.mxu0 %v6807_v47  ;;  %3337 = vmatprep.subr.bf16.mxu1 %v6810_v48 }
 0x11d   : > { %v1763_v47 = vshrl.u32 %v1762_v46, 7  ;;  %v6888_v46 = vld [vmem:[%s9414_s4 + $0x66c] ss:$16 sps:$4 sm:$0xff]  }
 0x11f   : > { %3256 = vmatpush1.bf16.msra.mxu0 %v6805_v54  ;;  %3338 = vmatpush1.bf16.msra.mxu1 %v6808_v55  ;;  %v8419_v48 = vsub.s32 0, %v1763_v47  ;;  %v8421_v54 = vsub.s32 2, %v1763_v47  ;;  %v8428_v55 = vsub.s32 3, %v1763_v47 }
 0x120   : > { %3257 = vmatprep.subr.bf16.mxu0 %v6813_v58  ;;  %3339 = vmatprep.subr.bf16.mxu1 %v6816_v59 }
 0x123   : > { %3258 = vmatpush1.bf16.msra.mxu0 %v6811_v62  ;;  %3340 = vmatpush1.bf16.msra.mxu1 %v6814_v63 }
 0x124   : > { %3259 = vmatprep.subr.bf16.mxu0 %v6819_v0  ;;  %3341 = vmatprep.subr.bf16.mxu1 %v6822_v1 }
 0x127   : > { %3260 = vmatpush1.bf16.msra.mxu0 %v6817_v3  ;;  %3342 = vmatpush1.bf16.msra.mxu1 %v6820_v4 }
 0x128   : > { %3261 = vmatprep.subr.bf16.mxu0 %v6825_v6  ;;  %3343 = vmatprep.subr.bf16.mxu1 %v6828_v7 }
 0x12b   : > { %3262 = vmatpush1.bf16.msra.mxu0 %v6823_v8  ;;  %3344 = vmatpush1.bf16.msra.mxu1 %v6826_v9 }
 0x12c   : > { %3263 = vmatprep.subr.bf16.mxu0 %v6831_v10  ;;  %3345 = vmatprep.subr.bf16.mxu1 %v6834_v11 }
 0x12f   : > { %3264 = vmatpush1.bf16.msra.mxu0 %v6829_v12  ;;  %3346 = vmatpush1.bf16.msra.mxu1 %v6832_v13 }
 0x130   : > { %3265 = vmatprep.subr.bf16.mxu0 %v6837_v14  ;;  %3347 = vmatprep.subr.bf16.mxu1 %v6840_v15 }
 0x133   : > { %3266 = vmatpush1.bf16.msra.mxu0 %v6835_v16  ;;  %3348 = vmatpush1.bf16.msra.mxu1 %v6838_v17 }
 0x134   : > { %3267 = vmatprep.subr.bf16.mxu0 %v6843_v18  ;;  %3349 = vmatprep.subr.bf16.mxu1 %v6846_v19 }
 0x137   : > { %3268 = vmatpush1.bf16.msra.mxu0 %v6841_v20  ;;  %3350 = vmatpush1.bf16.msra.mxu1 %v6844_v21 }
 0x138   : > { %3269 = vmatprep.subr.bf16.mxu0 %v6849_v22  ;;  %3351 = vmatprep.subr.bf16.mxu1 %v6852_v23 }
 0x13b   : > { %3270 = vmatpush1.bf16.msra.mxu0 %v6847_v24  ;;  %3352 = vmatpush1.bf16.msra.mxu1 %v6850_v25 }
 0x13c   : > { %3271 = vmatprep.subr.bf16.mxu0 %v6855_v26  ;;  %3353 = vmatprep.subr.bf16.mxu1 %v6858_v27 }
 0x13f   : > { %3272 = vmatpush1.bf16.msra.mxu0 %v6853_v28  ;;  %3354 = vmatpush1.bf16.msra.mxu1 %v6856_v29 }
 0x140   : > { %3273 = vmatprep.subr.bf16.mxu0 %v6861_v30  ;;  %3355 = vmatprep.subr.bf16.mxu1 %v6864_v31 }
 0x143   : > { %3274 = vmatpush1.bf16.msra.mxu0 %v6859_v32  ;;  %3356 = vmatpush1.bf16.msra.mxu1 %v6862_v33 }
 0x144   : > { %3284 = vmatprep.subr.bf16.mxu0 %v6867_v34  ;;  %3366 = vmatprep.subr.bf16.mxu1 %v6870_v35  ;;  %v6865_v34 = vld [vmem:[%s9414_s4 + $0x600] ss:$16 sps:$4 sm:$0xff]   ;;  %v6868_v35 = vld [vmem:[%s9414_s4 + $0x608] ss:$16 sps:$4 sm:$0xff]  }
 0x159   : > { %v1221_v5 = vpop.f32.mrb[4].mxu0  ;;  %v1262_v36 = vpop.f32.mrb[4].mxu1 }
 0x15a   : > { %v1222_v37 = vadd.f32 %v1221_v5, %v8287_v49  ;;  %v1263_v38 = vadd.f32 %v1262_v36, %v8289_v50  ;;  %v1223_v52 = vpop.f32.mrb[5].mxu0  ;;  %v1264_v39 = vpop.f32.mrb[5].mxu1  ;;  %v1760_v49 = vld [vmem:[%s9413_s3] sm:$0xf]  ;;  %v8426_v50 = vsub.s32 1, %v1763_v47 }
 0x15b   : > { %v1224_v40 = vadd.f32 %v1223_v52, %v8291_v51  ;;  %v1265_v41 = vadd.f32 %v1264_v39, %v8293_v53  ;;  %v1225_v42 = vpop.f32.mrb[6].mxu0  ;;  %v1266_v43 = vpop.f32.mrb[6].mxu1  ;;  %v1765_v51 = vrot.slane %v1760_v49, %v8419_v48  ;;  %v1773_v53 = vrot.slane %v1760_v49, %v8421_v54  ;;  %v6871_v39 = vld [vmem:[%s9414_s4 + $0x620] ss:$16 sps:$4 sm:$0xff]  }
 0x15c   : > { %v1226_v44 = vpop.f32.mrb[7].mxu0  ;;  %v1267_v45 = vpop.f32.mrb[7].mxu1  ;;  %v1769_v58 = vrot.slane %v1760_v49, %v8426_v50  ;;  %v1777_v59 = vrot.slane %v1760_v49, %v8428_v55  ;;  %v6882_v42 = vld [vmem:[%s9414_s4 + $0x64c] ss:$16 sps:$4 sm:$0xff]   ;;  %v6877_v43 = vld [vmem:[%s9414_s4 + $0x640] ss:$16 sps:$4 sm:$0xff]  }
 0x15d   : > { %v6880_v44 = vld [vmem:[%s9414_s4 + $0x648] ss:$16 sps:$4 sm:$0xff]   ;;  %v6885_v45 = vld [vmem:[%s9414_s4 + $0x664] ss:$16 sps:$4 sm:$0xff]   ;;  %v6883_v47 = vld [vmem:[%s9414_s4 + $0x660] ss:$16 sps:$4 sm:$0xff]  }
 0x15e   : > { %v6886_v49 = vld [vmem:[%s9414_s4 + $0x668] ss:$16 sps:$4 sm:$0xff]  }
 0x199   : > { %v1708_v56 = vpop.f32.mrb[8].mxu0  ;;  %v1749_v57 = vpop.f32.mrb[8].mxu1 }
 0x19a   : > { %v1756_v60 = vadd.f32 %v1708_v56, %v1222_v37  ;;  %v1758_v61 = vadd.f32 %v1749_v57, %v1263_v38  ;;  %v1710_v62 = vpop.f32.mrb[9].mxu0  ;;  %v1751_v63 = vpop.f32.mrb[9].mxu1  ;;  %v6873_v37 = vld [vmem:[%s9414_s4 + $0x624] ss:$16 sps:$4 sm:$0xff]   ;;  %v6876_v38 = vld [vmem:[%s9414_s4 + $0x62c] ss:$16 sps:$4 sm:$0xff]  }
 0x19b   : > { %v1757_v0 = vadd.f32 %v1710_v62, %v1224_v40  ;;  %v1759_v1 = vadd.f32 %v1751_v63, %v1265_v41  ;;  %v1712_v2 = vpop.f32.mrb[10].mxu0  ;;  %v1753_v3 = vpop.f32.mrb[10].mxu1  ;;  %v6874_v40 = vld [vmem:[%s9414_s4 + $0x628] ss:$16 sps:$4 sm:$0xff]   ;;  %v6879_v41 = vld [vmem:[%s9414_s4 + $0x644] ss:$16 sps:$4 sm:$0xff]  }
 0x19c   : > { %v1782_v4 = vadd.f32 %v1765_v51, %v1756_v60  ;;  %v1784_v6 = vadd.f32 %v1773_v53, %v1758_v61  ;;  %v1713_v7 = vpop.f32.mrb[11].mxu0  ;;  %v1754_v8 = vpop.f32.mrb[11].mxu1  ;;  %v6891_v51 = vld [vmem:[%s9414_s4 + $0x684] ss:$16 sps:$4 sm:$0xff]   ;;  %v6894_v53 = vld [vmem:[%s9414_s4 + $0x68c] ss:$16 sps:$4 sm:$0xff]  }
 0x19d   : > { %v1783_v9 = vadd.f32 %v1769_v58, %v1757_v0  ;;  %v1785_v10 = vadd.f32 %v1777_v59, %v1759_v1  ;;  %v6889_v56 = vld [vmem:[%s9414_s4 + $0x680] ss:$16 sps:$4 sm:$0xff]   ;;  %v6892_v57 = vld [vmem:[%s9414_s4 + $0x688] ss:$16 sps:$4 sm:$0xff]   ;;  %v6897_v58 = vld [vmem:[%s9414_s4 + $0x6a4] ss:$16 sps:$4 sm:$0xff]  }
 0x19e   : > { %v1786_v11 = vmax.f32 %v1782_v4, 0.0  ;;  %v1788_v12 = vmax.f32 %v1784_v6, 0.0  ;;  %v6900_v59 = vld [vmem:[%s9414_s4 + $0x6ac] ss:$16 sps:$4 sm:$0xff]   ;;  %v6895_v60 = vld [vmem:[%s9414_s4 + $0x6a0] ss:$16 sps:$4 sm:$0xff]  }
 0x19f   : > { %v1787_v13 = vmax.f32 %v1783_v9, 0.0  ;;  %v1789_v14 = vmax.f32 %v1785_v10, 0.0  ;;  %v6898_v61 = vld [vmem:[%s9414_s4 + $0x6a8] ss:$16 sps:$4 sm:$0xff]   ;;  %v6903_v62 = vld [vmem:[%s9414_s4 + $0x6c4] ss:$16 sps:$4 sm:$0xff]  }
 0x1a0   : > { %v2286_v15 = vrot.slane %v1786_v11, 7  ;;  %v2288_v16 = vrot.slane %v1788_v12, 7  ;;  %v6906_v63 = vld [vmem:[%s9414_s4 + $0x6cc] ss:$16 sps:$4 sm:$0xff]   ;;  %v6901_v0 = vld [vmem:[%s9414_s4 + $0x6c0] ss:$16 sps:$4 sm:$0xff]  }
 0x1a1   : > { %v2287_v17 = vrot.slane %v1787_v13, 7  ;;  %v2289_v18 = vrot.slane %v1789_v14, 7  ;;  %v6904_v1 = vld [vmem:[%s9414_s4 + $0x6c8] ss:$16 sps:$4 sm:$0xff]   ;;  %v6909_v2 = vld [vmem:[%s9414_s4 + $0x6e4] ss:$16 sps:$4 sm:$0xff]  }
 0x1a2   : > { %2294 = vst [vmem:[#allocation2] sm:$0x1e] %v2286_v15  ;;  %2296 = vst [vmem:[#allocation2 + $0x10] sm:$0x1e] %v2288_v16  ;;  %v6912_v3 = vld [vmem:[%s9414_s4 + $0x6ec] ss:$16 sps:$4 sm:$0xff]  }
 0x1a3   : > { %2295 = vst [vmem:[#allocation2 + $0x8] sm:$0x1e] %v2287_v17  ;;  %2297 = vst [vmem:[#allocation2 + $0x18] sm:$0x1e] %v2289_v18  ;;  %v6907_v4 = vld [vmem:[%s9414_s4 + $0x6e0] ss:$16 sps:$4 sm:$0xff]  }
 0x1a4   : > { %v6910_v6 = vld [vmem:[%s9414_s4 + $0x6e8] ss:$16 sps:$4 sm:$0xff]   ;;  %v6915_v7 = vld [vmem:[%s9414_s4 + $0x704] ss:$16 sps:$4 sm:$0xff]   ;;  %v6918_v8 = vld [vmem:[%s9414_s4 + $0x70c] ss:$16 sps:$4 sm:$0xff]  }
 0x1a5   : > { %v6913_v9 = vld [vmem:[%s9414_s4 + $0x700] ss:$16 sps:$4 sm:$0xff]   ;;  %v6916_v10 = vld [vmem:[%s9414_s4 + $0x708] ss:$16 sps:$4 sm:$0xff]   ;;  %v6921_v11 = vld [vmem:[%s9414_s4 + $0x724] ss:$16 sps:$4 sm:$0xff]  }
 0x1a6   : > { %v6924_v12 = vld [vmem:[%s9414_s4 + $0x72c] ss:$16 sps:$4 sm:$0xff]   ;;  %v6919_v13 = vld [vmem:[%s9414_s4 + $0x720] ss:$16 sps:$4 sm:$0xff]   ;;  %v6922_v14 = vld [vmem:[%s9414_s4 + $0x728] ss:$16 sps:$4 sm:$0xff]  }
 0x1a7   : > { %v6927_v15 = vld [vmem:[%s9414_s4 + $0x744] ss:$16 sps:$4 sm:$0xff]   ;;  %v6930_v16 = vld [vmem:[%s9414_s4 + $0x74c] ss:$16 sps:$4 sm:$0xff]   ;;  %v6925_v17 = vld [vmem:[%s9414_s4 + $0x740] ss:$16 sps:$4 sm:$0xff]  }
 0x1a8   : > { %v6928_v18 = vld [vmem:[%s9414_s4 + $0x748] ss:$16 sps:$4 sm:$0xff]  }
 0x1a9   : > { %v2434_v19 = vld [vmem:[#allocation2] sm:$0x1e] }
 0x1aa   : > { %v2435_v20 = vld [vmem:[#allocation2 + $0x8] sm:$0x1e]  ;;  %v2438_v21 = vpack.c.bf16 %v2434_v19, %v2434_v19  ;;  %v2437_v22 = vld [vmem:[#allocation2 + $0x18] sm:$0x1e]  ;;  %v6933_v19 = vld [vmem:[%s9414_s4 + $0x764] ss:$16 sps:$4 sm:$0xff]  }
 0x1ab   : > { %v2439_v23 = vpack.c.bf16 %v2435_v20, %v2435_v20  ;;  %v2441_v24 = vpack.c.bf16 %v2437_v22, %v2437_v22  ;;  %v6936_v20 = vld [vmem:[%s9414_s4 + $0x76c] ss:$16 sps:$4 sm:$0xff]   ;;  %v6934_v22 = vld [vmem:[%s9414_s4 + $0x768] ss:$16 sps:$4 sm:$0xff]  }
 0x1ac   : > { %v2574_v25 = vshll.u32 %v2438_v21, 16  ;;  %v2572_v31 = vshrl.u32 %v2438_v21, 16  ;;  %v6931_v21 = vld [vmem:[%s9414_s4 + $0x760] ss:$16 sps:$4 sm:$0xff]  }
 0x1ad   : > { %v2581_v26 = vshll.u32 %v2439_v23, 16  ;;  %v2595_v27 = vshll.u32 %v2441_v24, 16  ;;  %v2579_v29 = vshrl.u32 %v2439_v23, 16  ;;  %v2593_v36 = vshrl.u32 %v2441_v24, 16  ;;  %v6939_v23 = vld [vmem:[%s9414_s4 + $0x784] ss:$16 sps:$4 sm:$0xff]  }
 0x1ae   : > { %v2576_v28 = vrot.slane %v2574_v25, 1  ;;  %v6942_v24 = vld [vmem:[%s9414_s4 + $0x78c] ss:$16 sps:$4 sm:$0xff]   ;;  %v6937_v25 = vld [vmem:[%s9414_s4 + $0x780] ss:$16 sps:$4 sm:$0xff]  }
 0x1af   : > { %v2583_v30 = vrot.slane %v2581_v26, 1  ;;  %v2597_v32 = vrot.slane %v2595_v27, 1  ;;  %v6940_v26 = vld [vmem:[%s9414_s4 + $0x788] ss:$16 sps:$4 sm:$0xff]   ;;  %v6945_v27 = vld [vmem:[%s9414_s4 + $0x7a4] ss:$16 sps:$4 sm:$0xff]  }
 0x1b0   : > { %v2577_v5 = vor.u32 %v2576_v28, %v2572_v31  ;;  %v6948_v28 = vld [vmem:[%s9414_s4 + $0x7ac] ss:$16 sps:$4 sm:$0xff]   ;;  %v6946_v31 = vld [vmem:[%s9414_s4 + $0x7a8] ss:$16 sps:$4 sm:$0xff]  }
 0x1b1   : > { %v2584_v33 = vor.u32 %v2583_v30, %v2579_v29  ;;  %v2598_v52 = vor.u32 %v2597_v32, %v2593_v36  ;;  %v2436_v29 = vld [vmem:[#allocation2 + $0x10] sm:$0x1e] }
 0x1b2   : > { %v6943_v30 = vld [vmem:[%s9414_s4 + $0x7a0] ss:$16 sps:$4 sm:$0xff]   ;;  %v6951_v32 = vld [vmem:[%s9414_s4 + $0x7c4] ss:$16 sps:$4 sm:$0xff]  }
 0x1b3   : > { %3275 = vmatprep.mubr.bf16.mxu0 %v2584_v33  ;;  %3357 = vmatprep.mubr.bf16.mxu1 %v2584_v33  ;;  %v6954_v33 = vld [vmem:[%s9414_s4 + $0x7cc] ss:$16 sps:$4 sm:$0xff]   ;;  %v6957_v36 = vld [vmem:[%s9414_s4 + $0x7e4] ss:$16 sps:$4 sm:$0xff]  }
 0x1b4   : > { %3276 = vmatmul.mubr.bf16.vlgmr.msra.gmra.mrb[12].mxu0 %v2577_v5  ;;  %3358 = vmatmul.mubr.bf16.vlgmr.msra.gmra.mrb[12].mxu1 %v2577_v5  ;;  %v6952_v5 = vld [vmem:[%s9414_s4 + $0x7c8] ss:$16 sps:$4 sm:$0xff]  }
 0x1b5   : > { %3285 = vmatpush1.bf16.msra.mxu0 %v6865_v34  ;;  %3367 = vmatpush1.bf16.msra.mxu1 %v6868_v35  ;;  %v2440_v34 = vpack.c.bf16 %v2436_v29, %v2436_v29  ;;  %v6949_v35 = vld [vmem:[%s9414_s4 + $0x7c0] ss:$16 sps:$4 sm:$0xff]  }
 0x1b6   : > { %3316 = vmatprep.mubr.bf16.mxu0 %v2598_v52  ;;  %3398 = vmatprep.mubr.bf16.mxu1 %v2598_v52  ;;  %v6955_v52 = vld [vmem:[%s9414_s4 + $0x7e0] ss:$16 sps:$4 sm:$0xff]  }
 0x1b7   : > { %3286 = vmatprep.subr.bf16.mxu0 %v6873_v37  ;;  %3368 = vmatprep.subr.bf16.mxu1 %v6876_v38  ;;  %v6960_v37 = vld [vmem:[%s9414_s4 + $0x7ec] ss:$16 sps:$4 sm:$0xff]   ;;  %v2588_v38 = vshll.u32 %v2440_v34, 16  ;;  %v7021_v29 = vld [vmem:[%s9414_s4 + $0x140] ss:$16 sps:$4 sm:$0xff]  }
 0x1b9   : > { %3287 = vmatpush1.bf16.msra.mxu0 %v6871_v39  ;;  %3369 = vmatpush1.bf16.msra.mxu1 %v6874_v40  ;;  %v6958_v39 = vld [vmem:[%s9414_s4 + $0x7e8] ss:$16 sps:$4 sm:$0xff]   ;;  %v2590_v40 = vrot.slane %v2588_v38, 1  ;;  %v7041_v38 = vld [vmem:[%s9414_s4 + $0x1a4] ss:$16 sps:$4 sm:$0xff]  }
 0x1ba   : > { %3288 = vmatprep.subr.bf16.mxu0 %v6879_v41  ;;  %3370 = vmatprep.subr.bf16.mxu1 %v6882_v42  ;;  %v6963_v41 = vld [vmem:[%s9414_s4 + $0x4] ss:$16 sps:$4 sm:$0xff]   ;;  %v6966_v42 = vld [vmem:[%s9414_s4 + $0xc] ss:$16 sps:$4 sm:$0xff]  }
 0x1bd   : > { %3289 = vmatpush1.bf16.msra.mxu0 %v6877_v43  ;;  %3371 = vmatpush1.bf16.msra.mxu1 %v6880_v44  ;;  %v2586_v43 = vshrl.u32 %v2440_v34, 16  ;;  %v2299_v44 = vld [vmem:[#allocation2 + $0x8] sm:$0xf] }
 0x1be   : > { %3290 = vmatprep.subr.bf16.mxu0 %v6885_v45  ;;  %3372 = vmatprep.subr.bf16.mxu1 %v6888_v46  ;;  %v6961_v45 = vld [vmem:[%s9414_s4] ss:$16 sps:$4 sm:$0xff]   ;;  %v7030_v34 = vld [vmem:[%s9414_s4 + $0x168] ss:$16 sps:$4 sm:$0xff]  }
 0x1bf   : > { %v2591_v46 = vor.u32 %v2590_v40, %v2586_v43  ;;  %v7042_v40 = vld [vmem:[%s9414_s4 + $0x1a8] ss:$16 sps:$4 sm:$0xff]   ;;  %v7045_v43 = vld [vmem:[%s9414_s4 + $0x1c0] ss:$16 sps:$4 sm:$0xff]  }
 0x1c1   : > { %3291 = vmatpush1.bf16.msra.mxu0 %v6883_v47  ;;  %3373 = vmatpush1.bf16.msra.mxu1 %v6886_v49  ;;  %v6964_v47 = vld [vmem:[%s9414_s4 + $0x8] ss:$16 sps:$4 sm:$0xff]   ;;  %v2303_v49 = vpack.c.bf16 %v2299_v44, %v2299_v44 }
 0x1c2   : > { %3292 = vmatprep.subr.bf16.mxu0 %v6891_v51  ;;  %3374 = vmatprep.subr.bf16.mxu1 %v6894_v53  ;;  %v6969_v51 = vld [vmem:[%s9414_s4 + $0x24] ss:$16 sps:$4 sm:$0xff]   ;;  %v6972_v53 = vld [vmem:[%s9414_s4 + $0x2c] ss:$16 sps:$4 sm:$0xff]   ;;  %v7048_v44 = vld [vmem:[%s9414_s4 + $0x1c8] ss:$16 sps:$4 sm:$0xff]  }
 0x1c5   : > { %3293 = vmatpush1.bf16.msra.mxu0 %v6889_v56  ;;  %3375 = vmatpush1.bf16.msra.mxu1 %v6892_v57  ;;  %v6967_v56 = vld [vmem:[%s9414_s4 + $0x20] ss:$16 sps:$4 sm:$0xff]   ;;  %v6970_v57 = vld [vmem:[%s9414_s4 + $0x28] ss:$16 sps:$4 sm:$0xff]  }
 0x1c6   : > { %3294 = vmatprep.subr.bf16.mxu0 %v6897_v58  ;;  %3376 = vmatprep.subr.bf16.mxu1 %v6900_v59  ;;  %v6975_v58 = vld [vmem:[%s9414_s4 + $0x44] ss:$16 sps:$4 sm:$0xff]   ;;  %v6978_v59 = vld [vmem:[%s9414_s4 + $0x4c] ss:$16 sps:$4 sm:$0xff]  }
 0x1c9   : > { %3295 = vmatpush1.bf16.msra.mxu0 %v6895_v60  ;;  %3377 = vmatpush1.bf16.msra.mxu1 %v6898_v61  ;;  %v6973_v60 = vld [vmem:[%s9414_s4 + $0x40] ss:$16 sps:$4 sm:$0xff]   ;;  %v6976_v61 = vld [vmem:[%s9414_s4 + $0x48] ss:$16 sps:$4 sm:$0xff]  }
 0x1ca   : > { %3296 = vmatprep.subr.bf16.mxu0 %v6903_v62  ;;  %3378 = vmatprep.subr.bf16.mxu1 %v6906_v63  ;;  %v6981_v62 = vld [vmem:[%s9414_s4 + $0x64] ss:$16 sps:$4 sm:$0xff]   ;;  %v6984_v63 = vld [vmem:[%s9414_s4 + $0x6c] ss:$16 sps:$4 sm:$0xff]  }
 0x1cd   : > { %3297 = vmatpush1.bf16.msra.mxu0 %v6901_v0  ;;  %3379 = vmatpush1.bf16.msra.mxu1 %v6904_v1  ;;  %v6979_v0 = vld [vmem:[%s9414_s4 + $0x60] ss:$16 sps:$4 sm:$0xff]   ;;  %v6982_v1 = vld [vmem:[%s9414_s4 + $0x68] ss:$16 sps:$4 sm:$0xff]  }
 0x1ce   : > { %3298 = vmatprep.subr.bf16.mxu0 %v6909_v2  ;;  %3380 = vmatprep.subr.bf16.mxu1 %v6912_v3  ;;  %v6987_v2 = vld [vmem:[%s9414_s4 + $0x84] ss:$16 sps:$4 sm:$0xff]   ;;  %v6990_v3 = vld [vmem:[%s9414_s4 + $0x8c] ss:$16 sps:$4 sm:$0xff]  }
 0x1d1   : > { %3299 = vmatpush1.bf16.msra.mxu0 %v6907_v4  ;;  %3381 = vmatpush1.bf16.msra.mxu1 %v6910_v6  ;;  %v6985_v4 = vld [vmem:[%s9414_s4 + $0x80] ss:$16 sps:$4 sm:$0xff]   ;;  %v6988_v6 = vld [vmem:[%s9414_s4 + $0x88] ss:$16 sps:$4 sm:$0xff]  }
 0x1d2   : > { %3300 = vmatprep.subr.bf16.mxu0 %v6915_v7  ;;  %3382 = vmatprep.subr.bf16.mxu1 %v6918_v8  ;;  %v6993_v7 = vld [vmem:[%s9414_s4 + $0xa4] ss:$16 sps:$4 sm:$0xff]   ;;  %v6996_v8 = vld [vmem:[%s9414_s4 + $0xac] ss:$16 sps:$4 sm:$0xff]  }
 0x1d5   : > { %3301 = vmatpush1.bf16.msra.mxu0 %v6913_v9  ;;  %3383 = vmatpush1.bf16.msra.mxu1 %v6916_v10  ;;  %v6991_v9 = vld [vmem:[%s9414_s4 + $0xa0] ss:$16 sps:$4 sm:$0xff]   ;;  %v6994_v10 = vld [vmem:[%s9414_s4 + $0xa8] ss:$16 sps:$4 sm:$0xff]  }
 0x1d6   : > { %3302 = vmatprep.subr.bf16.mxu0 %v6921_v11  ;;  %3384 = vmatprep.subr.bf16.mxu1 %v6924_v12  ;;  %v6999_v11 = vld [vmem:[%s9414_s4 + $0xc4] ss:$16 sps:$4 sm:$0xff]   ;;  %v7002_v12 = vld [vmem:[%s9414_s4 + $0xcc] ss:$16 sps:$4 sm:$0xff]  }
 0x1d9   : > { %3303 = vmatpush1.bf16.msra.mxu0 %v6919_v13  ;;  %3385 = vmatpush1.bf16.msra.mxu1 %v6922_v14  ;;  %v6997_v13 = vld [vmem:[%s9414_s4 + $0xc0] ss:$16 sps:$4 sm:$0xff]   ;;  %v7000_v14 = vld [vmem:[%s9414_s4 + $0xc8] ss:$16 sps:$4 sm:$0xff]  }
 0x1da   : > { %3304 = vmatprep.subr.bf16.mxu0 %v6927_v15  ;;  %3386 = vmatprep.subr.bf16.mxu1 %v6930_v16  ;;  %v7005_v15 = vld [vmem:[%s9414_s4 + $0xe4] ss:$16 sps:$4 sm:$0xff]   ;;  %v7008_v16 = vld [vmem:[%s9414_s4 + $0xec] ss:$16 sps:$4 sm:$0xff]  }
 0x1dd   : > { %3305 = vmatpush1.bf16.msra.mxu0 %v6925_v17  ;;  %3387 = vmatpush1.bf16.msra.mxu1 %v6928_v18  ;;  %v7003_v17 = vld [vmem:[%s9414_s4 + $0xe0] ss:$16 sps:$4 sm:$0xff]   ;;  %v7006_v18 = vld [vmem:[%s9414_s4 + $0xe8] ss:$16 sps:$4 sm:$0xff]  }
 0x1de   : > { %3306 = vmatprep.subr.bf16.mxu0 %v6933_v19  ;;  %3388 = vmatprep.subr.bf16.mxu1 %v6936_v20  ;;  %v7011_v19 = vld [vmem:[%s9414_s4 + $0x104] ss:$16 sps:$4 sm:$0xff]   ;;  %v7014_v20 = vld [vmem:[%s9414_s4 + $0x10c] ss:$16 sps:$4 sm:$0xff]  }
 0x1e1   : > { %3307 = vmatpush1.bf16.msra.mxu0 %v6931_v21  ;;  %3389 = vmatpush1.bf16.msra.mxu1 %v6934_v22  ;;  %v7009_v21 = vld [vmem:[%s9414_s4 + $0x100] ss:$16 sps:$4 sm:$0xff]   ;;  %v7012_v22 = vld [vmem:[%s9414_s4 + $0x108] ss:$16 sps:$4 sm:$0xff]  }
 0x1e2   : > { %3308 = vmatprep.subr.bf16.mxu0 %v6939_v23  ;;  %3390 = vmatprep.subr.bf16.mxu1 %v6942_v24  ;;  %v7017_v23 = vld [vmem:[%s9414_s4 + $0x124] ss:$16 sps:$4 sm:$0xff]   ;;  %v7020_v24 = vld [vmem:[%s9414_s4 + $0x12c] ss:$16 sps:$4 sm:$0xff]  }
 0x1e5   : > { %3309 = vmatpush1.bf16.msra.mxu0 %v6937_v25  ;;  %3391 = vmatpush1.bf16.msra.mxu1 %v6940_v26  ;;  %v7015_v25 = vld [vmem:[%s9414_s4 + $0x120] ss:$16 sps:$4 sm:$0xff]   ;;  %v7018_v26 = vld [vmem:[%s9414_s4 + $0x128] ss:$16 sps:$4 sm:$0xff]  }
 0x1e6   : > { %3310 = vmatprep.subr.bf16.mxu0 %v6945_v27  ;;  %3392 = vmatprep.subr.bf16.mxu1 %v6948_v28  ;;  %v7023_v27 = vld [vmem:[%s9414_s4 + $0x144] ss:$16 sps:$4 sm:$0xff]   ;;  %v7026_v28 = vld [vmem:[%s9414_s4 + $0x14c] ss:$16 sps:$4 sm:$0xff]  }
 0x1e9   : > { %3311 = vmatpush1.bf16.msra.mxu0 %v6943_v30  ;;  %3393 = vmatpush1.bf16.msra.mxu1 %v6946_v31  ;;  %v7024_v30 = vld [vmem:[%s9414_s4 + $0x148] ss:$16 sps:$4 sm:$0xff]   ;;  %v7029_v31 = vld [vmem:[%s9414_s4 + $0x164] ss:$16 sps:$4 sm:$0xff]  }
 0x1ea   : > { %3312 = vmatprep.subr.bf16.mxu0 %v6951_v32  ;;  %3394 = vmatprep.subr.bf16.mxu1 %v6954_v33  ;;  %v7032_v32 = vld [vmem:[%s9414_s4 + $0x16c] ss:$16 sps:$4 sm:$0xff]   ;;  %v7027_v33 = vld [vmem:[%s9414_s4 + $0x160] ss:$16 sps:$4 sm:$0xff]  }
 0x1ed   : > { %3313 = vmatpush1.bf16.msra.mxu0 %v6949_v35  ;;  %3395 = vmatpush1.bf16.msra.mxu1 %v6952_v5  ;;  %v7035_v35 = vld [vmem:[%s9414_s4 + $0x184] ss:$16 sps:$4 sm:$0xff]   ;;  %v7038_v5 = vld [vmem:[%s9414_s4 + $0x18c] ss:$16 sps:$4 sm:$0xff]  }
 0x1ee   : > { %3314 = vmatprep.subr.bf16.mxu0 %v6957_v36  ;;  %3396 = vmatprep.subr.bf16.mxu1 %v6960_v37  ;;  %v7033_v36 = vld [vmem:[%s9414_s4 + $0x180] ss:$16 sps:$4 sm:$0xff]   ;;  %v7036_v37 = vld [vmem:[%s9414_s4 + $0x188] ss:$16 sps:$4 sm:$0xff]  }
 0x1f1   : > { %3315 = vmatpush1.bf16.msra.mxu0 %v6955_v52  ;;  %3397 = vmatpush1.bf16.msra.mxu1 %v6958_v39  ;;  %v7044_v52 = vld [vmem:[%s9414_s4 + $0x1ac] ss:$16 sps:$4 sm:$0xff]   ;;  %v7039_v39 = vld [vmem:[%s9414_s4 + $0x1a0] ss:$16 sps:$4 sm:$0xff]  }
 0x1f2   : > { %4047 = vmatprep.subr.bf16.mxu0 %v6963_v41  ;;  %4129 = vmatprep.subr.bf16.mxu1 %v6966_v42  ;;  %v7047_v41 = vld [vmem:[%s9414_s4 + $0x1c4] ss:$16 sps:$4 sm:$0xff]   ;;  %v7050_v42 = vld [vmem:[%s9414_s4 + $0x1cc] ss:$16 sps:$4 sm:$0xff]  }
 0x1f4   : > { %3317 = vmatmul.mubr.bf16.vlgmr.msra.gmra.mrb[12].mxu0 %v2591_v46  ;;  %3399 = vmatmul.mubr.bf16.vlgmr.msra.gmra.mrb[12].mxu1 %v2591_v46  ;;  %v7056_v46 = vld [vmem:[%s9414_s4 + $0x1ec] ss:$16 sps:$4 sm:$0xff]  }
 0x1f5   : > { %4048 = vmatpush1.bf16.msra.mxu0 %v6961_v45  ;;  %4079 = vmatprep.mubr.bf16.mxu0 %v2303_v49  ;;  %v7053_v45 = vld [vmem:[%s9414_s4 + $0x1e4] ss:$16 sps:$4 sm:$0xff]  }
 0x1f6   : > { %4130 = vmatpush1.bf16.msra.mxu1 %v6964_v47  ;;  %4161 = vmatprep.mubr.bf16.mxu1 %v2303_v49  ;;  %v7051_v47 = vld [vmem:[%s9414_s4 + $0x1e0] ss:$16 sps:$4 sm:$0xff]   ;;  %v7054_v49 = vld [vmem:[%s9414_s4 + $0x1e8] ss:$16 sps:$4 sm:$0xff]  }
 0x1f7   : > { %4049 = vmatprep.subr.bf16.mxu0 %v6969_v51  ;;  %4131 = vmatprep.subr.bf16.mxu1 %v6972_v53  ;;  %v7059_v51 = vld [vmem:[%s9414_s4 + $0x204] ss:$16 sps:$4 sm:$0xff]   ;;  %v2298_v53 = vld [vmem:[#allocation2] sm:$0xf] }
 0x1f9   : > { %4050 = vmatpush1.bf16.msra.mxu0 %v6967_v56  ;;  %v7062_v56 = vld [vmem:[%s9414_s4 + $0x20c] ss:$16 sps:$4 sm:$0xff]  }
 0x1fa   : > { %4132 = vmatpush1.bf16.msra.mxu1 %v6970_v57  ;;  %4051 = vmatprep.subr.bf16.mxu0 %v6975_v58  ;;  %v7057_v57 = vld [vmem:[%s9414_s4 + $0x200] ss:$16 sps:$4 sm:$0xff]   ;;  %v2301_v58 = vld [vmem:[#allocation2 + $0x18] sm:$0xf] }
 0x1fb   : > { %4133 = vmatprep.subr.bf16.mxu1 %v6978_v59  ;;  %v2302_v59 = vpack.c.bf16 %v2298_v53, %v2298_v53  ;;  %v7146_v53 = vld [vmem:[%s9414_s4 + $0x3cc] ss:$16 sps:$4 sm:$0xff]  }
 0x1fd   : > { %4052 = vmatpush1.bf16.msra.mxu0 %v6973_v60  ;;  %v7060_v60 = vld [vmem:[%s9414_s4 + $0x208] ss:$16 sps:$4 sm:$0xff]  }
 0x1fe   : > { %4134 = vmatpush1.bf16.msra.mxu1 %v6976_v61  ;;  %4053 = vmatprep.subr.bf16.mxu0 %v6981_v62  ;;  %v7065_v61 = vld [vmem:[%s9414_s4 + $0x224] ss:$16 sps:$4 sm:$0xff]   ;;  %v2305_v62 = vpack.c.bf16 %v2301_v58, %v2301_v58 }
 0x1ff   : > { %4135 = vmatprep.subr.bf16.mxu1 %v6984_v63  ;;  %v7068_v63 = vld [vmem:[%s9414_s4 + $0x22c] ss:$16 sps:$4 sm:$0xff]   ;;  %v7149_v58 = vld [vmem:[%s9414_s4 + $0x3e4] ss:$16 sps:$4 sm:$0xff]  }
 0x201   : > { %4054 = vmatpush1.bf16.msra.mxu0 %v6979_v0  ;;  %v7063_v0 = vld [vmem:[%s9414_s4 + $0x220] ss:$16 sps:$4 sm:$0xff]  }
 0x202   : > { %4136 = vmatpush1.bf16.msra.mxu1 %v6982_v1  ;;  %4055 = vmatprep.subr.bf16.mxu0 %v6987_v2  ;;  %v7066_v1 = vld [vmem:[%s9414_s4 + $0x228] ss:$16 sps:$4 sm:$0xff]   ;;  %v7071_v2 = vld [vmem:[%s9414_s4 + $0x244] ss:$16 sps:$4 sm:$0xff]  }
 0x203   : > { %4137 = vmatprep.subr.bf16.mxu1 %v6990_v3  ;;  %v7074_v3 = vld [vmem:[%s9414_s4 + $0x24c] ss:$16 sps:$4 sm:$0xff]  }
 0x205   : > { %4056 = vmatpush1.bf16.msra.mxu0 %v6985_v4  ;;  %v7069_v4 = vld [vmem:[%s9414_s4 + $0x240] ss:$16 sps:$4 sm:$0xff]  }
 0x206   : > { %4138 = vmatpush1.bf16.msra.mxu1 %v6988_v6  ;;  %4057 = vmatprep.subr.bf16.mxu0 %v6993_v7  ;;  %v7072_v6 = vld [vmem:[%s9414_s4 + $0x248] ss:$16 sps:$4 sm:$0xff]   ;;  %v7077_v7 = vld [vmem:[%s9414_s4 + $0x264] ss:$16 sps:$4 sm:$0xff]  }
 0x207   : > { %4139 = vmatprep.subr.bf16.mxu1 %v6996_v8  ;;  %v7080_v8 = vld [vmem:[%s9414_s4 + $0x26c] ss:$16 sps:$4 sm:$0xff]  }
 0x209   : > { %4058 = vmatpush1.bf16.msra.mxu0 %v6991_v9  ;;  %v7075_v9 = vld [vmem:[%s9414_s4 + $0x260] ss:$16 sps:$4 sm:$0xff]  }
 0x20a   : > { %4140 = vmatpush1.bf16.msra.mxu1 %v6994_v10  ;;  %4059 = vmatprep.subr.bf16.mxu0 %v6999_v11  ;;  %v7078_v10 = vld [vmem:[%s9414_s4 + $0x268] ss:$16 sps:$4 sm:$0xff]   ;;  %v7083_v11 = vld [vmem:[%s9414_s4 + $0x284] ss:$16 sps:$4 sm:$0xff]  }
 0x20b   : > { %4141 = vmatprep.subr.bf16.mxu1 %v7002_v12  ;;  %v7086_v12 = vld [vmem:[%s9414_s4 + $0x28c] ss:$16 sps:$4 sm:$0xff]  }
 0x20d   : > { %4060 = vmatpush1.bf16.msra.mxu0 %v6997_v13  ;;  %v7081_v13 = vld [vmem:[%s9414_s4 + $0x280] ss:$16 sps:$4 sm:$0xff]  }
 0x20e   : > { %4142 = vmatpush1.bf16.msra.mxu1 %v7000_v14  ;;  %4061 = vmatprep.subr.bf16.mxu0 %v7005_v15  ;;  %v7084_v14 = vld [vmem:[%s9414_s4 + $0x288] ss:$16 sps:$4 sm:$0xff]   ;;  %v7089_v15 = vld [vmem:[%s9414_s4 + $0x2a4] ss:$16 sps:$4 sm:$0xff]  }
 0x20f   : > { %4143 = vmatprep.subr.bf16.mxu1 %v7008_v16  ;;  %v7092_v16 = vld [vmem:[%s9414_s4 + $0x2ac] ss:$16 sps:$4 sm:$0xff]  }
 0x211   : > { %4062 = vmatpush1.bf16.msra.mxu0 %v7003_v17  ;;  %v7087_v17 = vld [vmem:[%s9414_s4 + $0x2a0] ss:$16 sps:$4 sm:$0xff]  }
 0x212   : > { %4144 = vmatpush1.bf16.msra.mxu1 %v7006_v18  ;;  %4063 = vmatprep.subr.bf16.mxu0 %v7011_v19  ;;  %v7090_v18 = vld [vmem:[%s9414_s4 + $0x2a8] ss:$16 sps:$4 sm:$0xff]   ;;  %v7095_v19 = vld [vmem:[%s9414_s4 + $0x2c4] ss:$16 sps:$4 sm:$0xff]  }
 0x213   : > { %4145 = vmatprep.subr.bf16.mxu1 %v7014_v20  ;;  %v7098_v20 = vld [vmem:[%s9414_s4 + $0x2cc] ss:$16 sps:$4 sm:$0xff]  }
 0x215   : > { %4064 = vmatpush1.bf16.msra.mxu0 %v7009_v21  ;;  %v7093_v21 = vld [vmem:[%s9414_s4 + $0x2c0] ss:$16 sps:$4 sm:$0xff]  }
 0x216   : > { %4146 = vmatpush1.bf16.msra.mxu1 %v7012_v22  ;;  %4065 = vmatprep.subr.bf16.mxu0 %v7017_v23  ;;  %v7096_v22 = vld [vmem:[%s9414_s4 + $0x2c8] ss:$16 sps:$4 sm:$0xff]   ;;  %v7101_v23 = vld [vmem:[%s9414_s4 + $0x2e4] ss:$16 sps:$4 sm:$0xff]  }
 0x217   : > { %4147 = vmatprep.subr.bf16.mxu1 %v7020_v24  ;;  %v7104_v24 = vld [vmem:[%s9414_s4 + $0x2ec] ss:$16 sps:$4 sm:$0xff]  }
 0x219   : > { %4066 = vmatpush1.bf16.msra.mxu0 %v7015_v25  ;;  %v7099_v25 = vld [vmem:[%s9414_s4 + $0x2e0] ss:$16 sps:$4 sm:$0xff]  }
 0x21a   : > { %4148 = vmatpush1.bf16.msra.mxu1 %v7018_v26  ;;  %4067 = vmatprep.subr.bf16.mxu0 %v7023_v27  ;;  %v7102_v26 = vld [vmem:[%s9414_s4 + $0x2e8] ss:$16 sps:$4 sm:$0xff]   ;;  %v7107_v27 = vld [vmem:[%s9414_s4 + $0x304] ss:$16 sps:$4 sm:$0xff]  }
 0x21b   : > { %4149 = vmatprep.subr.bf16.mxu1 %v7026_v28  ;;  %v7110_v28 = vld [vmem:[%s9414_s4 + $0x30c] ss:$16 sps:$4 sm:$0xff]  }
 0x21d   : > { %4068 = vmatpush1.bf16.msra.mxu0 %v7021_v29  ;;  %v7105_v29 = vld [vmem:[%s9414_s4 + $0x300] ss:$16 sps:$4 sm:$0xff]  }
 0x21e   : > { %4150 = vmatpush1.bf16.msra.mxu1 %v7024_v30  ;;  %4069 = vmatprep.subr.bf16.mxu0 %v7029_v31  ;;  %v7108_v30 = vld [vmem:[%s9414_s4 + $0x308] ss:$16 sps:$4 sm:$0xff]   ;;  %v7113_v31 = vld [vmem:[%s9414_s4 + $0x324] ss:$16 sps:$4 sm:$0xff]  }
 0x21f   : > { %4151 = vmatprep.subr.bf16.mxu1 %v7032_v32  ;;  %v7116_v32 = vld [vmem:[%s9414_s4 + $0x32c] ss:$16 sps:$4 sm:$0xff]  }
 0x221   : > { %4070 = vmatpush1.bf16.msra.mxu0 %v7027_v33  ;;  %v7111_v33 = vld [vmem:[%s9414_s4 + $0x320] ss:$16 sps:$4 sm:$0xff]  }
 0x222   : > { %4152 = vmatpush1.bf16.msra.mxu1 %v7030_v34  ;;  %4071 = vmatprep.subr.bf16.mxu0 %v7035_v35  ;;  %v7114_v34 = vld [vmem:[%s9414_s4 + $0x328] ss:$16 sps:$4 sm:$0xff]   ;;  %v7119_v35 = vld [vmem:[%s9414_s4 + $0x344] ss:$16 sps:$4 sm:$0xff]  }
 0x223   : > { %4153 = vmatprep.subr.bf16.mxu1 %v7038_v5  ;;  %v7122_v5 = vld [vmem:[%s9414_s4 + $0x34c] ss:$16 sps:$4 sm:$0xff]  }
 0x225   : > { %4072 = vmatpush1.bf16.msra.mxu0 %v7033_v36  ;;  %v7117_v36 = vld [vmem:[%s9414_s4 + $0x340] ss:$16 sps:$4 sm:$0xff]  }
 0x226   : > { %4154 = vmatpush1.bf16.msra.mxu1 %v7036_v37  ;;  %4073 = vmatprep.subr.bf16.mxu0 %v7041_v38  ;;  %v7120_v37 = vld [vmem:[%s9414_s4 + $0x348] ss:$16 sps:$4 sm:$0xff]   ;;  %v7125_v38 = vld [vmem:[%s9414_s4 + $0x364] ss:$16 sps:$4 sm:$0xff]  }
 0x227   : > { %4155 = vmatprep.subr.bf16.mxu1 %v7044_v52  ;;  %v7128_v52 = vld [vmem:[%s9414_s4 + $0x36c] ss:$16 sps:$4 sm:$0xff]  }
 0x229   : > { %4074 = vmatpush1.bf16.msra.mxu0 %v7039_v39  ;;  %v7123_v39 = vld [vmem:[%s9414_s4 + $0x360] ss:$16 sps:$4 sm:$0xff]  }
 0x22a   : > { %4156 = vmatpush1.bf16.msra.mxu1 %v7042_v40  ;;  %4075 = vmatprep.subr.bf16.mxu0 %v7047_v41  ;;  %v7126_v40 = vld [vmem:[%s9414_s4 + $0x368] ss:$16 sps:$4 sm:$0xff]   ;;  %v7131_v41 = vld [vmem:[%s9414_s4 + $0x384] ss:$16 sps:$4 sm:$0xff]  }
 0x22b   : > { %4157 = vmatprep.subr.bf16.mxu1 %v7050_v42  ;;  %v7134_v42 = vld [vmem:[%s9414_s4 + $0x38c] ss:$16 sps:$4 sm:$0xff]  }
 0x22d   : > { %4076 = vmatpush1.bf16.msra.mxu0 %v7045_v43  ;;  %v7129_v43 = vld [vmem:[%s9414_s4 + $0x380] ss:$16 sps:$4 sm:$0xff]  }
 0x22e   : > { %4158 = vmatpush1.bf16.msra.mxu1 %v7048_v44  ;;  %4077 = vmatprep.subr.bf16.mxu0 %v7053_v45  ;;  %v7132_v44 = vld [vmem:[%s9414_s4 + $0x388] ss:$16 sps:$4 sm:$0xff]   ;;  %v7137_v45 = vld [vmem:[%s9414_s4 + $0x3a4] ss:$16 sps:$4 sm:$0xff]  }
 0x22f   : > { %4159 = vmatprep.subr.bf16.mxu1 %v7056_v46  ;;  %v7140_v46 = vld [vmem:[%s9414_s4 + $0x3ac] ss:$16 sps:$4 sm:$0xff]  }
 0x231   : > { %4078 = vmatpush1.bf16.msra.mxu0 %v7051_v47  ;;  %v7135_v47 = vld [vmem:[%s9414_s4 + $0x3a0] ss:$16 sps:$4 sm:$0xff]  }
 0x232   : > { %4160 = vmatpush1.bf16.msra.mxu1 %v7054_v49  ;;  %4088 = vmatprep.subr.bf16.mxu0 %v7059_v51  ;;  %v7138_v49 = vld [vmem:[%s9414_s4 + $0x3a8] ss:$16 sps:$4 sm:$0xff]   ;;  %v7143_v51 = vld [vmem:[%s9414_s4 + $0x3c4] ss:$16 sps:$4 sm:$0xff]  }
 0x233   : > { %4170 = vmatprep.subr.bf16.mxu1 %v7062_v56  ;;  %v7141_v56 = vld [vmem:[%s9414_s4 + $0x3c0] ss:$16 sps:$4 sm:$0xff]  }
 0x234   : > { %4080 = vmatmul.mubr.bf16.vlgmr.msra.gmra.mrb[12].mxu0 %v2302_v59 }
 0x235   : > { %4162 = vmatmul.mubr.bf16.vlgmr.msra.gmra.mrb[12].mxu1 %v2302_v59  ;;  %4089 = vmatpush1.bf16.msra.mxu0 %v7057_v57  ;;  %v7144_v57 = vld [vmem:[%s9414_s4 + $0x3c8] ss:$16 sps:$4 sm:$0xff]   ;;  %v7152_v59 = vld [vmem:[%s9414_s4 + $0x3ec] ss:$16 sps:$4 sm:$0xff]  }
 0x236   : > { %4120 = vmatprep.mubr.bf16.mxu0 %v2305_v62  ;;  %4171 = vmatpush1.bf16.msra.mxu1 %v7060_v60  ;;  %v7147_v60 = vld [vmem:[%s9414_s4 + $0x3e0] ss:$16 sps:$4 sm:$0xff]  }
 0x237   : > { %4202 = vmatprep.mubr.bf16.mxu1 %v2305_v62  ;;  %4090 = vmatprep.subr.bf16.mxu0 %v7065_v61  ;;  %v4212_v61 = vld [vmem:[#allocation2 + $0x8] sm:$0x3c] }
 0x238   : > { %4172 = vmatprep.subr.bf16.mxu1 %v7068_v63  ;;  %v7150_v62 = vld [vmem:[%s9414_s4 + $0x3e8] ss:$16 sps:$4 sm:$0xff]   ;;  %v7155_v63 = vld [vmem:[%s9414_s4 + $0x804] ss:$16 sps:$4 sm:$0xff]  }
 0x239   : > { %4091 = vmatpush1.bf16.msra.mxu0 %v7063_v0  ;;  %v2300_v0 = vld [vmem:[#allocation2 + $0x10] sm:$0xf] }
 0x23a   : > { %4173 = vmatpush1.bf16.msra.mxu1 %v7066_v1  ;;  %4092 = vmatprep.subr.bf16.mxu0 %v7071_v2  ;;  %v7158_v1 = vld [vmem:[%s9414_s4 + $0x80c] ss:$16 sps:$4 sm:$0xff]   ;;  %v4216_v2 = vpack.c.bf16 %v4212_v61, %v4212_v61  ;;  %v7231_v61 = vld [vmem:[%s9414_s4 + $0x9a0] ss:$16 sps:$4 sm:$0xff]  }
 0x23b   : > { %4174 = vmatprep.subr.bf16.mxu1 %v7074_v3  ;;  %v7153_v3 = vld [vmem:[%s9414_s4 + $0x800] ss:$16 sps:$4 sm:$0xff]  }
 0x23d   : > { %4093 = vmatpush1.bf16.msra.mxu0 %v7069_v4  ;;  %v2304_v4 = vpack.c.bf16 %v2300_v0, %v2300_v0  ;;  %v7242_v0 = vld [vmem:[%s9414_s4 + $0x9cc] ss:$16 sps:$4 sm:$0xff]  }
 0x23e   : > { %4175 = vmatpush1.bf16.msra.mxu1 %v7072_v6  ;;  %4094 = vmatprep.subr.bf16.mxu0 %v7077_v7  ;;  %v7156_v6 = vld [vmem:[%s9414_s4 + $0x808] ss:$16 sps:$4 sm:$0xff]   ;;  %v7161_v7 = vld [vmem:[%s9414_s4 + $0x824] ss:$16 sps:$4 sm:$0xff]  }
 0x23f   : > { %4176 = vmatprep.subr.bf16.mxu1 %v7080_v8  ;;  %v4353_v8 = vrot.slane %v4216_v2, 1  ;;  %v7240_v2 = vld [vmem:[%s9414_s4 + $0x9c8] ss:$16 sps:$4 sm:$0xff]  }
 0x241   : > { %4095 = vmatpush1.bf16.msra.mxu0 %v7075_v9  ;;  %v7164_v9 = vld [vmem:[%s9414_s4 + $0x82c] ss:$16 sps:$4 sm:$0xff]  }
 0x242   : > { %4177 = vmatpush1.bf16.msra.mxu1 %v7078_v10  ;;  %4096 = vmatprep.subr.bf16.mxu0 %v7083_v11  ;;  %v7159_v10 = vld [vmem:[%s9414_s4 + $0x820] ss:$16 sps:$4 sm:$0xff]   ;;  %v7162_v11 = vld [vmem:[%s9414_s4 + $0x828] ss:$16 sps:$4 sm:$0xff]  }
 0x243   : > { %4178 = vmatprep.subr.bf16.mxu1 %v7086_v12  ;;  %v7167_v12 = vld [vmem:[%s9414_s4 + $0x844] ss:$16 sps:$4 sm:$0xff]  }
 0x245   : > { %4097 = vmatpush1.bf16.msra.mxu0 %v7081_v13  ;;  %v7170_v13 = vld [vmem:[%s9414_s4 + $0x84c] ss:$16 sps:$4 sm:$0xff]  }
 0x246   : > { %4179 = vmatpush1.bf16.msra.mxu1 %v7084_v14  ;;  %4098 = vmatprep.subr.bf16.mxu0 %v7089_v15  ;;  %v7165_v14 = vld [vmem:[%s9414_s4 + $0x840] ss:$16 sps:$4 sm:$0xff]   ;;  %v7168_v15 = vld [vmem:[%s9414_s4 + $0x848] ss:$16 sps:$4 sm:$0xff]  }
 0x247   : > { %4180 = vmatprep.subr.bf16.mxu1 %v7092_v16  ;;  %v7173_v16 = vld [vmem:[%s9414_s4 + $0x864] ss:$16 sps:$4 sm:$0xff]  }
 0x249   : > { %4099 = vmatpush1.bf16.msra.mxu0 %v7087_v17  ;;  %v7176_v17 = vld [vmem:[%s9414_s4 + $0x86c] ss:$16 sps:$4 sm:$0xff]  }
 0x24a   : > { %4181 = vmatpush1.bf16.msra.mxu1 %v7090_v18  ;;  %4100 = vmatprep.subr.bf16.mxu0 %v7095_v19  ;;  %v7171_v18 = vld [vmem:[%s9414_s4 + $0x860] ss:$16 sps:$4 sm:$0xff]   ;;  %v7174_v19 = vld [vmem:[%s9414_s4 + $0x868] ss:$16 sps:$4 sm:$0xff]  }
 0x24b   : > { %4182 = vmatprep.subr.bf16.mxu1 %v7098_v20  ;;  %v7179_v20 = vld [vmem:[%s9414_s4 + $0x884] ss:$16 sps:$4 sm:$0xff]  }
 0x24d   : > { %4101 = vmatpush1.bf16.msra.mxu0 %v7093_v21  ;;  %v7182_v21 = vld [vmem:[%s9414_s4 + $0x88c] ss:$16 sps:$4 sm:$0xff]  }
 0x24e   : > { %4183 = vmatpush1.bf16.msra.mxu1 %v7096_v22  ;;  %4102 = vmatprep.subr.bf16.mxu0 %v7101_v23  ;;  %v7177_v22 = vld [vmem:[%s9414_s4 + $0x880] ss:$16 sps:$4 sm:$0xff]   ;;  %v7180_v23 = vld [vmem:[%s9414_s4 + $0x888] ss:$16 sps:$4 sm:$0xff]  }
 0x24f   : > { %4184 = vmatprep.subr.bf16.mxu1 %v7104_v24  ;;  %v7185_v24 = vld [vmem:[%s9414_s4 + $0x8a4] ss:$16 sps:$4 sm:$0xff]  }
 0x251   : > { %4103 = vmatpush1.bf16.msra.mxu0 %v7099_v25  ;;  %v7188_v25 = vld [vmem:[%s9414_s4 + $0x8ac] ss:$16 sps:$4 sm:$0xff]  }
 0x252   : > { %4185 = vmatpush1.bf16.msra.mxu1 %v7102_v26  ;;  %4104 = vmatprep.subr.bf16.mxu0 %v7107_v27  ;;  %v7183_v26 = vld [vmem:[%s9414_s4 + $0x8a0] ss:$16 sps:$4 sm:$0xff]   ;;  %v7186_v27 = vld [vmem:[%s9414_s4 + $0x8a8] ss:$16 sps:$4 sm:$0xff]  }
 0x253   : > { %4186 = vmatprep.subr.bf16.mxu1 %v7110_v28  ;;  %v7191_v28 = vld [vmem:[%s9414_s4 + $0x8c4] ss:$16 sps:$4 sm:$0xff]  }
 0x255   : > { %4105 = vmatpush1.bf16.msra.mxu0 %v7105_v29  ;;  %v7194_v29 = vld [vmem:[%s9414_s4 + $0x8cc] ss:$16 sps:$4 sm:$0xff]  }
 0x256   : > { %4187 = vmatpush1.bf16.msra.mxu1 %v7108_v30  ;;  %4106 = vmatprep.subr.bf16.mxu0 %v7113_v31  ;;  %v7189_v30 = vld [vmem:[%s9414_s4 + $0x8c0] ss:$16 sps:$4 sm:$0xff]   ;;  %v7192_v31 = vld [vmem:[%s9414_s4 + $0x8c8] ss:$16 sps:$4 sm:$0xff]  }
 0x257   : > { %4188 = vmatprep.subr.bf16.mxu1 %v7116_v32  ;;  %v7197_v32 = vld [vmem:[%s9414_s4 + $0x8e4] ss:$16 sps:$4 sm:$0xff]  }
 0x259   : > { %4107 = vmatpush1.bf16.msra.mxu0 %v7111_v33  ;;  %v7200_v33 = vld [vmem:[%s9414_s4 + $0x8ec] ss:$16 sps:$4 sm:$0xff]  }
 0x25a   : > { %4189 = vmatpush1.bf16.msra.mxu1 %v7114_v34  ;;  %4108 = vmatprep.subr.bf16.mxu0 %v7119_v35  ;;  %v7195_v34 = vld [vmem:[%s9414_s4 + $0x8e0] ss:$16 sps:$4 sm:$0xff]   ;;  %v7198_v35 = vld [vmem:[%s9414_s4 + $0x8e8] ss:$16 sps:$4 sm:$0xff]  }
 0x25b   : > { %4190 = vmatprep.subr.bf16.mxu1 %v7122_v5  ;;  %v7203_v5 = vld [vmem:[%s9414_s4 + $0x904] ss:$16 sps:$4 sm:$0xff]  }
 0x25d   : > { %4109 = vmatpush1.bf16.msra.mxu0 %v7117_v36  ;;  %v7206_v36 = vld [vmem:[%s9414_s4 + $0x90c] ss:$16 sps:$4 sm:$0xff]  }
 0x25e   : > { %4191 = vmatpush1.bf16.msra.mxu1 %v7120_v37  ;;  %4110 = vmatprep.subr.bf16.mxu0 %v7125_v38  ;;  %v7201_v37 = vld [vmem:[%s9414_s4 + $0x900] ss:$16 sps:$4 sm:$0xff]   ;;  %v7204_v38 = vld [vmem:[%s9414_s4 + $0x908] ss:$16 sps:$4 sm:$0xff]  }
 0x25f   : > { %4192 = vmatprep.subr.bf16.mxu1 %v7128_v52  ;;  %v7209_v52 = vld [vmem:[%s9414_s4 + $0x924] ss:$16 sps:$4 sm:$0xff]  }
 0x261   : > { %4111 = vmatpush1.bf16.msra.mxu0 %v7123_v39  ;;  %v7212_v39 = vld [vmem:[%s9414_s4 + $0x92c] ss:$16 sps:$4 sm:$0xff]  }
 0x262   : > { %4193 = vmatpush1.bf16.msra.mxu1 %v7126_v40  ;;  %4112 = vmatprep.subr.bf16.mxu0 %v7131_v41  ;;  %v7207_v40 = vld [vmem:[%s9414_s4 + $0x920] ss:$16 sps:$4 sm:$0xff]   ;;  %v7210_v41 = vld [vmem:[%s9414_s4 + $0x928] ss:$16 sps:$4 sm:$0xff]  }
 0x263   : > { %4194 = vmatprep.subr.bf16.mxu1 %v7134_v42  ;;  %v7215_v42 = vld [vmem:[%s9414_s4 + $0x944] ss:$16 sps:$4 sm:$0xff]  }
 0x265   : > { %4113 = vmatpush1.bf16.msra.mxu0 %v7129_v43  ;;  %v7218_v43 = vld [vmem:[%s9414_s4 + $0x94c] ss:$16 sps:$4 sm:$0xff]  }
 0x266   : > { %4195 = vmatpush1.bf16.msra.mxu1 %v7132_v44  ;;  %4114 = vmatprep.subr.bf16.mxu0 %v7137_v45  ;;  %v7213_v44 = vld [vmem:[%s9414_s4 + $0x940] ss:$16 sps:$4 sm:$0xff]   ;;  %v7216_v45 = vld [vmem:[%s9414_s4 + $0x948] ss:$16 sps:$4 sm:$0xff]  }
 0x267   : > { %4196 = vmatprep.subr.bf16.mxu1 %v7140_v46  ;;  %v7221_v46 = vld [vmem:[%s9414_s4 + $0x964] ss:$16 sps:$4 sm:$0xff]  }
 0x269   : > { %4115 = vmatpush1.bf16.msra.mxu0 %v7135_v47  ;;  %v7224_v47 = vld [vmem:[%s9414_s4 + $0x96c] ss:$16 sps:$4 sm:$0xff]  }
 0x26a   : > { %4197 = vmatpush1.bf16.msra.mxu1 %v7138_v49  ;;  %4116 = vmatprep.subr.bf16.mxu0 %v7143_v51  ;;  %v7219_v49 = vld [vmem:[%s9414_s4 + $0x960] ss:$16 sps:$4 sm:$0xff]   ;;  %v7222_v51 = vld [vmem:[%s9414_s4 + $0x968] ss:$16 sps:$4 sm:$0xff]  }
 0x26b   : > { %4198 = vmatprep.subr.bf16.mxu1 %v7146_v53  ;;  %v7227_v53 = vld [vmem:[%s9414_s4 + $0x984] ss:$16 sps:$4 sm:$0xff]  }
 0x26d   : > { %4117 = vmatpush1.bf16.msra.mxu0 %v7141_v56  ;;  %v7230_v56 = vld [vmem:[%s9414_s4 + $0x98c] ss:$16 sps:$4 sm:$0xff]  }
 0x26e   : > { %4199 = vmatpush1.bf16.msra.mxu1 %v7144_v57  ;;  %4118 = vmatprep.subr.bf16.mxu0 %v7149_v58  ;;  %v7225_v57 = vld [vmem:[%s9414_s4 + $0x980] ss:$16 sps:$4 sm:$0xff]   ;;  %v7228_v58 = vld [vmem:[%s9414_s4 + $0x988] ss:$16 sps:$4 sm:$0xff]  }
 0x26f   : > { %4200 = vmatprep.subr.bf16.mxu1 %v7152_v59  ;;  %v7233_v59 = vld [vmem:[%s9414_s4 + $0x9a4] ss:$16 sps:$4 sm:$0xff]  }
 0x271   : > { %4119 = vmatpush1.bf16.msra.mxu0 %v7147_v60  ;;  %v7236_v60 = vld [vmem:[%s9414_s4 + $0x9ac] ss:$16 sps:$4 sm:$0xff]  }
 0x272   : > { %4201 = vmatpush1.bf16.msra.mxu1 %v7150_v62  ;;  %5000 = vmatprep.subr.bf16.mxu0 %v7155_v63  ;;  %v7234_v62 = vld [vmem:[%s9414_s4 + $0x9a8] ss:$16 sps:$4 sm:$0xff]   ;;  %v7239_v63 = vld [vmem:[%s9414_s4 + $0x9c4] ss:$16 sps:$4 sm:$0xff]  }
 0x273   : > { %5082 = vmatprep.subr.bf16.mxu1 %v7158_v1  ;;  %v7237_v1 = vld [vmem:[%s9414_s4 + $0x9c0] ss:$16 sps:$4 sm:$0xff]  }
 0x274   : > { %4121 = vmatmul.mubr.bf16.vlgmr.msra.gmra.mrb[12].mxu0 %v2304_v4 }
 0x275   : > { %4203 = vmatmul.mubr.bf16.vlgmr.msra.gmra.mrb[12].mxu1 %v2304_v4  ;;  %5001 = vmatpush1.bf16.msra.mxu0 %v7153_v3  ;;  %v7245_v3 = vld [vmem:[%s9414_s4 + $0x9e4] ss:$16 sps:$4 sm:$0xff]   ;;  %v7248_v4 = vld [vmem:[%s9414_s4 + $0x9ec] ss:$16 sps:$4 sm:$0xff]  }
 0x276   : > { %5032 = vmatprep.mubr.bf16.mxu0 %v4353_v8  ;;  %5083 = vmatpush1.bf16.msra.mxu1 %v7156_v6  ;;  %v4211_v6 = vld [vmem:[#allocation2] sm:$0x3c] }
 0x277   : > { %5114 = vmatprep.mubr.bf16.mxu1 %v4353_v8  ;;  %5002 = vmatprep.subr.bf16.mxu0 %v7161_v7  ;;  %v7243_v7 = vld [vmem:[%s9414_s4 + $0x9e0] ss:$16 sps:$4 sm:$0xff]   ;;  %v4214_v8 = vld [vmem:[#allocation2 + $0x18] sm:$0x3c] }
 0x278   : > { %5084 = vmatprep.subr.bf16.mxu1 %v7164_v9  ;;  %v7246_v9 = vld [vmem:[%s9414_s4 + $0x9e8] ss:$16 sps:$4 sm:$0xff]  }
 0x279   : > { %5003 = vmatpush1.bf16.msra.mxu0 %v7159_v10  ;;  %v4215_v10 = vpack.c.bf16 %v4211_v6, %v4211_v6  ;;  %v7329_v6 = vld [vmem:[%s9414_s4 + $0xba4] ss:$16 sps:$4 sm:$0xff]  }
 0x27a   : > { %5085 = vmatpush1.bf16.msra.mxu1 %v7162_v11  ;;  %5004 = vmatprep.subr.bf16.mxu0 %v7167_v12  ;;  %v7251_v11 = vld [vmem:[%s9414_s4 + $0xa04] ss:$16 sps:$4 sm:$0xff]   ;;  %v7254_v12 = vld [vmem:[%s9414_s4 + $0xa0c] ss:$16 sps:$4 sm:$0xff]  }
 0x27b   : > { %5086 = vmatprep.subr.bf16.mxu1 %v7170_v13  ;;  %v4218_v13 = vpack.c.bf16 %v4214_v8, %v4214_v8  ;;  %v7327_v8 = vld [vmem:[%s9414_s4 + $0xba0] ss:$16 sps:$4 sm:$0xff]  }
 0x27d   : > { %5005 = vmatpush1.bf16.msra.mxu0 %v7165_v14  ;;  %v7249_v14 = vld [vmem:[%s9414_s4 + $0xa00] ss:$16 sps:$4 sm:$0xff]  }
 0x27e   : > { %5087 = vmatpush1.bf16.msra.mxu1 %v7168_v15  ;;  %5006 = vmatprep.subr.bf16.mxu0 %v7173_v16  ;;  %v4352_v15 = vrot.slane %v4215_v10, 1  ;;  %v7252_v16 = vld [vmem:[%s9414_s4 + $0xa08] ss:$16 sps:$4 sm:$0xff]   ;;  %v7335_v10 = vld [vmem:[%s9414_s4 + $0xbc4] ss:$16 sps:$4 sm:$0xff]  }
 0x27f   : > { %5088 = vmatprep.subr.bf16.mxu1 %v7176_v17  ;;  %v7257_v17 = vld [vmem:[%s9414_s4 + $0xa24] ss:$16 sps:$4 sm:$0xff]  }
 0x281   : > { %5007 = vmatpush1.bf16.msra.mxu0 %v7171_v18  ;;  %v4355_v18 = vrot.slane %v4218_v13, 1  ;;  %v7336_v13 = vld [vmem:[%s9414_s4 + $0xbc8] ss:$16 sps:$4 sm:$0xff]  }
 0x282   : > { %5089 = vmatpush1.bf16.msra.mxu1 %v7174_v19  ;;  %5008 = vmatprep.subr.bf16.mxu0 %v7179_v20  ;;  %v7260_v19 = vld [vmem:[%s9414_s4 + $0xa2c] ss:$16 sps:$4 sm:$0xff]   ;;  %v7255_v20 = vld [vmem:[%s9414_s4 + $0xa20] ss:$16 sps:$4 sm:$0xff]  }
 0x283   : > { %5090 = vmatprep.subr.bf16.mxu1 %v7182_v21  ;;  %v7258_v21 = vld [vmem:[%s9414_s4 + $0xa28] ss:$16 sps:$4 sm:$0xff]  }
 0x285   : > { %5009 = vmatpush1.bf16.msra.mxu0 %v7177_v22  ;;  %v7263_v22 = vld [vmem:[%s9414_s4 + $0xa44] ss:$16 sps:$4 sm:$0xff]  }
 0x286   : > { %5091 = vmatpush1.bf16.msra.mxu1 %v7180_v23  ;;  %5010 = vmatprep.subr.bf16.mxu0 %v7185_v24  ;;  %v7266_v23 = vld [vmem:[%s9414_s4 + $0xa4c] ss:$16 sps:$4 sm:$0xff]   ;;  %v7261_v24 = vld [vmem:[%s9414_s4 + $0xa40] ss:$16 sps:$4 sm:$0xff]  }
 0x287   : > { %5092 = vmatprep.subr.bf16.mxu1 %v7188_v25  ;;  %v7264_v25 = vld [vmem:[%s9414_s4 + $0xa48] ss:$16 sps:$4 sm:$0xff]  }
 0x289   : > { %5011 = vmatpush1.bf16.msra.mxu0 %v7183_v26  ;;  %v7269_v26 = vld [vmem:[%s9414_s4 + $0xa64] ss:$16 sps:$4 sm:$0xff]  }
 0x28a   : > { %5093 = vmatpush1.bf16.msra.mxu1 %v7186_v27  ;;  %5012 = vmatprep.subr.bf16.mxu0 %v7191_v28  ;;  %v7272_v27 = vld [vmem:[%s9414_s4 + $0xa6c] ss:$16 sps:$4 sm:$0xff]   ;;  %v7267_v28 = vld [vmem:[%s9414_s4 + $0xa60] ss:$16 sps:$4 sm:$0xff]  }
 0x28b   : > { %5094 = vmatprep.subr.bf16.mxu1 %v7194_v29  ;;  %v7270_v29 = vld [vmem:[%s9414_s4 + $0xa68] ss:$16 sps:$4 sm:$0xff]  }
 0x28d   : > { %5013 = vmatpush1.bf16.msra.mxu0 %v7189_v30  ;;  %v7275_v30 = vld [vmem:[%s9414_s4 + $0xa84] ss:$16 sps:$4 sm:$0xff]  }
 0x28e   : > { %5095 = vmatpush1.bf16.msra.mxu1 %v7192_v31  ;;  %5014 = vmatprep.subr.bf16.mxu0 %v7197_v32  ;;  %v7278_v31 = vld [vmem:[%s9414_s4 + $0xa8c] ss:$16 sps:$4 sm:$0xff]   ;;  %v7273_v32 = vld [vmem:[%s9414_s4 + $0xa80] ss:$16 sps:$4 sm:$0xff]  }
 0x28f   : > { %5096 = vmatprep.subr.bf16.mxu1 %v7200_v33  ;;  %v7276_v33 = vld [vmem:[%s9414_s4 + $0xa88] ss:$16 sps:$4 sm:$0xff]  }
 0x291   : > { %5015 = vmatpush1.bf16.msra.mxu0 %v7195_v34  ;;  %v7281_v34 = vld [vmem:[%s9414_s4 + $0xaa4] ss:$16 sps:$4 sm:$0xff]  }
 0x292   : > { %5097 = vmatpush1.bf16.msra.mxu1 %v7198_v35  ;;  %5016 = vmatprep.subr.bf16.mxu0 %v7203_v5  ;;  %v7284_v35 = vld [vmem:[%s9414_s4 + $0xaac] ss:$16 sps:$4 sm:$0xff]   ;;  %v7279_v5 = vld [vmem:[%s9414_s4 + $0xaa0] ss:$16 sps:$4 sm:$0xff]  }
 0x293   : > { %5098 = vmatprep.subr.bf16.mxu1 %v7206_v36  ;;  %v7282_v36 = vld [vmem:[%s9414_s4 + $0xaa8] ss:$16 sps:$4 sm:$0xff]  }
 0x295   : > { %5017 = vmatpush1.bf16.msra.mxu0 %v7201_v37  ;;  %v7287_v37 = vld [vmem:[%s9414_s4 + $0xac4] ss:$16 sps:$4 sm:$0xff]  }
 0x296   : > { %5099 = vmatpush1.bf16.msra.mxu1 %v7204_v38  ;;  %5018 = vmatprep.subr.bf16.mxu0 %v7209_v52  ;;  %v7290_v38 = vld [vmem:[%s9414_s4 + $0xacc] ss:$16 sps:$4 sm:$0xff]   ;;  %v7285_v52 = vld [vmem:[%s9414_s4 + $0xac0] ss:$16 sps:$4 sm:$0xff]  }
 0x297   : > { %5100 = vmatprep.subr.bf16.mxu1 %v7212_v39  ;;  %v7288_v39 = vld [vmem:[%s9414_s4 + $0xac8] ss:$16 sps:$4 sm:$0xff]  }
 0x299   : > { %5019 = vmatpush1.bf16.msra.mxu0 %v7207_v40  ;;  %v7293_v40 = vld [vmem:[%s9414_s4 + $0xae4] ss:$16 sps:$4 sm:$0xff]  }
 0x29a   : > { %5101 = vmatpush1.bf16.msra.mxu1 %v7210_v41  ;;  %5020 = vmatprep.subr.bf16.mxu0 %v7215_v42  ;;  %v7296_v41 = vld [vmem:[%s9414_s4 + $0xaec] ss:$16 sps:$4 sm:$0xff]   ;;  %v7291_v42 = vld [vmem:[%s9414_s4 + $0xae0] ss:$16 sps:$4 sm:$0xff]  }
 0x29b   : > { %5102 = vmatprep.subr.bf16.mxu1 %v7218_v43  ;;  %v7294_v43 = vld [vmem:[%s9414_s4 + $0xae8] ss:$16 sps:$4 sm:$0xff]  }
 0x29d   : > { %5021 = vmatpush1.bf16.msra.mxu0 %v7213_v44  ;;  %v7299_v44 = vld [vmem:[%s9414_s4 + $0xb04] ss:$16 sps:$4 sm:$0xff]  }
 0x29e   : > { %5103 = vmatpush1.bf16.msra.mxu1 %v7216_v45  ;;  %5022 = vmatprep.subr.bf16.mxu0 %v7221_v46  ;;  %v7302_v45 = vld [vmem:[%s9414_s4 + $0xb0c] ss:$16 sps:$4 sm:$0xff]   ;;  %v7297_v46 = vld [vmem:[%s9414_s4 + $0xb00] ss:$16 sps:$4 sm:$0xff]  }
 0x29f   : > { %5104 = vmatprep.subr.bf16.mxu1 %v7224_v47  ;;  %v7300_v47 = vld [vmem:[%s9414_s4 + $0xb08] ss:$16 sps:$4 sm:$0xff]  }
 0x2a1   : > { %5023 = vmatpush1.bf16.msra.mxu0 %v7219_v49  ;;  %v7305_v49 = vld [vmem:[%s9414_s4 + $0xb24] ss:$16 sps:$4 sm:$0xff]  }
 0x2a2   : > { %5105 = vmatpush1.bf16.msra.mxu1 %v7222_v51  ;;  %5024 = vmatprep.subr.bf16.mxu0 %v7227_v53  ;;  %v7308_v51 = vld [vmem:[%s9414_s4 + $0xb2c] ss:$16 sps:$4 sm:$0xff]   ;;  %v7303_v53 = vld [vmem:[%s9414_s4 + $0xb20] ss:$16 sps:$4 sm:$0xff]  }
 0x2a3   : > { %5106 = vmatprep.subr.bf16.mxu1 %v7230_v56  ;;  %v7306_v56 = vld [vmem:[%s9414_s4 + $0xb28] ss:$16 sps:$4 sm:$0xff]  }
 0x2a5   : > { %5025 = vmatpush1.bf16.msra.mxu0 %v7225_v57  ;;  %v7311_v57 = vld [vmem:[%s9414_s4 + $0xb44] ss:$16 sps:$4 sm:$0xff]  }
 0x2a6   : > { %5107 = vmatpush1.bf16.msra.mxu1 %v7228_v58  ;;  %5026 = vmatprep.subr.bf16.mxu0 %v7233_v59  ;;  %v7314_v58 = vld [vmem:[%s9414_s4 + $0xb4c] ss:$16 sps:$4 sm:$0xff]   ;;  %v7309_v59 = vld [vmem:[%s9414_s4 + $0xb40] ss:$16 sps:$4 sm:$0xff]  }
 0x2a7   : > { %5108 = vmatprep.subr.bf16.mxu1 %v7236_v60  ;;  %v7312_v60 = vld [vmem:[%s9414_s4 + $0xb48] ss:$16 sps:$4 sm:$0xff]  }
 0x2a9   : > { %5027 = vmatpush1.bf16.msra.mxu0 %v7231_v61  ;;  %v7317_v61 = vld [vmem:[%s9414_s4 + $0xb64] ss:$16 sps:$4 sm:$0xff]  }
 0x2aa   : > { %5109 = vmatpush1.bf16.msra.mxu1 %v7234_v62  ;;  %5028 = vmatprep.subr.bf16.mxu0 %v7239_v63  ;;  %v7320_v62 = vld [vmem:[%s9414_s4 + $0xb6c] ss:$16 sps:$4 sm:$0xff]   ;;  %v7315_v63 = vld [vmem:[%s9414_s4 + $0xb60] ss:$16 sps:$4 sm:$0xff]  }
 0x2ab   : > { %5110 = vmatprep.subr.bf16.mxu1 %v7242_v0  ;;  %v7318_v0 = vld [vmem:[%s9414_s4 + $0xb68] ss:$16 sps:$4 sm:$0xff]  }
 0x2ad   : > { %5029 = vmatpush1.bf16.msra.mxu0 %v7237_v1  ;;  %v7323_v1 = vld [vmem:[%s9414_s4 + $0xb84] ss:$16 sps:$4 sm:$0xff]  }
 0x2ae   : > { %5111 = vmatpush1.bf16.msra.mxu1 %v7240_v2  ;;  %5030 = vmatprep.subr.bf16.mxu0 %v7245_v3  ;;  %v7326_v2 = vld [vmem:[%s9414_s4 + $0xb8c] ss:$16 sps:$4 sm:$0xff]   ;;  %v7321_v3 = vld [vmem:[%s9414_s4 + $0xb80] ss:$16 sps:$4 sm:$0xff]  }
 0x2af   : > { %5112 = vmatprep.subr.bf16.mxu1 %v7248_v4  ;;  %v7324_v4 = vld [vmem:[%s9414_s4 + $0xb88] ss:$16 sps:$4 sm:$0xff]  }
 0x2b1   : > { %5031 = vmatpush1.bf16.msra.mxu0 %v7243_v7  ;;  %v7332_v7 = vld [vmem:[%s9414_s4 + $0xbac] ss:$16 sps:$4 sm:$0xff]  }
 0x2b2   : > { %5113 = vmatpush1.bf16.msra.mxu1 %v7246_v9  ;;  %5041 = vmatprep.subr.bf16.mxu0 %v7251_v11  ;;  %v7330_v9 = vld [vmem:[%s9414_s4 + $0xba8] ss:$16 sps:$4 sm:$0xff]   ;;  %v7338_v11 = vld [vmem:[%s9414_s4 + $0xbcc] ss:$16 sps:$4 sm:$0xff]  }
 0x2b3   : > { %5123 = vmatprep.subr.bf16.mxu1 %v7254_v12  ;;  %v7333_v12 = vld [vmem:[%s9414_s4 + $0xbc0] ss:$16 sps:$4 sm:$0xff]  }
 0x2b4   : > { %5033 = vmatmul.mubr.bf16.vlgmr.msra.gmra.mrb[12].mxu0 %v4352_v15 }
 0x2b5   : > { %5115 = vmatmul.mubr.bf16.vlgmr.msra.gmra.mrb[12].mxu1 %v4352_v15  ;;  %5042 = vmatpush1.bf16.msra.mxu0 %v7249_v14  ;;  %v7341_v14 = vld [vmem:[%s9414_s4 + $0xbe4] ss:$16 sps:$4 sm:$0xff]   ;;  %v7344_v15 = vld [vmem:[%s9414_s4 + $0xbec] ss:$16 sps:$4 sm:$0xff]  }
 0x2b6   : > { %5073 = vmatprep.mubr.bf16.mxu0 %v4355_v18  ;;  %5124 = vmatpush1.bf16.msra.mxu1 %v7252_v16  ;;  %v4213_v16 = vld [vmem:[#allocation2 + $0x10] sm:$0x3c] }
 0x2b7   : > { %5155 = vmatprep.mubr.bf16.mxu1 %v4355_v18  ;;  %5043 = vmatprep.subr.bf16.mxu0 %v7257_v17  ;;  %v7339_v17 = vld [vmem:[%s9414_s4 + $0xbe0] ss:$16 sps:$4 sm:$0xff]   ;;  %v7342_v18 = vld [vmem:[%s9414_s4 + $0xbe8] ss:$16 sps:$4 sm:$0xff]  }
 0x2b8   : > { %5125 = vmatprep.subr.bf16.mxu1 %v7260_v19  ;;  %v4217_v19 = vpack.c.bf16 %v4213_v16, %v4213_v16 }
 0x2b9   : > { %5044 = vmatpush1.bf16.msra.mxu0 %v7255_v20 }
 0x2ba   : > { %5126 = vmatpush1.bf16.msra.mxu1 %v7258_v21  ;;  %5045 = vmatprep.subr.bf16.mxu0 %v7263_v22  ;;  %v4354_v20 = vrot.slane %v4217_v19, 1  ;;  %v1854_v21 = vld [vmem:[%s9417_s7] sm:$0xf] }
 0x2bb   : > { %5127 = vmatprep.subr.bf16.mxu1 %v7266_v23  ;;  %v5168_v22 = vld [vmem:[%s9415_s5] sm:$0xf]  ;;  %v1859_v23 = vrot.slane %v1854_v21, %v8419_v48 }
 0x2bd   : > { %5046 = vmatpush1.bf16.msra.mxu0 %v7261_v24  ;;  %v1867_v24 = vrot.slane %v1854_v21, %v8421_v54 }
 0x2be   : > { %5128 = vmatpush1.bf16.msra.mxu1 %v7264_v25  ;;  %5047 = vmatprep.subr.bf16.mxu0 %v7269_v26  ;;  %v1863_v25 = vrot.slane %v1854_v21, %v8426_v50  ;;  %v5173_v26 = vrot.slane %v5168_v22, %v8419_v48 }
 0x2bf   : > { %5129 = vmatprep.subr.bf16.mxu1 %v7272_v27  ;;  %v1871_v27 = vrot.slane %v1854_v21, %v8428_v55 }
 0x2c1   : > { %5048 = vmatpush1.bf16.msra.mxu0 %v7267_v28 }
 0x2c2   : > { %5130 = vmatpush1.bf16.msra.mxu1 %v7270_v29  ;;  %5049 = vmatprep.subr.bf16.mxu0 %v7275_v30  ;;  %v5181_v29 = vrot.slane %v5168_v22, %v8421_v54  ;;  %v5177_v30 = vrot.slane %v5168_v22, %v8426_v50 }
 0x2c3   : > { %5131 = vmatprep.subr.bf16.mxu1 %v7278_v31 }
 0x2c5   : > { %5050 = vmatpush1.bf16.msra.mxu0 %v7273_v32 }
 0x2c6   : > { %5132 = vmatpush1.bf16.msra.mxu1 %v7276_v33  ;;  %5051 = vmatprep.subr.bf16.mxu0 %v7281_v34  ;;  %v5185_v34 = vrot.slane %v5168_v22, %v8428_v55 }
 0x2c7   : > { %5133 = vmatprep.subr.bf16.mxu1 %v7284_v35 }
 0x2c9   : > { %5052 = vmatpush1.bf16.msra.mxu0 %v7279_v5 }
 0x2ca   : > { %5134 = vmatpush1.bf16.msra.mxu1 %v7282_v36  ;;  %5053 = vmatprep.subr.bf16.mxu0 %v7287_v37 }
 0x2cb   : > { %5135 = vmatprep.subr.bf16.mxu1 %v7290_v38 }
 0x2cd   : > { %5054 = vmatpush1.bf16.msra.mxu0 %v7285_v52 }
 0x2ce   : > { %5136 = vmatpush1.bf16.msra.mxu1 %v7288_v39  ;;  %5055 = vmatprep.subr.bf16.mxu0 %v7293_v40 }
 0x2cf   : > { %5137 = vmatprep.subr.bf16.mxu1 %v7296_v41 }
 0x2d1   : > { %5056 = vmatpush1.bf16.msra.mxu0 %v7291_v42 }
 0x2d2   : > { %5138 = vmatpush1.bf16.msra.mxu1 %v7294_v43  ;;  %5057 = vmatprep.subr.bf16.mxu0 %v7299_v44 }
 0x2d3   : > { %5139 = vmatprep.subr.bf16.mxu1 %v7302_v45 }
 0x2d5   : > { %5058 = vmatpush1.bf16.msra.mxu0 %v7297_v46 }
 0x2d6   : > { %5140 = vmatpush1.bf16.msra.mxu1 %v7300_v47  ;;  %5059 = vmatprep.subr.bf16.mxu0 %v7305_v49 }
 0x2d7   : > { %5141 = vmatprep.subr.bf16.mxu1 %v7308_v51 }
 0x2d9   : > { %5060 = vmatpush1.bf16.msra.mxu0 %v7303_v53 }
 0x2da   : > { %5142 = vmatpush1.bf16.msra.mxu1 %v7306_v56  ;;  %5061 = vmatprep.subr.bf16.mxu0 %v7311_v57 }
 0x2db   : > { %5143 = vmatprep.subr.bf16.mxu1 %v7314_v58 }
 0x2dd   : > { %5062 = vmatpush1.bf16.msra.mxu0 %v7309_v59 }
 0x2de   : > { %5144 = vmatpush1.bf16.msra.mxu1 %v7312_v60  ;;  %5063 = vmatprep.subr.bf16.mxu0 %v7317_v61 }
 0x2df   : > { %5145 = vmatprep.subr.bf16.mxu1 %v7320_v62 }
 0x2e1   : > { %5064 = vmatpush1.bf16.msra.mxu0 %v7315_v63 }
 0x2e2   : > { %5146 = vmatpush1.bf16.msra.mxu1 %v7318_v0  ;;  %5065 = vmatprep.subr.bf16.mxu0 %v7323_v1 }
 0x2e3   : > { %5147 = vmatprep.subr.bf16.mxu1 %v7326_v2 }
 0x2e5   : > { %5066 = vmatpush1.bf16.msra.mxu0 %v7321_v3 }
 0x2e6   : > { %5148 = vmatpush1.bf16.msra.mxu1 %v7324_v4  ;;  %5067 = vmatprep.subr.bf16.mxu0 %v7329_v6 }
 0x2e7   : > { %5149 = vmatprep.subr.bf16.mxu1 %v7332_v7 }
 0x2e9   : > { %5068 = vmatpush1.bf16.msra.mxu0 %v7327_v8 }
 0x2ea   : > { %5150 = vmatpush1.bf16.msra.mxu1 %v7330_v9  ;;  %5069 = vmatprep.subr.bf16.mxu0 %v7335_v10 }
 0x2eb   : > { %5151 = vmatprep.subr.bf16.mxu1 %v7338_v11 }
 0x2ed   : > { %5070 = vmatpush1.bf16.msra.mxu0 %v7333_v12 }
 0x2ee   : > { %5152 = vmatpush1.bf16.msra.mxu1 %v7336_v13  ;;  %5071 = vmatprep.subr.bf16.mxu0 %v7341_v14 }
 0x2ef   : > { %5153 = vmatprep.subr.bf16.mxu1 %v7344_v15 }
 0x2f1   : > { %5072 = vmatpush1.bf16.msra.mxu0 %v7339_v17 }
 0x2f2   : > { %5154 = vmatpush1.bf16.msra.mxu1 %v7342_v18 }
 0x2f4   : > { %5074 = vmatmul.mubr.bf16.vlgmr.msra.gmra.mrb[12].mxu0 %v4354_v20 }
 0x2f5   : > { %5156 = vmatmul.mubr.bf16.vlgmr.msra.gmra.mrb[12].mxu1 %v4354_v20 }
 0x3c7   : > { %v5075_v28 = vpop.f32.mrb[12].mxu0 }
 0x3c8   : > { %v6319_v31 = vadd.f32 %v5075_v28, %v1859_v23  ;;  %v5157_v32 = vpop.f32.mrb[12].mxu1  ;;  %v5077_v33 = vpop.f32.mrb[13].mxu0 }
 0x3c9   : > { %v6323_v35 = vadd.f32 %v5157_v32, %v1867_v24  ;;  %v6321_v5 = vadd.f32 %v5077_v33, %v1863_v25  ;;  %v5159_v36 = vpop.f32.mrb[13].mxu1  ;;  %v5079_v37 = vpop.f32.mrb[14].mxu0 }
 0x3ca   : > { %v6320_v38 = vadd.f32 %v6319_v31, %v5173_v26  ;;  %v6325_v52 = vadd.f32 %v5159_v36, %v1871_v27  ;;  %v5161_v48 = vpop.f32.mrb[14].mxu1  ;;  %v5080_v39 = vpop.f32.mrb[15].mxu0 }
 0x3cb   : > { %v6324_v40 = vadd.f32 %v6323_v35, %v5181_v29  ;;  %v6322_v41 = vadd.f32 %v6321_v5, %v5177_v30  ;;  %v5162_v42 = vpop.f32.mrb[15].mxu1 }
 0x3cc   : > { %v5198_v54 = vmax.f32 %v6320_v38, 0.0  ;;  %v6326_v43 = vadd.f32 %v6325_v52, %v5185_v34 }
 0x3cd   : > { %v5200_v50 = vmax.f32 %v6324_v40, 0.0  ;;  %v5199_v44 = vmax.f32 %v6322_v41, 0.0 }
 0x3ce   : > { %v5201_v55 = vmax.f32 %v6326_v43, 0.0 }
 0x3cf   : > { %v5206_v45 = vcombine.low %v5198_v54, %v5199_v44 }
 0x3d0   : > { %v5207_v46 = vcombine.low %v5200_v50, %v5201_v55 }
 0x3d1   : > { %5210 = vst [vmem:[%s325_s12] sm:$0xff] %v5206_v45 }
 0x3d2   : > { %5211 = vst [vmem:[%s325_s12 + $0x8] sm:$0xff] %v5207_v46 }
 0x3d3 PF: > { %s18_s27 = sadd.s32 1, %s7351_s27  }
 0x3d4   : > { %p15_p4 = scmp.ge.s32.totalorder %s18_s27, 4  }
 0x3d6   :  { %17 = sbr.rel (!%p15_p4) target bundleno = 1 (0x1), region = 89 }

// kernel: _lambda_.32
= control target key start
LH: loop header
LB: loop body
LE: loop exit
PB: predicated region body
PF: predicated region fallthrough
CT: control target
= control target key end

     0   :  { %s8623_s18 = smov 0   ;;  %s11126_s0 = inlined_call_operand.vmem [shape: f32[2,6,512], index: 0, kind: input, shape index: {}]   ;;  %s11127_s1 = inlined_call_operand.vmem [shape: bf16[3,512,512], index: 1, kind: input, shape index: {}]   ;;  %s11128_s2 = inlined_call_operand.vmem [shape: f32[1,512], index: 2, kind: input, shape index: {}]   ;;  %s11129_s3 = inlined_call_operand.vmem [shape: bf16[3,512,512], index: 3, kind: input, shape index: {}]   ;;  %s11130_s4 = inlined_call_operand.vmem [shape: f32[1,512], index: 4, kind: input, shape index: {}]   ;;  %s11131_s5 = inlined_call_operand.vmem [shape: f32[2,4,512], index: 5, kind: output, shape index: {}]  }
   0x1 LB: > { %s6130_s19 = sadd.s32 4294967295, %s8590_s18   ;;  %p6134_p0 = scmp.ge.s32.totalorder %s8590_s18, 1  ;;  %s8590_s18 = sphi %s8623_s18, %s15_s18  }
   0x2   : > { %p187_p1 = scmp.lt.s32.totalorder %s8590_s18, 3 }
   0x4   : > { %p188_p2 = pnand %p6134_p0, %p187_p1 }
   0x5   : > { %v7432_v0 = vld [vmem:[%s11127_s1 + $0x404] ss:$16 sps:$4 sm:$0xff] (!%p188_p2)   ;;  %v7436_v2 = vld [vmem:[%s11127_s1 + $0x400] ss:$16 sps:$4 sm:$0xff] (!%p188_p2)   ;;  %p215_p3 = scmp.lt.s32.totalorder (!%p188_p2), %s6130_s19, 1 }
   0x6   : > { %191 = sbr.rel (%p188_p2) target bundleno = 1177 (0x499), region = 40  ;;  %v7434_v1 = vld [vmem:[%s11127_s1 + $0x604] ss:$16 sps:$4 sm:$0xff] (!%p188_p2)   ;;  %1170 = vmatprep.subr.bf16.mxu0 (!%p188_p2), %v7432_v0  ;;  %v7437_v3 = vld [vmem:[%s11127_s1 + $0x600] ss:$16 sps:$4 sm:$0xff] (!%p188_p2)  }
   0x7   : > { %1211 = vmatprep.subr.bf16.mxu1 (!%p188_p2), %v7434_v1  ;;  %v7438_v4 = vld [vmem:[%s11127_s1 + $0x424] ss:$16 sps:$4 sm:$0xff] (!%p188_p2)   ;;  %1171 = vmatpush1.bf16.msra.mxu0 (!%p188_p2), %v7436_v2  ;;  %v7442_v6 = vld [vmem:[%s11127_s1 + $0x420] ss:$16 sps:$4 sm:$0xff] (!%p188_p2)  }
   0x8   : > { %1212 = vmatpush1.bf16.msra.mxu1 (!%p188_p2), %v7437_v3  ;;  %v7440_v5 = vld [vmem:[%s11127_s1 + $0x624] ss:$16 sps:$4 sm:$0xff] (!%p188_p2)   ;;  %1172 = vmatprep.subr.bf16.mxu0 (!%p188_p2), %v7438_v4  ;;  %v7443_v7 = vld [vmem:[%s11127_s1 + $0x620] ss:$16 sps:$4 sm:$0xff] (!%p188_p2)  }
   0x9   : > { %1213 = vmatprep.subr.bf16.mxu1 (!%p188_p2), %v7440_v5  ;;  %v7444_v8 = vld [vmem:[%s11127_s1 + $0x444] ss:$16 sps:$4 sm:$0xff] (!%p188_p2)   ;;  %v7448_v10 = vld [vmem:[%s11127_s1 + $0x440] ss:$16 sps:$4 sm:$0xff] (!%p188_p2)  }
   0xa   : > { %v7446_v9 = vld [vmem:[%s11127_s1 + $0x644] ss:$16 sps:$4 sm:$0xff] (!%p188_p2)   ;;  %v7449_v11 = vld [vmem:[%s11127_s1 + $0x640] ss:$16 sps:$4 sm:$0xff] (!%p188_p2)  }
   0xb   : > { %1173 = vmatpush1.bf16.msra.mxu0 (!%p188_p2), %v7442_v6  ;;  %v7450_v12 = vld [vmem:[%s11127_s1 + $0x464] ss:$16 sps:$4 sm:$0xff] (!%p188_p2)   ;;  %v7454_v14 = vld [vmem:[%s11127_s1 + $0x460] ss:$16 sps:$4 sm:$0xff] (!%p188_p2)  }
   0xc   : > { %1214 = vmatpush1.bf16.msra.mxu1 (!%p188_p2), %v7443_v7  ;;  %1174 = vmatprep.subr.bf16.mxu0 (!%p188_p2), %v7444_v8  ;;  %v7452_v13 = vld [vmem:[%s11127_s1 + $0x664] ss:$16 sps:$4 sm:$0xff] (!%p188_p2)   ;;  %v7455_v15 = vld [vmem:[%s11127_s1 + $0x660] ss:$16 sps:$4 sm:$0xff] (!%p188_p2)  }
   0xd   : > { %1215 = vmatprep.subr.bf16.mxu1 %v7446_v9  ;;  %v7456_v16 = vld [vmem:[%s11127_s1 + $0x484] ss:$16 sps:$4 sm:$0xff]   ;;  %v7460_v18 = vld [vmem:[%s11127_s1 + $0x480] ss:$16 sps:$4 sm:$0xff]   ;;  %s11133_s19 = smov (!%p215_p3, %s6130_s19), 1 }
   0xe   : > { %v7458_v17 = vld [vmem:[%s11127_s1 + $0x684] ss:$16 sps:$4 sm:$0xff]   ;;  %v7461_v19 = vld [vmem:[%s11127_s1 + $0x680] ss:$16 sps:$4 sm:$0xff]   ;;  %s7421_s8 = sshll.u32 %s11133_s19, 5  ;;  %s7422_s20 = sshll.u32 %s11133_s19, 4 }
   0xf   : > { %1175 = vmatpush1.bf16.msra.mxu0 %v7448_v10  ;;  %v7462_v20 = vld [vmem:[%s11127_s1 + $0x4a4] ss:$16 sps:$4 sm:$0xff]   ;;  %v7466_v22 = vld [vmem:[%s11127_s1 + $0x4a0] ss:$16 sps:$4 sm:$0xff]   ;;  %s8773_s17 = scalar_lea.vmem %s11126_s0, %s7421_s8  ;;  %s224_s23 = scalar_lea.vmem %s11131_s5, %s7422_s20 }
  0x10   : > { %1216 = vmatpush1.bf16.msra.mxu1 %v7449_v11  ;;  %1176 = vmatprep.subr.bf16.mxu0 %v7450_v12  ;;  %v7464_v21 = vld [vmem:[%s11127_s1 + $0x6a4] ss:$16 sps:$4 sm:$0xff]   ;;  %v7467_v23 = vld [vmem:[%s11127_s1 + $0x6a0] ss:$16 sps:$4 sm:$0xff]   ;;  %v362_v46 = vld [vmem:[%s8773_s17 + $0x8] sm:$0x1e] }
  0x11   : > { %1217 = vmatprep.subr.bf16.mxu1 %v7452_v13  ;;  %v7468_v24 = vld [vmem:[%s11127_s1 + $0x4c4] ss:$16 sps:$4 sm:$0xff]   ;;  %v7472_v26 = vld [vmem:[%s11127_s1 + $0x4c0] ss:$16 sps:$4 sm:$0xff]   ;;  %v366_v49 = vpack.c.bf16 %v362_v46, %v362_v46  ;;  %v364_v50 = vld [vmem:[%s8773_s17 + $0x18] sm:$0x1e] }
  0x12   : > { %v7470_v25 = vld [vmem:[%s11127_s1 + $0x6c4] ss:$16 sps:$4 sm:$0xff]   ;;  %v7473_v27 = vld [vmem:[%s11127_s1 + $0x6c0] ss:$16 sps:$4 sm:$0xff]   ;;  %v368_v52 = vpack.c.bf16 %v364_v50, %v364_v50  ;;  %v7558_v46 = vld [vmem:[%s11127_s1 + $0x4a8] ss:$16 sps:$4 sm:$0xff]  }
  0x13   : > { %1177 = vmatpush1.bf16.msra.mxu0 %v7454_v14  ;;  %v7474_v28 = vld [vmem:[%s11127_s1 + $0x4e4] ss:$16 sps:$4 sm:$0xff]   ;;  %v7478_v30 = vld [vmem:[%s11127_s1 + $0x4e0] ss:$16 sps:$4 sm:$0xff]   ;;  %v506_v54 = vshrl.u32 %v366_v49, 16  ;;  %v508_v55 = vshll.u32 %v366_v49, 16 }
  0x14   : > { %1218 = vmatpush1.bf16.msra.mxu1 %v7455_v15  ;;  %1178 = vmatprep.subr.bf16.mxu0 %v7456_v16  ;;  %v7476_v29 = vld [vmem:[%s11127_s1 + $0x6e4] ss:$16 sps:$4 sm:$0xff]   ;;  %v7479_v31 = vld [vmem:[%s11127_s1 + $0x6e0] ss:$16 sps:$4 sm:$0xff]   ;;  %v520_v57 = vshrl.u32 %v368_v52, 16  ;;  %v522_v58 = vshll.u32 %v368_v52, 16 }
  0x15   : > { %1219 = vmatprep.subr.bf16.mxu1 %v7458_v17  ;;  %v7480_v32 = vld [vmem:[%s11127_s1 + $0x504] ss:$16 sps:$4 sm:$0xff]   ;;  %v7484_v34 = vld [vmem:[%s11127_s1 + $0x500] ss:$16 sps:$4 sm:$0xff]   ;;  %v510_v60 = vrot.slane %v508_v55, 1 }
  0x16   : > { %v7482_v33 = vld [vmem:[%s11127_s1 + $0x704] ss:$16 sps:$4 sm:$0xff]   ;;  %v7485_v35 = vld [vmem:[%s11127_s1 + $0x700] ss:$16 sps:$4 sm:$0xff]   ;;  %v524_v62 = vrot.slane %v522_v58, 1 }
  0x17   : > { %1179 = vmatpush1.bf16.msra.mxu0 %v7460_v18  ;;  %v7486_v36 = vld [vmem:[%s11127_s1 + $0x524] ss:$16 sps:$4 sm:$0xff]   ;;  %v7490_v38 = vld [vmem:[%s11127_s1 + $0x520] ss:$16 sps:$4 sm:$0xff]   ;;  %v511_v2 = vor.u32 %v510_v60, %v506_v54  ;;  %v7569_v49 = vld [vmem:[%s11127_s1 + $0x6cc] ss:$16 sps:$4 sm:$0xff]  }
  0x18   : > { %1220 = vmatpush1.bf16.msra.mxu1 %v7461_v19  ;;  %1180 = vmatprep.subr.bf16.mxu0 %v7462_v20  ;;  %v7488_v37 = vld [vmem:[%s11127_s1 + $0x724] ss:$16 sps:$4 sm:$0xff]   ;;  %v7491_v39 = vld [vmem:[%s11127_s1 + $0x720] ss:$16 sps:$4 sm:$0xff]   ;;  %v525_v3 = vor.u32 %v524_v62, %v520_v57  ;;  %v7564_v50 = vld [vmem:[%s11127_s1 + $0x4c8] ss:$16 sps:$4 sm:$0xff]  }
  0x19   : > { %1221 = vmatprep.subr.bf16.mxu1 %v7464_v21  ;;  %v7492_v40 = vld [vmem:[%s11127_s1 + $0x544] ss:$16 sps:$4 sm:$0xff]   ;;  %v7496_v42 = vld [vmem:[%s11127_s1 + $0x540] ss:$16 sps:$4 sm:$0xff]   ;;  %1202 = vmatprep.mubr.bf16.mxu0 %v511_v2  ;;  %v7572_v52 = vld [vmem:[%s11127_s1 + $0x4ec] ss:$16 sps:$4 sm:$0xff]  }
  0x1a   : > { %v7494_v41 = vld [vmem:[%s11127_s1 + $0x744] ss:$16 sps:$4 sm:$0xff]   ;;  %v7497_v43 = vld [vmem:[%s11127_s1 + $0x740] ss:$16 sps:$4 sm:$0xff]   ;;  %1243 = vmatprep.mubr.bf16.mxu1 %v525_v3  ;;  %v7570_v54 = vld [vmem:[%s11127_s1 + $0x4e8] ss:$16 sps:$4 sm:$0xff]  }
  0x1b   : > { %1181 = vmatpush1.bf16.msra.mxu0 %v7466_v22  ;;  %v7498_v44 = vld [vmem:[%s11127_s1 + $0x564] ss:$16 sps:$4 sm:$0xff]   ;;  %v7502_v47 = vld [vmem:[%s11127_s1 + $0x560] ss:$16 sps:$4 sm:$0xff]   ;;  %v7530_v22 = vld [vmem:[%s11127_s1 + $0x40c] ss:$16 sps:$4 sm:$0xff]  }
  0x1c   : > { %1222 = vmatpush1.bf16.msra.mxu1 %v7467_v23  ;;  %1182 = vmatprep.subr.bf16.mxu0 %v7468_v24  ;;  %v7500_v45 = vld [vmem:[%s11127_s1 + $0x764] ss:$16 sps:$4 sm:$0xff]   ;;  %v7503_v48 = vld [vmem:[%s11127_s1 + $0x760] ss:$16 sps:$4 sm:$0xff]   ;;  %v7533_v23 = vld [vmem:[%s11127_s1 + $0x60c] ss:$16 sps:$4 sm:$0xff]  }
  0x1d   : > { %1223 = vmatprep.subr.bf16.mxu1 %v7470_v25  ;;  %v7504_v51 = vld [vmem:[%s11127_s1 + $0x584] ss:$16 sps:$4 sm:$0xff]   ;;  %v7508_v56 = vld [vmem:[%s11127_s1 + $0x580] ss:$16 sps:$4 sm:$0xff]   ;;  %v7573_v55 = vld [vmem:[%s11127_s1 + $0x6e8] ss:$16 sps:$4 sm:$0xff]  }
  0x1e   : > { %v7506_v53 = vld [vmem:[%s11127_s1 + $0x784] ss:$16 sps:$4 sm:$0xff]   ;;  %v7509_v59 = vld [vmem:[%s11127_s1 + $0x780] ss:$16 sps:$4 sm:$0xff]   ;;  %v7581_v57 = vld [vmem:[%s11127_s1 + $0x70c] ss:$16 sps:$4 sm:$0xff]  }
  0x1f   : > { %1183 = vmatpush1.bf16.msra.mxu0 %v7472_v26  ;;  %v361_v61 = vld [vmem:[%s8773_s17] sm:$0x1e]  ;;  %v363_v63 = vld [vmem:[%s8773_s17 + $0x10] sm:$0x1e]  ;;  %v7528_v26 = vld [vmem:[%s11127_s1 + $0x408] ss:$16 sps:$4 sm:$0xff]  }
  0x20   : > { %1224 = vmatpush1.bf16.msra.mxu1 %v7473_v27  ;;  %1184 = vmatprep.subr.bf16.mxu0 %v7474_v28  ;;  %v7510_v0 = vld [vmem:[%s11127_s1 + $0x5a4] ss:$16 sps:$4 sm:$0xff]   ;;  %v7514_v4 = vld [vmem:[%s11127_s1 + $0x5a0] ss:$16 sps:$4 sm:$0xff]   ;;  %v365_v5 = vpack.c.bf16 %v361_v61, %v361_v61  ;;  %v367_v6 = vpack.c.bf16 %v363_v63, %v363_v63  ;;  %v7531_v27 = vld [vmem:[%s11127_s1 + $0x608] ss:$16 sps:$4 sm:$0xff]  }
  0x21   : > { %1225 = vmatprep.subr.bf16.mxu1 %v7476_v29  ;;  %v7512_v1 = vld [vmem:[%s11127_s1 + $0x7a4] ss:$16 sps:$4 sm:$0xff]   ;;  %v7515_v7 = vld [vmem:[%s11127_s1 + $0x7a0] ss:$16 sps:$4 sm:$0xff]   ;;  %v7536_v28 = vld [vmem:[%s11127_s1 + $0x42c] ss:$16 sps:$4 sm:$0xff]  }
  0x22   : > { %v7516_v8 = vld [vmem:[%s11127_s1 + $0x5c4] ss:$16 sps:$4 sm:$0xff]   ;;  %v7520_v10 = vld [vmem:[%s11127_s1 + $0x5c0] ss:$16 sps:$4 sm:$0xff]   ;;  %v501_v11 = vshll.u32 %v365_v5, 16  ;;  %v515_v12 = vshll.u32 %v367_v6, 16 }
  0x23   : > { %1185 = vmatpush1.bf16.msra.mxu0 %v7478_v30  ;;  %v7518_v9 = vld [vmem:[%s11127_s1 + $0x7c4] ss:$16 sps:$4 sm:$0xff]   ;;  %v7521_v13 = vld [vmem:[%s11127_s1 + $0x7c0] ss:$16 sps:$4 sm:$0xff]   ;;  %v499_v17 = vshrl.u32 %v365_v5, 16  ;;  %v513_v19 = vshrl.u32 %v367_v6, 16 }
  0x24   : > { %1226 = vmatpush1.bf16.msra.mxu1 %v7479_v31  ;;  %1186 = vmatprep.subr.bf16.mxu0 %v7480_v32  ;;  %v7522_v14 = vld [vmem:[%s11127_s1 + $0x5e4] ss:$16 sps:$4 sm:$0xff]   ;;  %v7526_v16 = vld [vmem:[%s11127_s1 + $0x5e0] ss:$16 sps:$4 sm:$0xff]   ;;  %v503_v18 = vrot.slane %v501_v11, 1  ;;  %v517_v20 = vrot.slane %v515_v12, 1 }
  0x25   : > { %1227 = vmatprep.subr.bf16.mxu1 %v7482_v33  ;;  %v7524_v15 = vld [vmem:[%s11127_s1 + $0x7e4] ss:$16 sps:$4 sm:$0xff]   ;;  %v7527_v21 = vld [vmem:[%s11127_s1 + $0x7e0] ss:$16 sps:$4 sm:$0xff]   ;;  %v7539_v29 = vld [vmem:[%s11127_s1 + $0x62c] ss:$16 sps:$4 sm:$0xff]  }
  0x26   : > { %v8845_v24 = vor.u32 %v503_v18, %v499_v17  ;;  %v8847_v25 = vor.u32 %v517_v20, %v513_v19  ;;  %v7534_v30 = vld [vmem:[%s11127_s1 + $0x428] ss:$16 sps:$4 sm:$0xff]   ;;  %v7542_v32 = vld [vmem:[%s11127_s1 + $0x44c] ss:$16 sps:$4 sm:$0xff]  }
  0x27   : > { %1187 = vmatpush1.bf16.msra.mxu0 %v7484_v34  ;;  %v7537_v31 = vld [vmem:[%s11127_s1 + $0x628] ss:$16 sps:$4 sm:$0xff]   ;;  %v7545_v33 = vld [vmem:[%s11127_s1 + $0x64c] ss:$16 sps:$4 sm:$0xff]  }
  0x28   : > { %1228 = vmatpush1.bf16.msra.mxu1 %v7485_v35  ;;  %1188 = vmatprep.subr.bf16.mxu0 %v7486_v36  ;;  %v7540_v34 = vld [vmem:[%s11127_s1 + $0x448] ss:$16 sps:$4 sm:$0xff]   ;;  %v7548_v36 = vld [vmem:[%s11127_s1 + $0x46c] ss:$16 sps:$4 sm:$0xff]  }
  0x29   : > { %1229 = vmatprep.subr.bf16.mxu1 %v7488_v37  ;;  %v7543_v35 = vld [vmem:[%s11127_s1 + $0x648] ss:$16 sps:$4 sm:$0xff]   ;;  %v7551_v37 = vld [vmem:[%s11127_s1 + $0x66c] ss:$16 sps:$4 sm:$0xff]  }
  0x2a   : > { %v7576_v58 = vld [vmem:[%s11127_s1 + $0x508] ss:$16 sps:$4 sm:$0xff]   ;;  %v7584_v60 = vld [vmem:[%s11127_s1 + $0x52c] ss:$16 sps:$4 sm:$0xff]  }
  0x2b   : > { %1189 = vmatpush1.bf16.msra.mxu0 %v7490_v38  ;;  %v7546_v38 = vld [vmem:[%s11127_s1 + $0x468] ss:$16 sps:$4 sm:$0xff]   ;;  %v7587_v61 = vld [vmem:[%s11127_s1 + $0x72c] ss:$16 sps:$4 sm:$0xff]  }
  0x2c   : > { %1230 = vmatpush1.bf16.msra.mxu1 %v7491_v39  ;;  %1190 = vmatprep.subr.bf16.mxu0 %v7492_v40  ;;  %v7549_v39 = vld [vmem:[%s11127_s1 + $0x668] ss:$16 sps:$4 sm:$0xff]   ;;  %v7554_v40 = vld [vmem:[%s11127_s1 + $0x48c] ss:$16 sps:$4 sm:$0xff]  }
  0x2d   : > { %1231 = vmatprep.subr.bf16.mxu1 %v7494_v41  ;;  %v7557_v41 = vld [vmem:[%s11127_s1 + $0x68c] ss:$16 sps:$4 sm:$0xff]   ;;  %v7582_v62 = vld [vmem:[%s11127_s1 + $0x528] ss:$16 sps:$4 sm:$0xff]  }
  0x2e   : > { %v7585_v63 = vld [vmem:[%s11127_s1 + $0x728] ss:$16 sps:$4 sm:$0xff]   ;;  %v7599_v5 = vld [vmem:[%s11127_s1 + $0x76c] ss:$16 sps:$4 sm:$0xff]  }
  0x2f   : > { %1191 = vmatpush1.bf16.msra.mxu0 %v7496_v42  ;;  %v7552_v42 = vld [vmem:[%s11127_s1 + $0x488] ss:$16 sps:$4 sm:$0xff]   ;;  %v7608_v12 = vld [vmem:[%s11127_s1 + $0x5ac] ss:$16 sps:$4 sm:$0xff]  }
  0x30   : > { %1232 = vmatpush1.bf16.msra.mxu1 %v7497_v43  ;;  %1192 = vmatprep.subr.bf16.mxu0 %v7498_v44  ;;  %v7555_v43 = vld [vmem:[%s11127_s1 + $0x688] ss:$16 sps:$4 sm:$0xff]   ;;  %v7560_v44 = vld [vmem:[%s11127_s1 + $0x4ac] ss:$16 sps:$4 sm:$0xff]  }
  0x31   : > { %1233 = vmatprep.subr.bf16.mxu1 %v7500_v45  ;;  %v7563_v45 = vld [vmem:[%s11127_s1 + $0x6ac] ss:$16 sps:$4 sm:$0xff]   ;;  %v7594_v6 = vld [vmem:[%s11127_s1 + $0x568] ss:$16 sps:$4 sm:$0xff]  }
  0x32   : > { %v7603_v11 = vld [vmem:[%s11127_s1 + $0x788] ss:$16 sps:$4 sm:$0xff]   ;;  %v7617_v17 = vld [vmem:[%s11127_s1 + $0x7cc] ss:$16 sps:$4 sm:$0xff]  }
  0x33   : > { %1193 = vmatpush1.bf16.msra.mxu0 %v7502_v47  ;;  %v7561_v47 = vld [vmem:[%s11127_s1 + $0x6a8] ss:$16 sps:$4 sm:$0xff]   ;;  %v7620_v20 = vld [vmem:[%s11127_s1 + $0x5ec] ss:$16 sps:$4 sm:$0xff]  }
  0x34   : > { %1234 = vmatpush1.bf16.msra.mxu1 %v7503_v48  ;;  %1194 = vmatprep.subr.bf16.mxu0 %v7504_v51  ;;  %v7566_v48 = vld [vmem:[%s11127_s1 + $0x4cc] ss:$16 sps:$4 sm:$0xff]   ;;  %v7567_v51 = vld [vmem:[%s11127_s1 + $0x6c8] ss:$16 sps:$4 sm:$0xff]  }
  0x35   : > { %1235 = vmatprep.subr.bf16.mxu1 %v7506_v53  ;;  %v7575_v53 = vld [vmem:[%s11127_s1 + $0x6ec] ss:$16 sps:$4 sm:$0xff]   ;;  %v7612_v18 = vld [vmem:[%s11127_s1 + $0x5c8] ss:$16 sps:$4 sm:$0xff]  }
  0x36   : > { %v7615_v19 = vld [vmem:[%s11127_s1 + $0x7c8] ss:$16 sps:$4 sm:$0xff]  }
  0x37   : > { %1195 = vmatpush1.bf16.msra.mxu0 %v7508_v56  ;;  %v7578_v56 = vld [vmem:[%s11127_s1 + $0x50c] ss:$16 sps:$4 sm:$0xff]  }
  0x38   : > { %1236 = vmatpush1.bf16.msra.mxu1 %v7509_v59  ;;  %1196 = vmatprep.subr.bf16.mxu0 %v7510_v0  ;;  %v7579_v59 = vld [vmem:[%s11127_s1 + $0x708] ss:$16 sps:$4 sm:$0xff]   ;;  %v7590_v0 = vld [vmem:[%s11127_s1 + $0x54c] ss:$16 sps:$4 sm:$0xff]  }
  0x39   : > { %1237 = vmatprep.subr.bf16.mxu1 %v7512_v1  ;;  %v7593_v1 = vld [vmem:[%s11127_s1 + $0x74c] ss:$16 sps:$4 sm:$0xff]  }
  0x3b   : > { %1197 = vmatpush1.bf16.msra.mxu0 %v7514_v4  ;;  %v7596_v4 = vld [vmem:[%s11127_s1 + $0x56c] ss:$16 sps:$4 sm:$0xff]  }
  0x3c   : > { %1238 = vmatpush1.bf16.msra.mxu1 %v7515_v7  ;;  %1198 = vmatprep.subr.bf16.mxu0 %v7516_v8  ;;  %v7597_v7 = vld [vmem:[%s11127_s1 + $0x768] ss:$16 sps:$4 sm:$0xff]   ;;  %v7602_v8 = vld [vmem:[%s11127_s1 + $0x58c] ss:$16 sps:$4 sm:$0xff]  }
  0x3d   : > { %1239 = vmatprep.subr.bf16.mxu1 %v7518_v9  ;;  %v7605_v9 = vld [vmem:[%s11127_s1 + $0x78c] ss:$16 sps:$4 sm:$0xff]  }
  0x3f   : > { %1199 = vmatpush1.bf16.msra.mxu0 %v7520_v10  ;;  %v7600_v10 = vld [vmem:[%s11127_s1 + $0x588] ss:$16 sps:$4 sm:$0xff]  }
  0x40   : > { %1240 = vmatpush1.bf16.msra.mxu1 %v7521_v13  ;;  %1200 = vmatprep.subr.bf16.mxu0 %v7522_v14  ;;  %v7611_v13 = vld [vmem:[%s11127_s1 + $0x7ac] ss:$16 sps:$4 sm:$0xff]   ;;  %v7606_v14 = vld [vmem:[%s11127_s1 + $0x5a8] ss:$16 sps:$4 sm:$0xff]  }
  0x41   : > { %1241 = vmatprep.subr.bf16.mxu1 %v7524_v15  ;;  %v7609_v15 = vld [vmem:[%s11127_s1 + $0x7a8] ss:$16 sps:$4 sm:$0xff]  }
  0x43   : > { %1201 = vmatpush1.bf16.msra.mxu0 %v7526_v16  ;;  %v7614_v16 = vld [vmem:[%s11127_s1 + $0x5cc] ss:$16 sps:$4 sm:$0xff]  }
  0x44   : > { %1242 = vmatpush1.bf16.msra.mxu1 %v7527_v21  ;;  %1252 = vmatprep.subr.bf16.mxu0 %v7530_v22  ;;  %v7623_v21 = vld [vmem:[%s11127_s1 + $0x7ec] ss:$16 sps:$4 sm:$0xff]   ;;  %v7618_v22 = vld [vmem:[%s11127_s1 + $0x5e8] ss:$16 sps:$4 sm:$0xff]  }
  0x45   : > { %1293 = vmatprep.subr.bf16.mxu1 %v7533_v23  ;;  %v7621_v23 = vld [vmem:[%s11127_s1 + $0x7e8] ss:$16 sps:$4 sm:$0xff]  }
  0x46   : > { %1203 = vmatmul.mubr.bf16.vlgmr.msra.gmra.mrb[0].mxu0 %v8845_v24 }
  0x47   : > { %1244 = vmatmul.mubr.bf16.vlgmr.msra.gmra.mrb[0].mxu1 %v8847_v25  ;;  %1253 = vmatpush1.bf16.msra.mxu0 %v7528_v26  ;;  %v7626_v26 = vld [vmem:[%s11127_s1 + $0x4] ss:$16 sps:$4 sm:$0xff]  }
  0x48   : > { %1294 = vmatpush1.bf16.msra.mxu1 %v7531_v27  ;;  %1254 = vmatprep.subr.bf16.mxu0 %v7536_v28  ;;  %v7629_v27 = vld [vmem:[%s11127_s1 + $0x204] ss:$16 sps:$4 sm:$0xff]   ;;  %v7624_v28 = vld [vmem:[%s11127_s1] ss:$16 sps:$4 sm:$0xff]  }
  0x49   : > { %1295 = vmatprep.subr.bf16.mxu1 %v7539_v29  ;;  %1284 = vmatprep.mubr.bf16.mxu0 %v511_v2  ;;  %v7588_v2 = vld [vmem:[%s11127_s1 + $0x548] ss:$16 sps:$4 sm:$0xff]   ;;  %v7627_v29 = vld [vmem:[%s11127_s1 + $0x200] ss:$16 sps:$4 sm:$0xff]  }
  0x4a   : > { %1325 = vmatprep.mubr.bf16.mxu1 %v525_v3  ;;  %v7591_v3 = vld [vmem:[%s11127_s1 + $0x748] ss:$16 sps:$4 sm:$0xff]  }
  0x4b   : > { %1255 = vmatpush1.bf16.msra.mxu0 %v7534_v30  ;;  %v7632_v30 = vld [vmem:[%s11127_s1 + $0x24] ss:$16 sps:$4 sm:$0xff]  }
  0x4c   : > { %1296 = vmatpush1.bf16.msra.mxu1 %v7537_v31  ;;  %1256 = vmatprep.subr.bf16.mxu0 %v7542_v32  ;;  %v7635_v31 = vld [vmem:[%s11127_s1 + $0x224] ss:$16 sps:$4 sm:$0xff]   ;;  %v226_v32 = vld [vmem:[%s8773_s17 + $0x8] sm:$0xf] }
  0x4d   : > { %1297 = vmatprep.subr.bf16.mxu1 %v7545_v33  ;;  %v228_v33 = vld [vmem:[%s8773_s17 + $0x18] sm:$0xf] }
  0x4f   : > { %1257 = vmatpush1.bf16.msra.mxu0 %v7540_v34  ;;  %v7630_v34 = vld [vmem:[%s11127_s1 + $0x20] ss:$16 sps:$4 sm:$0xff]  }
  0x50   : > { %1298 = vmatpush1.bf16.msra.mxu1 %v7543_v35  ;;  %1258 = vmatprep.subr.bf16.mxu0 %v7548_v36  ;;  %v9062_v35 = vpack.c.bf16 %v226_v32, %v226_v32  ;;  %v9064_v36 = vpack.c.bf16 %v228_v33, %v228_v33  ;;  %v7722_v32 = vld [vmem:[%s11127_s1 + $0xc] ss:$16 sps:$4 sm:$0xff]  }
  0x51   : > { %1299 = vmatprep.subr.bf16.mxu1 %v7551_v37  ;;  %v7633_v37 = vld [vmem:[%s11127_s1 + $0x220] ss:$16 sps:$4 sm:$0xff]   ;;  %v7725_v33 = vld [vmem:[%s11127_s1 + $0x20c] ss:$16 sps:$4 sm:$0xff]  }
  0x53   : > { %1259 = vmatpush1.bf16.msra.mxu0 %v7546_v38  ;;  %v7636_v38 = vld [vmem:[%s11127_s1 + $0x40] ss:$16 sps:$4 sm:$0xff]  }
  0x54   : > { %1300 = vmatpush1.bf16.msra.mxu1 %v7549_v39  ;;  %1260 = vmatprep.subr.bf16.mxu0 %v7554_v40  ;;  %v7639_v39 = vld [vmem:[%s11127_s1 + $0x240] ss:$16 sps:$4 sm:$0xff]   ;;  %v7644_v40 = vld [vmem:[%s11127_s1 + $0x64] ss:$16 sps:$4 sm:$0xff]  }
  0x55   : > { %1301 = vmatprep.subr.bf16.mxu1 %v7557_v41  ;;  %v7647_v41 = vld [vmem:[%s11127_s1 + $0x264] ss:$16 sps:$4 sm:$0xff]  }
  0x57   : > { %1261 = vmatpush1.bf16.msra.mxu0 %v7552_v42  ;;  %v7642_v42 = vld [vmem:[%s11127_s1 + $0x60] ss:$16 sps:$4 sm:$0xff]  }
  0x58   : > { %1302 = vmatpush1.bf16.msra.mxu1 %v7555_v43  ;;  %1262 = vmatprep.subr.bf16.mxu0 %v7560_v44  ;;  %v7645_v43 = vld [vmem:[%s11127_s1 + $0x260] ss:$16 sps:$4 sm:$0xff]   ;;  %v7650_v44 = vld [vmem:[%s11127_s1 + $0x84] ss:$16 sps:$4 sm:$0xff]  }
  0x59   : > { %1303 = vmatprep.subr.bf16.mxu1 %v7563_v45  ;;  %v7653_v45 = vld [vmem:[%s11127_s1 + $0x284] ss:$16 sps:$4 sm:$0xff]  }
  0x5b   : > { %1263 = vmatpush1.bf16.msra.mxu0 %v7558_v46  ;;  %v7648_v46 = vld [vmem:[%s11127_s1 + $0x80] ss:$16 sps:$4 sm:$0xff]  }
  0x5c   : > { %1304 = vmatpush1.bf16.msra.mxu1 %v7561_v47  ;;  %1264 = vmatprep.subr.bf16.mxu0 %v7566_v48  ;;  %v7651_v47 = vld [vmem:[%s11127_s1 + $0x280] ss:$16 sps:$4 sm:$0xff]   ;;  %v7656_v48 = vld [vmem:[%s11127_s1 + $0xa4] ss:$16 sps:$4 sm:$0xff]  }
  0x5d   : > { %1305 = vmatprep.subr.bf16.mxu1 %v7569_v49  ;;  %v7659_v49 = vld [vmem:[%s11127_s1 + $0x2a4] ss:$16 sps:$4 sm:$0xff]  }
  0x5f   : > { %1265 = vmatpush1.bf16.msra.mxu0 %v7564_v50  ;;  %v7654_v50 = vld [vmem:[%s11127_s1 + $0xa0] ss:$16 sps:$4 sm:$0xff]  }
  0x60   : > { %1306 = vmatpush1.bf16.msra.mxu1 %v7567_v51  ;;  %1266 = vmatprep.subr.bf16.mxu0 %v7572_v52  ;;  %v7657_v51 = vld [vmem:[%s11127_s1 + $0x2a0] ss:$16 sps:$4 sm:$0xff]   ;;  %v7662_v52 = vld [vmem:[%s11127_s1 + $0xc4] ss:$16 sps:$4 sm:$0xff]  }
  0x61   : > { %1307 = vmatprep.subr.bf16.mxu1 %v7575_v53  ;;  %v7665_v53 = vld [vmem:[%s11127_s1 + $0x2c4] ss:$16 sps:$4 sm:$0xff]  }
  0x63   : > { %1267 = vmatpush1.bf16.msra.mxu0 %v7570_v54  ;;  %v7660_v54 = vld [vmem:[%s11127_s1 + $0xc0] ss:$16 sps:$4 sm:$0xff]  }
  0x64   : > { %1308 = vmatpush1.bf16.msra.mxu1 %v7573_v55  ;;  %1268 = vmatprep.subr.bf16.mxu0 %v7578_v56  ;;  %v7663_v55 = vld [vmem:[%s11127_s1 + $0x2c0] ss:$16 sps:$4 sm:$0xff]   ;;  %v7668_v56 = vld [vmem:[%s11127_s1 + $0xe4] ss:$16 sps:$4 sm:$0xff]  }
  0x65   : > { %1309 = vmatprep.subr.bf16.mxu1 %v7581_v57  ;;  %v7671_v57 = vld [vmem:[%s11127_s1 + $0x2e4] ss:$16 sps:$4 sm:$0xff]  }
  0x67   : > { %1269 = vmatpush1.bf16.msra.mxu0 %v7576_v58  ;;  %v7666_v58 = vld [vmem:[%s11127_s1 + $0xe0] ss:$16 sps:$4 sm:$0xff]  }
  0x68   : > { %1310 = vmatpush1.bf16.msra.mxu1 %v7579_v59  ;;  %1270 = vmatprep.subr.bf16.mxu0 %v7584_v60  ;;  %v7669_v59 = vld [vmem:[%s11127_s1 + $0x2e0] ss:$16 sps:$4 sm:$0xff]   ;;  %v7674_v60 = vld [vmem:[%s11127_s1 + $0x104] ss:$16 sps:$4 sm:$0xff]  }
  0x69   : > { %1311 = vmatprep.subr.bf16.mxu1 %v7587_v61  ;;  %v7677_v61 = vld [vmem:[%s11127_s1 + $0x304] ss:$16 sps:$4 sm:$0xff]  }
  0x6b   : > { %1271 = vmatpush1.bf16.msra.mxu0 %v7582_v62  ;;  %v7672_v62 = vld [vmem:[%s11127_s1 + $0x100] ss:$16 sps:$4 sm:$0xff]  }
  0x6c   : > { %1312 = vmatpush1.bf16.msra.mxu1 %v7585_v63  ;;  %1272 = vmatprep.subr.bf16.mxu0 %v7590_v0  ;;  %v7675_v63 = vld [vmem:[%s11127_s1 + $0x300] ss:$16 sps:$4 sm:$0xff]   ;;  %v7680_v0 = vld [vmem:[%s11127_s1 + $0x124] ss:$16 sps:$4 sm:$0xff]  }
  0x6d   : > { %1313 = vmatprep.subr.bf16.mxu1 %v7593_v1  ;;  %v7683_v1 = vld [vmem:[%s11127_s1 + $0x324] ss:$16 sps:$4 sm:$0xff]  }
  0x6f   : > { %1273 = vmatpush1.bf16.msra.mxu0 %v7588_v2  ;;  %v7678_v2 = vld [vmem:[%s11127_s1 + $0x120] ss:$16 sps:$4 sm:$0xff]  }
  0x70   : > { %1314 = vmatpush1.bf16.msra.mxu1 %v7591_v3  ;;  %1274 = vmatprep.subr.bf16.mxu0 %v7596_v4  ;;  %v7681_v3 = vld [vmem:[%s11127_s1 + $0x320] ss:$16 sps:$4 sm:$0xff]   ;;  %v7686_v4 = vld [vmem:[%s11127_s1 + $0x144] ss:$16 sps:$4 sm:$0xff]  }
  0x71   : > { %1315 = vmatprep.subr.bf16.mxu1 %v7599_v5  ;;  %v7689_v5 = vld [vmem:[%s11127_s1 + $0x344] ss:$16 sps:$4 sm:$0xff]  }
  0x73   : > { %1275 = vmatpush1.bf16.msra.mxu0 %v7594_v6  ;;  %v7684_v6 = vld [vmem:[%s11127_s1 + $0x140] ss:$16 sps:$4 sm:$0xff]  }
  0x74   : > { %1316 = vmatpush1.bf16.msra.mxu1 %v7597_v7  ;;  %1276 = vmatprep.subr.bf16.mxu0 %v7602_v8  ;;  %v7687_v7 = vld [vmem:[%s11127_s1 + $0x340] ss:$16 sps:$4 sm:$0xff]   ;;  %v7692_v8 = vld [vmem:[%s11127_s1 + $0x164] ss:$16 sps:$4 sm:$0xff]  }
  0x75   : > { %1317 = vmatprep.subr.bf16.mxu1 %v7605_v9  ;;  %v7695_v9 = vld [vmem:[%s11127_s1 + $0x364] ss:$16 sps:$4 sm:$0xff]  }
  0x77   : > { %1277 = vmatpush1.bf16.msra.mxu0 %v7600_v10  ;;  %v7690_v10 = vld [vmem:[%s11127_s1 + $0x160] ss:$16 sps:$4 sm:$0xff]  }
  0x78   : > { %1318 = vmatpush1.bf16.msra.mxu1 %v7603_v11  ;;  %1278 = vmatprep.subr.bf16.mxu0 %v7608_v12  ;;  %v7693_v11 = vld [vmem:[%s11127_s1 + $0x360] ss:$16 sps:$4 sm:$0xff]   ;;  %v7698_v12 = vld [vmem:[%s11127_s1 + $0x184] ss:$16 sps:$4 sm:$0xff]  }
  0x79   : > { %1319 = vmatprep.subr.bf16.mxu1 %v7611_v13  ;;  %v7701_v13 = vld [vmem:[%s11127_s1 + $0x384] ss:$16 sps:$4 sm:$0xff]  }
  0x7b   : > { %1279 = vmatpush1.bf16.msra.mxu0 %v7606_v14  ;;  %v7696_v14 = vld [vmem:[%s11127_s1 + $0x180] ss:$16 sps:$4 sm:$0xff]  }
  0x7c   : > { %1320 = vmatpush1.bf16.msra.mxu1 %v7609_v15  ;;  %1280 = vmatprep.subr.bf16.mxu0 %v7614_v16  ;;  %v7699_v15 = vld [vmem:[%s11127_s1 + $0x380] ss:$16 sps:$4 sm:$0xff]   ;;  %v7704_v16 = vld [vmem:[%s11127_s1 + $0x1a4] ss:$16 sps:$4 sm:$0xff]  }
  0x7d   : > { %1321 = vmatprep.subr.bf16.mxu1 %v7617_v17  ;;  %v7707_v17 = vld [vmem:[%s11127_s1 + $0x3a4] ss:$16 sps:$4 sm:$0xff]  }
  0x7f   : > { %1281 = vmatpush1.bf16.msra.mxu0 %v7612_v18  ;;  %v7702_v18 = vld [vmem:[%s11127_s1 + $0x1a0] ss:$16 sps:$4 sm:$0xff]  }
  0x80   : > { %1322 = vmatpush1.bf16.msra.mxu1 %v7615_v19  ;;  %1282 = vmatprep.subr.bf16.mxu0 %v7620_v20  ;;  %v7705_v19 = vld [vmem:[%s11127_s1 + $0x3a0] ss:$16 sps:$4 sm:$0xff]   ;;  %v7710_v20 = vld [vmem:[%s11127_s1 + $0x1c4] ss:$16 sps:$4 sm:$0xff]  }
  0x81   : > { %1323 = vmatprep.subr.bf16.mxu1 %v7623_v21  ;;  %v7713_v21 = vld [vmem:[%s11127_s1 + $0x3c4] ss:$16 sps:$4 sm:$0xff]  }
  0x83   : > { %1283 = vmatpush1.bf16.msra.mxu0 %v7618_v22  ;;  %v7708_v22 = vld [vmem:[%s11127_s1 + $0x1c0] ss:$16 sps:$4 sm:$0xff]  }
  0x84   : > { %1324 = vmatpush1.bf16.msra.mxu1 %v7621_v23  ;;  %1974 = vmatprep.subr.bf16.mxu0 %v7626_v26  ;;  %v7711_v23 = vld [vmem:[%s11127_s1 + $0x3c0] ss:$16 sps:$4 sm:$0xff]   ;;  %v7716_v26 = vld [vmem:[%s11127_s1 + $0x1e4] ss:$16 sps:$4 sm:$0xff]  }
  0x85   : > { %2015 = vmatprep.subr.bf16.mxu1 %v7629_v27  ;;  %v7719_v27 = vld [vmem:[%s11127_s1 + $0x3e4] ss:$16 sps:$4 sm:$0xff]  }
  0x86   : > { %1285 = vmatmul.mubr.bf16.vlgmr.msra.gmra.mrb[4].mxu0 %v8845_v24  ;;  %v7638_v24 = vld [vmem:[%s11127_s1 + $0x44] ss:$16 sps:$4 sm:$0xff]  }
  0x87   : > { %1326 = vmatmul.mubr.bf16.vlgmr.msra.gmra.mrb[4].mxu1 %v8847_v25  ;;  %1975 = vmatpush1.bf16.msra.mxu0 %v7624_v28  ;;  %v7641_v25 = vld [vmem:[%s11127_s1 + $0x244] ss:$16 sps:$4 sm:$0xff]   ;;  %v7714_v28 = vld [vmem:[%s11127_s1 + $0x1e0] ss:$16 sps:$4 sm:$0xff]  }
  0x88   : > { %2016 = vmatpush1.bf16.msra.mxu1 %v7627_v29  ;;  %1976 = vmatprep.subr.bf16.mxu0 %v7632_v30  ;;  %v7717_v29 = vld [vmem:[%s11127_s1 + $0x3e0] ss:$16 sps:$4 sm:$0xff]  }
  0x89   : > { %2017 = vmatprep.subr.bf16.mxu1 %v7635_v31  ;;  %2006 = vmatprep.mubr.bf16.mxu0 %v9062_v35  ;;  %v225_v30 = vld [vmem:[%s8773_s17] sm:$0xf]  ;;  %v227_v31 = vld [vmem:[%s8773_s17 + $0x10] sm:$0xf] }
  0x8a   : > { %2047 = vmatprep.mubr.bf16.mxu1 %v9064_v36 }
  0x8b   : > { %1977 = vmatpush1.bf16.msra.mxu0 %v7630_v34  ;;  %v9247_v34 = vpack.c.bf16 %v225_v30, %v225_v30  ;;  %v7812_v30 = vld [vmem:[%s11127_s1 + $0x1ec] ss:$16 sps:$4 sm:$0xff]  }
  0x8c   : > { %2018 = vmatpush1.bf16.msra.mxu1 %v7633_v37  ;;  %1978 = vmatprep.subr.bf16.mxu0 %v7638_v24  ;;  %v9249_v37 = vpack.c.bf16 %v227_v31, %v227_v31  ;;  %v7720_v24 = vld [vmem:[%s11127_s1 + $0x8] ss:$16 sps:$4 sm:$0xff]   ;;  %v7815_v31 = vld [vmem:[%s11127_s1 + $0x3ec] ss:$16 sps:$4 sm:$0xff]  }
  0x8d   : > { %2019 = vmatprep.subr.bf16.mxu1 %v7641_v25  ;;  %v7723_v25 = vld [vmem:[%s11127_s1 + $0x208] ss:$16 sps:$4 sm:$0xff]  }
  0x8f   : > { %1979 = vmatpush1.bf16.msra.mxu0 %v7636_v38  ;;  %v7728_v38 = vld [vmem:[%s11127_s1 + $0x2c] ss:$16 sps:$4 sm:$0xff]  }
  0x90   : > { %2020 = vmatpush1.bf16.msra.mxu1 %v7639_v39  ;;  %1980 = vmatprep.subr.bf16.mxu0 %v7644_v40  ;;  %v7731_v39 = vld [vmem:[%s11127_s1 + $0x22c] ss:$16 sps:$4 sm:$0xff]   ;;  %v7726_v40 = vld [vmem:[%s11127_s1 + $0x28] ss:$16 sps:$4 sm:$0xff]  }
  0x91   : > { %2021 = vmatprep.subr.bf16.mxu1 %v7647_v41  ;;  %v7729_v41 = vld [vmem:[%s11127_s1 + $0x228] ss:$16 sps:$4 sm:$0xff]  }
  0x93   : > { %1981 = vmatpush1.bf16.msra.mxu0 %v7642_v42  ;;  %v7734_v42 = vld [vmem:[%s11127_s1 + $0x4c] ss:$16 sps:$4 sm:$0xff]  }
  0x94   : > { %2022 = vmatpush1.bf16.msra.mxu1 %v7645_v43  ;;  %1982 = vmatprep.subr.bf16.mxu0 %v7650_v44  ;;  %v7737_v43 = vld [vmem:[%s11127_s1 + $0x24c] ss:$16 sps:$4 sm:$0xff]   ;;  %v7732_v44 = vld [vmem:[%s11127_s1 + $0x48] ss:$16 sps:$4 sm:$0xff]  }
  0x95   : > { %2023 = vmatprep.subr.bf16.mxu1 %v7653_v45  ;;  %v7735_v45 = vld [vmem:[%s11127_s1 + $0x248] ss:$16 sps:$4 sm:$0xff]  }
  0x97   : > { %1983 = vmatpush1.bf16.msra.mxu0 %v7648_v46  ;;  %v7740_v46 = vld [vmem:[%s11127_s1 + $0x6c] ss:$16 sps:$4 sm:$0xff]  }
  0x98   : > { %2024 = vmatpush1.bf16.msra.mxu1 %v7651_v47  ;;  %1984 = vmatprep.subr.bf16.mxu0 %v7656_v48  ;;  %v7741_v47 = vld [vmem:[%s11127_s1 + $0x268] ss:$16 sps:$4 sm:$0xff]   ;;  %v7746_v48 = vld [vmem:[%s11127_s1 + $0x8c] ss:$16 sps:$4 sm:$0xff]  }
  0x99   : > { %2025 = vmatprep.subr.bf16.mxu1 %v7659_v49  ;;  %v7749_v49 = vld [vmem:[%s11127_s1 + $0x28c] ss:$16 sps:$4 sm:$0xff]  }
  0x9b   : > { %1985 = vmatpush1.bf16.msra.mxu0 %v7654_v50  ;;  %v7744_v50 = vld [vmem:[%s11127_s1 + $0x88] ss:$16 sps:$4 sm:$0xff]  }
  0x9c   : > { %2026 = vmatpush1.bf16.msra.mxu1 %v7657_v51  ;;  %1986 = vmatprep.subr.bf16.mxu0 %v7662_v52  ;;  %v7747_v51 = vld [vmem:[%s11127_s1 + $0x288] ss:$16 sps:$4 sm:$0xff]   ;;  %v7752_v52 = vld [vmem:[%s11127_s1 + $0xac] ss:$16 sps:$4 sm:$0xff]  }
  0x9d   : > { %2027 = vmatprep.subr.bf16.mxu1 %v7665_v53  ;;  %v7755_v53 = vld [vmem:[%s11127_s1 + $0x2ac] ss:$16 sps:$4 sm:$0xff]  }
  0x9f   : > { %1987 = vmatpush1.bf16.msra.mxu0 %v7660_v54  ;;  %v7750_v54 = vld [vmem:[%s11127_s1 + $0xa8] ss:$16 sps:$4 sm:$0xff]  }
  0xa0   : > { %2028 = vmatpush1.bf16.msra.mxu1 %v7663_v55  ;;  %1988 = vmatprep.subr.bf16.mxu0 %v7668_v56  ;;  %v7753_v55 = vld [vmem:[%s11127_s1 + $0x2a8] ss:$16 sps:$4 sm:$0xff]   ;;  %v7758_v56 = vld [vmem:[%s11127_s1 + $0xcc] ss:$16 sps:$4 sm:$0xff]  }
  0xa1   : > { %2029 = vmatprep.subr.bf16.mxu1 %v7671_v57  ;;  %v7761_v57 = vld [vmem:[%s11127_s1 + $0x2cc] ss:$16 sps:$4 sm:$0xff]  }
  0xa3   : > { %1989 = vmatpush1.bf16.msra.mxu0 %v7666_v58  ;;  %v7756_v58 = vld [vmem:[%s11127_s1 + $0xc8] ss:$16 sps:$4 sm:$0xff]  }
  0xa4   : > { %2030 = vmatpush1.bf16.msra.mxu1 %v7669_v59  ;;  %1990 = vmatprep.subr.bf16.mxu0 %v7674_v60  ;;  %v7759_v59 = vld [vmem:[%s11127_s1 + $0x2c8] ss:$16 sps:$4 sm:$0xff]   ;;  %v7764_v60 = vld [vmem:[%s11127_s1 + $0xec] ss:$16 sps:$4 sm:$0xff]  }
  0xa5   : > { %2031 = vmatprep.subr.bf16.mxu1 %v7677_v61  ;;  %v7767_v61 = vld [vmem:[%s11127_s1 + $0x2ec] ss:$16 sps:$4 sm:$0xff]  }
  0xa7   : > { %1991 = vmatpush1.bf16.msra.mxu0 %v7672_v62  ;;  %v7762_v62 = vld [vmem:[%s11127_s1 + $0xe8] ss:$16 sps:$4 sm:$0xff]  }
  0xa8   : > { %2032 = vmatpush1.bf16.msra.mxu1 %v7675_v63  ;;  %1992 = vmatprep.subr.bf16.mxu0 %v7680_v0  ;;  %v7765_v63 = vld [vmem:[%s11127_s1 + $0x2e8] ss:$16 sps:$4 sm:$0xff]   ;;  %v7770_v0 = vld [vmem:[%s11127_s1 + $0x10c] ss:$16 sps:$4 sm:$0xff]  }
  0xa9   : > { %2033 = vmatprep.subr.bf16.mxu1 %v7683_v1  ;;  %v7773_v1 = vld [vmem:[%s11127_s1 + $0x30c] ss:$16 sps:$4 sm:$0xff]  }
  0xab   : > { %1993 = vmatpush1.bf16.msra.mxu0 %v7678_v2  ;;  %v7768_v2 = vld [vmem:[%s11127_s1 + $0x108] ss:$16 sps:$4 sm:$0xff]  }
  0xac   : > { %2034 = vmatpush1.bf16.msra.mxu1 %v7681_v3  ;;  %1994 = vmatprep.subr.bf16.mxu0 %v7686_v4  ;;  %v7771_v3 = vld [vmem:[%s11127_s1 + $0x308] ss:$16 sps:$4 sm:$0xff]   ;;  %v7776_v4 = vld [vmem:[%s11127_s1 + $0x12c] ss:$16 sps:$4 sm:$0xff]  }
  0xad   : > { %2035 = vmatprep.subr.bf16.mxu1 %v7689_v5  ;;  %v7779_v5 = vld [vmem:[%s11127_s1 + $0x32c] ss:$16 sps:$4 sm:$0xff]  }
  0xaf   : > { %1995 = vmatpush1.bf16.msra.mxu0 %v7684_v6  ;;  %v7774_v6 = vld [vmem:[%s11127_s1 + $0x128] ss:$16 sps:$4 sm:$0xff]  }
  0xb0   : > { %2036 = vmatpush1.bf16.msra.mxu1 %v7687_v7  ;;  %1996 = vmatprep.subr.bf16.mxu0 %v7692_v8  ;;  %v7777_v7 = vld [vmem:[%s11127_s1 + $0x328] ss:$16 sps:$4 sm:$0xff]   ;;  %v7782_v8 = vld [vmem:[%s11127_s1 + $0x14c] ss:$16 sps:$4 sm:$0xff]  }
  0xb1   : > { %2037 = vmatprep.subr.bf16.mxu1 %v7695_v9  ;;  %v7785_v9 = vld [vmem:[%s11127_s1 + $0x34c] ss:$16 sps:$4 sm:$0xff]  }
  0xb3   : > { %1997 = vmatpush1.bf16.msra.mxu0 %v7690_v10  ;;  %v7780_v10 = vld [vmem:[%s11127_s1 + $0x148] ss:$16 sps:$4 sm:$0xff]  }
  0xb4   : > { %2038 = vmatpush1.bf16.msra.mxu1 %v7693_v11  ;;  %1998 = vmatprep.subr.bf16.mxu0 %v7698_v12  ;;  %v7783_v11 = vld [vmem:[%s11127_s1 + $0x348] ss:$16 sps:$4 sm:$0xff]   ;;  %v7788_v12 = vld [vmem:[%s11127_s1 + $0x16c] ss:$16 sps:$4 sm:$0xff]  }
  0xb5   : > { %2039 = vmatprep.subr.bf16.mxu1 %v7701_v13  ;;  %v7791_v13 = vld [vmem:[%s11127_s1 + $0x36c] ss:$16 sps:$4 sm:$0xff]  }
  0xb7   : > { %1999 = vmatpush1.bf16.msra.mxu0 %v7696_v14  ;;  %v7786_v14 = vld [vmem:[%s11127_s1 + $0x168] ss:$16 sps:$4 sm:$0xff]  }
  0xb8   : > { %2040 = vmatpush1.bf16.msra.mxu1 %v7699_v15  ;;  %2000 = vmatprep.subr.bf16.mxu0 %v7704_v16  ;;  %v7789_v15 = vld [vmem:[%s11127_s1 + $0x368] ss:$16 sps:$4 sm:$0xff]   ;;  %v7794_v16 = vld [vmem:[%s11127_s1 + $0x18c] ss:$16 sps:$4 sm:$0xff]  }
  0xb9   : > { %2041 = vmatprep.subr.bf16.mxu1 %v7707_v17  ;;  %v7797_v17 = vld [vmem:[%s11127_s1 + $0x38c] ss:$16 sps:$4 sm:$0xff]  }
  0xbb   : > { %2001 = vmatpush1.bf16.msra.mxu0 %v7702_v18  ;;  %v7792_v18 = vld [vmem:[%s11127_s1 + $0x188] ss:$16 sps:$4 sm:$0xff]  }
  0xbc   : > { %2042 = vmatpush1.bf16.msra.mxu1 %v7705_v19  ;;  %2002 = vmatprep.subr.bf16.mxu0 %v7710_v20  ;;  %v7795_v19 = vld [vmem:[%s11127_s1 + $0x388] ss:$16 sps:$4 sm:$0xff]   ;;  %v7800_v20 = vld [vmem:[%s11127_s1 + $0x1ac] ss:$16 sps:$4 sm:$0xff]  }
  0xbd   : > { %2043 = vmatprep.subr.bf16.mxu1 %v7713_v21  ;;  %v7803_v21 = vld [vmem:[%s11127_s1 + $0x3ac] ss:$16 sps:$4 sm:$0xff]  }
  0xbf   : > { %2003 = vmatpush1.bf16.msra.mxu0 %v7708_v22  ;;  %v7798_v22 = vld [vmem:[%s11127_s1 + $0x1a8] ss:$16 sps:$4 sm:$0xff]  }
  0xc0   : > { %2044 = vmatpush1.bf16.msra.mxu1 %v7711_v23  ;;  %2004 = vmatprep.subr.bf16.mxu0 %v7716_v26  ;;  %v7801_v23 = vld [vmem:[%s11127_s1 + $0x3a8] ss:$16 sps:$4 sm:$0xff]   ;;  %v7806_v26 = vld [vmem:[%s11127_s1 + $0x1cc] ss:$16 sps:$4 sm:$0xff]  }
  0xc1   : > { %2045 = vmatprep.subr.bf16.mxu1 %v7719_v27  ;;  %v7809_v27 = vld [vmem:[%s11127_s1 + $0x3cc] ss:$16 sps:$4 sm:$0xff]  }
  0xc3   : > { %2005 = vmatpush1.bf16.msra.mxu0 %v7714_v28  ;;  %v7804_v28 = vld [vmem:[%s11127_s1 + $0x1c8] ss:$16 sps:$4 sm:$0xff]  }
  0xc4   : > { %2046 = vmatpush1.bf16.msra.mxu1 %v7717_v29  ;;  %2056 = vmatprep.subr.bf16.mxu0 %v7722_v32  ;;  %v7807_v29 = vld [vmem:[%s11127_s1 + $0x3c8] ss:$16 sps:$4 sm:$0xff]  }
  0xc5   : > { %2097 = vmatprep.subr.bf16.mxu1 %v7725_v33  ;;  %v7810_v32 = vld [vmem:[%s11127_s1 + $0x1e8] ss:$16 sps:$4 sm:$0xff]  }
  0xc6   : > { %2007 = vmatmul.mubr.bf16.vlgmr.msra.gmra.mrb[8].mxu0 %v9247_v34  ;;  %v7813_v33 = vld [vmem:[%s11127_s1 + $0x3e8] ss:$16 sps:$4 sm:$0xff]  }
  0xc7   : > { %2048 = vmatmul.mubr.bf16.vlgmr.msra.gmra.mrb[8].mxu1 %v9249_v37  ;;  %2057 = vmatpush1.bf16.msra.mxu0 %v7720_v24  ;;  %v2139_v24 = vld [vmem:[%s8773_s17 + $0x8] sm:$0x3c] }
  0xc8   : > { %2098 = vmatpush1.bf16.msra.mxu1 %v7723_v25  ;;  %2058 = vmatprep.subr.bf16.mxu0 %v7728_v38  ;;  %v2141_v25 = vld [vmem:[%s8773_s17 + $0x18] sm:$0x3c]  ;;  %v7818_v38 = vld [vmem:[%s11127_s1 + $0x804] ss:$16 sps:$4 sm:$0xff]  }
  0xc9   : > { %2099 = vmatprep.subr.bf16.mxu1 %v7731_v39  ;;  %2088 = vmatprep.mubr.bf16.mxu0 %v9062_v35  ;;  %v7743_v35 = vld [vmem:[%s11127_s1 + $0x26c] ss:$16 sps:$4 sm:$0xff]   ;;  %v7821_v39 = vld [vmem:[%s11127_s1 + $0xa04] ss:$16 sps:$4 sm:$0xff]  }
  0xca   : > { %2129 = vmatprep.mubr.bf16.mxu1 %v9064_v36  ;;  %v7738_v36 = vld [vmem:[%s11127_s1 + $0x68] ss:$16 sps:$4 sm:$0xff]  }
  0xcb   : > { %2059 = vmatpush1.bf16.msra.mxu0 %v7726_v40  ;;  %v2143_v40 = vpack.c.bf16 %v2139_v24, %v2139_v24  ;;  %v7890_v24 = vld [vmem:[%s11127_s1 + $0x984] ss:$16 sps:$4 sm:$0xff]  }
  0xcc   : > { %2100 = vmatpush1.bf16.msra.mxu1 %v7729_v41  ;;  %2060 = vmatprep.subr.bf16.mxu0 %v7734_v42  ;;  %v2145_v41 = vpack.c.bf16 %v2141_v25, %v2141_v25  ;;  %v7816_v42 = vld [vmem:[%s11127_s1 + $0x800] ss:$16 sps:$4 sm:$0xff]   ;;  %v7893_v25 = vld [vmem:[%s11127_s1 + $0xb84] ss:$16 sps:$4 sm:$0xff]  }
  0xcd   : > { %2101 = vmatprep.subr.bf16.mxu1 %v7737_v43  ;;  %v7819_v43 = vld [vmem:[%s11127_s1 + $0xa00] ss:$16 sps:$4 sm:$0xff]  }
  0xcf   : > { %2061 = vmatpush1.bf16.msra.mxu0 %v7732_v44  ;;  %v7824_v44 = vld [vmem:[%s11127_s1 + $0x824] ss:$16 sps:$4 sm:$0xff]  }
  0xd0   : > { %2102 = vmatpush1.bf16.msra.mxu1 %v7735_v45  ;;  %2062 = vmatprep.subr.bf16.mxu0 %v7740_v46  ;;  %v7827_v45 = vld [vmem:[%s11127_s1 + $0xa24] ss:$16 sps:$4 sm:$0xff]   ;;  %v9461_v46 = vrot.slane %v2143_v40, 1 }
  0xd1   : > { %2103 = vmatprep.subr.bf16.mxu1 %v7743_v35  ;;  %v9463_v35 = vrot.slane %v2145_v41, 1  ;;  %v7896_v40 = vld [vmem:[%s11127_s1 + $0x9a4] ss:$16 sps:$4 sm:$0xff]  }
  0xd2   : > { %v7899_v41 = vld [vmem:[%s11127_s1 + $0xba4] ss:$16 sps:$4 sm:$0xff]  }
  0xd3   : > { %2063 = vmatpush1.bf16.msra.mxu0 %v7738_v36  ;;  %v7822_v36 = vld [vmem:[%s11127_s1 + $0x820] ss:$16 sps:$4 sm:$0xff]  }
  0xd4   : > { %2104 = vmatpush1.bf16.msra.mxu1 %v7741_v47  ;;  %2064 = vmatprep.subr.bf16.mxu0 %v7746_v48  ;;  %v7825_v47 = vld [vmem:[%s11127_s1 + $0xa20] ss:$16 sps:$4 sm:$0xff]   ;;  %v7830_v48 = vld [vmem:[%s11127_s1 + $0x844] ss:$16 sps:$4 sm:$0xff]  }
  0xd5   : > { %2105 = vmatprep.subr.bf16.mxu1 %v7749_v49  ;;  %v7831_v49 = vld [vmem:[%s11127_s1 + $0xa40] ss:$16 sps:$4 sm:$0xff]  }
  0xd7   : > { %2065 = vmatpush1.bf16.msra.mxu0 %v7744_v50  ;;  %v7836_v50 = vld [vmem:[%s11127_s1 + $0x864] ss:$16 sps:$4 sm:$0xff]  }
  0xd8   : > { %2106 = vmatpush1.bf16.msra.mxu1 %v7747_v51  ;;  %2066 = vmatprep.subr.bf16.mxu0 %v7752_v52  ;;  %v7839_v51 = vld [vmem:[%s11127_s1 + $0xa64] ss:$16 sps:$4 sm:$0xff]   ;;  %v7834_v52 = vld [vmem:[%s11127_s1 + $0x860] ss:$16 sps:$4 sm:$0xff]  }
  0xd9   : > { %2107 = vmatprep.subr.bf16.mxu1 %v7755_v53  ;;  %v7837_v53 = vld [vmem:[%s11127_s1 + $0xa60] ss:$16 sps:$4 sm:$0xff]  }
  0xdb   : > { %2067 = vmatpush1.bf16.msra.mxu0 %v7750_v54  ;;  %v7842_v54 = vld [vmem:[%s11127_s1 + $0x884] ss:$16 sps:$4 sm:$0xff]  }
  0xdc   : > { %2108 = vmatpush1.bf16.msra.mxu1 %v7753_v55  ;;  %2068 = vmatprep.subr.bf16.mxu0 %v7758_v56  ;;  %v7845_v55 = vld [vmem:[%s11127_s1 + $0xa84] ss:$16 sps:$4 sm:$0xff]   ;;  %v7840_v56 = vld [vmem:[%s11127_s1 + $0x880] ss:$16 sps:$4 sm:$0xff]  }
  0xdd   : > { %2109 = vmatprep.subr.bf16.mxu1 %v7761_v57  ;;  %v7843_v57 = vld [vmem:[%s11127_s1 + $0xa80] ss:$16 sps:$4 sm:$0xff]  }
  0xdf   : > { %2069 = vmatpush1.bf16.msra.mxu0 %v7756_v58  ;;  %v7848_v58 = vld [vmem:[%s11127_s1 + $0x8a4] ss:$16 sps:$4 sm:$0xff]  }
  0xe0   : > { %2110 = vmatpush1.bf16.msra.mxu1 %v7759_v59  ;;  %2070 = vmatprep.subr.bf16.mxu0 %v7764_v60  ;;  %v7851_v59 = vld [vmem:[%s11127_s1 + $0xaa4] ss:$16 sps:$4 sm:$0xff]   ;;  %v7846_v60 = vld [vmem:[%s11127_s1 + $0x8a0] ss:$16 sps:$4 sm:$0xff]  }
  0xe1   : > { %2111 = vmatprep.subr.bf16.mxu1 %v7767_v61  ;;  %v7849_v61 = vld [vmem:[%s11127_s1 + $0xaa0] ss:$16 sps:$4 sm:$0xff]  }
  0xe3   : > { %2071 = vmatpush1.bf16.msra.mxu0 %v7762_v62  ;;  %v7854_v62 = vld [vmem:[%s11127_s1 + $0x8c4] ss:$16 sps:$4 sm:$0xff]  }
  0xe4   : > { %2112 = vmatpush1.bf16.msra.mxu1 %v7765_v63  ;;  %2072 = vmatprep.subr.bf16.mxu0 %v7770_v0  ;;  %v7857_v63 = vld [vmem:[%s11127_s1 + $0xac4] ss:$16 sps:$4 sm:$0xff]  }
  0xe5   : > { %2113 = vmatprep.subr.bf16.mxu1 %v7773_v1 }
  0xe7   : > { %2073 = vmatpush1.bf16.msra.mxu0 %v7768_v2  ;;  %v7852_v2 = vld [vmem:[%s11127_s1 + $0x8c0] ss:$16 sps:$4 sm:$0xff]  }
  0xe8   : > { %2114 = vmatpush1.bf16.msra.mxu1 %v7771_v3  ;;  %2074 = vmatprep.subr.bf16.mxu0 %v7776_v4  ;;  %v7855_v3 = vld [vmem:[%s11127_s1 + $0xac0] ss:$16 sps:$4 sm:$0xff]  }
  0xe9   : > { %2115 = vmatprep.subr.bf16.mxu1 %v7779_v5 }
  0xeb   : > { %2075 = vmatpush1.bf16.msra.mxu0 %v7774_v6 }
  0xec   : > { %2116 = vmatpush1.bf16.msra.mxu1 %v7777_v7  ;;  %2076 = vmatprep.subr.bf16.mxu0 %v7782_v8  ;;  %v7860_v7 = vld [vmem:[%s11127_s1 + $0x8e4] ss:$16 sps:$4 sm:$0xff]  }
  0xed   : > { %2117 = vmatprep.subr.bf16.mxu1 %v7785_v9  ;;  %v7863_v8 = vld [vmem:[%s11127_s1 + $0xae4] ss:$16 sps:$4 sm:$0xff]  }
  0xef   : > { %2077 = vmatpush1.bf16.msra.mxu0 %v7780_v10 }
  0xf0   : > { %2118 = vmatpush1.bf16.msra.mxu1 %v7783_v11  ;;  %2078 = vmatprep.subr.bf16.mxu0 %v7788_v12 }
  0xf1   : > { %2119 = vmatprep.subr.bf16.mxu1 %v7791_v13 }
  0xf3   : > { %2079 = vmatpush1.bf16.msra.mxu0 %v7786_v14  ;;  %v7858_v14 = vld [vmem:[%s11127_s1 + $0x8e0] ss:$16 sps:$4 sm:$0xff]  }
  0xf4   : > { %2120 = vmatpush1.bf16.msra.mxu1 %v7789_v15  ;;  %2080 = vmatprep.subr.bf16.mxu0 %v7794_v16  ;;  %v7861_v15 = vld [vmem:[%s11127_s1 + $0xae0] ss:$16 sps:$4 sm:$0xff]   ;;  %v7866_v16 = vld [vmem:[%s11127_s1 + $0x904] ss:$16 sps:$4 sm:$0xff]  }
  0xf5   : > { %2121 = vmatprep.subr.bf16.mxu1 %v7797_v17  ;;  %v7869_v17 = vld [vmem:[%s11127_s1 + $0xb04] ss:$16 sps:$4 sm:$0xff]  }
  0xf7   : > { %2081 = vmatpush1.bf16.msra.mxu0 %v7792_v18  ;;  %v7864_v18 = vld [vmem:[%s11127_s1 + $0x900] ss:$16 sps:$4 sm:$0xff]  }
  0xf8   : > { %2122 = vmatpush1.bf16.msra.mxu1 %v7795_v19  ;;  %2082 = vmatprep.subr.bf16.mxu0 %v7800_v20  ;;  %v7867_v19 = vld [vmem:[%s11127_s1 + $0xb00] ss:$16 sps:$4 sm:$0xff]   ;;  %v7872_v20 = vld [vmem:[%s11127_s1 + $0x924] ss:$16 sps:$4 sm:$0xff]  }
  0xf9   : > { %2123 = vmatprep.subr.bf16.mxu1 %v7803_v21  ;;  %v7875_v21 = vld [vmem:[%s11127_s1 + $0xb24] ss:$16 sps:$4 sm:$0xff]  }
  0xfb   : > { %2083 = vmatpush1.bf16.msra.mxu0 %v7798_v22  ;;  %v7870_v22 = vld [vmem:[%s11127_s1 + $0x920] ss:$16 sps:$4 sm:$0xff]  }
  0xfc   : > { %2124 = vmatpush1.bf16.msra.mxu1 %v7801_v23  ;;  %2084 = vmatprep.subr.bf16.mxu0 %v7806_v26  ;;  %v7873_v23 = vld [vmem:[%s11127_s1 + $0xb20] ss:$16 sps:$4 sm:$0xff]   ;;  %v7878_v26 = vld [vmem:[%s11127_s1 + $0x944] ss:$16 sps:$4 sm:$0xff]  }
  0xfd   : > { %2125 = vmatprep.subr.bf16.mxu1 %v7809_v27  ;;  %v7881_v27 = vld [vmem:[%s11127_s1 + $0xb44] ss:$16 sps:$4 sm:$0xff]  }
  0xff   : > { %2085 = vmatpush1.bf16.msra.mxu0 %v7804_v28  ;;  %v7876_v28 = vld [vmem:[%s11127_s1 + $0x940] ss:$16 sps:$4 sm:$0xff]  }
 0x100   : > { %2126 = vmatpush1.bf16.msra.mxu1 %v7807_v29  ;;  %2086 = vmatprep.subr.bf16.mxu0 %v7812_v30  ;;  %v7879_v29 = vld [vmem:[%s11127_s1 + $0xb40] ss:$16 sps:$4 sm:$0xff]   ;;  %v7884_v30 = vld [vmem:[%s11127_s1 + $0x964] ss:$16 sps:$4 sm:$0xff]  }
 0x101   : > { %2127 = vmatprep.subr.bf16.mxu1 %v7815_v31  ;;  %v7887_v31 = vld [vmem:[%s11127_s1 + $0xb64] ss:$16 sps:$4 sm:$0xff]  }
 0x103   : > { %2087 = vmatpush1.bf16.msra.mxu0 %v7810_v32  ;;  %v7882_v32 = vld [vmem:[%s11127_s1 + $0x960] ss:$16 sps:$4 sm:$0xff]  }
 0x104   : > { %2128 = vmatpush1.bf16.msra.mxu1 %v7813_v33  ;;  %2927 = vmatprep.subr.bf16.mxu0 %v7818_v38  ;;  %v7885_v33 = vld [vmem:[%s11127_s1 + $0xb60] ss:$16 sps:$4 sm:$0xff]  }
 0x105   : > { %2968 = vmatprep.subr.bf16.mxu1 %v7821_v39  ;;  %v7888_v38 = vld [vmem:[%s11127_s1 + $0x980] ss:$16 sps:$4 sm:$0xff]  }
 0x106   : > { %2089 = vmatmul.mubr.bf16.vlgmr.msra.gmra.mrb[12].mxu0 %v9247_v34  ;;  %v7833_v34 = vld [vmem:[%s11127_s1 + $0xa44] ss:$16 sps:$4 sm:$0xff]   ;;  %v7891_v39 = vld [vmem:[%s11127_s1 + $0xb80] ss:$16 sps:$4 sm:$0xff]  }
 0x107   : > { %2130 = vmatmul.mubr.bf16.vlgmr.msra.gmra.mrb[12].mxu1 %v9249_v37  ;;  %2928 = vmatpush1.bf16.msra.mxu0 %v7816_v42  ;;  %v7828_v37 = vld [vmem:[%s11127_s1 + $0x840] ss:$16 sps:$4 sm:$0xff]  }
 0x108   : > { %2969 = vmatpush1.bf16.msra.mxu1 %v7819_v43  ;;  %2929 = vmatprep.subr.bf16.mxu0 %v7824_v44  ;;  %v7894_v42 = vld [vmem:[%s11127_s1 + $0x9a0] ss:$16 sps:$4 sm:$0xff]   ;;  %v7902_v44 = vld [vmem:[%s11127_s1 + $0x9c4] ss:$16 sps:$4 sm:$0xff]  }
 0x109   : > { %2970 = vmatprep.subr.bf16.mxu1 %v7827_v45  ;;  %2959 = vmatprep.mubr.bf16.mxu0 %v9461_v46  ;;  %v7897_v43 = vld [vmem:[%s11127_s1 + $0xba0] ss:$16 sps:$4 sm:$0xff]   ;;  %v7905_v45 = vld [vmem:[%s11127_s1 + $0xbc4] ss:$16 sps:$4 sm:$0xff]  }
 0x10a   : > { %3000 = vmatprep.mubr.bf16.mxu1 %v9463_v35 }
 0x10b   : > { %2930 = vmatpush1.bf16.msra.mxu0 %v7822_v36  ;;  %v7900_v36 = vld [vmem:[%s11127_s1 + $0x9c0] ss:$16 sps:$4 sm:$0xff]  }
 0x10c   : > { %2971 = vmatpush1.bf16.msra.mxu1 %v7825_v47  ;;  %2931 = vmatprep.subr.bf16.mxu0 %v7830_v48  ;;  %v7903_v47 = vld [vmem:[%s11127_s1 + $0xbc0] ss:$16 sps:$4 sm:$0xff]  }
 0x10d   : > { %2972 = vmatprep.subr.bf16.mxu1 %v7833_v34  ;;  %v2138_v48 = vld [vmem:[%s8773_s17] sm:$0x3c]  ;;  %v2140_v34 = vld [vmem:[%s8773_s17 + $0x10] sm:$0x3c] }
 0x10f   : > { %2932 = vmatpush1.bf16.msra.mxu0 %v7828_v37  ;;  %v7908_v37 = vld [vmem:[%s11127_s1 + $0x9e4] ss:$16 sps:$4 sm:$0xff]  }
 0x110   : > { %2973 = vmatpush1.bf16.msra.mxu1 %v7831_v49  ;;  %2933 = vmatprep.subr.bf16.mxu0 %v7836_v50  ;;  %v7911_v49 = vld [vmem:[%s11127_s1 + $0xbe4] ss:$16 sps:$4 sm:$0xff]   ;;  %v7906_v50 = vld [vmem:[%s11127_s1 + $0x9e0] ss:$16 sps:$4 sm:$0xff]  }
 0x111   : > { %2974 = vmatprep.subr.bf16.mxu1 %v7839_v51  ;;  %v7909_v51 = vld [vmem:[%s11127_s1 + $0xbe0] ss:$16 sps:$4 sm:$0xff]  }
 0x113   : > { %2934 = vmatpush1.bf16.msra.mxu0 %v7834_v52  ;;  %v2142_v52 = vpack.c.bf16 %v2138_v48, %v2138_v48  ;;  %v7972_v48 = vld [vmem:[%s11127_s1 + $0x948] ss:$16 sps:$4 sm:$0xff]  }
 0x114   : > { %2975 = vmatpush1.bf16.msra.mxu1 %v7837_v53  ;;  %2935 = vmatprep.subr.bf16.mxu0 %v7842_v54  ;;  %v2144_v53 = vpack.c.bf16 %v2140_v34, %v2140_v34  ;;  %v7914_v54 = vld [vmem:[%s11127_s1 + $0x80c] ss:$16 sps:$4 sm:$0xff]   ;;  %v7975_v34 = vld [vmem:[%s11127_s1 + $0xb48] ss:$16 sps:$4 sm:$0xff]  }
 0x115   : > { %2976 = vmatprep.subr.bf16.mxu1 %v7845_v55  ;;  %v7917_v55 = vld [vmem:[%s11127_s1 + $0xa0c] ss:$16 sps:$4 sm:$0xff]  }
 0x117   : > { %2936 = vmatpush1.bf16.msra.mxu0 %v7840_v56  ;;  %v7912_v56 = vld [vmem:[%s11127_s1 + $0x808] ss:$16 sps:$4 sm:$0xff]  }
 0x118   : > { %2977 = vmatpush1.bf16.msra.mxu1 %v7843_v57  ;;  %2937 = vmatprep.subr.bf16.mxu0 %v7848_v58  ;;  %v7915_v57 = vld [vmem:[%s11127_s1 + $0xa08] ss:$16 sps:$4 sm:$0xff]   ;;  %v9661_v58 = vrot.slane %v2142_v52, 1  ;;  %v7986_v52 = vld [vmem:[%s11127_s1 + $0x98c] ss:$16 sps:$4 sm:$0xff]  }
 0x119   : > { %2978 = vmatprep.subr.bf16.mxu1 %v7851_v59  ;;  %v1204_v0 = vpop.f32.mrb[0].mxu0  ;;  %v9663_v59 = vrot.slane %v2144_v53, 1  ;;  %v7989_v53 = vld [vmem:[%s11127_s1 + $0xb8c] ss:$16 sps:$4 sm:$0xff]  }
 0x11a   : > { %v1245_v1 = vpop.f32.mrb[0].mxu1  ;;  %v1206_v5 = vpop.f32.mrb[1].mxu0 }
 0x11b   : > { %v9535_v4 = vadd.f32 %v1245_v1, %v1204_v0  ;;  %v1247_v6 = vpop.f32.mrb[1].mxu1  ;;  %v1208_v10 = vpop.f32.mrb[2].mxu0  ;;  %2938 = vmatpush1.bf16.msra.mxu0 %v7846_v60  ;;  %v7920_v60 = vld [vmem:[%s11127_s1 + $0x82c] ss:$16 sps:$4 sm:$0xff]  }
 0x11c   : > { %v9543_v9 = vadd.f32 %v1247_v6, %v1206_v5  ;;  %v1249_v11 = vpop.f32.mrb[2].mxu1  ;;  %2979 = vmatpush1.bf16.msra.mxu1 %v7849_v61  ;;  %v1209_v12 = vpop.f32.mrb[3].mxu0  ;;  %2939 = vmatprep.subr.bf16.mxu0 %v7854_v62  ;;  %v7923_v61 = vld [vmem:[%s11127_s1 + $0xa2c] ss:$16 sps:$4 sm:$0xff]   ;;  %v7918_v62 = vld [vmem:[%s11127_s1 + $0x828] ss:$16 sps:$4 sm:$0xff]  }
 0x11d   : > { %v1250_v13 = vpop.f32.mrb[3].mxu1  ;;  %2980 = vmatprep.subr.bf16.mxu1 %v7857_v63  ;;  %v7921_v63 = vld [vmem:[%s11127_s1 + $0xa28] ss:$16 sps:$4 sm:$0xff]   ;;  %v7926_v0 = vld [vmem:[%s11127_s1 + $0x84c] ss:$16 sps:$4 sm:$0xff]  }
 0x11e   : > { %v7929_v1 = vld [vmem:[%s11127_s1 + $0xa4c] ss:$16 sps:$4 sm:$0xff]   ;;  %v7936_v10 = vld [vmem:[%s11127_s1 + $0x888] ss:$16 sps:$4 sm:$0xff]  }
 0x11f   : > { %2940 = vmatpush1.bf16.msra.mxu0 %v7852_v2  ;;  %v7924_v2 = vld [vmem:[%s11127_s1 + $0x848] ss:$16 sps:$4 sm:$0xff]   ;;  %v7932_v5 = vld [vmem:[%s11127_s1 + $0x86c] ss:$16 sps:$4 sm:$0xff]  }
 0x120   : > { %2981 = vmatpush1.bf16.msra.mxu1 %v7855_v3  ;;  %2941 = vmatprep.subr.bf16.mxu0 %v7860_v7  ;;  %v7927_v3 = vld [vmem:[%s11127_s1 + $0xa48] ss:$16 sps:$4 sm:$0xff]   ;;  %v7935_v6 = vld [vmem:[%s11127_s1 + $0xa6c] ss:$16 sps:$4 sm:$0xff]  }
 0x121   : > { %2982 = vmatprep.subr.bf16.mxu1 %v7863_v8  ;;  %v7930_v7 = vld [vmem:[%s11127_s1 + $0x868] ss:$16 sps:$4 sm:$0xff]   ;;  %v7941_v8 = vld [vmem:[%s11127_s1 + $0xa8c] ss:$16 sps:$4 sm:$0xff]  }
 0x122   : > { %v7939_v11 = vld [vmem:[%s11127_s1 + $0xa88] ss:$16 sps:$4 sm:$0xff]   ;;  %v7944_v12 = vld [vmem:[%s11127_s1 + $0x8ac] ss:$16 sps:$4 sm:$0xff]  }
 0x123   : > { %2942 = vmatpush1.bf16.msra.mxu0 %v7858_v14  ;;  %v7947_v13 = vld [vmem:[%s11127_s1 + $0xaac] ss:$16 sps:$4 sm:$0xff]   ;;  %v7942_v14 = vld [vmem:[%s11127_s1 + $0x8a8] ss:$16 sps:$4 sm:$0xff]  }
 0x124   : > { %2983 = vmatpush1.bf16.msra.mxu1 %v7861_v15  ;;  %2943 = vmatprep.subr.bf16.mxu0 %v7866_v16  ;;  %v7945_v15 = vld [vmem:[%s11127_s1 + $0xaa8] ss:$16 sps:$4 sm:$0xff]   ;;  %v7950_v16 = vld [vmem:[%s11127_s1 + $0x8cc] ss:$16 sps:$4 sm:$0xff]  }
 0x125   : > { %2984 = vmatprep.subr.bf16.mxu1 %v7869_v17  ;;  %v7953_v17 = vld [vmem:[%s11127_s1 + $0xacc] ss:$16 sps:$4 sm:$0xff]  }
 0x127   : > { %2944 = vmatpush1.bf16.msra.mxu0 %v7864_v18 }
 0x128   : > { %2985 = vmatpush1.bf16.msra.mxu1 %v7867_v19  ;;  %2945 = vmatprep.subr.bf16.mxu0 %v7872_v20  ;;  %v7948_v20 = vld [vmem:[%s11127_s1 + $0x8c8] ss:$16 sps:$4 sm:$0xff]  }
 0x129   : > { %2986 = vmatprep.subr.bf16.mxu1 %v7875_v21  ;;  %v7951_v21 = vld [vmem:[%s11127_s1 + $0xac8] ss:$16 sps:$4 sm:$0xff]  }
 0x12b   : > { %2946 = vmatpush1.bf16.msra.mxu0 %v7870_v22 }
 0x12c   : > { %2987 = vmatpush1.bf16.msra.mxu1 %v7873_v23  ;;  %2947 = vmatprep.subr.bf16.mxu0 %v7878_v26 }
 0x12d   : > { %2988 = vmatprep.subr.bf16.mxu1 %v7881_v27  ;;  %v7956_v27 = vld [vmem:[%s11127_s1 + $0x8ec] ss:$16 sps:$4 sm:$0xff]  }
 0x12f   : > { %2948 = vmatpush1.bf16.msra.mxu0 %v7876_v28  ;;  %v7959_v28 = vld [vmem:[%s11127_s1 + $0xaec] ss:$16 sps:$4 sm:$0xff]  }
 0x130   : > { %2989 = vmatpush1.bf16.msra.mxu1 %v7879_v29  ;;  %2949 = vmatprep.subr.bf16.mxu0 %v7884_v30 }
 0x131   : > { %2990 = vmatprep.subr.bf16.mxu1 %v7887_v31 }
 0x133   : > { %2950 = vmatpush1.bf16.msra.mxu0 %v7882_v32 }
 0x134   : > { %2991 = vmatpush1.bf16.msra.mxu1 %v7885_v33  ;;  %2951 = vmatprep.subr.bf16.mxu0 %v7890_v24  ;;  %v7954_v24 = vld [vmem:[%s11127_s1 + $0x8e8] ss:$16 sps:$4 sm:$0xff]  }
 0x135   : > { %2992 = vmatprep.subr.bf16.mxu1 %v7893_v25  ;;  %v7957_v25 = vld [vmem:[%s11127_s1 + $0xae8] ss:$16 sps:$4 sm:$0xff]  }
 0x137   : > { %2952 = vmatpush1.bf16.msra.mxu0 %v7888_v38  ;;  %v7962_v38 = vld [vmem:[%s11127_s1 + $0x90c] ss:$16 sps:$4 sm:$0xff]  }
 0x138   : > { %2993 = vmatpush1.bf16.msra.mxu1 %v7891_v39  ;;  %2953 = vmatprep.subr.bf16.mxu0 %v7896_v40  ;;  %v7965_v39 = vld [vmem:[%s11127_s1 + $0xb0c] ss:$16 sps:$4 sm:$0xff]   ;;  %v7960_v40 = vld [vmem:[%s11127_s1 + $0x908] ss:$16 sps:$4 sm:$0xff]  }
 0x139   : > { %2994 = vmatprep.subr.bf16.mxu1 %v7899_v41  ;;  %v7963_v41 = vld [vmem:[%s11127_s1 + $0xb08] ss:$16 sps:$4 sm:$0xff]  }
 0x13b   : > { %2954 = vmatpush1.bf16.msra.mxu0 %v7894_v42  ;;  %v7968_v42 = vld [vmem:[%s11127_s1 + $0x92c] ss:$16 sps:$4 sm:$0xff]  }
 0x13c   : > { %2995 = vmatpush1.bf16.msra.mxu1 %v7897_v43  ;;  %2955 = vmatprep.subr.bf16.mxu0 %v7902_v44  ;;  %v7971_v43 = vld [vmem:[%s11127_s1 + $0xb2c] ss:$16 sps:$4 sm:$0xff]   ;;  %v7966_v44 = vld [vmem:[%s11127_s1 + $0x928] ss:$16 sps:$4 sm:$0xff]  }
 0x13d   : > { %2996 = vmatprep.subr.bf16.mxu1 %v7905_v45  ;;  %v7969_v45 = vld [vmem:[%s11127_s1 + $0xb28] ss:$16 sps:$4 sm:$0xff]  }
 0x13f   : > { %2956 = vmatpush1.bf16.msra.mxu0 %v7900_v36  ;;  %v7974_v36 = vld [vmem:[%s11127_s1 + $0x94c] ss:$16 sps:$4 sm:$0xff]  }
 0x140   : > { %2997 = vmatpush1.bf16.msra.mxu1 %v7903_v47  ;;  %2957 = vmatprep.subr.bf16.mxu0 %v7908_v37  ;;  %v7977_v47 = vld [vmem:[%s11127_s1 + $0xb4c] ss:$16 sps:$4 sm:$0xff]  }
 0x141   : > { %2998 = vmatprep.subr.bf16.mxu1 %v7911_v49  ;;  %v7980_v37 = vld [vmem:[%s11127_s1 + $0x96c] ss:$16 sps:$4 sm:$0xff]  }
 0x142   : > { %v7983_v49 = vld [vmem:[%s11127_s1 + $0xb6c] ss:$16 sps:$4 sm:$0xff]  }
 0x143   : > { %2958 = vmatpush1.bf16.msra.mxu0 %v7906_v50  ;;  %v7978_v50 = vld [vmem:[%s11127_s1 + $0x968] ss:$16 sps:$4 sm:$0xff]  }
 0x144   : > { %2999 = vmatpush1.bf16.msra.mxu1 %v7909_v51  ;;  %3009 = vmatprep.subr.bf16.mxu0 %v7914_v54  ;;  %v7981_v51 = vld [vmem:[%s11127_s1 + $0xb68] ss:$16 sps:$4 sm:$0xff]  }
 0x145   : > { %3050 = vmatprep.subr.bf16.mxu1 %v7917_v55  ;;  %v7984_v54 = vld [vmem:[%s11127_s1 + $0x988] ss:$16 sps:$4 sm:$0xff]  }
 0x146   : > { %2960 = vmatmul.mubr.bf16.vlgmr.msra.gmra.mrb[16].mxu0 %v9661_v58  ;;  %v7987_v55 = vld [vmem:[%s11127_s1 + $0xb88] ss:$16 sps:$4 sm:$0xff]  }
 0x147   : > { %3001 = vmatmul.mubr.bf16.vlgmr.msra.gmra.mrb[16].mxu1 %v9663_v59  ;;  %3010 = vmatpush1.bf16.msra.mxu0 %v7912_v56  ;;  %v7992_v56 = vld [vmem:[%s11127_s1 + $0x9ac] ss:$16 sps:$4 sm:$0xff]  }
 0x148   : > { %3051 = vmatpush1.bf16.msra.mxu1 %v7915_v57  ;;  %3011 = vmatprep.subr.bf16.mxu0 %v7920_v60  ;;  %v7995_v57 = vld [vmem:[%s11127_s1 + $0xbac] ss:$16 sps:$4 sm:$0xff]   ;;  %v7990_v60 = vld [vmem:[%s11127_s1 + $0x9a8] ss:$16 sps:$4 sm:$0xff]  }
 0x149   : > { %3052 = vmatprep.subr.bf16.mxu1 %v7923_v61  ;;  %3041 = vmatprep.mubr.bf16.mxu0 %v9461_v46  ;;  %v7933_v46 = vld [vmem:[%s11127_s1 + $0xa68] ss:$16 sps:$4 sm:$0xff]  }
 0x14a   : > { %3082 = vmatprep.mubr.bf16.mxu1 %v9463_v35  ;;  %v7938_v35 = vld [vmem:[%s11127_s1 + $0x88c] ss:$16 sps:$4 sm:$0xff]   ;;  %v7993_v61 = vld [vmem:[%s11127_s1 + $0xba8] ss:$16 sps:$4 sm:$0xff]  }
 0x14b   : > { %3012 = vmatpush1.bf16.msra.mxu0 %v7918_v62  ;;  %v7998_v62 = vld [vmem:[%s11127_s1 + $0x9cc] ss:$16 sps:$4 sm:$0xff]  }
 0x14c   : > { %3053 = vmatpush1.bf16.msra.mxu1 %v7921_v63  ;;  %3013 = vmatprep.subr.bf16.mxu0 %v7926_v0  ;;  %v8001_v63 = vld [vmem:[%s11127_s1 + $0xbcc] ss:$16 sps:$4 sm:$0xff]   ;;  %v7996_v0 = vld [vmem:[%s11127_s1 + $0x9c8] ss:$16 sps:$4 sm:$0xff]  }
 0x14d   : > { %3054 = vmatprep.subr.bf16.mxu1 %v7929_v1  ;;  %v7999_v1 = vld [vmem:[%s11127_s1 + $0xbc8] ss:$16 sps:$4 sm:$0xff]  }
 0x14f   : > { %3014 = vmatpush1.bf16.msra.mxu0 %v7924_v2  ;;  %v8004_v2 = vld [vmem:[%s11127_s1 + $0x9ec] ss:$16 sps:$4 sm:$0xff]  }
 0x150   : > { %3055 = vmatpush1.bf16.msra.mxu1 %v7927_v3  ;;  %3015 = vmatprep.subr.bf16.mxu0 %v7932_v5  ;;  %v8007_v3 = vld [vmem:[%s11127_s1 + $0xbec] ss:$16 sps:$4 sm:$0xff]   ;;  %v8002_v5 = vld [vmem:[%s11127_s1 + $0x9e8] ss:$16 sps:$4 sm:$0xff]  }
 0x151   : > { %3056 = vmatprep.subr.bf16.mxu1 %v7935_v6  ;;  %v8005_v6 = vld [vmem:[%s11127_s1 + $0xbe8] ss:$16 sps:$4 sm:$0xff]  }
 0x153   : > { %3016 = vmatpush1.bf16.msra.mxu0 %v7930_v7  ;;  %v8010_v7 = vld [vmem:[%s11129_s3 + $0x404] ss:$16 sps:$4 sm:$0xff]  }
 0x154   : > { %3057 = vmatpush1.bf16.msra.mxu1 %v7933_v46  ;;  %3017 = vmatprep.subr.bf16.mxu0 %v7938_v35  ;;  %v8008_v46 = vld [vmem:[%s11129_s3 + $0x400] ss:$16 sps:$4 sm:$0xff]   ;;  %v8013_v35 = vld [vmem:[%s11129_s3 + $0x424] ss:$16 sps:$4 sm:$0xff]  }
 0x155   : > { %3058 = vmatprep.subr.bf16.mxu1 %v7941_v8  ;;  %v8011_v8 = vld [vmem:[%s11129_s3 + $0x420] ss:$16 sps:$4 sm:$0xff]  }
 0x157   : > { %3018 = vmatpush1.bf16.msra.mxu0 %v7936_v10  ;;  %v8016_v10 = vld [vmem:[%s11129_s3 + $0x444] ss:$16 sps:$4 sm:$0xff]  }
 0x158   : > { %3059 = vmatpush1.bf16.msra.mxu1 %v7939_v11  ;;  %3019 = vmatprep.subr.bf16.mxu0 %v7944_v12  ;;  %v8014_v11 = vld [vmem:[%s11129_s3 + $0x440] ss:$16 sps:$4 sm:$0xff]   ;;  %v8019_v12 = vld [vmem:[%s11129_s3 + $0x464] ss:$16 sps:$4 sm:$0xff]  }
 0x159   : > { %3060 = vmatprep.subr.bf16.mxu1 %v7947_v13  ;;  %v1286_v18 = vpop.f32.mrb[4].mxu0  ;;  %v8020_v13 = vld [vmem:[%s11129_s3 + $0x480] ss:$16 sps:$4 sm:$0xff]  }
 0x15a   : > { %v1327_v19 = vpop.f32.mrb[4].mxu1  ;;  %v1288_v23 = vpop.f32.mrb[5].mxu0 }
 0x15b   : > { %v9741_v22 = vadd.f32 %v1327_v19, %v1286_v18  ;;  %v1329_v26 = vpop.f32.mrb[5].mxu1  ;;  %v1290_v30 = vpop.f32.mrb[6].mxu0  ;;  %3020 = vmatpush1.bf16.msra.mxu0 %v7942_v14  ;;  %v8025_v14 = vld [vmem:[%s11129_s3 + $0x4a4] ss:$16 sps:$4 sm:$0xff]  }
 0x15c   : > { %v9749_v29 = vadd.f32 %v1329_v26, %v1288_v23  ;;  %v1331_v31 = vpop.f32.mrb[6].mxu1  ;;  %3061 = vmatpush1.bf16.msra.mxu1 %v7945_v15  ;;  %v1291_v32 = vpop.f32.mrb[7].mxu0  ;;  %3021 = vmatprep.subr.bf16.mxu0 %v7950_v16  ;;  %v8023_v15 = vld [vmem:[%s11129_s3 + $0x4a0] ss:$16 sps:$4 sm:$0xff]   ;;  %v8028_v16 = vld [vmem:[%s11129_s3 + $0x4c4] ss:$16 sps:$4 sm:$0xff]  }
 0x15d   : > { %v1332_v33 = vpop.f32.mrb[7].mxu1  ;;  %3062 = vmatprep.subr.bf16.mxu1 %v7953_v17 }
 0x15f   : > { %3022 = vmatpush1.bf16.msra.mxu0 %v7948_v20 }
 0x160   : > { %3063 = vmatpush1.bf16.msra.mxu1 %v7951_v21  ;;  %3023 = vmatprep.subr.bf16.mxu0 %v7956_v27 }
 0x161   : > { %3064 = vmatprep.subr.bf16.mxu1 %v7959_v28  ;;  %v8026_v28 = vld [vmem:[%s11129_s3 + $0x4c0] ss:$16 sps:$4 sm:$0xff]  }
 0x163   : > { %3024 = vmatpush1.bf16.msra.mxu0 %v7954_v24  ;;  %v8034_v24 = vld [vmem:[%s11129_s3 + $0x504] ss:$16 sps:$4 sm:$0xff]  }
 0x164   : > { %3065 = vmatpush1.bf16.msra.mxu1 %v7957_v25  ;;  %3025 = vmatprep.subr.bf16.mxu0 %v7962_v38  ;;  %v8592_v25 = vmov 0.0   ;;  %v8032_v38 = vld [vmem:[%s11129_s3 + $0x500] ss:$16 sps:$4 sm:$0xff]  }
 0x165   : > { %3066 = vmatprep.subr.bf16.mxu1 %v7965_v39  ;;  %3125 = vst [vmem:[#allocation2] sm:$0x3f] %v8592_v25  ;;  %3126 = vst [vmem:[#allocation2 + $0x8] sm:$0x3f] %v8592_v25  ;;  %v8037_v39 = vld [vmem:[%s11129_s3 + $0x524] ss:$16 sps:$4 sm:$0xff]  }
 0x166   : > { %3127 = vst [vmem:[#allocation2 + $0x10] sm:$0x3f] %v8592_v25  ;;  %3128 = vst [vmem:[#allocation2 + $0x18] sm:$0x3f] %v8592_v25  ;;  %v3097_v25 = vlaneseq }
 0x167   : > { %3026 = vmatpush1.bf16.msra.mxu0 %v7960_v40  ;;  %v8035_v40 = vld [vmem:[%s11129_s3 + $0x520] ss:$16 sps:$4 sm:$0xff]  }
 0x168   : > { %3067 = vmatpush1.bf16.msra.mxu1 %v7963_v41  ;;  %3027 = vmatprep.subr.bf16.mxu0 %v7968_v42  ;;  %v8040_v41 = vld [vmem:[%s11129_s3 + $0x544] ss:$16 sps:$4 sm:$0xff]   ;;  %v8038_v42 = vld [vmem:[%s11129_s3 + $0x540] ss:$16 sps:$4 sm:$0xff]  }
 0x169   : > { %3068 = vmatprep.subr.bf16.mxu1 %v7971_v43  ;;  %v8043_v43 = vld [vmem:[%s11129_s3 + $0x564] ss:$16 sps:$4 sm:$0xff]  }
 0x16b   : > { %3028 = vmatpush1.bf16.msra.mxu0 %v7966_v44  ;;  %v8041_v44 = vld [vmem:[%s11129_s3 + $0x560] ss:$16 sps:$4 sm:$0xff]  }
 0x16c   : > { %3069 = vmatpush1.bf16.msra.mxu1 %v7969_v45  ;;  %3029 = vmatprep.subr.bf16.mxu0 %v7974_v36  ;;  %v8046_v45 = vld [vmem:[%s11129_s3 + $0x584] ss:$16 sps:$4 sm:$0xff]   ;;  %v8044_v36 = vld [vmem:[%s11129_s3 + $0x580] ss:$16 sps:$4 sm:$0xff]  }
 0x16d   : > { %3070 = vmatprep.subr.bf16.mxu1 %v7977_v47  ;;  %v8058_v47 = vld [vmem:[%s11129_s3 + $0x604] ss:$16 sps:$4 sm:$0xff]  }
 0x16f   : > { %3030 = vmatpush1.bf16.msra.mxu0 %v7972_v48  ;;  %v8049_v48 = vld [vmem:[%s11129_s3 + $0x5a4] ss:$16 sps:$4 sm:$0xff]  }
 0x170   : > { %3071 = vmatpush1.bf16.msra.mxu1 %v7975_v34  ;;  %3031 = vmatprep.subr.bf16.mxu0 %v7980_v37  ;;  %v8056_v34 = vld [vmem:[%s11129_s3 + $0x600] ss:$16 sps:$4 sm:$0xff]  }
 0x171   : > { %3072 = vmatprep.subr.bf16.mxu1 %v7983_v49  ;;  %v8047_v37 = vld [vmem:[%s11129_s3 + $0x5a0] ss:$16 sps:$4 sm:$0xff]  }
 0x172   : > { %v8062_v49 = vld [vmem:[%s11129_s3 + $0x620] ss:$16 sps:$4 sm:$0xff]  }
 0x173   : > { %3032 = vmatpush1.bf16.msra.mxu0 %v7978_v50  ;;  %v8064_v50 = vld [vmem:[%s11129_s3 + $0x624] ss:$16 sps:$4 sm:$0xff]  }
 0x174   : > { %3073 = vmatpush1.bf16.msra.mxu1 %v7981_v51  ;;  %3033 = vmatprep.subr.bf16.mxu0 %v7986_v52  ;;  %v8052_v51 = vld [vmem:[%s11129_s3 + $0x5c4] ss:$16 sps:$4 sm:$0xff]   ;;  %v8050_v52 = vld [vmem:[%s11129_s3 + $0x5c0] ss:$16 sps:$4 sm:$0xff]  }
 0x175   : > { %3074 = vmatprep.subr.bf16.mxu1 %v7989_v53  ;;  %v8068_v53 = vld [vmem:[%s11129_s3 + $0x640] ss:$16 sps:$4 sm:$0xff]  }
 0x177   : > { %3034 = vmatpush1.bf16.msra.mxu0 %v7984_v54  ;;  %v8070_v54 = vld [vmem:[%s11129_s3 + $0x644] ss:$16 sps:$4 sm:$0xff]  }
 0x178   : > { %3075 = vmatpush1.bf16.msra.mxu1 %v7987_v55  ;;  %3035 = vmatprep.subr.bf16.mxu0 %v7992_v56  ;;  %v8055_v55 = vld [vmem:[%s11129_s3 + $0x5e4] ss:$16 sps:$4 sm:$0xff]   ;;  %v8053_v56 = vld [vmem:[%s11129_s3 + $0x5e0] ss:$16 sps:$4 sm:$0xff]  }
 0x179   : > { %3076 = vmatprep.subr.bf16.mxu1 %v7995_v57  ;;  %v8074_v57 = vld [vmem:[%s11129_s3 + $0x660] ss:$16 sps:$4 sm:$0xff]  }
 0x17b   : > { %3036 = vmatpush1.bf16.msra.mxu0 %v7990_v60  ;;  %v8076_v60 = vld [vmem:[%s11129_s3 + $0x664] ss:$16 sps:$4 sm:$0xff]  }
 0x17c   : > { %3077 = vmatpush1.bf16.msra.mxu1 %v7993_v61  ;;  %3037 = vmatprep.subr.bf16.mxu0 %v7998_v62  ;;  %v8061_v61 = vld [vmem:[%s11129_s3 + $0x40c] ss:$16 sps:$4 sm:$0xff]   ;;  %v8080_v62 = vld [vmem:[%s11129_s3 + $0x680] ss:$16 sps:$4 sm:$0xff]  }
 0x17d   : > { %3078 = vmatprep.subr.bf16.mxu1 %v8001_v63  ;;  %v8082_v63 = vld [vmem:[%s11129_s3 + $0x684] ss:$16 sps:$4 sm:$0xff]  }
 0x17f   : > { %3038 = vmatpush1.bf16.msra.mxu0 %v7996_v0  ;;  %v8086_v0 = vld [vmem:[%s11129_s3 + $0x6a0] ss:$16 sps:$4 sm:$0xff]  }
 0x180   : > { %3079 = vmatpush1.bf16.msra.mxu1 %v7999_v1  ;;  %3039 = vmatprep.subr.bf16.mxu0 %v8004_v2  ;;  %v8088_v1 = vld [vmem:[%s11129_s3 + $0x6a4] ss:$16 sps:$4 sm:$0xff]   ;;  %v8092_v2 = vld [vmem:[%s11129_s3 + $0x6c0] ss:$16 sps:$4 sm:$0xff]  }
 0x181   : > { %3080 = vmatprep.subr.bf16.mxu1 %v8007_v3  ;;  %v8094_v3 = vld [vmem:[%s11129_s3 + $0x6c4] ss:$16 sps:$4 sm:$0xff]  }
 0x183   : > { %3040 = vmatpush1.bf16.msra.mxu0 %v8002_v5  ;;  %v8098_v5 = vld [vmem:[%s11129_s3 + $0x6e0] ss:$16 sps:$4 sm:$0xff]  }
 0x184   : > { %3081 = vmatpush1.bf16.msra.mxu1 %v8005_v6  ;;  %4090 = vmatprep.subr.bf16.mxu0 %v8010_v7  ;;  %v8100_v6 = vld [vmem:[%s11129_s3 + $0x6e4] ss:$16 sps:$4 sm:$0xff]   ;;  %v8104_v7 = vld [vmem:[%s11129_s3 + $0x700] ss:$16 sps:$4 sm:$0xff]  }
 0x185   : > { %4131 = vmatprep.subr.bf16.mxu1 %v8058_v47 }
 0x186   : > { %3042 = vmatmul.mubr.bf16.vlgmr.msra.gmra.mrb[20].mxu0 %v9661_v58  ;;  %v8017_v58 = vld [vmem:[%s11129_s3 + $0x460] ss:$16 sps:$4 sm:$0xff]  }
 0x187   : > { %3083 = vmatmul.mubr.bf16.vlgmr.msra.gmra.mrb[20].mxu1 %v9663_v59  ;;  %4091 = vmatpush1.bf16.msra.mxu0 %v8008_v46  ;;  %v8022_v59 = vld [vmem:[%s11129_s3 + $0x484] ss:$16 sps:$4 sm:$0xff]  }
 0x188   : > { %4092 = vmatprep.subr.bf16.mxu0 %v8013_v35  ;;  %4132 = vmatpush1.bf16.msra.mxu1 %v8056_v34  ;;  %v8106_v46 = vld [vmem:[%s11129_s3 + $0x704] ss:$16 sps:$4 sm:$0xff]  }
 0x189   : > { %4133 = vmatprep.subr.bf16.mxu1 %v8064_v50  ;;  %v8112_v35 = vld [vmem:[%s11129_s3 + $0x724] ss:$16 sps:$4 sm:$0xff]  }
 0x18b   : > { %4093 = vmatpush1.bf16.msra.mxu0 %v8011_v8 }
 0x18c   : > { %4094 = vmatprep.subr.bf16.mxu0 %v8016_v10  ;;  %4134 = vmatpush1.bf16.msra.mxu1 %v8062_v49 }
 0x18d   : > { %4135 = vmatprep.subr.bf16.mxu1 %v8070_v54 }
 0x18f   : > { %4095 = vmatpush1.bf16.msra.mxu0 %v8014_v11  ;;  %v8110_v11 = vld [vmem:[%s11129_s3 + $0x720] ss:$16 sps:$4 sm:$0xff]  }
 0x190   : > { %4096 = vmatprep.subr.bf16.mxu0 %v8019_v12  ;;  %4136 = vmatpush1.bf16.msra.mxu1 %v8068_v53 }
 0x191   : > { %4137 = vmatprep.subr.bf16.mxu1 %v8076_v60 }
 0x193   : > { %4097 = vmatpush1.bf16.msra.mxu0 %v8017_v58 }
 0x194   : > { %4098 = vmatprep.subr.bf16.mxu0 %v8022_v59  ;;  %4138 = vmatpush1.bf16.msra.mxu1 %v8074_v57 }
 0x195   : > { %4139 = vmatprep.subr.bf16.mxu1 %v8082_v63 }
 0x197   : > { %4099 = vmatpush1.bf16.msra.mxu0 %v8020_v13 }
 0x198   : > { %4100 = vmatprep.subr.bf16.mxu0 %v8025_v14  ;;  %4140 = vmatpush1.bf16.msra.mxu1 %v8080_v62 }
 0x199   : > { %v2008_v17 = vpop.f32.mrb[8].mxu0  ;;  %4141 = vmatprep.subr.bf16.mxu1 %v8088_v1 }
 0x19a   : > { %v2049_v18 = vpop.f32.mrb[8].mxu1  ;;  %v2009_v19 = vadd.f32 %v2008_v17, %v9535_v4  ;;  %v2010_v20 = vpop.f32.mrb[9].mxu0  ;;  %v8031_v4 = vld [vmem:[%s11129_s3 + $0x4e4] ss:$16 sps:$4 sm:$0xff]  }
 0x19b   : > { %v2051_v21 = vpop.f32.mrb[9].mxu1  ;;  %v2011_v23 = vadd.f32 %v2010_v20, %v9543_v9  ;;  %v2012_v26 = vpop.f32.mrb[10].mxu0  ;;  %4101 = vmatpush1.bf16.msra.mxu0 %v8023_v15  ;;  %v8029_v9 = vld [vmem:[%s11129_s3 + $0x4e0] ss:$16 sps:$4 sm:$0xff]  }
 0x19c   : > { %v2053_v27 = vpop.f32.mrb[10].mxu1  ;;  %v9899_v30 = vadd.f32 %v2049_v18, %v2009_v19  ;;  %v2013_v31 = vpop.f32.mrb[11].mxu0  ;;  %4102 = vmatprep.subr.bf16.mxu0 %v8028_v16  ;;  %4142 = vmatpush1.bf16.msra.mxu1 %v8086_v0  ;;  %v8118_v19 = vld [vmem:[%s11129_s3 + $0x744] ss:$16 sps:$4 sm:$0xff]   ;;  %v8128_v26 = vld [vmem:[%s11129_s3 + $0x780] ss:$16 sps:$4 sm:$0xff]  }
 0x19d   : > { %v2054_v32 = vpop.f32.mrb[11].mxu1  ;;  %v9904_v33 = vadd.f32 %v2051_v21, %v2011_v23  ;;  %4143 = vmatprep.subr.bf16.mxu1 %v8094_v3  ;;  %v8122_v21 = vld [vmem:[%s11129_s3 + $0x760] ss:$16 sps:$4 sm:$0xff]   ;;  %v8130_v23 = vld [vmem:[%s11129_s3 + $0x784] ss:$16 sps:$4 sm:$0xff]  }
 0x19e   : > { %v8134_v27 = vld [vmem:[%s11129_s3 + $0x7a0] ss:$16 sps:$4 sm:$0xff]   ;;  %v8142_v32 = vld [vmem:[%s11129_s3 + $0x7c4] ss:$16 sps:$4 sm:$0xff]  }
 0x19f   : > { %4103 = vmatpush1.bf16.msra.mxu0 %v8026_v28  ;;  %v8136_v28 = vld [vmem:[%s11129_s3 + $0x7a4] ss:$16 sps:$4 sm:$0xff]   ;;  %v8140_v31 = vld [vmem:[%s11129_s3 + $0x7c0] ss:$16 sps:$4 sm:$0xff]  }
 0x1a0   : > { %4104 = vmatprep.subr.bf16.mxu0 %v8031_v4  ;;  %4144 = vmatpush1.bf16.msra.mxu1 %v8092_v2  ;;  %v8146_v4 = vld [vmem:[%s11129_s3 + $0x7e0] ss:$16 sps:$4 sm:$0xff]  }
 0x1a1   : > { %4145 = vmatprep.subr.bf16.mxu1 %v8100_v6 }
 0x1a3   : > { %4105 = vmatpush1.bf16.msra.mxu0 %v8029_v9  ;;  %v8148_v9 = vld [vmem:[%s11129_s3 + $0x7e4] ss:$16 sps:$4 sm:$0xff]  }
 0x1a4   : > { %4106 = vmatprep.subr.bf16.mxu0 %v8034_v24  ;;  %4146 = vmatpush1.bf16.msra.mxu1 %v8098_v5  ;;  %v8154_v24 = vld [vmem:[%s11129_s3 + $0x60c] ss:$16 sps:$4 sm:$0xff]  }
 0x1a5   : > { %4147 = vmatprep.subr.bf16.mxu1 %v8106_v46 }
 0x1a7   : > { %4107 = vmatpush1.bf16.msra.mxu0 %v8032_v38  ;;  %v10065_v38 = vshrl.u32 %v3097_v25, 7 }
 0x1a8   : > { %4108 = vmatprep.subr.bf16.mxu0 %v8037_v39  ;;  %4148 = vmatpush1.bf16.msra.mxu1 %v8104_v7 }
 0x1a9   : > { %4149 = vmatprep.subr.bf16.mxu1 %v8112_v35  ;;  %v3099_v39 = vsub.s32 0, %v10065_v38 }
 0x1ab   : > { %4109 = vmatpush1.bf16.msra.mxu0 %v8035_v40  ;;  %v10071_v40 = vld [vmem:[%s11128_s2] sm:$0xf] }
 0x1ac   : > { %4110 = vmatprep.subr.bf16.mxu0 %v8040_v41  ;;  %4150 = vmatpush1.bf16.msra.mxu1 %v8110_v11  ;;  %v3103_v41 = vsub.s32 1, %v10065_v38  ;;  %v8073_v11 = vld [vmem:[%s11129_s3 + $0x44c] ss:$16 sps:$4 sm:$0xff]  }
 0x1ad   : > { %4151 = vmatprep.subr.bf16.mxu1 %v8118_v19  ;;  %v8095_v19 = vld [vmem:[%s11129_s3 + $0x4c8] ss:$16 sps:$4 sm:$0xff]  }
 0x1ae   : > { %v3104_v34 = vrot.slane %v10071_v40, %v3103_v41 }
 0x1af   : > { %4111 = vmatpush1.bf16.msra.mxu0 %v8038_v42 }
 0x1b0   : > { %4112 = vmatprep.subr.bf16.mxu0 %v8043_v43 }
 0x1b3   : > { %4113 = vmatpush1.bf16.msra.mxu0 %v8041_v44 }
 0x1b4   : > { %4114 = vmatprep.subr.bf16.mxu0 %v8046_v45  ;;  %v3100_v45 = vrot.slane %v10071_v40, %v3099_v39 }
 0x1b7   : > { %4115 = vmatpush1.bf16.msra.mxu0 %v8044_v36 }
 0x1b8   : > { %4116 = vmatprep.subr.bf16.mxu0 %v8049_v48 }
 0x1bb   : > { %4117 = vmatpush1.bf16.msra.mxu0 %v8047_v37 }
 0x1bc   : > { %4118 = vmatprep.subr.bf16.mxu0 %v8052_v51 }
 0x1bf   : > { %4119 = vmatpush1.bf16.msra.mxu0 %v8050_v52 }
 0x1c0   : > { %4120 = vmatprep.subr.bf16.mxu0 %v8055_v55 }
 0x1c3   : > { %4121 = vmatpush1.bf16.msra.mxu0 %v8053_v56 }
 0x1c4   : > { %4172 = vmatprep.subr.bf16.mxu0 %v8061_v61 }
 0x1d9   : > { %v2090_v8 = vpop.f32.mrb[12].mxu0 }
 0x1da   : > { %v2131_v10 = vpop.f32.mrb[12].mxu1  ;;  %v2091_v12 = vadd.f32 %v2090_v8, %v9741_v22  ;;  %v2092_v58 = vpop.f32.mrb[13].mxu0  ;;  %v8116_v22 = vld [vmem:[%s11129_s3 + $0x740] ss:$16 sps:$4 sm:$0xff]   ;;  %v8067_v8 = vld [vmem:[%s11129_s3 + $0x42c] ss:$16 sps:$4 sm:$0xff]  }
 0x1db   : > { %v2133_v59 = vpop.f32.mrb[13].mxu1  ;;  %v2093_v13 = vadd.f32 %v2092_v58, %v9749_v29  ;;  %v2094_v14 = vpop.f32.mrb[14].mxu0  ;;  %4152 = vmatpush1.bf16.msra.mxu1 %v8116_v22  ;;  %v8124_v29 = vld [vmem:[%s11129_s3 + $0x764] ss:$16 sps:$4 sm:$0xff]   ;;  %v8079_v58 = vld [vmem:[%s11129_s3 + $0x46c] ss:$16 sps:$4 sm:$0xff]  }
 0x1dc   : > { %v2135_v15 = vpop.f32.mrb[14].mxu1  ;;  %v10022_v16 = vadd.f32 %v2131_v10, %v2091_v12  ;;  %v2095_v17 = vpop.f32.mrb[15].mxu0  ;;  %4153 = vmatprep.subr.bf16.mxu1 %v8124_v29  ;;  %v8065_v10 = vld [vmem:[%s11129_s3 + $0x428] ss:$16 sps:$4 sm:$0xff]   ;;  %v8103_v22 = vld [vmem:[%s11129_s3 + $0x4ec] ss:$16 sps:$4 sm:$0xff]  }
 0x1dd   : > { %v2136_v18 = vpop.f32.mrb[15].mxu1  ;;  %v10027_v20 = vadd.f32 %v2133_v59, %v2093_v13  ;;  %v8071_v12 = vld [vmem:[%s11129_s3 + $0x448] ss:$16 sps:$4 sm:$0xff]   ;;  %v8085_v13 = vld [vmem:[%s11129_s3 + $0x48c] ss:$16 sps:$4 sm:$0xff]  }
 0x1de   : > { %v8077_v59 = vld [vmem:[%s11129_s3 + $0x468] ss:$16 sps:$4 sm:$0xff]   ;;  %v8091_v15 = vld [vmem:[%s11129_s3 + $0x4ac] ss:$16 sps:$4 sm:$0xff]  }
 0x1df   : > { %4154 = vmatpush1.bf16.msra.mxu1 %v8122_v21  ;;  %v8083_v14 = vld [vmem:[%s11129_s3 + $0x488] ss:$16 sps:$4 sm:$0xff]   ;;  %v8097_v18 = vld [vmem:[%s11129_s3 + $0x4cc] ss:$16 sps:$4 sm:$0xff]  }
 0x1e0   : > { %4155 = vmatprep.subr.bf16.mxu1 %v8130_v23  ;;  %v8089_v17 = vld [vmem:[%s11129_s3 + $0x4a8] ss:$16 sps:$4 sm:$0xff]   ;;  %v8109_v21 = vld [vmem:[%s11129_s3 + $0x50c] ss:$16 sps:$4 sm:$0xff]  }
 0x1e1   : > { %v8101_v29 = vld [vmem:[%s11129_s3 + $0x4e8] ss:$16 sps:$4 sm:$0xff]  }
 0x1e2   : > { %v8107_v23 = vld [vmem:[%s11129_s3 + $0x508] ss:$16 sps:$4 sm:$0xff]  }
 0x1e3   : > { %4156 = vmatpush1.bf16.msra.mxu1 %v8128_v26  ;;  %v8115_v26 = vld [vmem:[%s11129_s3 + $0x52c] ss:$16 sps:$4 sm:$0xff]  }
 0x1e4   : > { %4157 = vmatprep.subr.bf16.mxu1 %v8136_v28  ;;  %v8113_v28 = vld [vmem:[%s11129_s3 + $0x528] ss:$16 sps:$4 sm:$0xff]  }
 0x1e7   : > { %4158 = vmatpush1.bf16.msra.mxu1 %v8134_v27  ;;  %v3107_v27 = vsub.s32 2, %v10065_v38 }
 0x1e8   : > { %4159 = vmatprep.subr.bf16.mxu1 %v8142_v32  ;;  %v8121_v32 = vld [vmem:[%s11129_s3 + $0x54c] ss:$16 sps:$4 sm:$0xff]  }
 0x1e9   : > { %v3108_v25 = vrot.slane %v10071_v40, %v3107_v27 }
 0x1eb   : > { %4160 = vmatpush1.bf16.msra.mxu1 %v8140_v31  ;;  %v3111_v31 = vsub.s32 3, %v10065_v38 }
 0x1ec   : > { %4161 = vmatprep.subr.bf16.mxu1 %v8148_v9 }
 0x1ef   : > { %4162 = vmatpush1.bf16.msra.mxu1 %v8146_v4 }
 0x1f0   : > { %4213 = vmatprep.subr.bf16.mxu1 %v8154_v24 }
 0x219   : > { %v2961_v42 = vpop.f32.mrb[16].mxu0 }
 0x21a   : > { %v3002_v43 = vpop.f32.mrb[16].mxu1  ;;  %v2963_v36 = vpop.f32.mrb[17].mxu0 }
 0x21b   : > { %v3003_v44 = vadd.f32 %v3002_v43, %v2961_v42  ;;  %v3004_v47 = vpop.f32.mrb[17].mxu1  ;;  %v2965_v37 = vpop.f32.mrb[18].mxu0 }
 0x21c   : > { %v3005_v48 = vadd.f32 %v3004_v47, %v2963_v36  ;;  %v3006_v49 = vpop.f32.mrb[18].mxu1  ;;  %v2966_v51 = vpop.f32.mrb[19].mxu0 }
 0x21d   : > { %v3091_v50 = vadd.f32 %v3003_v44, %v9899_v30  ;;  %v3007_v52 = vpop.f32.mrb[19].mxu1 }
 0x21e   : > { %v3092_v53 = vadd.f32 %v3005_v48, %v9904_v33  ;;  %v8059_v33 = vld [vmem:[%s11129_s3 + $0x408] ss:$16 sps:$4 sm:$0xff]  }
 0x21f   : > { %v3117_v54 = vadd.f32 %v3100_v45, %v3091_v50  ;;  %v3112_v45 = vrot.slane %v10071_v40, %v3111_v31  ;;  %v8119_v48 = vld [vmem:[%s11129_s3 + $0x548] ss:$16 sps:$4 sm:$0xff]   ;;  %v8127_v50 = vld [vmem:[%s11129_s3 + $0x56c] ss:$16 sps:$4 sm:$0xff]  }
 0x220   : > { %v3118_v55 = vadd.f32 %v3104_v34, %v3092_v53  ;;  %v8125_v53 = vld [vmem:[%s11129_s3 + $0x568] ss:$16 sps:$4 sm:$0xff]  }
 0x221   : > { %v3121_v56 = vmax.f32 %v3117_v54, 0.0 }
 0x222   : > { %v3122_v57 = vmax.f32 %v3118_v55, 0.0 }
 0x223   : > { %v3133_v60 = vrot.slane %v3121_v56, 7 }
 0x224   : > { %v3134_v61 = vrot.slane %v3122_v57, 7 }
 0x225   : > { %3141 = vst [vmem:[#allocation2] sm:$0x1e] %v3133_v60  ;;  %v8139_v60 = vld [vmem:[%s11129_s3 + $0x5ac] ss:$16 sps:$4 sm:$0xff]  }
 0x226   : > { %3142 = vst [vmem:[#allocation2 + $0x8] sm:$0x1e] %v3134_v61  ;;  %v8137_v61 = vld [vmem:[%s11129_s3 + $0x5a8] ss:$16 sps:$4 sm:$0xff]  }
 0x22c   : > { %v3281_v62 = vld [vmem:[#allocation2] sm:$0x1e] }
 0x22d   : > { %v3282_v63 = vld [vmem:[#allocation2 + $0x8] sm:$0x1e]  ;;  %v3285_v0 = vpack.c.bf16 %v3281_v62, %v3281_v62 }
 0x22e   : > { %v3286_v1 = vpack.c.bf16 %v3282_v63, %v3282_v63  ;;  %v8145_v62 = vld [vmem:[%s11129_s3 + $0x5cc] ss:$16 sps:$4 sm:$0xff]   ;;  %v8143_v63 = vld [vmem:[%s11129_s3 + $0x5c8] ss:$16 sps:$4 sm:$0xff]  }
 0x22f   : > { %v3421_v2 = vshll.u32 %v3285_v0, 16  ;;  %v3419_v7 = vshrl.u32 %v3285_v0, 16 }
 0x230   : > { %v3428_v3 = vshll.u32 %v3286_v1, 16  ;;  %v3426_v30 = vshrl.u32 %v3286_v1, 16  ;;  %v8151_v1 = vld [vmem:[%s11129_s3 + $0x5ec] ss:$16 sps:$4 sm:$0xff]  }
 0x231   : > { %v3423_v5 = vrot.slane %v3421_v2, 1 }
 0x232   : > { %v3430_v6 = vrot.slane %v3428_v3, 1 }
 0x233   : > { %v10085_v35 = vor.u32 %v3423_v5, %v3419_v7 }
 0x234   : > { %v3431_v46 = vor.u32 %v3430_v6, %v3426_v30  ;;  %v8149_v6 = vld [vmem:[%s11129_s3 + $0x5e8] ss:$16 sps:$4 sm:$0xff]  }
 0x236   : > { %4122 = vmatprep.mubr.bf16.mxu0 %v3431_v46 }
 0x237   : > { %4123 = vmatmul.mubr.bf16.vlgmr.msra.gmra.mrb[24].mxu0 %v10085_v35 }
 0x238   : > { %4173 = vmatpush1.bf16.msra.mxu0 %v8059_v33  ;;  %4204 = vmatprep.mubr.bf16.mxu0 %v3431_v46  ;;  %v8157_v46 = vld [vmem:[%s11129_s3 + $0x4] ss:$16 sps:$4 sm:$0xff]  }
 0x239   : > { %4174 = vmatprep.subr.bf16.mxu0 %v8067_v8 }
 0x23c   : > { %4175 = vmatpush1.bf16.msra.mxu0 %v8065_v10 }
 0x23d   : > { %4176 = vmatprep.subr.bf16.mxu0 %v8073_v11 }
 0x240   : > { %4177 = vmatpush1.bf16.msra.mxu0 %v8071_v12 }
 0x241   : > { %4178 = vmatprep.subr.bf16.mxu0 %v8079_v58  ;;  %v8152_v58 = vld [vmem:[%s11129_s3 + $0x608] ss:$16 sps:$4 sm:$0xff]  }
 0x244   : > { %4179 = vmatpush1.bf16.msra.mxu0 %v8077_v59  ;;  %v8155_v59 = vld [vmem:[%s11129_s3] ss:$16 sps:$4 sm:$0xff]  }
 0x245   : > { %4180 = vmatprep.subr.bf16.mxu0 %v8085_v13  ;;  %v3146_v13 = vld [vmem:[#allocation2 + $0x8] sm:$0xf] }
 0x248   : > { %4181 = vmatpush1.bf16.msra.mxu0 %v8083_v14 }
 0x249   : > { %4182 = vmatprep.subr.bf16.mxu0 %v8091_v15  ;;  %v8160_v15 = vld [vmem:[%s11129_s3 + $0x62c] ss:$16 sps:$4 sm:$0xff]  }
 0x24c   : > { %4183 = vmatpush1.bf16.msra.mxu0 %v8089_v17  ;;  %v8163_v17 = vld [vmem:[%s11129_s3 + $0x24] ss:$16 sps:$4 sm:$0xff]  }
 0x24d   : > { %4184 = vmatprep.subr.bf16.mxu0 %v8097_v18  ;;  %v10207_v18 = vpack.c.bf16 %v3146_v13, %v3146_v13  ;;  %v8244_v13 = vld [vmem:[%s11129_s3 + $0x7ec] ss:$16 sps:$4 sm:$0xff]  }
 0x250   : > { %4185 = vmatpush1.bf16.msra.mxu0 %v8095_v19  ;;  %v8158_v19 = vld [vmem:[%s11129_s3 + $0x628] ss:$16 sps:$4 sm:$0xff]  }
 0x251   : > { %4186 = vmatprep.subr.bf16.mxu0 %v8103_v22  ;;  %v8161_v22 = vld [vmem:[%s11129_s3 + $0x20] ss:$16 sps:$4 sm:$0xff]  }
 0x254   : > { %4187 = vmatpush1.bf16.msra.mxu0 %v8101_v29  ;;  %v8169_v29 = vld [vmem:[%s11129_s3 + $0x44] ss:$16 sps:$4 sm:$0xff]  }
 0x255   : > { %4188 = vmatprep.subr.bf16.mxu0 %v8109_v21  ;;  %v8164_v21 = vld [vmem:[%s11129_s3 + $0x648] ss:$16 sps:$4 sm:$0xff]  }
 0x258   : > { %4189 = vmatpush1.bf16.msra.mxu0 %v8107_v23  ;;  %v8167_v23 = vld [vmem:[%s11129_s3 + $0x40] ss:$16 sps:$4 sm:$0xff]  }
 0x259   : > { %4190 = vmatprep.subr.bf16.mxu0 %v8115_v26  ;;  %v3043_v4 = vpop.f32.mrb[20].mxu0  ;;  %v8172_v26 = vld [vmem:[%s11129_s3 + $0x66c] ss:$16 sps:$4 sm:$0xff]  }
 0x25a   : > { %v3084_v9 = vpop.f32.mrb[20].mxu1  ;;  %v3045_v42 = vpop.f32.mrb[21].mxu0 }
 0x25b   : > { %v3085_v24 = vadd.f32 %v3084_v9, %v3043_v4  ;;  %v3086_v43 = vpop.f32.mrb[21].mxu1  ;;  %v3047_v36 = vpop.f32.mrb[22].mxu0  ;;  %v8173_v4 = vld [vmem:[%s11129_s3 + $0x60] ss:$16 sps:$4 sm:$0xff]   ;;  %v8178_v9 = vld [vmem:[%s11129_s3 + $0x68c] ss:$16 sps:$4 sm:$0xff]  }
 0x25c   : > { %v3087_v44 = vadd.f32 %v3086_v43, %v3045_v42  ;;  %4191 = vmatpush1.bf16.msra.mxu0 %v8113_v28  ;;  %v3088_v47 = vpop.f32.mrb[22].mxu1  ;;  %v3048_v37 = vpop.f32.mrb[23].mxu0  ;;  %v8175_v28 = vld [vmem:[%s11129_s3 + $0x64] ss:$16 sps:$4 sm:$0xff]   ;;  %v8179_v42 = vld [vmem:[%s11129_s3 + $0x80] ss:$16 sps:$4 sm:$0xff]  }
 0x25d   : > { %v3093_v34 = vadd.f32 %v3085_v24, %v10022_v16  ;;  %v3089_v49 = vpop.f32.mrb[23].mxu1  ;;  %4192 = vmatprep.subr.bf16.mxu0 %v8121_v32  ;;  %v8133_v16 = vld [vmem:[%s11129_s3 + $0x58c] ss:$16 sps:$4 sm:$0xff]   ;;  %v8170_v32 = vld [vmem:[%s11129_s3 + $0x668] ss:$16 sps:$4 sm:$0xff]  }
 0x25e   : > { %v3094_v51 = vadd.f32 %v3087_v44, %v10027_v20  ;;  %v8131_v20 = vld [vmem:[%s11129_s3 + $0x588] ss:$16 sps:$4 sm:$0xff]   ;;  %v8181_v24 = vld [vmem:[%s11129_s3 + $0x84] ss:$16 sps:$4 sm:$0xff]   ;;  %v8184_v43 = vld [vmem:[%s11129_s3 + $0x6ac] ss:$16 sps:$4 sm:$0xff]  }
 0x25f   : > { %v3119_v52 = vadd.f32 %v3108_v25, %v3093_v34  ;;  %v8176_v25 = vld [vmem:[%s11129_s3 + $0x688] ss:$16 sps:$4 sm:$0xff]   ;;  %v8187_v44 = vld [vmem:[%s11129_s3 + $0xa4] ss:$16 sps:$4 sm:$0xff]   ;;  %v8185_v36 = vld [vmem:[%s11129_s3 + $0xa0] ss:$16 sps:$4 sm:$0xff]  }
 0x260   : > { %v3120_v40 = vadd.f32 %v3112_v45, %v3094_v51  ;;  %4193 = vmatpush1.bf16.msra.mxu0 %v8119_v48  ;;  %v8182_v45 = vld [vmem:[%s11129_s3 + $0x6a8] ss:$16 sps:$4 sm:$0xff]   ;;  %v8190_v47 = vld [vmem:[%s11129_s3 + $0x6cc] ss:$16 sps:$4 sm:$0xff]   ;;  %v8193_v48 = vld [vmem:[%s11129_s3 + $0xc4] ss:$16 sps:$4 sm:$0xff]  }
 0x261   : > { %v3123_v54 = vmax.f32 %v3119_v52, 0.0  ;;  %4194 = vmatprep.subr.bf16.mxu0 %v8127_v50  ;;  %v8188_v34 = vld [vmem:[%s11129_s3 + $0x6c8] ss:$16 sps:$4 sm:$0xff]   ;;  %v8191_v37 = vld [vmem:[%s11129_s3 + $0xc0] ss:$16 sps:$4 sm:$0xff]  }
 0x262   : > { %v3124_v55 = vmax.f32 %v3120_v40, 0.0  ;;  %v8196_v49 = vld [vmem:[%s11129_s3 + $0x6ec] ss:$16 sps:$4 sm:$0xff]   ;;  %v8199_v50 = vld [vmem:[%s11129_s3 + $0xe4] ss:$16 sps:$4 sm:$0xff]  }
 0x263   : > { %v3135_v56 = vrot.slane %v3123_v54, 7  ;;  %v8194_v51 = vld [vmem:[%s11129_s3 + $0x6e8] ss:$16 sps:$4 sm:$0xff]   ;;  %v8197_v52 = vld [vmem:[%s11129_s3 + $0xe0] ss:$16 sps:$4 sm:$0xff]  }
 0x264   : > { %v3136_v57 = vrot.slane %v3124_v55, 7  ;;  %4195 = vmatpush1.bf16.msra.mxu0 %v8125_v53  ;;  %v8202_v40 = vld [vmem:[%s11129_s3 + $0x70c] ss:$16 sps:$4 sm:$0xff]   ;;  %v8205_v53 = vld [vmem:[%s11129_s3 + $0x104] ss:$16 sps:$4 sm:$0xff]  }
 0x265   : > { %3143 = vst [vmem:[#allocation2 + $0x10] sm:$0x1e] %v3135_v56  ;;  %4196 = vmatprep.subr.bf16.mxu0 %v8133_v16  ;;  %v8200_v54 = vld [vmem:[%s11129_s3 + $0x708] ss:$16 sps:$4 sm:$0xff]   ;;  %v8203_v16 = vld [vmem:[%s11129_s3 + $0x100] ss:$16 sps:$4 sm:$0xff]  }
 0x266   : > { %3144 = vst [vmem:[#allocation2 + $0x18] sm:$0x1e] %v3136_v57  ;;  %v8208_v55 = vld [vmem:[%s11129_s3 + $0x72c] ss:$16 sps:$4 sm:$0xff]   ;;  %v8211_v56 = vld [vmem:[%s11129_s3 + $0x124] ss:$16 sps:$4 sm:$0xff]  }
 0x267   : > { %v8206_v57 = vld [vmem:[%s11129_s3 + $0x728] ss:$16 sps:$4 sm:$0xff]  }
 0x268   : > { %4197 = vmatpush1.bf16.msra.mxu0 %v8131_v20  ;;  %v8209_v20 = vld [vmem:[%s11129_s3 + $0x120] ss:$16 sps:$4 sm:$0xff]  }
 0x269   : > { %4198 = vmatprep.subr.bf16.mxu0 %v8139_v60  ;;  %v8214_v60 = vld [vmem:[%s11129_s3 + $0x74c] ss:$16 sps:$4 sm:$0xff]  }
 0x26c   : > { %4199 = vmatpush1.bf16.msra.mxu0 %v8137_v61  ;;  %v3283_v0 = vld [vmem:[#allocation2 + $0x10] sm:$0x1e] }
 0x26d   : > { %4200 = vmatprep.subr.bf16.mxu0 %v8145_v62  ;;  %v3284_v2 = vld [vmem:[#allocation2 + $0x18] sm:$0x1e]  ;;  %v3287_v3 = vpack.c.bf16 %v3283_v0, %v3283_v0  ;;  %v8217_v61 = vld [vmem:[%s11129_s3 + $0x144] ss:$16 sps:$4 sm:$0xff]  }
 0x26e   : > { %v3288_v5 = vpack.c.bf16 %v3284_v2, %v3284_v2  ;;  %v8212_v62 = vld [vmem:[%s11129_s3 + $0x748] ss:$16 sps:$4 sm:$0xff]   ;;  %v8220_v0 = vld [vmem:[%s11129_s3 + $0x76c] ss:$16 sps:$4 sm:$0xff]  }
 0x26f   : > { %v3435_v30 = vshll.u32 %v3287_v3, 16  ;;  %v3433_v11 = vshrl.u32 %v3287_v3, 16  ;;  %v8218_v2 = vld [vmem:[%s11129_s3 + $0x768] ss:$16 sps:$4 sm:$0xff]   ;;  %v8221_v3 = vld [vmem:[%s11129_s3 + $0x160] ss:$16 sps:$4 sm:$0xff]  }
 0x270   : > { %4201 = vmatpush1.bf16.msra.mxu0 %v8143_v63  ;;  %v3442_v7 = vshll.u32 %v3288_v5, 16  ;;  %v3440_v8 = vshrl.u32 %v3288_v5, 16  ;;  %v8215_v63 = vld [vmem:[%s11129_s3 + $0x140] ss:$16 sps:$4 sm:$0xff]   ;;  %v8226_v5 = vld [vmem:[%s11129_s3 + $0x78c] ss:$16 sps:$4 sm:$0xff]  }
 0x271   : > { %4202 = vmatprep.subr.bf16.mxu0 %v8151_v1  ;;  %v3437_v33 = vrot.slane %v3435_v30, 1  ;;  %v8223_v1 = vld [vmem:[%s11129_s3 + $0x164] ss:$16 sps:$4 sm:$0xff]  }
 0x272   : > { %v3444_v10 = vrot.slane %v3442_v7, 1  ;;  %v8229_v30 = vld [vmem:[%s11129_s3 + $0x184] ss:$16 sps:$4 sm:$0xff]   ;;  %v8227_v7 = vld [vmem:[%s11129_s3 + $0x180] ss:$16 sps:$4 sm:$0xff]  }
 0x273   : > { %v10197_v14 = vor.u32 %v3437_v33, %v3433_v11  ;;  %v8235_v33 = vld [vmem:[%s11129_s3 + $0x1a4] ss:$16 sps:$4 sm:$0xff]   ;;  %v8238_v11 = vld [vmem:[%s11129_s3 + $0x7cc] ss:$16 sps:$4 sm:$0xff]  }
 0x274   : > { %4203 = vmatpush1.bf16.msra.mxu0 %v8149_v6  ;;  %v3445_v12 = vor.u32 %v3444_v10, %v3440_v8  ;;  %v8224_v6 = vld [vmem:[%s11129_s3 + $0x788] ss:$16 sps:$4 sm:$0xff]   ;;  %v8233_v10 = vld [vmem:[%s11129_s3 + $0x1a0] ss:$16 sps:$4 sm:$0xff]  }
 0x275   : > { %4894 = vmatprep.subr.bf16.mxu0 %v8157_v46  ;;  %v8232_v46 = vld [vmem:[%s11129_s3 + $0x7ac] ss:$16 sps:$4 sm:$0xff]   ;;  %v8230_v8 = vld [vmem:[%s11129_s3 + $0x7a8] ss:$16 sps:$4 sm:$0xff]  }
 0x276   : > { %4163 = vmatprep.mubr.bf16.mxu1 %v3445_v12 }
 0x277   : > { %4205 = vmatmul.mubr.bf16.vlgmr.msra.gmra.mrb[28].mxu0 %v10085_v35  ;;  %4164 = vmatmul.mubr.bf16.vlgmr.msra.gmra.mrb[24].mxu1 %v10197_v14  ;;  %v8166_v35 = vld [vmem:[%s11129_s3 + $0x64c] ss:$16 sps:$4 sm:$0xff]  }
 0x278   : > { %4214 = vmatpush1.bf16.msra.mxu1 %v8152_v58  ;;  %4895 = vmatpush1.bf16.msra.mxu0 %v8155_v59  ;;  %v8236_v58 = vld [vmem:[%s11129_s3 + $0x7c8] ss:$16 sps:$4 sm:$0xff]   ;;  %v8239_v59 = vld [vmem:[%s11129_s3 + $0x1c0] ss:$16 sps:$4 sm:$0xff]  }
 0x279   : > { %4926 = vmatprep.mubr.bf16.mxu0 %v10207_v18  ;;  %4245 = vmatprep.mubr.bf16.mxu1 %v3445_v12  ;;  %v8241_v12 = vld [vmem:[%s11129_s3 + $0x1c4] ss:$16 sps:$4 sm:$0xff]  }
 0x27a   : > { %4215 = vmatprep.subr.bf16.mxu1 %v8160_v15  ;;  %4896 = vmatprep.subr.bf16.mxu0 %v8163_v17  ;;  %v8247_v15 = vld [vmem:[%s11129_s3 + $0x1e4] ss:$16 sps:$4 sm:$0xff]   ;;  %v8242_v17 = vld [vmem:[%s11129_s3 + $0x7e8] ss:$16 sps:$4 sm:$0xff]  }
 0x27c   : > { %4216 = vmatpush1.bf16.msra.mxu1 %v8158_v19  ;;  %4897 = vmatpush1.bf16.msra.mxu0 %v8161_v22  ;;  %v8245_v19 = vld [vmem:[%s11129_s3 + $0x1e0] ss:$16 sps:$4 sm:$0xff]   ;;  %v8250_v22 = vld [vmem:[%s11129_s3 + $0x204] ss:$16 sps:$4 sm:$0xff]  }
 0x27d   : > { %4217 = vmatprep.subr.bf16.mxu1 %v8166_v35  ;;  %4898 = vmatprep.subr.bf16.mxu0 %v8169_v29  ;;  %v8253_v35 = vld [vmem:[%s11129_s3 + $0xc] ss:$16 sps:$4 sm:$0xff]   ;;  %v3145_v29 = vld [vmem:[#allocation2] sm:$0xf] }
 0x280   : > { %4218 = vmatpush1.bf16.msra.mxu1 %v8164_v21  ;;  %4899 = vmatpush1.bf16.msra.mxu0 %v8167_v23  ;;  %v3148_v21 = vld [vmem:[#allocation2 + $0x18] sm:$0xf]  ;;  %v8248_v23 = vld [vmem:[%s11129_s3 + $0x200] ss:$16 sps:$4 sm:$0xff]  }
 0x281   : > { %4219 = vmatprep.subr.bf16.mxu1 %v8172_v26  ;;  %4900 = vmatprep.subr.bf16.mxu0 %v8175_v28  ;;  %v10393_v26 = vpack.c.bf16 %v3145_v29, %v3145_v29  ;;  %v8251_v28 = vld [vmem:[%s11129_s3 + $0x8] ss:$16 sps:$4 sm:$0xff]   ;;  %v8337_v29 = vld [vmem:[%s11129_s3 + $0x1cc] ss:$16 sps:$4 sm:$0xff]  }
 0x284   : > { %4220 = vmatpush1.bf16.msra.mxu1 %v8170_v32  ;;  %4901 = vmatpush1.bf16.msra.mxu0 %v8173_v4  ;;  %v10398_v32 = vpack.c.bf16 %v3148_v21, %v3148_v21  ;;  %v8256_v4 = vld [vmem:[%s11129_s3 + $0x224] ss:$16 sps:$4 sm:$0xff]   ;;  %v8332_v21 = vld [vmem:[%s11129_s3 + $0x3c0] ss:$16 sps:$4 sm:$0xff]  }
 0x285   : > { %4221 = vmatprep.subr.bf16.mxu1 %v8178_v9  ;;  %4902 = vmatprep.subr.bf16.mxu0 %v8181_v24  ;;  %v8259_v9 = vld [vmem:[%s11129_s3 + $0x2c] ss:$16 sps:$4 sm:$0xff]   ;;  %v8254_v24 = vld [vmem:[%s11129_s3 + $0x220] ss:$16 sps:$4 sm:$0xff]  }
 0x288   : > { %4222 = vmatpush1.bf16.msra.mxu1 %v8176_v25  ;;  %4903 = vmatpush1.bf16.msra.mxu0 %v8179_v42  ;;  %v8257_v25 = vld [vmem:[%s11129_s3 + $0x28] ss:$16 sps:$4 sm:$0xff]   ;;  %v8265_v42 = vld [vmem:[%s11129_s3 + $0x4c] ss:$16 sps:$4 sm:$0xff]  }
 0x289   : > { %4223 = vmatprep.subr.bf16.mxu1 %v8184_v43  ;;  %4904 = vmatprep.subr.bf16.mxu0 %v8187_v44  ;;  %v8260_v43 = vld [vmem:[%s11129_s3 + $0x240] ss:$16 sps:$4 sm:$0xff]   ;;  %v8268_v44 = vld [vmem:[%s11129_s3 + $0x264] ss:$16 sps:$4 sm:$0xff]  }
 0x28c   : > { %4224 = vmatpush1.bf16.msra.mxu1 %v8182_v45  ;;  %4905 = vmatpush1.bf16.msra.mxu0 %v8185_v36  ;;  %v8271_v45 = vld [vmem:[%s11129_s3 + $0x6c] ss:$16 sps:$4 sm:$0xff]   ;;  %v8266_v36 = vld [vmem:[%s11129_s3 + $0x260] ss:$16 sps:$4 sm:$0xff]  }
 0x28d   : > { %4225 = vmatprep.subr.bf16.mxu1 %v8190_v47  ;;  %4906 = vmatprep.subr.bf16.mxu0 %v8193_v48  ;;  %v8269_v47 = vld [vmem:[%s11129_s3 + $0x68] ss:$16 sps:$4 sm:$0xff]   ;;  %v8274_v48 = vld [vmem:[%s11129_s3 + $0x284] ss:$16 sps:$4 sm:$0xff]  }
 0x290   : > { %4226 = vmatpush1.bf16.msra.mxu1 %v8188_v34  ;;  %4907 = vmatpush1.bf16.msra.mxu0 %v8191_v37  ;;  %v8277_v34 = vld [vmem:[%s11129_s3 + $0x8c] ss:$16 sps:$4 sm:$0xff]   ;;  %v8272_v37 = vld [vmem:[%s11129_s3 + $0x280] ss:$16 sps:$4 sm:$0xff]  }
 0x291   : > { %4227 = vmatprep.subr.bf16.mxu1 %v8196_v49  ;;  %4908 = vmatprep.subr.bf16.mxu0 %v8199_v50  ;;  %v8275_v49 = vld [vmem:[%s11129_s3 + $0x88] ss:$16 sps:$4 sm:$0xff]   ;;  %v8280_v50 = vld [vmem:[%s11129_s3 + $0x2a4] ss:$16 sps:$4 sm:$0xff]  }
 0x294   : > { %4228 = vmatpush1.bf16.msra.mxu1 %v8194_v51  ;;  %4909 = vmatpush1.bf16.msra.mxu0 %v8197_v52  ;;  %v8283_v51 = vld [vmem:[%s11129_s3 + $0xac] ss:$16 sps:$4 sm:$0xff]   ;;  %v8278_v52 = vld [vmem:[%s11129_s3 + $0x2a0] ss:$16 sps:$4 sm:$0xff]  }
 0x295   : > { %4229 = vmatprep.subr.bf16.mxu1 %v8202_v40  ;;  %4910 = vmatprep.subr.bf16.mxu0 %v8205_v53  ;;  %v8281_v40 = vld [vmem:[%s11129_s3 + $0xa8] ss:$16 sps:$4 sm:$0xff]   ;;  %v8286_v53 = vld [vmem:[%s11129_s3 + $0x2c4] ss:$16 sps:$4 sm:$0xff]  }
 0x298   : > { %4230 = vmatpush1.bf16.msra.mxu1 %v8200_v54  ;;  %4911 = vmatpush1.bf16.msra.mxu0 %v8203_v16  ;;  %v8289_v54 = vld [vmem:[%s11129_s3 + $0xcc] ss:$16 sps:$4 sm:$0xff]   ;;  %v8284_v16 = vld [vmem:[%s11129_s3 + $0x2c0] ss:$16 sps:$4 sm:$0xff]  }
 0x299   : > { %4231 = vmatprep.subr.bf16.mxu1 %v8208_v55  ;;  %4912 = vmatprep.subr.bf16.mxu0 %v8211_v56  ;;  %v8287_v55 = vld [vmem:[%s11129_s3 + $0xc8] ss:$16 sps:$4 sm:$0xff]   ;;  %v8292_v56 = vld [vmem:[%s11129_s3 + $0x2e4] ss:$16 sps:$4 sm:$0xff]  }
 0x29c   : > { %4232 = vmatpush1.bf16.msra.mxu1 %v8206_v57  ;;  %4913 = vmatpush1.bf16.msra.mxu0 %v8209_v20  ;;  %v8295_v57 = vld [vmem:[%s11129_s3 + $0xec] ss:$16 sps:$4 sm:$0xff]   ;;  %v8290_v20 = vld [vmem:[%s11129_s3 + $0x2e0] ss:$16 sps:$4 sm:$0xff]  }
 0x29d   : > { %4233 = vmatprep.subr.bf16.mxu1 %v8214_v60  ;;  %4914 = vmatprep.subr.bf16.mxu0 %v8217_v61  ;;  %v8293_v60 = vld [vmem:[%s11129_s3 + $0xe8] ss:$16 sps:$4 sm:$0xff]   ;;  %v8298_v61 = vld [vmem:[%s11129_s3 + $0x304] ss:$16 sps:$4 sm:$0xff]  }
 0x2a0   : > { %4234 = vmatpush1.bf16.msra.mxu1 %v8212_v62  ;;  %4915 = vmatpush1.bf16.msra.mxu0 %v8215_v63  ;;  %v8301_v62 = vld [vmem:[%s11129_s3 + $0x10c] ss:$16 sps:$4 sm:$0xff]   ;;  %v8296_v63 = vld [vmem:[%s11129_s3 + $0x300] ss:$16 sps:$4 sm:$0xff]  }
 0x2a1   : > { %4235 = vmatprep.subr.bf16.mxu1 %v8220_v0  ;;  %4916 = vmatprep.subr.bf16.mxu0 %v8223_v1  ;;  %v8299_v0 = vld [vmem:[%s11129_s3 + $0x108] ss:$16 sps:$4 sm:$0xff]   ;;  %v8304_v1 = vld [vmem:[%s11129_s3 + $0x324] ss:$16 sps:$4 sm:$0xff]  }
 0x2a4   : > { %4236 = vmatpush1.bf16.msra.mxu1 %v8218_v2  ;;  %4917 = vmatpush1.bf16.msra.mxu0 %v8221_v3  ;;  %v8307_v2 = vld [vmem:[%s11129_s3 + $0x12c] ss:$16 sps:$4 sm:$0xff]   ;;  %v8302_v3 = vld [vmem:[%s11129_s3 + $0x320] ss:$16 sps:$4 sm:$0xff]  }
 0x2a5   : > { %4237 = vmatprep.subr.bf16.mxu1 %v8226_v5  ;;  %4918 = vmatprep.subr.bf16.mxu0 %v8229_v30  ;;  %v8305_v5 = vld [vmem:[%s11129_s3 + $0x128] ss:$16 sps:$4 sm:$0xff]   ;;  %v8310_v30 = vld [vmem:[%s11129_s3 + $0x344] ss:$16 sps:$4 sm:$0xff]  }
 0x2a8   : > { %4238 = vmatpush1.bf16.msra.mxu1 %v8224_v6  ;;  %4919 = vmatpush1.bf16.msra.mxu0 %v8227_v7  ;;  %v8313_v6 = vld [vmem:[%s11129_s3 + $0x14c] ss:$16 sps:$4 sm:$0xff]   ;;  %v8308_v7 = vld [vmem:[%s11129_s3 + $0x340] ss:$16 sps:$4 sm:$0xff]  }
 0x2a9   : > { %4239 = vmatprep.subr.bf16.mxu1 %v8232_v46  ;;  %4920 = vmatprep.subr.bf16.mxu0 %v8235_v33  ;;  %v8311_v46 = vld [vmem:[%s11129_s3 + $0x148] ss:$16 sps:$4 sm:$0xff]   ;;  %v8316_v33 = vld [vmem:[%s11129_s3 + $0x364] ss:$16 sps:$4 sm:$0xff]  }
 0x2ac   : > { %4240 = vmatpush1.bf16.msra.mxu1 %v8230_v8  ;;  %4921 = vmatpush1.bf16.msra.mxu0 %v8233_v10  ;;  %v8319_v8 = vld [vmem:[%s11129_s3 + $0x16c] ss:$16 sps:$4 sm:$0xff]   ;;  %v8314_v10 = vld [vmem:[%s11129_s3 + $0x360] ss:$16 sps:$4 sm:$0xff]  }
 0x2ad   : > { %4241 = vmatprep.subr.bf16.mxu1 %v8238_v11  ;;  %4922 = vmatprep.subr.bf16.mxu0 %v8241_v12  ;;  %v8317_v11 = vld [vmem:[%s11129_s3 + $0x168] ss:$16 sps:$4 sm:$0xff]   ;;  %v8322_v12 = vld [vmem:[%s11129_s3 + $0x384] ss:$16 sps:$4 sm:$0xff]  }
 0x2b0   : > { %4242 = vmatpush1.bf16.msra.mxu1 %v8236_v58  ;;  %4923 = vmatpush1.bf16.msra.mxu0 %v8239_v59  ;;  %v8325_v58 = vld [vmem:[%s11129_s3 + $0x18c] ss:$16 sps:$4 sm:$0xff]   ;;  %v8320_v59 = vld [vmem:[%s11129_s3 + $0x380] ss:$16 sps:$4 sm:$0xff]  }
 0x2b1   : > { %4243 = vmatprep.subr.bf16.mxu1 %v8244_v13  ;;  %4924 = vmatprep.subr.bf16.mxu0 %v8247_v15  ;;  %v8323_v13 = vld [vmem:[%s11129_s3 + $0x188] ss:$16 sps:$4 sm:$0xff]   ;;  %v8328_v15 = vld [vmem:[%s11129_s3 + $0x3a4] ss:$16 sps:$4 sm:$0xff]  }
 0x2b4   : > { %4244 = vmatpush1.bf16.msra.mxu1 %v8242_v17  ;;  %4925 = vmatpush1.bf16.msra.mxu0 %v8245_v19  ;;  %v8331_v17 = vld [vmem:[%s11129_s3 + $0x1ac] ss:$16 sps:$4 sm:$0xff]   ;;  %v8326_v19 = vld [vmem:[%s11129_s3 + $0x3a0] ss:$16 sps:$4 sm:$0xff]  }
 0x2b5   : > { %4935 = vmatprep.subr.bf16.mxu1 %v8250_v22  ;;  %4976 = vmatprep.subr.bf16.mxu0 %v8253_v35  ;;  %v8329_v22 = vld [vmem:[%s11129_s3 + $0x1a8] ss:$16 sps:$4 sm:$0xff]   ;;  %v8334_v35 = vld [vmem:[%s11129_s3 + $0x3c4] ss:$16 sps:$4 sm:$0xff]  }
 0x2b7   : > { %4246 = vmatmul.mubr.bf16.vlgmr.msra.gmra.mrb[28].mxu1 %v10197_v14  ;;  %4927 = vmatmul.mubr.bf16.vlgmr.msra.gmra.mrb[32].mxu0 %v10393_v26  ;;  %v8262_v14 = vld [vmem:[%s11129_s3 + $0x244] ss:$16 sps:$4 sm:$0xff]  }
 0x2b8   : > { %4936 = vmatpush1.bf16.msra.mxu1 %v8248_v23  ;;  %4967 = vmatprep.mubr.bf16.mxu1 %v10398_v32  ;;  %v8335_v23 = vld [vmem:[%s11129_s3 + $0x1c8] ss:$16 sps:$4 sm:$0xff]  }
 0x2b9   : > { %4977 = vmatpush1.bf16.msra.mxu0 %v8251_v28  ;;  %5008 = vmatprep.mubr.bf16.mxu0 %v10207_v18  ;;  %v8263_v18 = vld [vmem:[%s11129_s3 + $0x48] ss:$16 sps:$4 sm:$0xff]   ;;  %v8340_v28 = vld [vmem:[%s11129_s3 + $0x3e4] ss:$16 sps:$4 sm:$0xff]  }
 0x2ba   : > { %4937 = vmatprep.subr.bf16.mxu1 %v8256_v4  ;;  %4978 = vmatprep.subr.bf16.mxu0 %v8259_v9  ;;  %v8343_v4 = vld [vmem:[%s11129_s3 + $0x1ec] ss:$16 sps:$4 sm:$0xff]   ;;  %v8338_v9 = vld [vmem:[%s11129_s3 + $0x3e0] ss:$16 sps:$4 sm:$0xff]  }
 0x2bc   : > { %4938 = vmatpush1.bf16.msra.mxu1 %v8254_v24  ;;  %v8341_v24 = vld [vmem:[%s11129_s3 + $0x1e8] ss:$16 sps:$4 sm:$0xff]  }
 0x2bd   : > { %4979 = vmatpush1.bf16.msra.mxu0 %v8257_v25  ;;  %4939 = vmatprep.subr.bf16.mxu1 %v8262_v14  ;;  %v8346_v25 = vld [vmem:[%s11129_s3 + $0x20c] ss:$16 sps:$4 sm:$0xff]  }
 0x2be   : > { %4980 = vmatprep.subr.bf16.mxu0 %v8265_v42  ;;  %v5059_v14 = vld [vmem:[#allocation2 + $0x8] sm:$0x3c]  ;;  %v3147_v42 = vld [vmem:[#allocation2 + $0x10] sm:$0xf] }
 0x2c0   : > { %4940 = vmatpush1.bf16.msra.mxu1 %v8260_v43  ;;  %v8349_v43 = vld [vmem:[%s11129_s3 + $0x804] ss:$16 sps:$4 sm:$0xff]  }
 0x2c1   : > { %4981 = vmatpush1.bf16.msra.mxu0 %v8263_v18  ;;  %4941 = vmatprep.subr.bf16.mxu1 %v8268_v44  ;;  %v8344_v18 = vld [vmem:[%s11129_s3 + $0x208] ss:$16 sps:$4 sm:$0xff]   ;;  %v5063_v44 = vpack.c.bf16 %v5059_v14, %v5059_v14  ;;  %v8419_v14 = vld [vmem:[%s11129_s3 + $0x980] ss:$16 sps:$4 sm:$0xff]  }
 0x2c2   : > { %4982 = vmatprep.subr.bf16.mxu0 %v8271_v45  ;;  %v10593_v45 = vpack.c.bf16 %v3147_v42, %v3147_v42  ;;  %v8424_v42 = vld [vmem:[%s11129_s3 + $0x3ac] ss:$16 sps:$4 sm:$0xff]  }
 0x2c4   : > { %4942 = vmatpush1.bf16.msra.mxu1 %v8266_v36  ;;  %v8347_v36 = vld [vmem:[%s11129_s3 + $0x800] ss:$16 sps:$4 sm:$0xff]  }
 0x2c5   : > { %4983 = vmatpush1.bf16.msra.mxu0 %v8269_v47  ;;  %4943 = vmatprep.subr.bf16.mxu1 %v8274_v48  ;;  %v8352_v47 = vld [vmem:[%s11129_s3 + $0x22c] ss:$16 sps:$4 sm:$0xff]   ;;  %v8355_v48 = vld [vmem:[%s11129_s3 + $0x824] ss:$16 sps:$4 sm:$0xff]  }
 0x2c6   : > { %4984 = vmatprep.subr.bf16.mxu0 %v8277_v34  ;;  %v10606_v34 = vrot.slane %v5063_v44, 1  ;;  %v8425_v44 = vld [vmem:[%s11129_s3 + $0x9a0] ss:$16 sps:$4 sm:$0xff]  }
 0x2c8   : > { %4944 = vmatpush1.bf16.msra.mxu1 %v8272_v37  ;;  %v8350_v37 = vld [vmem:[%s11129_s3 + $0x228] ss:$16 sps:$4 sm:$0xff]  }
 0x2c9   : > { %4985 = vmatpush1.bf16.msra.mxu0 %v8275_v49  ;;  %4945 = vmatprep.subr.bf16.mxu1 %v8280_v50  ;;  %v8353_v49 = vld [vmem:[%s11129_s3 + $0x820] ss:$16 sps:$4 sm:$0xff]   ;;  %v8358_v50 = vld [vmem:[%s11129_s3 + $0x24c] ss:$16 sps:$4 sm:$0xff]  }
 0x2ca   : > { %4986 = vmatprep.subr.bf16.mxu0 %v8283_v51  ;;  %v8359_v51 = vld [vmem:[%s11129_s3 + $0x840] ss:$16 sps:$4 sm:$0xff]  }
 0x2cc   : > { %4946 = vmatpush1.bf16.msra.mxu1 %v8278_v52  ;;  %v8364_v52 = vld [vmem:[%s11129_s3 + $0x26c] ss:$16 sps:$4 sm:$0xff]  }
 0x2cd   : > { %4987 = vmatpush1.bf16.msra.mxu0 %v8281_v40  ;;  %4947 = vmatprep.subr.bf16.mxu1 %v8286_v53  ;;  %v8367_v40 = vld [vmem:[%s11129_s3 + $0x864] ss:$16 sps:$4 sm:$0xff]   ;;  %v8362_v53 = vld [vmem:[%s11129_s3 + $0x268] ss:$16 sps:$4 sm:$0xff]  }
 0x2ce   : > { %4988 = vmatprep.subr.bf16.mxu0 %v8289_v54  ;;  %v8365_v54 = vld [vmem:[%s11129_s3 + $0x860] ss:$16 sps:$4 sm:$0xff]  }
 0x2d0   : > { %4948 = vmatpush1.bf16.msra.mxu1 %v8284_v16  ;;  %v8370_v16 = vld [vmem:[%s11129_s3 + $0x28c] ss:$16 sps:$4 sm:$0xff]  }
 0x2d1   : > { %4989 = vmatpush1.bf16.msra.mxu0 %v8287_v55  ;;  %4949 = vmatprep.subr.bf16.mxu1 %v8292_v56  ;;  %v8373_v55 = vld [vmem:[%s11129_s3 + $0x884] ss:$16 sps:$4 sm:$0xff]   ;;  %v8368_v56 = vld [vmem:[%s11129_s3 + $0x288] ss:$16 sps:$4 sm:$0xff]  }
 0x2d2   : > { %4990 = vmatprep.subr.bf16.mxu0 %v8295_v57  ;;  %v8371_v57 = vld [vmem:[%s11129_s3 + $0x880] ss:$16 sps:$4 sm:$0xff]  }
 0x2d4   : > { %4950 = vmatpush1.bf16.msra.mxu1 %v8290_v20  ;;  %v8376_v20 = vld [vmem:[%s11129_s3 + $0x2ac] ss:$16 sps:$4 sm:$0xff]  }
 0x2d5   : > { %4991 = vmatpush1.bf16.msra.mxu0 %v8293_v60  ;;  %4951 = vmatprep.subr.bf16.mxu1 %v8298_v61  ;;  %v8379_v60 = vld [vmem:[%s11129_s3 + $0x8a4] ss:$16 sps:$4 sm:$0xff]   ;;  %v8374_v61 = vld [vmem:[%s11129_s3 + $0x2a8] ss:$16 sps:$4 sm:$0xff]  }
 0x2d6   : > { %4992 = vmatprep.subr.bf16.mxu0 %v8301_v62  ;;  %v8377_v62 = vld [vmem:[%s11129_s3 + $0x8a0] ss:$16 sps:$4 sm:$0xff]  }
 0x2d8   : > { %4952 = vmatpush1.bf16.msra.mxu1 %v8296_v63  ;;  %v8382_v63 = vld [vmem:[%s11129_s3 + $0x2cc] ss:$16 sps:$4 sm:$0xff]  }
 0x2d9   : > { %4993 = vmatpush1.bf16.msra.mxu0 %v8299_v0  ;;  %4953 = vmatprep.subr.bf16.mxu1 %v8304_v1  ;;  %v8385_v1 = vld [vmem:[%s11129_s3 + $0x8c4] ss:$16 sps:$4 sm:$0xff]  }
 0x2da   : > { %4994 = vmatprep.subr.bf16.mxu0 %v8307_v2 }
 0x2dc   : > { %4954 = vmatpush1.bf16.msra.mxu1 %v8302_v3 }
 0x2dd   : > { %4995 = vmatpush1.bf16.msra.mxu0 %v8305_v5  ;;  %4955 = vmatprep.subr.bf16.mxu1 %v8310_v30  ;;  %v8380_v5 = vld [vmem:[%s11129_s3 + $0x2c8] ss:$16 sps:$4 sm:$0xff]  }
 0x2de   : > { %4996 = vmatprep.subr.bf16.mxu0 %v8313_v6  ;;  %v8383_v6 = vld [vmem:[%s11129_s3 + $0x8c0] ss:$16 sps:$4 sm:$0xff]  }
 0x2e0   : > { %4956 = vmatpush1.bf16.msra.mxu1 %v8308_v7  ;;  %v8388_v7 = vld [vmem:[%s11129_s3 + $0x2ec] ss:$16 sps:$4 sm:$0xff]  }
 0x2e1   : > { %4997 = vmatpush1.bf16.msra.mxu0 %v8311_v46  ;;  %4957 = vmatprep.subr.bf16.mxu1 %v8316_v33  ;;  %v8391_v46 = vld [vmem:[%s11129_s3 + $0x8e4] ss:$16 sps:$4 sm:$0xff]   ;;  %v8386_v33 = vld [vmem:[%s11129_s3 + $0x2e8] ss:$16 sps:$4 sm:$0xff]  }
 0x2e2   : > { %4998 = vmatprep.subr.bf16.mxu0 %v8319_v8  ;;  %v8389_v8 = vld [vmem:[%s11129_s3 + $0x8e0] ss:$16 sps:$4 sm:$0xff]  }
 0x2e4   : > { %4958 = vmatpush1.bf16.msra.mxu1 %v8314_v10  ;;  %v8394_v10 = vld [vmem:[%s11129_s3 + $0x30c] ss:$16 sps:$4 sm:$0xff]  }
 0x2e5   : > { %4999 = vmatpush1.bf16.msra.mxu0 %v8317_v11  ;;  %4959 = vmatprep.subr.bf16.mxu1 %v8322_v12  ;;  %v8397_v11 = vld [vmem:[%s11129_s3 + $0x904] ss:$16 sps:$4 sm:$0xff]   ;;  %v8392_v12 = vld [vmem:[%s11129_s3 + $0x308] ss:$16 sps:$4 sm:$0xff]  }
 0x2e6   : > { %5000 = vmatprep.subr.bf16.mxu0 %v8325_v58  ;;  %v8395_v58 = vld [vmem:[%s11129_s3 + $0x900] ss:$16 sps:$4 sm:$0xff]  }
 0x2e8   : > { %4960 = vmatpush1.bf16.msra.mxu1 %v8320_v59  ;;  %v8400_v59 = vld [vmem:[%s11129_s3 + $0x32c] ss:$16 sps:$4 sm:$0xff]  }
 0x2e9   : > { %5001 = vmatpush1.bf16.msra.mxu0 %v8323_v13  ;;  %4961 = vmatprep.subr.bf16.mxu1 %v8328_v15  ;;  %v8403_v13 = vld [vmem:[%s11129_s3 + $0x924] ss:$16 sps:$4 sm:$0xff]   ;;  %v8398_v15 = vld [vmem:[%s11129_s3 + $0x328] ss:$16 sps:$4 sm:$0xff]  }
 0x2ea   : > { %5002 = vmatprep.subr.bf16.mxu0 %v8331_v17  ;;  %v8401_v17 = vld [vmem:[%s11129_s3 + $0x920] ss:$16 sps:$4 sm:$0xff]  }
 0x2ec   : > { %4962 = vmatpush1.bf16.msra.mxu1 %v8326_v19  ;;  %v8406_v19 = vld [vmem:[%s11129_s3 + $0x34c] ss:$16 sps:$4 sm:$0xff]  }
 0x2ed   : > { %5003 = vmatpush1.bf16.msra.mxu0 %v8329_v22  ;;  %4963 = vmatprep.subr.bf16.mxu1 %v8334_v35  ;;  %v8409_v22 = vld [vmem:[%s11129_s3 + $0x944] ss:$16 sps:$4 sm:$0xff]   ;;  %v8404_v35 = vld [vmem:[%s11129_s3 + $0x348] ss:$16 sps:$4 sm:$0xff]  }
 0x2ee   : > { %5004 = vmatprep.subr.bf16.mxu0 %v8337_v29  ;;  %v8407_v29 = vld [vmem:[%s11129_s3 + $0x940] ss:$16 sps:$4 sm:$0xff]  }
 0x2f0   : > { %4964 = vmatpush1.bf16.msra.mxu1 %v8332_v21  ;;  %v8412_v21 = vld [vmem:[%s11129_s3 + $0x36c] ss:$16 sps:$4 sm:$0xff]  }
 0x2f1   : > { %5005 = vmatpush1.bf16.msra.mxu0 %v8335_v23  ;;  %4965 = vmatprep.subr.bf16.mxu1 %v8340_v28  ;;  %v8415_v23 = vld [vmem:[%s11129_s3 + $0x964] ss:$16 sps:$4 sm:$0xff]   ;;  %v8410_v28 = vld [vmem:[%s11129_s3 + $0x368] ss:$16 sps:$4 sm:$0xff]  }
 0x2f2   : > { %5006 = vmatprep.subr.bf16.mxu0 %v8343_v4  ;;  %v8413_v4 = vld [vmem:[%s11129_s3 + $0x960] ss:$16 sps:$4 sm:$0xff]  }
 0x2f4   : > { %4966 = vmatpush1.bf16.msra.mxu1 %v8338_v9  ;;  %v8418_v9 = vld [vmem:[%s11129_s3 + $0x38c] ss:$16 sps:$4 sm:$0xff]  }
 0x2f5   : > { %5007 = vmatpush1.bf16.msra.mxu0 %v8341_v24  ;;  %5017 = vmatprep.subr.bf16.mxu1 %v8346_v25  ;;  %v8421_v24 = vld [vmem:[%s11129_s3 + $0x984] ss:$16 sps:$4 sm:$0xff]   ;;  %v8416_v25 = vld [vmem:[%s11129_s3 + $0x388] ss:$16 sps:$4 sm:$0xff]  }
 0x2f6   : > { %5847 = vmatprep.subr.bf16.mxu0 %v8349_v43  ;;  %v8427_v43 = vld [vmem:[%s11129_s3 + $0x9a4] ss:$16 sps:$4 sm:$0xff]  }
 0x2f7   : > { %4968 = vmatmul.mubr.bf16.vlgmr.msra.gmra.mrb[32].mxu1 %v10593_v45 }
 0x2f8   : > { %5009 = vmatmul.mubr.bf16.vlgmr.msra.gmra.mrb[36].mxu0 %v10393_v26  ;;  %5018 = vmatpush1.bf16.msra.mxu1 %v8344_v18  ;;  %v8361_v26 = vld [vmem:[%s11129_s3 + $0x844] ss:$16 sps:$4 sm:$0xff]   ;;  %v8422_v18 = vld [vmem:[%s11129_s3 + $0x3a8] ss:$16 sps:$4 sm:$0xff]  }
 0x2f9   : > { %5049 = vmatprep.mubr.bf16.mxu1 %v10398_v32  ;;  %5848 = vmatpush1.bf16.msra.mxu0 %v8347_v36  ;;  %v8356_v32 = vld [vmem:[%s11129_s3 + $0x248] ss:$16 sps:$4 sm:$0xff]   ;;  %v8430_v36 = vld [vmem:[%s11129_s3 + $0x3cc] ss:$16 sps:$4 sm:$0xff]  }
 0x2fa   : > { %5879 = vmatprep.mubr.bf16.mxu0 %v10606_v34  ;;  %5019 = vmatprep.subr.bf16.mxu1 %v8352_v47  ;;  %v8433_v47 = vld [vmem:[%s11129_s3 + $0x9c4] ss:$16 sps:$4 sm:$0xff]  }
 0x2fb   : > { %5849 = vmatprep.subr.bf16.mxu0 %v8355_v48  ;;  %v8428_v48 = vld [vmem:[%s11129_s3 + $0x3c8] ss:$16 sps:$4 sm:$0xff]  }
 0x2fc   : > { %5020 = vmatpush1.bf16.msra.mxu1 %v8350_v37  ;;  %v8431_v37 = vld [vmem:[%s11129_s3 + $0x9c0] ss:$16 sps:$4 sm:$0xff]  }
 0x2fd   : > { %5850 = vmatpush1.bf16.msra.mxu0 %v8353_v49  ;;  %5021 = vmatprep.subr.bf16.mxu1 %v8358_v50  ;;  %v8436_v49 = vld [vmem:[%s11129_s3 + $0x3ec] ss:$16 sps:$4 sm:$0xff]   ;;  %v8439_v50 = vld [vmem:[%s11129_s3 + $0x9e4] ss:$16 sps:$4 sm:$0xff]  }
 0x2fe   : > { %5851 = vmatprep.subr.bf16.mxu0 %v8361_v26  ;;  %v5058_v26 = vld [vmem:[#allocation2] sm:$0x3c] }
 0x300   : > { %5022 = vmatpush1.bf16.msra.mxu1 %v8356_v32  ;;  %v8434_v32 = vld [vmem:[%s11129_s3 + $0x3e8] ss:$16 sps:$4 sm:$0xff]  }
 0x301   : > { %5852 = vmatpush1.bf16.msra.mxu0 %v8359_v51  ;;  %5023 = vmatprep.subr.bf16.mxu1 %v8364_v52  ;;  %v5061_v51 = vld [vmem:[#allocation2 + $0x18] sm:$0x3c]  ;;  %v8437_v52 = vld [vmem:[%s11129_s3 + $0x9e0] ss:$16 sps:$4 sm:$0xff]  }
 0x302   : > { %5853 = vmatprep.subr.bf16.mxu0 %v8367_v40  ;;  %v8442_v40 = vld [vmem:[%s11129_s3 + $0xa04] ss:$16 sps:$4 sm:$0xff]  }
 0x304   : > { %5024 = vmatpush1.bf16.msra.mxu1 %v8362_v53  ;;  %v5062_v53 = vpack.c.bf16 %v5058_v26, %v5058_v26  ;;  %v8505_v26 = vld [vmem:[%s11129_s3 + $0x94c] ss:$16 sps:$4 sm:$0xff]  }
 0x305   : > { %5854 = vmatpush1.bf16.msra.mxu0 %v8365_v54  ;;  %5025 = vmatprep.subr.bf16.mxu1 %v8370_v16  ;;  %v8445_v54 = vld [vmem:[%s11129_s3 + $0x80c] ss:$16 sps:$4 sm:$0xff]   ;;  %v5065_v16 = vpack.c.bf16 %v5061_v51, %v5061_v51  ;;  %v8503_v51 = vld [vmem:[%s11129_s3 + $0x948] ss:$16 sps:$4 sm:$0xff]  }
 0x306   : > { %5855 = vmatprep.subr.bf16.mxu0 %v8373_v55  ;;  %v8440_v55 = vld [vmem:[%s11129_s3 + $0xa00] ss:$16 sps:$4 sm:$0xff]  }
 0x308   : > { %5026 = vmatpush1.bf16.msra.mxu1 %v8368_v56  ;;  %v8443_v56 = vld [vmem:[%s11129_s3 + $0x808] ss:$16 sps:$4 sm:$0xff]  }
 0x309   : > { %5856 = vmatpush1.bf16.msra.mxu0 %v8371_v57  ;;  %5027 = vmatprep.subr.bf16.mxu1 %v8376_v20  ;;  %v10800_v57 = vrot.slane %v5062_v53, 1  ;;  %v8448_v20 = vld [vmem:[%s11129_s3 + $0xa24] ss:$16 sps:$4 sm:$0xff]   ;;  %v8506_v53 = vld [vmem:[%s11129_s3 + $0xb60] ss:$16 sps:$4 sm:$0xff]  }
 0x30a   : > { %v10667_v0 = vpop.f32.mrb[24].mxu0  ;;  %5857 = vmatprep.subr.bf16.mxu0 %v8379_v60  ;;  %v10806_v60 = vrot.slane %v5065_v16, 1  ;;  %v8514_v16 = vld [vmem:[%s11129_s3 + $0xb84] ss:$16 sps:$4 sm:$0xff]  }
 0x30b   : > { %v10672_v2 = vpop.f32.mrb[25].mxu0 }
 0x30c   : > { %5028 = vmatpush1.bf16.msra.mxu1 %v8374_v61  ;;  %v4128_v3 = vpop.f32.mrb[26].mxu0  ;;  %v8451_v61 = vld [vmem:[%s11129_s3 + $0x82c] ss:$16 sps:$4 sm:$0xff]  }
 0x30d   : > { %5858 = vmatpush1.bf16.msra.mxu0 %v8377_v62  ;;  %v4129_v30 = vpop.f32.mrb[27].mxu0  ;;  %5029 = vmatprep.subr.bf16.mxu1 %v8382_v63  ;;  %v8446_v62 = vld [vmem:[%s11129_s3 + $0xa20] ss:$16 sps:$4 sm:$0xff]   ;;  %v8454_v63 = vld [vmem:[%s11129_s3 + $0xa44] ss:$16 sps:$4 sm:$0xff]  }
 0x30e   : > { %5859 = vmatprep.subr.bf16.mxu0 %v8385_v1  ;;  %v8457_v1 = vld [vmem:[%s11129_s3 + $0x84c] ss:$16 sps:$4 sm:$0xff]   ;;  %v8452_v3 = vld [vmem:[%s11129_s3 + $0xa40] ss:$16 sps:$4 sm:$0xff]  }
 0x30f   : > { %v8463_v30 = vld [vmem:[%s11129_s3 + $0x86c] ss:$16 sps:$4 sm:$0xff]  }
 0x310   : > { %5030 = vmatpush1.bf16.msra.mxu1 %v8380_v5  ;;  %v8455_v5 = vld [vmem:[%s11129_s3 + $0x848] ss:$16 sps:$4 sm:$0xff]  }
 0x311   : > { %5860 = vmatpush1.bf16.msra.mxu0 %v8383_v6  ;;  %5031 = vmatprep.subr.bf16.mxu1 %v8388_v7  ;;  %v8458_v6 = vld [vmem:[%s11129_s3 + $0xa60] ss:$16 sps:$4 sm:$0xff]   ;;  %v8461_v7 = vld [vmem:[%s11129_s3 + $0x868] ss:$16 sps:$4 sm:$0xff]  }
 0x312   : > { %5861 = vmatprep.subr.bf16.mxu0 %v8391_v46  ;;  %v8466_v46 = vld [vmem:[%s11129_s3 + $0xa84] ss:$16 sps:$4 sm:$0xff]  }
 0x314   : > { %5032 = vmatpush1.bf16.msra.mxu1 %v8386_v33  ;;  %v8469_v33 = vld [vmem:[%s11129_s3 + $0x88c] ss:$16 sps:$4 sm:$0xff]  }
 0x315   : > { %5862 = vmatpush1.bf16.msra.mxu0 %v8389_v8  ;;  %5033 = vmatprep.subr.bf16.mxu1 %v8394_v10  ;;  %v8464_v8 = vld [vmem:[%s11129_s3 + $0xa80] ss:$16 sps:$4 sm:$0xff]   ;;  %v8467_v10 = vld [vmem:[%s11129_s3 + $0x888] ss:$16 sps:$4 sm:$0xff]  }
 0x316   : > { %5863 = vmatprep.subr.bf16.mxu0 %v8397_v11  ;;  %v8472_v11 = vld [vmem:[%s11129_s3 + $0xaa4] ss:$16 sps:$4 sm:$0xff]  }
 0x318   : > { %5034 = vmatpush1.bf16.msra.mxu1 %v8392_v12  ;;  %v8475_v12 = vld [vmem:[%s11129_s3 + $0x8ac] ss:$16 sps:$4 sm:$0xff]  }
 0x319   : > { %5864 = vmatpush1.bf16.msra.mxu0 %v8395_v58  ;;  %5035 = vmatprep.subr.bf16.mxu1 %v8400_v59  ;;  %v8470_v58 = vld [vmem:[%s11129_s3 + $0xaa0] ss:$16 sps:$4 sm:$0xff]   ;;  %v8473_v59 = vld [vmem:[%s11129_s3 + $0x8a8] ss:$16 sps:$4 sm:$0xff]  }
 0x31a   : > { %5865 = vmatprep.subr.bf16.mxu0 %v8403_v13  ;;  %v8478_v13 = vld [vmem:[%s11129_s3 + $0xac4] ss:$16 sps:$4 sm:$0xff]  }
 0x31c   : > { %5036 = vmatpush1.bf16.msra.mxu1 %v8398_v15 }
 0x31d   : > { %5866 = vmatpush1.bf16.msra.mxu0 %v8401_v17  ;;  %5037 = vmatprep.subr.bf16.mxu1 %v8406_v19  ;;  %v8481_v19 = vld [vmem:[%s11129_s3 + $0x8cc] ss:$16 sps:$4 sm:$0xff]  }
 0x31e   : > { %5867 = vmatprep.subr.bf16.mxu0 %v8409_v22 }
 0x320   : > { %5038 = vmatpush1.bf16.msra.mxu1 %v8404_v35 }
 0x321   : > { %5868 = vmatpush1.bf16.msra.mxu0 %v8407_v29  ;;  %5039 = vmatprep.subr.bf16.mxu1 %v8412_v21 }
 0x322   : > { %5869 = vmatprep.subr.bf16.mxu0 %v8415_v23 }
 0x324   : > { %5040 = vmatpush1.bf16.msra.mxu1 %v8410_v28 }
 0x325   : > { %5870 = vmatpush1.bf16.msra.mxu0 %v8413_v4  ;;  %5041 = vmatprep.subr.bf16.mxu1 %v8418_v9  ;;  %v8476_v4 = vld [vmem:[%s11129_s3 + $0xac0] ss:$16 sps:$4 sm:$0xff]  }
 0x326   : > { %5871 = vmatprep.subr.bf16.mxu0 %v8421_v24 }
 0x328   : > { %5042 = vmatpush1.bf16.msra.mxu1 %v8416_v25  ;;  %v8487_v25 = vld [vmem:[%s11129_s3 + $0x8ec] ss:$16 sps:$4 sm:$0xff]  }
 0x329   : > { %5872 = vmatpush1.bf16.msra.mxu0 %v8419_v14  ;;  %5043 = vmatprep.subr.bf16.mxu1 %v8424_v42  ;;  %v8482_v14 = vld [vmem:[%s11129_s3 + $0xae0] ss:$16 sps:$4 sm:$0xff]   ;;  %v8485_v42 = vld [vmem:[%s11129_s3 + $0x8e8] ss:$16 sps:$4 sm:$0xff]  }
 0x32a   : > { %5873 = vmatprep.subr.bf16.mxu0 %v8427_v43  ;;  %v8490_v43 = vld [vmem:[%s11129_s3 + $0xb04] ss:$16 sps:$4 sm:$0xff]  }
 0x32c   : > { %5044 = vmatpush1.bf16.msra.mxu1 %v8422_v18  ;;  %v8493_v18 = vld [vmem:[%s11129_s3 + $0x90c] ss:$16 sps:$4 sm:$0xff]  }
 0x32d   : > { %5874 = vmatpush1.bf16.msra.mxu0 %v8425_v44  ;;  %5045 = vmatprep.subr.bf16.mxu1 %v8430_v36  ;;  %v8488_v44 = vld [vmem:[%s11129_s3 + $0xb00] ss:$16 sps:$4 sm:$0xff]   ;;  %v8491_v36 = vld [vmem:[%s11129_s3 + $0x908] ss:$16 sps:$4 sm:$0xff]  }
 0x32e   : > { %5875 = vmatprep.subr.bf16.mxu0 %v8433_v47  ;;  %v8496_v47 = vld [vmem:[%s11129_s3 + $0xb24] ss:$16 sps:$4 sm:$0xff]  }
 0x330   : > { %5046 = vmatpush1.bf16.msra.mxu1 %v8428_v48  ;;  %v8499_v48 = vld [vmem:[%s11129_s3 + $0x92c] ss:$16 sps:$4 sm:$0xff]  }
 0x331   : > { %5876 = vmatpush1.bf16.msra.mxu0 %v8431_v37  ;;  %5047 = vmatprep.subr.bf16.mxu1 %v8436_v49  ;;  %v8494_v37 = vld [vmem:[%s11129_s3 + $0xb20] ss:$16 sps:$4 sm:$0xff]   ;;  %v8497_v49 = vld [vmem:[%s11129_s3 + $0x928] ss:$16 sps:$4 sm:$0xff]  }
 0x332   : > { %5877 = vmatprep.subr.bf16.mxu0 %v8439_v50  ;;  %v8502_v50 = vld [vmem:[%s11129_s3 + $0xb44] ss:$16 sps:$4 sm:$0xff]  }
 0x334   : > { %5048 = vmatpush1.bf16.msra.mxu1 %v8434_v32  ;;  %v8500_v32 = vld [vmem:[%s11129_s3 + $0xb40] ss:$16 sps:$4 sm:$0xff]  }
 0x335   : > { %5878 = vmatpush1.bf16.msra.mxu0 %v8437_v52  ;;  %5888 = vmatprep.subr.bf16.mxu1 %v8442_v40  ;;  %v8508_v52 = vld [vmem:[%s11129_s3 + $0xb64] ss:$16 sps:$4 sm:$0xff]   ;;  %v8511_v40 = vld [vmem:[%s11129_s3 + $0x96c] ss:$16 sps:$4 sm:$0xff]  }
 0x336   : > { %5929 = vmatprep.subr.bf16.mxu0 %v8445_v54  ;;  %v8509_v54 = vld [vmem:[%s11129_s3 + $0x968] ss:$16 sps:$4 sm:$0xff]  }
 0x337   : > { %5050 = vmatmul.mubr.bf16.vlgmr.msra.gmra.mrb[36].mxu1 %v10593_v45  ;;  %v8449_v45 = vld [vmem:[%s11129_s3 + $0x828] ss:$16 sps:$4 sm:$0xff]  }
 0x338   : > { %5880 = vmatmul.mubr.bf16.vlgmr.msra.gmra.mrb[40].mxu0 %v10800_v57  ;;  %5889 = vmatpush1.bf16.msra.mxu1 %v8440_v55  ;;  %v8517_v55 = vld [vmem:[%s11129_s3 + $0x98c] ss:$16 sps:$4 sm:$0xff]  }
 0x339   : > { %5920 = vmatprep.mubr.bf16.mxu1 %v10806_v60  ;;  %5930 = vmatpush1.bf16.msra.mxu0 %v8443_v56  ;;  %v8512_v56 = vld [vmem:[%s11129_s3 + $0xb80] ss:$16 sps:$4 sm:$0xff]  }
 0x33a   : > { %5961 = vmatprep.mubr.bf16.mxu0 %v10606_v34  ;;  %5890 = vmatprep.subr.bf16.mxu1 %v8448_v20  ;;  %v8460_v34 = vld [vmem:[%s11129_s3 + $0xa64] ss:$16 sps:$4 sm:$0xff]   ;;  %v8515_v20 = vld [vmem:[%s11129_s3 + $0x988] ss:$16 sps:$4 sm:$0xff]  }
 0x33b   : > { %5931 = vmatprep.subr.bf16.mxu0 %v8451_v61  ;;  %v8520_v61 = vld [vmem:[%s11129_s3 + $0xba4] ss:$16 sps:$4 sm:$0xff]  }
 0x33c   : > { %5891 = vmatpush1.bf16.msra.mxu1 %v8446_v62  ;;  %v8523_v62 = vld [vmem:[%s11129_s3 + $0x9ac] ss:$16 sps:$4 sm:$0xff]  }
 0x33d   : > { %5932 = vmatpush1.bf16.msra.mxu0 %v8449_v45  ;;  %5892 = vmatprep.subr.bf16.mxu1 %v8454_v63  ;;  %v8518_v45 = vld [vmem:[%s11129_s3 + $0xba0] ss:$16 sps:$4 sm:$0xff]   ;;  %v8521_v63 = vld [vmem:[%s11129_s3 + $0x9a8] ss:$16 sps:$4 sm:$0xff]  }
 0x33e   : > { %5933 = vmatprep.subr.bf16.mxu0 %v8457_v1  ;;  %v8526_v1 = vld [vmem:[%s11129_s3 + $0xbc4] ss:$16 sps:$4 sm:$0xff]  }
 0x340   : > { %5893 = vmatpush1.bf16.msra.mxu1 %v8452_v3  ;;  %v8529_v3 = vld [vmem:[%s11129_s3 + $0x9cc] ss:$16 sps:$4 sm:$0xff]  }
 0x341   : > { %5934 = vmatpush1.bf16.msra.mxu0 %v8455_v5  ;;  %5894 = vmatprep.subr.bf16.mxu1 %v8460_v34  ;;  %v8524_v5 = vld [vmem:[%s11129_s3 + $0xbc0] ss:$16 sps:$4 sm:$0xff]   ;;  %v8527_v34 = vld [vmem:[%s11129_s3 + $0x9c8] ss:$16 sps:$4 sm:$0xff]  }
 0x342   : > { %5935 = vmatprep.subr.bf16.mxu0 %v8463_v30  ;;  %v8532_v30 = vld [vmem:[%s11129_s3 + $0xbe4] ss:$16 sps:$4 sm:$0xff]  }
 0x344   : > { %5895 = vmatpush1.bf16.msra.mxu1 %v8458_v6  ;;  %v8535_v6 = vld [vmem:[%s11129_s3 + $0x9ec] ss:$16 sps:$4 sm:$0xff]  }
 0x345   : > { %5936 = vmatpush1.bf16.msra.mxu0 %v8461_v7  ;;  %5896 = vmatprep.subr.bf16.mxu1 %v8466_v46  ;;  %v5060_v7 = vld [vmem:[#allocation2 + $0x10] sm:$0x3c] }
 0x346   : > { %5937 = vmatprep.subr.bf16.mxu0 %v8469_v33  ;;  %v8530_v46 = vld [vmem:[%s11129_s3 + $0xbe0] ss:$16 sps:$4 sm:$0xff]   ;;  %v8533_v33 = vld [vmem:[%s11129_s3 + $0x9e8] ss:$16 sps:$4 sm:$0xff]  }
 0x348   : > { %5897 = vmatpush1.bf16.msra.mxu1 %v8464_v8  ;;  %v5064_v8 = vpack.c.bf16 %v5060_v7, %v5060_v7 }
 0x349   : > { %5938 = vmatpush1.bf16.msra.mxu0 %v8467_v10  ;;  %5898 = vmatprep.subr.bf16.mxu1 %v8472_v11  ;;  %v8538_v10 = vld [vmem:[%s11129_s3 + $0xa0c] ss:$16 sps:$4 sm:$0xff]   ;;  %v8536_v11 = vld [vmem:[%s11129_s3 + $0xa08] ss:$16 sps:$4 sm:$0xff]  }
 0x34a   : > { %v10871_v15 = vpop.f32.mrb[28].mxu0  ;;  %v4165_v17 = vpop.f32.mrb[24].mxu1  ;;  %5939 = vmatprep.subr.bf16.mxu0 %v8475_v12  ;;  %v11004_v12 = vrot.slane %v5064_v8, 1 }
 0x34b   : > { %v10877_v22 = vadd.f32 %v4165_v17, %v10667_v0  ;;  %v10879_v35 = vpop.f32.mrb[29].mxu0  ;;  %v4167_v29 = vpop.f32.mrb[25].mxu1  ;;  %v8479_v0 = vld [vmem:[%s11129_s3 + $0x8c8] ss:$16 sps:$4 sm:$0xff]  }
 0x34c   : > { %v10882_v21 = vadd.f32 %v4167_v29, %v10672_v2  ;;  %v4210_v23 = vpop.f32.mrb[30].mxu0  ;;  %5899 = vmatpush1.bf16.msra.mxu1 %v8470_v58  ;;  %v4169_v28 = vpop.f32.mrb[26].mxu1  ;;  %v8484_v2 = vld [vmem:[%s11129_s3 + $0xae4] ss:$16 sps:$4 sm:$0xff]   ;;  %v8541_v58 = vld [vmem:[%s11129_s3 + $0xa2c] ss:$16 sps:$4 sm:$0xff]  }
 0x34d   : > { %5940 = vmatpush1.bf16.msra.mxu0 %v8473_v59  ;;  %v4211_v9 = vpop.f32.mrb[31].mxu0  ;;  %v4170_v24 = vpop.f32.mrb[27].mxu1  ;;  %5900 = vmatprep.subr.bf16.mxu1 %v8478_v13  ;;  %v8539_v59 = vld [vmem:[%s11129_s3 + $0xa28] ss:$16 sps:$4 sm:$0xff]   ;;  %v8544_v13 = vld [vmem:[%s11129_s3 + $0xa4c] ss:$16 sps:$4 sm:$0xff]  }
 0x34e   : > { %5941 = vmatprep.subr.bf16.mxu0 %v8481_v19  ;;  %v8542_v17 = vld [vmem:[%s11129_s3 + $0xa48] ss:$16 sps:$4 sm:$0xff]   ;;  %v8550_v19 = vld [vmem:[%s11129_s3 + $0xa8c] ss:$16 sps:$4 sm:$0xff]  }
 0x34f   : > { %v8548_v29 = vld [vmem:[%s11129_s3 + $0xa88] ss:$16 sps:$4 sm:$0xff]   ;;  %v8553_v23 = vld [vmem:[%s11129_s3 + $0xaac] ss:$16 sps:$4 sm:$0xff]  }
 0x350   : > { %5901 = vmatpush1.bf16.msra.mxu1 %v8476_v4  ;;  %v8551_v28 = vld [vmem:[%s11129_s3 + $0xaa8] ss:$16 sps:$4 sm:$0xff]   ;;  %v8556_v4 = vld [vmem:[%s11129_s3 + $0xacc] ss:$16 sps:$4 sm:$0xff]  }
 0x351   : > { %5942 = vmatpush1.bf16.msra.mxu0 %v8479_v0  ;;  %5902 = vmatprep.subr.bf16.mxu1 %v8484_v2 }
 0x352   : > { %5943 = vmatprep.subr.bf16.mxu0 %v8487_v25 }
 0x354   : > { %5903 = vmatpush1.bf16.msra.mxu1 %v8482_v14 }
 0x355   : > { %5944 = vmatpush1.bf16.msra.mxu0 %v8485_v42  ;;  %5904 = vmatprep.subr.bf16.mxu1 %v8490_v43 }
 0x356   : > { %5945 = vmatprep.subr.bf16.mxu0 %v8493_v18 }
 0x358   : > { %5905 = vmatpush1.bf16.msra.mxu1 %v8488_v44 }
 0x359   : > { %5946 = vmatpush1.bf16.msra.mxu0 %v8491_v36  ;;  %5906 = vmatprep.subr.bf16.mxu1 %v8496_v47  ;;  %v8554_v36 = vld [vmem:[%s11129_s3 + $0xac8] ss:$16 sps:$4 sm:$0xff]  }
 0x35a   : > { %5947 = vmatprep.subr.bf16.mxu0 %v8499_v48 }
 0x35c   : > { %5907 = vmatpush1.bf16.msra.mxu1 %v8494_v37  ;;  %v8565_v37 = vld [vmem:[%s11129_s3 + $0xb2c] ss:$16 sps:$4 sm:$0xff]  }
 0x35d   : > { %5948 = vmatpush1.bf16.msra.mxu0 %v8497_v49  ;;  %5908 = vmatprep.subr.bf16.mxu1 %v8502_v50  ;;  %v8563_v49 = vld [vmem:[%s11129_s3 + $0xb28] ss:$16 sps:$4 sm:$0xff]   ;;  %v8568_v50 = vld [vmem:[%s11129_s3 + $0xb4c] ss:$16 sps:$4 sm:$0xff]  }
 0x35e   : > { %5949 = vmatprep.subr.bf16.mxu0 %v8505_v26  ;;  %v8566_v26 = vld [vmem:[%s11129_s3 + $0xb48] ss:$16 sps:$4 sm:$0xff]  }
 0x360   : > { %5909 = vmatpush1.bf16.msra.mxu1 %v8500_v32  ;;  %v8571_v32 = vld [vmem:[%s11129_s3 + $0xb6c] ss:$16 sps:$4 sm:$0xff]  }
 0x361   : > { %5950 = vmatpush1.bf16.msra.mxu0 %v8503_v51  ;;  %5910 = vmatprep.subr.bf16.mxu1 %v8508_v52  ;;  %v8569_v51 = vld [vmem:[%s11129_s3 + $0xb68] ss:$16 sps:$4 sm:$0xff]   ;;  %v8574_v52 = vld [vmem:[%s11129_s3 + $0xb8c] ss:$16 sps:$4 sm:$0xff]  }
 0x362   : > { %5951 = vmatprep.subr.bf16.mxu0 %v8511_v40  ;;  %v8572_v40 = vld [vmem:[%s11129_s3 + $0xb88] ss:$16 sps:$4 sm:$0xff]  }
 0x364   : > { %5911 = vmatpush1.bf16.msra.mxu1 %v8506_v53  ;;  %v8577_v53 = vld [vmem:[%s11129_s3 + $0xbac] ss:$16 sps:$4 sm:$0xff]  }
 0x365   : > { %5952 = vmatpush1.bf16.msra.mxu0 %v8509_v54  ;;  %5912 = vmatprep.subr.bf16.mxu1 %v8514_v16  ;;  %v8575_v54 = vld [vmem:[%s11129_s3 + $0xba8] ss:$16 sps:$4 sm:$0xff]   ;;  %v8580_v16 = vld [vmem:[%s11129_s3 + $0xbcc] ss:$16 sps:$4 sm:$0xff]  }
 0x366   : > { %5953 = vmatprep.subr.bf16.mxu0 %v8517_v55  ;;  %v8578_v55 = vld [vmem:[%s11129_s3 + $0xbc8] ss:$16 sps:$4 sm:$0xff]  }
 0x368   : > { %5913 = vmatpush1.bf16.msra.mxu1 %v8512_v56  ;;  %v8583_v56 = vld [vmem:[%s11129_s3 + $0xbec] ss:$16 sps:$4 sm:$0xff]  }
 0x369   : > { %5954 = vmatpush1.bf16.msra.mxu0 %v8515_v20  ;;  %5914 = vmatprep.subr.bf16.mxu1 %v8520_v61  ;;  %v8581_v20 = vld [vmem:[%s11129_s3 + $0xbe8] ss:$16 sps:$4 sm:$0xff]  }
 0x36a   : > { %5955 = vmatprep.subr.bf16.mxu0 %v8523_v62 }
 0x36c   : > { %5915 = vmatpush1.bf16.msra.mxu1 %v8518_v45 }
 0x36d   : > { %5956 = vmatpush1.bf16.msra.mxu0 %v8521_v63  ;;  %5916 = vmatprep.subr.bf16.mxu1 %v8526_v1 }
 0x36e   : > { %5957 = vmatprep.subr.bf16.mxu0 %v8529_v3 }
 0x370   : > { %5917 = vmatpush1.bf16.msra.mxu1 %v8524_v5 }
 0x371   : > { %5958 = vmatpush1.bf16.msra.mxu0 %v8527_v34  ;;  %5918 = vmatprep.subr.bf16.mxu1 %v8532_v30 }
 0x372   : > { %5959 = vmatprep.subr.bf16.mxu0 %v8535_v6 }
 0x374   : > { %5919 = vmatpush1.bf16.msra.mxu1 %v8530_v46 }
 0x375   : > { %5960 = vmatpush1.bf16.msra.mxu0 %v8533_v33  ;;  %5970 = vmatprep.subr.bf16.mxu1 %v8538_v10 }
 0x377   : > { %5921 = vmatmul.mubr.bf16.vlgmr.msra.gmra.mrb[40].mxu1 %v11004_v12 }
 0x378   : > { %5962 = vmatmul.mubr.bf16.vlgmr.msra.gmra.mrb[44].mxu0 %v10800_v57  ;;  %5971 = vmatpush1.bf16.msra.mxu1 %v8536_v11  ;;  %v8547_v57 = vld [vmem:[%s11129_s3 + $0xa6c] ss:$16 sps:$4 sm:$0xff]  }
 0x379   : > { %6002 = vmatprep.mubr.bf16.mxu1 %v10806_v60  ;;  %5972 = vmatprep.subr.bf16.mxu1 %v8541_v58  ;;  %v8545_v60 = vld [vmem:[%s11129_s3 + $0xa68] ss:$16 sps:$4 sm:$0xff]  }
 0x37c   : > { %5973 = vmatpush1.bf16.msra.mxu1 %v8539_v59 }
 0x37d   : > { %5974 = vmatprep.subr.bf16.mxu1 %v8544_v13 }
 0x380   : > { %5975 = vmatpush1.bf16.msra.mxu1 %v8542_v17 }
 0x381   : > { %5976 = vmatprep.subr.bf16.mxu1 %v8547_v57 }
 0x384   : > { %5977 = vmatpush1.bf16.msra.mxu1 %v8545_v60  ;;  %v6015_v60 = vld [vmem:[%s11130_s4] sm:$0xf] }
 0x385   : > { %5978 = vmatprep.subr.bf16.mxu1 %v8550_v19 }
 0x388   : > { %5979 = vmatpush1.bf16.msra.mxu1 %v8548_v29  ;;  %v6041_v29 = vld [vmem:[%s8773_s17] sm:$0x1e] }
 0x389   : > { %5980 = vmatprep.subr.bf16.mxu1 %v8553_v23 }
 0x38a   : > { %v4247_v9 = vpop.f32.mrb[28].mxu1  ;;  %v4928_v24 = vpop.f32.mrb[32].mxu0 }
 0x38b   : > { %v4248_v0 = vadd.f32 %v4247_v9, %v10871_v15  ;;  %v4929_v2 = vadd.f32 %v4928_v24, %v10877_v22  ;;  %v4249_v25 = vpop.f32.mrb[29].mxu1  ;;  %v4930_v14 = vpop.f32.mrb[33].mxu0  ;;  %v8559_v15 = vld [vmem:[%s11129_s3 + $0xaec] ss:$16 sps:$4 sm:$0xff]   ;;  %v8557_v22 = vld [vmem:[%s11129_s3 + $0xae8] ss:$16 sps:$4 sm:$0xff]  }
 0x38c   : > { %v4250_v42 = vadd.f32 %v4249_v25, %v10879_v35  ;;  %v4931_v43 = vadd.f32 %v4930_v14, %v10882_v21  ;;  %v4251_v18 = vpop.f32.mrb[30].mxu1  ;;  %v4932_v44 = vpop.f32.mrb[34].mxu0  ;;  %5981 = vmatpush1.bf16.msra.mxu1 %v8551_v28  ;;  %v8562_v35 = vld [vmem:[%s11129_s3 + $0xb0c] ss:$16 sps:$4 sm:$0xff]   ;;  %v8560_v21 = vld [vmem:[%s11129_s3 + $0xb08] ss:$16 sps:$4 sm:$0xff]   ;;  %v6020_v28 = vrot.slane %v6015_v60, %v3099_v39 }
 0x38d   : > { %v4252_v47 = vpop.f32.mrb[31].mxu1  ;;  %v4933_v48 = vpop.f32.mrb[35].mxu0  ;;  %5982 = vmatprep.subr.bf16.mxu1 %v8556_v4  ;;  %v6042_v24 = vld [vmem:[%s8773_s17 + $0x8] sm:$0x1e] }
 0x38e   : > { %v6050_v47 = vrot.slane %v6042_v24, 1 }
 0x390   : > { %5983 = vmatpush1.bf16.msra.mxu1 %v8554_v36 }
 0x391   : > { %5984 = vmatprep.subr.bf16.mxu1 %v8559_v15 }
 0x394   : > { %5985 = vmatpush1.bf16.msra.mxu1 %v8557_v22 }
 0x395   : > { %5986 = vmatprep.subr.bf16.mxu1 %v8562_v35 }
 0x398   : > { %5987 = vmatpush1.bf16.msra.mxu1 %v8560_v21 }
 0x399   : > { %5988 = vmatprep.subr.bf16.mxu1 %v8565_v37 }
 0x39c   : > { %5989 = vmatpush1.bf16.msra.mxu1 %v8563_v49 }
 0x39d   : > { %5990 = vmatprep.subr.bf16.mxu1 %v8568_v50  ;;  %v6043_v50 = vld [vmem:[%s8773_s17 + $0x10] sm:$0x1e] }
 0x3a0   : > { %5991 = vmatpush1.bf16.msra.mxu1 %v8566_v26 }
 0x3a1   : > { %5992 = vmatprep.subr.bf16.mxu1 %v8571_v32  ;;  %v6028_v32 = vrot.slane %v6015_v60, %v3107_v27 }
 0x3a4   : > { %5993 = vmatpush1.bf16.msra.mxu1 %v8569_v51 }
 0x3a5   : > { %5994 = vmatprep.subr.bf16.mxu1 %v8574_v52  ;;  %v6044_v52 = vld [vmem:[%s8773_s17 + $0x18] sm:$0x1e] }
 0x3a8   : > { %5995 = vmatpush1.bf16.msra.mxu1 %v8572_v40 }
 0x3a9   : > { %5996 = vmatprep.subr.bf16.mxu1 %v8577_v53  ;;  %v6032_v53 = vrot.slane %v6015_v60, %v3111_v31 }
 0x3ac   : > { %5997 = vmatpush1.bf16.msra.mxu1 %v8575_v54 }
 0x3ad   : > { %5998 = vmatprep.subr.bf16.mxu1 %v8580_v16 }
 0x3b0   : > { %5999 = vmatpush1.bf16.msra.mxu1 %v8578_v55  ;;  %v6051_v55 = vrot.slane %v6043_v50, 1 }
 0x3b1   : > { %6000 = vmatprep.subr.bf16.mxu1 %v8583_v56 }
 0x3b4   : > { %6001 = vmatpush1.bf16.msra.mxu1 %v8581_v20 }
 0x3b7   : > { %6003 = vmatmul.mubr.bf16.vlgmr.msra.gmra.mrb[44].mxu1 %v11004_v12 }
 0x3ca   : > { %v4969_v61 = vpop.f32.mrb[32].mxu1 }
 0x3cb   : > { %v4970_v62 = vadd.f32 %v4969_v61, %v4929_v2  ;;  %v5010_v45 = vpop.f32.mrb[36].mxu0  ;;  %v4971_v63 = vpop.f32.mrb[33].mxu1  ;;  %v6024_v2 = vrot.slane %v6015_v60, %v3103_v41  ;;  %v6052_v61 = vrot.slane %v6044_v52, 1 }
 0x3cc   : > { %v5011_v1 = vadd.f32 %v5010_v45, %v4248_v0  ;;  %v4972_v3 = vadd.f32 %v4971_v63, %v4931_v43  ;;  %v5012_v5 = vpop.f32.mrb[37].mxu0  ;;  %v4973_v34 = vpop.f32.mrb[34].mxu1  ;;  %v6049_v43 = vrot.slane %v6041_v29, 1 }
 0x3cd   : > { %v5013_v30 = vadd.f32 %v5012_v5, %v4250_v42  ;;  %v5014_v6 = vpop.f32.mrb[38].mxu0  ;;  %v4974_v7 = vpop.f32.mrb[35].mxu1 }
 0x3ce   : > { %v5015_v46 = vpop.f32.mrb[39].mxu0 }
 0x40a   : > { %v5051_v33 = vpop.f32.mrb[36].mxu1 }
 0x40b   : > { %v5052_v8 = vadd.f32 %v5051_v33, %v5011_v1  ;;  %v5881_v10 = vpop.f32.mrb[40].mxu0  ;;  %v5053_v11 = vpop.f32.mrb[37].mxu1 }
 0x40c   : > { %v5054_v58 = vadd.f32 %v5053_v11, %v5013_v30  ;;  %v5883_v12 = vpop.f32.mrb[41].mxu0  ;;  %v5055_v59 = vpop.f32.mrb[38].mxu1 }
 0x40d   : > { %v5885_v13 = vpop.f32.mrb[42].mxu0  ;;  %v5056_v17 = vpop.f32.mrb[39].mxu1 }
 0x40e   : > { %v5886_v57 = vpop.f32.mrb[43].mxu0 }
 0x44a   : > { %v5922_v19 = vpop.f32.mrb[40].mxu1 }
 0x44b   : > { %v5923_v23 = vadd.f32 %v5922_v19, %v5881_v10  ;;  %v5963_v4 = vpop.f32.mrb[44].mxu0  ;;  %v5924_v9 = vpop.f32.mrb[41].mxu1 }
 0x44c   : > { %v5925_v0 = vadd.f32 %v5924_v9, %v5883_v12  ;;  %v5965_v25 = vpop.f32.mrb[45].mxu0  ;;  %v5926_v14 = vpop.f32.mrb[42].mxu1 }
 0x44d   : > { %v6011_v42 = vadd.f32 %v5923_v23, %v4970_v62  ;;  %v5967_v18 = vpop.f32.mrb[46].mxu0  ;;  %v5927_v44 = vpop.f32.mrb[43].mxu1 }
 0x44e   : > { %v6012_v36 = vadd.f32 %v5925_v0, %v4972_v3  ;;  %v5968_v48 = vpop.f32.mrb[47].mxu0 }
 0x44f   : > { %v6037_v39 = vadd.f32 %v6020_v28, %v6011_v42 }
 0x450   : > { %v6038_v15 = vadd.f32 %v6024_v2, %v6012_v36 }
 0x451   : > { %v6057_v22 = vadd.f32 %v6049_v43, %v6037_v39 }
 0x452   : > { %v6058_v35 = vadd.f32 %v6050_v47, %v6038_v15 }
 0x453   : > { %v6061_v21 = vmax.f32 %v6057_v22, 0.0 }
 0x454   : > { %v6062_v37 = vmax.f32 %v6058_v35, 0.0 }
 0x456   : > { %v6069_v41 = vcombine.low %v6061_v21, %v6062_v37 }
 0x458   : > { %6073 = vst [vmem:[%s224_s23] sm:$0xff] %v6069_v41 }
 0x48a   : > { %v6004_v49 = vpop.f32.mrb[44].mxu1 }
 0x48b   : > { %v6005_v26 = vadd.f32 %v6004_v49, %v5963_v4  ;;  %v6006_v51 = vpop.f32.mrb[45].mxu1 }
 0x48c   : > { %v6007_v40 = vadd.f32 %v6006_v51, %v5965_v25  ;;  %v6008_v54 = vpop.f32.mrb[46].mxu1 }
 0x48d   : > { %v6013_v16 = vadd.f32 %v6005_v26, %v5052_v8  ;;  %v6009_v56 = vpop.f32.mrb[47].mxu1 }
 0x48e   : > { %v6014_v20 = vadd.f32 %v6007_v40, %v5054_v58 }
 0x48f   : > { %v6039_v62 = vadd.f32 %v6028_v32, %v6013_v16 }
 0x490   : > { %v6040_v45 = vadd.f32 %v6032_v53, %v6014_v20 }
 0x491   : > { %v6059_v63 = vadd.f32 %v6051_v55, %v6039_v62 }
 0x492   : > { %v6060_v1 = vadd.f32 %v6052_v61, %v6040_v45 }
 0x493   : > { %v6063_v3 = vmax.f32 %v6059_v63, 0.0 }
 0x494   : > { %v6064_v5 = vmax.f32 %v6060_v1, 0.0 }
 0x496   : > { %v6070_v34 = vcombine.low %v6063_v3, %v6064_v5 }
 0x498   : > { %6074 = vst [vmem:[%s224_s23 + $0x8] sm:$0xff] %v6070_v34 }
 0x499 PF: > { %s15_s18 = sadd.s32 1, %s8590_s18  }
 0x49a   : > { %p12_p4 = scmp.ge.s32.totalorder %s15_s18, 4  }
 0x49c   :  { %14 = sbr.rel (!%p12_p4) target bundleno = 1 (0x1), region = 74 }

</bundles_post_ra>
